<compile_context>
chip_gen: v5e
topology: v5e:2x2
jax: 0.10.0
libtpu: 0.0.40
codegen_flags: <defaults>
</compile_context>

<pallas_src>
import functools

import jax
import jax.numpy as jnp
from jax.experimental import pallas as pl
from jax.experimental.pallas import tpu as pltpu

_HID = 750                 # torch hidden width
_HPAD = 768                # padded hidden width (6 * 128 lanes)
_PACK = 32                 # lane block for small vectors (sa, z, mean, std, u)
_X_LANES = 2 * _PACK       # packed input lanes
_HEAD_LANES = 2 * _PACK    # head / d3 output lanes
_OUT_LANES = 4 * _PACK     # packed output lanes


def _round_up(x, m):
    return ((x + m - 1) // m) * m


def _vae_kernel(x_ref, w1_ref, wq_ref, wh_ref, bs_ref, out_ref,
                *, latent_dim, max_action):
    f32, bf16 = jnp.float32, jnp.bfloat16
    ld = latent_dim

    x = x_ref[...]                               # [TB, 64] f32
    sa = x[:, 0:_PACK].astype(bf16)              # [TB, 32] cat(state, action), 0-padded
    noise = x[:, _PACK:2 * _PACK]                # [TB, 32] noise, 0-padded
    bias = bs_ref[...]                           # [8, 768] f32 (rows 6/7 = dequant scales)

    # ---- fused first layer: e1 (lanes 0:768) | d1_state (lanes 768:1536) ----
    pre1 = jnp.dot(sa, w1_ref[0:_PACK, :], preferred_element_type=f32)  # [TB, 1536]
    h = jnp.maximum(pre1[:, :_HPAD] + bias[0:1, :], 0.0)
    d1s_pre = pre1[:, _HPAD:]

    # ---- e2: int8 weight; exact int->bf16 dequant on the VPU, per-column scale
    #      folded into one VPU multiply after the f32-accumulated MXU dot ----
    w_e2 = wq_ref[0].astype(jnp.int32).astype(f32).astype(bf16)
    h = (jnp.dot(h.astype(bf16), w_e2, preferred_element_type=f32)
         * bias[6:7, :] + bias[1:2, :])
    h = jnp.maximum(h, 0.0)

    # ---- fused mean / log_std head: mean -> lanes [0:ld), log_std -> [32:32+ld) ----
    head = (jnp.dot(h.astype(bf16), wh_ref[0], preferred_element_type=f32)
            + bias[4:5, 0:_HEAD_LANES])                       # [TB, 64]
    mean_blk = head[:, 0:_PACK]                               # pad lanes are exactly 0
    std_blk = jnp.exp(jnp.clip(head[:, _PACK:2 * _PACK], -4.0, 15.0))  # pad lanes -> 1
    z_blk = (mean_blk + std_blk * noise).astype(bf16)         # [TB, 32], pad lanes 0

    # ---- decoder d1 = state part (from the fused first matmul) + z part ----
    d1z_pre = jnp.dot(z_blk, w1_ref[_PACK:2 * _PACK, _HPAD:],
                      preferred_element_type=f32)
    a = jnp.maximum(d1s_pre + d1z_pre + bias[2:3, :], 0.0)

    # ---- d2: int8 weight (same dequant scheme) ----
    w_d2 = wq_ref[1].astype(jnp.int32).astype(f32).astype(bf16)
    a = (jnp.dot(a.astype(bf16), w_d2, preferred_element_type=f32)
         * bias[7:8, :] + bias[3:4, :])
    a = jnp.maximum(a, 0.0)

    # ---- d3 + tanh ----
    d3 = (jnp.dot(a.astype(bf16), wh_ref[1], preferred_element_type=f32)
          + bias[5:6, 0:_HEAD_LANES])                         # [TB, 64]
    u = max_action * jnp.tanh(d3)                             # pad lanes stay 0

    # ---- single lane-dense [TB, 128] output slab -> one output DMA per tile ----
    out_ref[:, 0:2 * _PACK] = u
    out_ref[:, 2 * _PACK:3 * _PACK] = mean_blk
    out_ref[:, 3 * _PACK:4 * _PACK] = std_blk


def init_params(key, state_dim, action_dim, latent_dim, hidden=_HID):
    """Synthetic PyTorch-Linear-like params, stored transposed [in, out], f32."""
    def linear(key, fan_in, fan_out):
        kw, kb = jax.random.split(key)
        bound = 1.0 / jnp.sqrt(fan_in)
        w = jax.random.uniform(kw, (fan_in, fan_out), jnp.float32, -bound, bound)
        b = jax.random.uniform(kb, (1, fan_out), jnp.float32, -bound, bound)
        return w, b

    keys = jax.random.split(key, 7)
    p = {}
    p["w_e1"], p["b_e1"] = linear(keys[0], state_dim + action_dim, hidden)
    p["w_e2"], p["b_e2"] = linear(keys[1], hidden, hidden)
    p["w_mu"], p["b_mu"] = linear(keys[2], hidden, latent_dim)
    p["w_ls"], p["b_ls"] = linear(keys[3], hidden, latent_dim)
    p["w_d1"], p["b_d1"] = linear(keys[4], state_dim + latent_dim, hidden)
    p["w_d2"], p["b_d2"] = linear(keys[5], hidden, hidden)
    p["w_d3"], p["b_d3"] = linear(keys[6], hidden, action_dim)
    return p


def _quantize_per_col(w):
    """Symmetric per-output-column int8 quantization (exact for zero columns)."""
    amax = jnp.max(jnp.abs(w), axis=0)
    scale = jnp.maximum(amax, 1e-8) / 127.0
    q = jnp.clip(jnp.round(w / scale), -127.0, 127.0).astype(jnp.int8)
    return q, scale.astype(jnp.float32)


def prepare_kernel_params(p, state_dim, action_dim, latent_dim, hpad=_HPAD):
    """Pack / pad / quantize the params into the 4 consolidated kernel operands."""
    assert state_dim + action_dim <= _PACK
    assert 2 * latent_dim <= _PACK + latent_dim <= 2 * _PACK
    assert latent_dim <= _PACK and action_dim <= _PACK
    bf16 = jnp.bfloat16
    hidden = p["w_e2"].shape[0]

    def pad_to(a, rows, cols):
        return jnp.pad(a, ((0, rows - a.shape[0]), (0, cols - a.shape[1])))

    # w1 [64, 1536]: rows 0:32 = [e1 | d1_state], rows 32:64 = [0 | d1_z]
    w_e1 = pad_to(p["w_e1"], _PACK, hpad)
    w_d1s = pad_to(p["w_d1"][:state_dim, :], _PACK, hpad)
    w_d1z = pad_to(p["w_d1"][state_dim:, :], _PACK, hpad)
    w1 = jnp.concatenate(
        [jnp.concatenate([w_e1, w_d1s], axis=1),
         jnp.concatenate([jnp.zeros_like(w_e1), w_d1z], axis=1)],
        axis=0).astype(bf16)

    # wq int8 [2, 768, 768] + per-output-column dequant scales
    q_e2, s_e2 = _quantize_per_col(pad_to(p["w_e2"], hpad, hpad))
    q_d2, s_d2 = _quantize_per_col(pad_to(p["w_d2"], hpad, hpad))
    wq = jnp.stack([q_e2, q_d2], axis=0)

    # wh [2, 768, 64]: [0] = mean (lanes 0:ld) | log_std (lanes 32:32+ld), [1] = d3
    w_head = jnp.zeros((hpad, _HEAD_LANES), jnp.float32)
    w_head = w_head.at[:hidden, :latent_dim].set(p["w_mu"])
    w_head = w_head.at[:hidden, _PACK:_PACK + latent_dim].set(p["w_ls"])
    w_d3 = jnp.zeros((hpad, _HEAD_LANES), jnp.float32)
    w_d3 = w_d3.at[:hidden, :action_dim].set(p["w_d3"])
    wh = jnp.stack([w_head, w_d3], axis=0).astype(bf16)

    # bias / scale slab [8, 768] f32
    def row(b):
        return jnp.pad(b[0], (0, hpad - b.shape[1]))

    b_head = jnp.zeros((hpad,), jnp.float32)
    b_head = b_head.at[:latent_dim].set(p["b_mu"][0])
    b_head = b_head.at[_PACK:_PACK + latent_dim].set(p["b_ls"][0])
    b_d3 = jnp.zeros((hpad,), jnp.float32).at[:action_dim].set(p["b_d3"][0])
    bias_scale = jnp.stack(
        [row(p["b_e1"]), row(p["b_e2"]), row(p["b_d1"]), row(p["b_d2"]),
         b_head, b_d3, s_e2, s_d2], axis=0)

    return {"w1": w1, "wq": wq, "wh": wh, "bias_scale": bias_scale}


def vae_forward(state, action, noise, kparams, max_action):
    """Pallas implementation of VAE.forward(state, action) -> (u, mean, std)."""
    batch, state_dim = state.shape
    action_dim = action.shape[1]
    latent_dim = noise.shape[1]

    tile_b = min(128, _round_up(max(batch, 1), 8))
    b_pad = _round_up(batch, tile_b)
    n_tiles = b_pad // tile_b

    # Pack state/action/noise into one lane-dense [B_pad, 64] input slab.
    sa = jnp.concatenate([state, action], axis=1)
    x = jnp.zeros((b_pad, _X_LANES), jnp.float32)
    x = x.at[:batch, :state_dim + action_dim].set(sa)
    x = x.at[:batch, _PACK:_PACK + latent_dim].set(noise)

    kernel = functools.partial(
        _vae_kernel, latent_dim=latent_dim, max_action=float(max_action))

    out = pl.pallas_call(
        kernel,
        out_shape=jax.ShapeDtypeStruct((b_pad, _OUT_LANES), jnp.float32),
        grid=(n_tiles,),
        in_specs=[
            pl.BlockSpec((tile_b, _X_LANES), lambda i: (i, 0)),        # activations
            pl.BlockSpec((2 * _PACK, 2 * _HPAD), lambda i: (0, 0)),    # w1 (resident)
            pl.BlockSpec((2, _HPAD, _HPAD), lambda i: (0, 0, 0)),      # wq (resident)
            pl.BlockSpec((2, _HPAD, _HEAD_LANES), lambda i: (0, 0, 0)),# wh (resident)
            pl.BlockSpec((8, _HPAD), lambda i: (0, 0)),                # biases/scales
        ],
        out_specs=pl.BlockSpec((tile_b, _OUT_LANES), lambda i: (i, 0)),
        compiler_params=pltpu.CompilerParams(
            dimension_semantics=("arbitrary",),   # keep weights on one TC, resident
            vmem_limit_bytes=32 << 20),
    )(x, kparams["w1"], kparams["wq"], kparams["wh"], kparams["bias_scale"])

    u = out[:batch, :action_dim]
    mean = out[:batch, 2 * _PACK:2 * _PACK + latent_dim]
    std = out[:batch, 3 * _PACK:3 * _PACK + latent_dim]
    return u, mean, std


def vae_forward_ref(state, action, noise, params, max_action):
    """Pure-JAX reference with the same bf16-weight / f32-accumulate math and
    the same int8 quantization of w_e2 / w_d2 as the kernel."""
    bf16, f32 = jnp.bfloat16, jnp.float32

    def lin(x, w, b):
        return jnp.dot(x.astype(bf16), w.astype(bf16),
                       preferred_element_type=f32) + b

    def lin_q(x, w, b):
        q, s = _quantize_per_col(w)
        return jnp.dot(x.astype(bf16), q.astype(bf16),
                       preferred_element_type=f32) * s + b

    sa = jnp.concatenate([state, action], 1)
    h = jnp.maximum(lin(sa, params["w_e1"], params["b_e1"]), 0.0)
    h = jnp.maximum(lin_q(h, params["w_e2"], params["b_e2"]), 0.0)
    mean = lin(h, params["w_mu"], params["b_mu"])
    log_std = jnp.clip(lin(h, params["w_ls"], params["b_ls"]), -4.0, 15.0)
    std = jnp.exp(log_std)
    z = mean + std * noise
    sz = jnp.concatenate([state, z], 1)
    a = jnp.maximum(lin(sz, params["w_d1"], params["b_d1"]), 0.0)
    a = jnp.maximum(lin_q(a, params["w_d2"], params["b_d2"]), 0.0)
    u = max_action * jnp.tanh(lin(a, params["w_d3"], params["b_d3"]))
    return u, mean, std


if __name__ == "__main__":
    key = jax.random.PRNGKey(0)
    k_param, k_state, k_action, k_noise = jax.random.split(key, 4)

    batch = 8
    state_dim = 17
    action_dim = 6
    latent_dim = 2 * action_dim   # BCQ convention
    max_action = 1.0

    params = init_params(k_param, state_dim, action_dim, latent_dim)
    kparams = prepare_kernel_params(params, state_dim, action_dim, latent_dim)

    state = jax.random.normal(k_state, (batch, state_dim), jnp.float32)
    action = jax.random.normal(k_action, (batch, action_dim), jnp.float32)
    # torch.randn_like(std) equivalent, generated deterministically outside.
    noise = jax.random.normal(k_noise, (batch, latent_dim), jnp.float32)

    u, mean, std = vae_forward(state, action, noise, kparams, max_action)
    jax.block_until_ready((u, mean, std))

    u_r, mean_r, std_r = vae_forward_ref(state, action, noise, params, max_action)
    assert jnp.allclose(u, u_r, atol=2e-3, rtol=2e-3), float(jnp.max(jnp.abs(u - u_r)))
    assert jnp.allclose(mean, mean_r, atol=2e-3, rtol=2e-3), float(jnp.max(jnp.abs(mean - mean_r)))
    assert jnp.allclose(std, std_r, atol=2e-3, rtol=2e-3), float(jnp.max(jnp.abs(std - std_r)))

    print("KERNEL_OK")
</pallas_src>

<mosaic_0001>
module attributes {stable_mosaic.version = 11 : i64} {
  func.func @_vae_kernel(%arg0: i32, %arg1: memref<8x64xf32, #tpu.memory_space<vmem>>, %arg2: memref<64x1536xbf16, #tpu.memory_space<vmem>>, %arg3: memref<2x768x768xi8, #tpu.memory_space<vmem>>, %arg4: memref<2x768x64xbf16, #tpu.memory_space<vmem>>, %arg5: memref<8x768xf32, #tpu.memory_space<vmem>>, %arg6: memref<8x128xf32, #tpu.memory_space<vmem>>) attributes {dimension_semantics = [#tpu.dimension_semantics<arbitrary>], iteration_bounds = array<i64: 1>, scalar_prefetch = 0 : i64, scratch_operands = 0 : i64, tpu.core_type = #tpu.core_type<tc>, window_params = [{transform_indices = @transform_0, window_bounds = array<i64: 8, 64>}, {pipeline_mode = #tpu.pipeline_mode<synchronous>, transform_indices = @transform_1, window_bounds = array<i64: 64, 1536>}, {pipeline_mode = #tpu.pipeline_mode<synchronous>, transform_indices = @transform_2, window_bounds = array<i64: 2, 768, 768>}, {pipeline_mode = #tpu.pipeline_mode<synchronous>, transform_indices = @transform_3, window_bounds = array<i64: 2, 768, 64>}, {pipeline_mode = #tpu.pipeline_mode<synchronous>, transform_indices = @transform_4, window_bounds = array<i64: 8, 768>}, {transform_indices = @transform_5, window_bounds = array<i64: 8, 128>}]} {
    %c0 = arith.constant 0 : index
    %c0_0 = arith.constant 0 : index
    %0 = vector.load %arg1[%c0, %c0_0] : memref<8x64xf32, #tpu.memory_space<vmem>>, vector<8x64xf32>
    %1 = vector.extract_strided_slice %0 {offsets = [0, 0], sizes = [8, 32], strides = [1, 1]} : vector<8x64xf32> to vector<8x32xf32>
    %2 = arith.truncf %1 : vector<8x32xf32> to vector<8x32xbf16>
    %3 = vector.extract_strided_slice %0 {offsets = [0, 32], sizes = [8, 32], strides = [1, 1]} : vector<8x64xf32> to vector<8x32xf32>
    %c0_1 = arith.constant 0 : index
    %c0_2 = arith.constant 0 : index
    %4 = vector.load %arg5[%c0_1, %c0_2] : memref<8x768xf32, #tpu.memory_space<vmem>>, vector<8x768xf32>
    %c0_3 = arith.constant 0 : index
    %c0_4 = arith.constant 0 : index
    %5 = vector.load %arg2[%c0_3, %c0_4] : memref<64x1536xbf16, #tpu.memory_space<vmem>>, vector<32x1536xbf16>
    %cst = arith.constant dense<0.000000e+00> : vector<8x1536xf32>
    %6 = tpu.matmul %2, %5, %cst {dimension_numbers = #tpu.dot_dimension_numbers<[1], [0], [0], [1], [0, 0, 1, 1], [], []>} : vector<8x32xbf16>, vector<32x1536xbf16>, vector<8x1536xf32> -> vector<8x1536xf32>
    %7 = vector.extract_strided_slice %6 {offsets = [0, 0], sizes = [8, 768], strides = [1, 1]} : vector<8x1536xf32> to vector<8x768xf32>
    %8 = vector.extract_strided_slice %4 {offsets = [0, 0], sizes = [1, 768], strides = [1, 1]} : vector<8x768xf32> to vector<1x768xf32>
    %9 = vector.broadcast %8 : vector<1x768xf32> to vector<8x768xf32>
    %10 = arith.addf %7, %9 : vector<8x768xf32>
    %cst_5 = arith.constant 0.000000e+00 : f32
    %11 = vector.broadcast %cst_5 : f32 to vector<8x768xf32>
    %12 = arith.maximumf %10, %11 : vector<8x768xf32>
    %13 = vector.extract_strided_slice %6 {offsets = [0, 768], sizes = [8, 768], strides = [1, 1]} : vector<8x1536xf32> to vector<8x768xf32>
    %c0_6 = arith.constant 0 : index
    %c0_7 = arith.constant 0 : index
    %c0_8 = arith.constant 0 : index
    %14 = vector.load %arg3[%c0_6, %c0_7, %c0_8] : memref<2x768x768xi8, #tpu.memory_space<vmem>>, vector<1x768x768xi8>
    %15 = vector.shape_cast %14 : vector<1x768x768xi8> to vector<768x768xi8>
    %16 = arith.extsi %15 : vector<768x768xi8> to vector<768x768xi32>
    %17 = arith.sitofp %16 : vector<768x768xi32> to vector<768x768xf32>
    %18 = arith.truncf %17 : vector<768x768xf32> to vector<768x768xbf16>
    %19 = arith.truncf %12 : vector<8x768xf32> to vector<8x768xbf16>
    %cst_9 = arith.constant dense<0.000000e+00> : vector<8x768xf32>
    %20 = tpu.matmul %19, %18, %cst_9 {dimension_numbers = #tpu.dot_dimension_numbers<[1], [0], [0], [1], [0, 0, 1, 1], [], []>} : vector<8x768xbf16>, vector<768x768xbf16>, vector<8x768xf32> -> vector<8x768xf32>
    %21 = vector.extract_strided_slice %4 {offsets = [6, 0], sizes = [1, 768], strides = [1, 1]} : vector<8x768xf32> to vector<1x768xf32>
    %22 = vector.broadcast %21 : vector<1x768xf32> to vector<8x768xf32>
    %23 = arith.mulf %20, %22 : vector<8x768xf32>
    %24 = vector.extract_strided_slice %4 {offsets = [1, 0], sizes = [1, 768], strides = [1, 1]} : vector<8x768xf32> to vector<1x768xf32>
    %25 = vector.broadcast %24 : vector<1x768xf32> to vector<8x768xf32>
    %26 = arith.addf %23, %25 : vector<8x768xf32>
    %cst_10 = arith.constant 0.000000e+00 : f32
    %27 = vector.broadcast %cst_10 : f32 to vector<8x768xf32>
    %28 = arith.maximumf %26, %27 : vector<8x768xf32>
    %29 = arith.truncf %28 : vector<8x768xf32> to vector<8x768xbf16>
    %c0_11 = arith.constant 0 : index
    %c0_12 = arith.constant 0 : index
    %c0_13 = arith.constant 0 : index
    %30 = vector.load %arg4[%c0_11, %c0_12, %c0_13] : memref<2x768x64xbf16, #tpu.memory_space<vmem>>, vector<1x768x64xbf16>
    %31 = vector.shape_cast %30 : vector<1x768x64xbf16> to vector<768x64xbf16>
    %cst_14 = arith.constant dense<0.000000e+00> : vector<8x64xf32>
    %32 = tpu.matmul %29, %31, %cst_14 {dimension_numbers = #tpu.dot_dimension_numbers<[1], [0], [0], [1], [0, 0, 1, 1], [], []>} : vector<8x768xbf16>, vector<768x64xbf16>, vector<8x64xf32> -> vector<8x64xf32>
    %33 = vector.extract_strided_slice %4 {offsets = [4, 0], sizes = [1, 64], strides = [1, 1]} : vector<8x768xf32> to vector<1x64xf32>
    %34 = vector.broadcast %33 : vector<1x64xf32> to vector<8x64xf32>
    %35 = arith.addf %32, %34 : vector<8x64xf32>
    %36 = vector.extract_strided_slice %35 {offsets = [0, 0], sizes = [8, 32], strides = [1, 1]} : vector<8x64xf32> to vector<8x32xf32>
    %37 = vector.extract_strided_slice %35 {offsets = [0, 32], sizes = [8, 32], strides = [1, 1]} : vector<8x64xf32> to vector<8x32xf32>
    %cst_15 = arith.constant -4.000000e+00 : f32
    %cst_16 = arith.constant 1.500000e+01 : f32
    %38 = vector.broadcast %cst_15 : f32 to vector<8x32xf32>
    %39 = arith.maximumf %38, %37 : vector<8x32xf32>
    %40 = vector.broadcast %cst_16 : f32 to vector<8x32xf32>
    %41 = arith.minimumf %40, %39 : vector<8x32xf32>
    %42 = math.exp %41 : vector<8x32xf32>
    %43 = arith.mulf %42, %3 : vector<8x32xf32>
    %44 = arith.addf %36, %43 : vector<8x32xf32>
    %45 = arith.truncf %44 : vector<8x32xf32> to vector<8x32xbf16>
    %c32 = arith.constant 32 : index
    %c768 = arith.constant 768 : index
    %46 = vector.load %arg2[%c32, %c768] : memref<64x1536xbf16, #tpu.memory_space<vmem>>, vector<32x768xbf16>
    %cst_17 = arith.constant dense<0.000000e+00> : vector<8x768xf32>
    %47 = tpu.matmul %45, %46, %cst_17 {dimension_numbers = #tpu.dot_dimension_numbers<[1], [0], [0], [1], [0, 0, 1, 1], [], []>} : vector<8x32xbf16>, vector<32x768xbf16>, vector<8x768xf32> -> vector<8x768xf32>
    %48 = arith.addf %13, %47 : vector<8x768xf32>
    %49 = vector.extract_strided_slice %4 {offsets = [2, 0], sizes = [1, 768], strides = [1, 1]} : vector<8x768xf32> to vector<1x768xf32>
    %50 = vector.broadcast %49 : vector<1x768xf32> to vector<8x768xf32>
    %51 = arith.addf %48, %50 : vector<8x768xf32>
    %cst_18 = arith.constant 0.000000e+00 : f32
    %52 = vector.broadcast %cst_18 : f32 to vector<8x768xf32>
    %53 = arith.maximumf %51, %52 : vector<8x768xf32>
    %c1 = arith.constant 1 : index
    %c0_19 = arith.constant 0 : index
    %c0_20 = arith.constant 0 : index
    %54 = vector.load %arg3[%c1, %c0_19, %c0_20] : memref<2x768x768xi8, #tpu.memory_space<vmem>>, vector<1x768x768xi8>
    %55 = vector.shape_cast %54 : vector<1x768x768xi8> to vector<768x768xi8>
    %56 = arith.extsi %55 : vector<768x768xi8> to vector<768x768xi32>
    %57 = arith.sitofp %56 : vector<768x768xi32> to vector<768x768xf32>
    %58 = arith.truncf %57 : vector<768x768xf32> to vector<768x768xbf16>
    %59 = arith.truncf %53 : vector<8x768xf32> to vector<8x768xbf16>
    %cst_21 = arith.constant dense<0.000000e+00> : vector<8x768xf32>
    %60 = tpu.matmul %59, %58, %cst_21 {dimension_numbers = #tpu.dot_dimension_numbers<[1], [0], [0], [1], [0, 0, 1, 1], [], []>} : vector<8x768xbf16>, vector<768x768xbf16>, vector<8x768xf32> -> vector<8x768xf32>
    %61 = vector.extract_strided_slice %4 {offsets = [7, 0], sizes = [1, 768], strides = [1, 1]} : vector<8x768xf32> to vector<1x768xf32>
    %62 = vector.broadcast %61 : vector<1x768xf32> to vector<8x768xf32>
    %63 = arith.mulf %60, %62 : vector<8x768xf32>
    %64 = vector.extract_strided_slice %4 {offsets = [3, 0], sizes = [1, 768], strides = [1, 1]} : vector<8x768xf32> to vector<1x768xf32>
    %65 = vector.broadcast %64 : vector<1x768xf32> to vector<8x768xf32>
    %66 = arith.addf %63, %65 : vector<8x768xf32>
    %cst_22 = arith.constant 0.000000e+00 : f32
    %67 = vector.broadcast %cst_22 : f32 to vector<8x768xf32>
    %68 = arith.maximumf %66, %67 : vector<8x768xf32>
    %69 = arith.truncf %68 : vector<8x768xf32> to vector<8x768xbf16>
    %c1_23 = arith.constant 1 : index
    %c0_24 = arith.constant 0 : index
    %c0_25 = arith.constant 0 : index
    %70 = vector.load %arg4[%c1_23, %c0_24, %c0_25] : memref<2x768x64xbf16, #tpu.memory_space<vmem>>, vector<1x768x64xbf16>
    %71 = vector.shape_cast %70 : vector<1x768x64xbf16> to vector<768x64xbf16>
    %cst_26 = arith.constant dense<0.000000e+00> : vector<8x64xf32>
    %72 = tpu.matmul %69, %71, %cst_26 {dimension_numbers = #tpu.dot_dimension_numbers<[1], [0], [0], [1], [0, 0, 1, 1], [], []>} : vector<8x768xbf16>, vector<768x64xbf16>, vector<8x64xf32> -> vector<8x64xf32>
    %73 = vector.extract_strided_slice %4 {offsets = [5, 0], sizes = [1, 64], strides = [1, 1]} : vector<8x768xf32> to vector<1x64xf32>
    %74 = vector.broadcast %73 : vector<1x64xf32> to vector<8x64xf32>
    %75 = arith.addf %72, %74 : vector<8x64xf32>
    %76 = math.tanh %75 : vector<8x64xf32>
    %cst_27 = arith.constant 1.000000e+00 : f32
    %77 = vector.broadcast %cst_27 : f32 to vector<8x64xf32>
    %78 = arith.mulf %77, %76 : vector<8x64xf32>
    %c0_28 = arith.constant 0 : index
    %c0_29 = arith.constant 0 : index
    %79 = vector.load %arg6[%c0_28, %c0_29] : memref<8x128xf32, #tpu.memory_space<vmem>>, vector<8x64xf32>
    tpu.vector_store %arg6[%c0_28, %c0_29], %78 {strides = array<i32>} : memref<8x128xf32, #tpu.memory_space<vmem>>, vector<8x64xf32>,
    %c0_30 = arith.constant 0 : index
    %c64 = arith.constant 64 : index
    %80 = vector.load %arg6[%c0_30, %c64] : memref<8x128xf32, #tpu.memory_space<vmem>>, vector<8x32xf32>
    tpu.vector_store %arg6[%c0_30, %c64], %36 {strides = array<i32>} : memref<8x128xf32, #tpu.memory_space<vmem>>, vector<8x32xf32>,
    %c0_31 = arith.constant 0 : index
    %c96 = arith.constant 96 : index
    %81 = vector.load %arg6[%c0_31, %c96] : memref<8x128xf32, #tpu.memory_space<vmem>>, vector<8x32xf32>
    tpu.vector_store %arg6[%c0_31, %c96], %42 {strides = array<i32>} : memref<8x128xf32, #tpu.memory_space<vmem>>, vector<8x32xf32>,
    return
  }
  func.func @transform_0(%arg0: i32) -> (i32, i32) {
    %c0_i32 = arith.constant 0 : i32
    %c0_i32_0 = arith.constant 0 : i32
    return %arg0, %c0_i32 : i32, i32
  }
  func.func @transform_1(%arg0: i32) -> (i32, i32) {
    %c0_i32 = arith.constant 0 : i32
    %c0_i32_0 = arith.constant 0 : i32
    %c0_i32_1 = arith.constant 0 : i32
    return %c0_i32, %c0_i32_0 : i32, i32
  }
  func.func @transform_2(%arg0: i32) -> (i32, i32, i32) {
    %c0_i32 = arith.constant 0 : i32
    %c0_i32_0 = arith.constant 0 : i32
    %c0_i32_1 = arith.constant 0 : i32
    %c0_i32_2 = arith.constant 0 : i32
    return %c0_i32, %c0_i32_0, %c0_i32_1 : i32, i32, i32
  }
  func.func @transform_3(%arg0: i32) -> (i32, i32, i32) {
    %c0_i32 = arith.constant 0 : i32
    %c0_i32_0 = arith.constant 0 : i32
    %c0_i32_1 = arith.constant 0 : i32
    %c0_i32_2 = arith.constant 0 : i32
    return %c0_i32, %c0_i32_0, %c0_i32_1 : i32, i32, i32
  }
  func.func @transform_4(%arg0: i32) -> (i32, i32) {
    %c0_i32 = arith.constant 0 : i32
    %c0_i32_0 = arith.constant 0 : i32
    %c0_i32_1 = arith.constant 0 : i32
    return %c0_i32, %c0_i32_0 : i32, i32
  }
  func.func @transform_5(%arg0: i32) -> (i32, i32) {
    %c0_i32 = arith.constant 0 : i32
    %c0_i32_0 = arith.constant 0 : i32
    return %arg0, %c0_i32 : i32, i32
  }
}

</mosaic_0001>

<bundles_post_ra>
// kernel: tpu_custom_call.1
= control target key start
LH: loop header
LB: loop body
LE: loop exit
PB: predicated region body
PF: predicated region fallthrough
CT: control target
= control target key end

     0   :  { %10 = vsyncpa [#allocation3], 0  ;;  %s8279_s0 = inlined_call_operand.hbm [shape: f32[8,64], index: 0, kind: input, shape index: {}]   ;;  %s8280_s1 = inlined_call_operand.hbm [shape: bf16[64,1536], index: 1, kind: input, shape index: {}]   ;;  %s8281_s2 = inlined_call_operand.hbm [shape: s8[2,768,768], index: 2, kind: input, shape index: {}]   ;;  %s8282_s3 = inlined_call_operand.vmem [shape: bf16[2,768,64], index: 3, kind: input, shape index: {}]   ;;  %s8283_s4 = inlined_call_operand.hbm [shape: f32[8,768], index: 4, kind: input, shape index: {}]   ;;  %s8284_s5 = inlined_call_operand.hbm [shape: f32[8,128], index: 5, kind: output, shape index: {}]  }
   0x1   :  { %11 = vsyncpa [#allocation6], 0 }
   0x2   :  { %12 = vsyncpa [#allocation9], 0  ;;  %s29_s20 = sshll.u32 %s8280_s1, 4  ;;  %s30_s20 = int_to_ptr.hbm [resolvable:$true] %s29_s20 }
   0x3   :  { %13 = vsyncpa [#allocation4], 0  ;;  %s6681_s21 = smov [#allocation5]   ;;  %s19_s25 = sshll.u32 %s8279_s0, 4  ;;  %s20_s25 = int_to_ptr.hbm [resolvable:$true] %s19_s25 }
   0x4   :  { %s31_s22 = sshll.u32 %s6681_s21, 4  ;;  %s6682_s26 = smov 768   ;;  %s32_s22 = int_to_ptr.vmem [resolvable:$true] %s31_s22 }
   0x5   :  { %s6683_s27 = smov 48   ;;  %s6684_s28 = smov [#allocation2]  }
   0x6   :  { %37 = dma.hbm_to_vmem [thread:$0]  %s30_s20, 6144, %s32_s22, [#allocation6], %s6682_s26, %s6682_s26, %s6683_s27  }
   0x7   :  { %s21_s29 = sshll.u32 %s6684_s28, 4  ;;  %s42_s7 = sshll.u32 %s8281_s2, 4  ;;  %s22_s29 = int_to_ptr.vmem [resolvable:$true] %s21_s29  ;;  %s43_s7 = int_to_ptr.hbm [resolvable:$true] %s42_s7 }
   0x8   :  { %24 = dma.hbm_to_vmem [thread:$0]  %s20_s25, 128, %s22_s29, [#allocation3]  }
   0x9   :  { %s58_s9 = sshll.u32 %s8283_s4, 4  ;;  %s6685_s10 = smov [#allocation7]   ;;  %s59_s9 = int_to_ptr.hbm [resolvable:$true] %s58_s9 }
   0xa   :  { %s44_s11 = sshll.u32 %s6685_s10, 4  ;;  %s6686_s0 = smov [#allocation8]   ;;  %s45_s11 = int_to_ptr.vmem [resolvable:$true] %s44_s11 }
   0xb   :  { %50 = dma.hbm_to_vmem [thread:$0]  %s43_s7, 36864, %s45_s11, [#allocation6], %s6682_s26, %s6682_s26, %s6683_s27  }
   0xc   :  { %s60_s12 = sshll.u32 %s6686_s0, 4  ;;  %s61_s12 = int_to_ptr.vmem [resolvable:$true] %s60_s12 }
   0xd   :  { %63 = dma.hbm_to_vmem [thread:$0]  %s59_s9, 768, %s61_s12, [#allocation9]  }
   0xe   :  { %6673 = dma.done.wait [#allocation3], 128  }
   0xf   :  { %6674 = vsyncadd [#allocation3], 4294967168 }
  0x10   :  { %6675 = dma.done.wait [#allocation6], 43008  }
  0x11   :  { %6676 = vsyncadd [#allocation6], 4294924288 }
  0x12   :  { %6677 = dma.done.wait [#allocation9], 768  }
  0x13   :  { %6678 = vsyncadd [#allocation9], 4294966528  ;;  %v5799_v0 = vld [vmem:[#allocation5 + $0x60] sm:$0xf]  ;;  %v6409_v1 = vld [vmem:[#allocation5 + $0x8c] sm:$0xf0] }
  0x14   :  { %v6403_v2 = vld [vmem:[#allocation5 + $0x64] sm:$0xf]  ;;  %v5800_v3 = vor.u32 %v6409_v1, %v5799_v0  ;;  %v5801_v4 = vld [vmem:[#allocation5 + $0x90] sm:$0xf0]  ;;  %v5807_v5 = vld [vmem:[#allocation5 + $0x68] sm:$0xf] }
  0x15   :  { %v6410_v6 = vld [vmem:[#allocation5 + $0x94] sm:$0xf0]  ;;  %v5804_v7 = vor.u32 %v6403_v2, %v5801_v4  ;;  %v6404_v9 = vld [vmem:[#allocation5 + $0x6c] sm:$0xf]  ;;  %v5809_v10 = vld [vmem:[#allocation5 + $0x98] sm:$0xf0] }
  0x16   :  { %v5808_v8 = vor.u32 %v6410_v6, %v5807_v5  ;;  %v5751_v11 = vld [vmem:[#allocation5] sm:$0xf]  ;;  %243 = vmatpush.bf16.msra.mxu0 %v5800_v3  ;;  %v5812_v12 = vor.u32 %v6404_v9, %v5809_v10  ;;  %v6397_v13 = vld [vmem:[#allocation5 + $0x2c] sm:$0xf0]  ;;  %v6391_v14 = vld [vmem:[#allocation5 + $0x4] sm:$0xf] }
  0x17   :  { %v5753_v15 = vld [vmem:[#allocation5 + $0x30] sm:$0xf0]  ;;  %256 = vmatpush.bf16.msra.mxu1 %v5804_v7  ;;  %v5752_v16 = vor.u32 %v6397_v13, %v5751_v11  ;;  %v5759_v18 = vld [vmem:[#allocation5 + $0x8] sm:$0xf]  ;;  %v6398_v19 = vld [vmem:[#allocation5 + $0x34] sm:$0xf0] }
  0x18   :  { %269 = vmatpush.bf16.msra.mxu2 %v5808_v8  ;;  %v5756_v17 = vor.u32 %v6391_v14, %v5753_v15  ;;  %v6392_v20 = vld [vmem:[#allocation5 + $0xc] sm:$0xf]  ;;  %282 = vmatpush.bf16.msra.mxu3 %v5812_v12  ;;  %v5760_v21 = vor.u32 %v6398_v19, %v5759_v18  ;;  %v5761_v22 = vld [vmem:[#allocation5 + $0x38] sm:$0xf0]  ;;  %vm233_vm0 = vcmask 261120   ;;  %v429_v61 = vld [vmem:[#allocation7 + $0x90] sm:$0xff] }
  0x19   :  { %v81_v23 = vld [vmem:[#allocation2] sm:$0xff]  ;;  %v5815_v24 = vld [vmem:[#allocation5 + $0x70] sm:$0xf]  ;;  %v5764_v25 = vor.u32 %v6392_v20, %v5761_v22  ;;  %v6411_v27 = vld [vmem:[#allocation5 + $0x9c] sm:$0xf0]  ;;  %v639_v63 = vunpack.c.2.s8 %v429_v61  ;;  %v645_v0 = vunpack.c.3.s8 %v429_v61  ;;  %v627_v4 = vunpack.c.0.s8 %v429_v61  ;;  %s6687_s20 = smov 64  }
  0x1a   :  { %v6732_v26 = vpack.c.bf16 %v81_v23, %v81_v23  ;;  %v6405_v28 = vld [vmem:[#allocation5 + $0x74] sm:$0xf]  ;;  %v5817_v29 = vld [vmem:[#allocation5 + $0xa0] sm:$0xf0]  ;;  %244 = vmatpush.bf16.msra.mxu0 %v5752_v16  ;;  %v5816_v30 = vor.u32 %v6411_v27, %v5815_v24  ;;  %v5767_v32 = vld [vmem:[#allocation5 + $0x10] sm:$0xf]  ;;  %v633_v10 = vunpack.c.1.s8 %v429_v61 }
  0x1b   :  { %v5820_v31 = vor.u32 %v6405_v28, %v5817_v29  ;;  %v6399_v33 = vld [vmem:[#allocation5 + $0x3c] sm:$0xf0]  ;;  %v6393_v34 = vld [vmem:[#allocation5 + $0x14] sm:$0xf]  ;;  %257 = vmatpush.bf16.msra.mxu1 %v5756_v17  ;;  %v5769_v35 = vld [vmem:[#allocation5 + $0x40] sm:$0xf0]  ;;  %v6742_v12 = vcvt.s32.f32 %v639_v63  ;;  %v6744_v13 = vcvt.s32.f32 %v645_v0  ;;  %v6746_v15 = vcvt.s32.f32 %v627_v4 }
  0x1c   :  { %270 = vmatpush.bf16.msra.mxu2 %v5760_v21  ;;  %v5823_v36 = vld [vmem:[#allocation5 + $0x78] sm:$0xf]  ;;  %v6412_v37 = vld [vmem:[#allocation5 + $0xa4] sm:$0xf0]  ;;  %283 = vmatpush.bf16.msra.mxu3 %v5764_v25  ;;  %v5768_v38 = vor.u32 %v6399_v33, %v5767_v32  ;;  %v6406_v40 = vld [vmem:[#allocation5 + $0x7c] sm:$0xf]  ;;  %v5772_v43 = vor.u32 %v6393_v34, %v5769_v35  ;;  %v6752_v21 = vcvt.s32.f32 %v633_v10 }
  0x1d   :  { %v5824_v39 = vor.u32 %v6412_v37, %v5823_v36  ;;  %v5825_v41 = vld [vmem:[#allocation5 + $0xa8] sm:$0xf0]  ;;  %v5775_v42 = vld [vmem:[#allocation5 + $0x18] sm:$0xf]  ;;  %5845 = vmatmul.msk.bf16.vlgmr.msra.gmra.mxu0 %vm233_vm0, %v6732_v26  ;;  %v6400_v45 = vld [vmem:[#allocation5 + $0x44] sm:$0xf0]  ;;  %v1749_v25 = vpack.c.bf16 %v6744_v13, %v6742_v12 }
  0x1e   :  { %295 = vmatpush.bf16.msrb.mxu0 %v5816_v30  ;;  %v5828_v44 = vor.u32 %v6406_v40, %v5825_v41  ;;  %v5831_v46 = vld [vmem:[#allocation5 + $0x80] sm:$0xf]  ;;  %v6413_v47 = vld [vmem:[#allocation5 + $0xac] sm:$0xf0]  ;;  %5846 = vmatmul.msk.bf16.vlgmr.msra.gmra.mxu1 %vm233_vm0, %v6732_v26  ;;  %v6407_v49 = vld [vmem:[#allocation5 + $0x84] sm:$0xf]  ;;  %v5776_v52 = vor.u32 %v6400_v45, %v5775_v42  ;;  %v1743_v33 = vpack.c.bf16 %v6752_v21, %v6746_v15 }
  0x1f   :  { %308 = vmatpush.bf16.msrb.mxu1 %v5820_v31  ;;  %5847 = vmatmul.msk.bf16.vlgmr.msra.gmra.mxu2 %vm233_vm0, %v6732_v26  ;;  %v5832_v48 = vor.u32 %v6413_v47, %v5831_v46  ;;  %v5833_v50 = vld [vmem:[#allocation5 + $0xb0] sm:$0xf0]  ;;  %v6394_v51 = vld [vmem:[#allocation5 + $0x1c] sm:$0xf]  ;;  %v5777_v54 = vld [vmem:[#allocation5 + $0x48] sm:$0xf0] }
  0x20   :  { %5848 = vmatmul.msk.bf16.vlgmr.msra.gmra.mxu3 %vm233_vm0, %v6732_v26  ;;  %321 = vmatpush.bf16.msrb.mxu2 %v5824_v39  ;;  %v5836_v53 = vor.u32 %v6407_v49, %v5833_v50  ;;  %v5783_v55 = vld [vmem:[#allocation5 + $0x20] sm:$0xf]  ;;  %v6401_v56 = vld [vmem:[#allocation5 + $0x4c] sm:$0xf0]  ;;  %v5780_v57 = vor.u32 %v6394_v51, %v5777_v54  ;;  %v6395_v59 = vld [vmem:[#allocation5 + $0x24] sm:$0xf] }
  0x21   :  { %334 = vmatpush.bf16.msrb.mxu3 %v5828_v44  ;;  %v5784_v58 = vor.u32 %v6401_v56, %v5783_v55  ;;  %v5785_v60 = vld [vmem:[#allocation5 + $0x50] sm:$0xf0]  ;;  %v5839_v2 = vld [vmem:[#allocation5 + $0x88] sm:$0xf]  ;;  %v6414_v3 = vld [vmem:[#allocation5 + $0xb4] sm:$0xf0] }
  0x22   :  { %296 = vmatpush.bf16.msrb.mxu0 %v5768_v38  ;;  %v5788_v62 = vor.u32 %v6395_v59, %v5785_v60  ;;  %v453_v1 = vld [vmem:[#allocation7 + $0x150] sm:$0xff]  ;;  %v5840_v7 = vor.u32 %v6414_v3, %v5839_v2  ;;  %v6408_v8 = vld [vmem:[#allocation5 + $0x8c] sm:$0xf]  ;;  %v5841_v9 = vld [vmem:[#allocation5 + $0xb8] sm:$0xf0]  ;;  %s6688_s21 = smov 96  }
  0x23   :  { %309 = vmatpush.bf16.msrb.mxu1 %v5772_v43  ;;  %v735_v5 = vunpack.c.2.s8 %v453_v1  ;;  %v741_v6 = vunpack.c.3.s8 %v453_v1  ;;  %v5791_v11 = vld [vmem:[#allocation5 + $0x28] sm:$0xf]  ;;  %v5844_v14 = vor.u32 %v6408_v8, %v5841_v9  ;;  %v6402_v16 = vld [vmem:[#allocation5 + $0x54] sm:$0xf0]  ;;  %v6396_v17 = vld [vmem:[#allocation5 + $0x2c] sm:$0xf]  ;;  %v723_v22 = vunpack.c.0.s8 %v453_v1 }
  0x24   :  { %322 = vmatpush.bf16.msrb.mxu2 %v5776_v52  ;;  %v5793_v18 = vld [vmem:[#allocation5 + $0x58] sm:$0xf0]  ;;  %v477_v23 = vld [vmem:[#allocation7 + $0x210] sm:$0xff]  ;;  %v729_v27 = vunpack.c.1.s8 %v453_v1  ;;  %v5792_v28 = vor.u32 %v6402_v16, %v5791_v11  ;;  %v423_v30 = vld [vmem:[#allocation7 + $0x60] sm:$0xff]  ;;  %vm5716_vm1 = vcmask 523264   ;;  %s5737_s8 = sshll.u32 %s8284_s5, 4  ;;  %s5738_s8 = int_to_ptr.hbm [resolvable:$true] %s5737_s8 }
  0x25   :  { %335 = vmatpush.bf16.msrb.mxu3 %v5780_v57  ;;  %v6748_v19 = vcvt.s32.f32 %v735_v5  ;;  %v6750_v20 = vcvt.s32.f32 %v741_v6  ;;  %v501_v24 = vld [vmem:[#allocation7 + $0x2d0] sm:$0xff]  ;;  %v5796_v29 = vor.u32 %v6396_v17, %v5793_v18  ;;  %v447_v31 = vld [vmem:[#allocation7 + $0x120] sm:$0xff]  ;;  %v6760_v34 = vcvt.s32.f32 %v723_v22 }
  0x26   :  { %347 = vmatpush.bf16.msra.mxu0 %v5832_v48  ;;  %v831_v35 = vunpack.c.2.s8 %v477_v23  ;;  %v6762_v36 = vcvt.s32.f32 %v729_v27  ;;  %v837_v37 = vunpack.c.3.s8 %v477_v23  ;;  %v927_v38 = vunpack.c.2.s8 %v501_v24  ;;  %v471_v0 = vld [vmem:[#allocation7 + $0x1e0] sm:$0xff]  ;;  %v417_v10 = vld [vmem:[#allocation7 + $0x30] sm:$0xff] }
  0x27   :  { %360 = vmatpush.bf16.msra.mxu1 %v5836_v53  ;;  %v1797_v32 = vpack.c.bf16 %v6750_v20, %v6748_v19  ;;  %v933_v39 = vunpack.c.3.s8 %v501_v24  ;;  %v615_v41 = vunpack.c.2.s8 %v423_v30  ;;  %v621_v42 = vunpack.c.3.s8 %v423_v30  ;;  %v495_v5 = vld [vmem:[#allocation7 + $0x2a0] sm:$0xff]  ;;  %v441_v16 = vld [vmem:[#allocation7 + $0xf0] sm:$0xff] }
  0x28   :  { %373 = vmatpush.bf16.msra.mxu2 %v5840_v7  ;;  %v1407_v40 = vcvt.s32.f32 %v831_v35  ;;  %v711_v43 = vunpack.c.2.s8 %v447_v31  ;;  %v1791_v44 = vpack.c.bf16 %v6762_v36, %v6760_v34  ;;  %v1413_v45 = vcvt.s32.f32 %v837_v37 }
  0x29   :  { %386 = vmatpush.bf16.msra.mxu3 %v5844_v14  ;;  %v1503_v46 = vcvt.s32.f32 %v927_v38  ;;  %v1509_v47 = vcvt.s32.f32 %v933_v39  ;;  %v6766_v48 = vcvt.s32.f32 %v615_v41  ;;  %v6768_v49 = vcvt.s32.f32 %v621_v42 }
  0x2a   :  { %348 = vmatpush.bf16.msra.mxu0 %v5784_v58  ;;  %v717_v50 = vunpack.c.3.s8 %v447_v31  ;;  %v6770_v51 = vcvt.s32.f32 %v711_v43  ;;  %v1845_v52 = vpack.c.bf16 %v1413_v45, %v1407_v40  ;;  %v819_v54 = vunpack.c.0.s8 %v477_v23 }
  0x2b   :  { %361 = vmatpush.bf16.msra.mxu1 %v5788_v62  ;;  %v1893_v53 = vpack.c.bf16 %v1509_v47, %v1503_v46  ;;  %v825_v55 = vunpack.c.1.s8 %v477_v23  ;;  %v1737_v56 = vpack.c.bf16 %v6768_v49, %v6766_v48  ;;  %v915_v58 = vunpack.c.0.s8 %v501_v24 }
  0x2c   :  { %374 = vmatpush.bf16.msra.mxu2 %v5792_v28  ;;  %v6774_v57 = vcvt.s32.f32 %v717_v50  ;;  %v921_v59 = vunpack.c.1.s8 %v501_v24  ;;  %v1395_v60 = vcvt.s32.f32 %v819_v54  ;;  %v603_v62 = vunpack.c.0.s8 %v423_v30  ;;  %v489_v50 = vld [vmem:[#allocation7 + $0x270] sm:$0xff] }
  0x2d   :  { %387 = vmatpush.bf16.msra.mxu3 %v5796_v29  ;;  %5849 = vmatmul.msk.bf16.vlgmr.msrb.gmra.mxu0 %vm233_vm0, %v6732_v26  ;;  %v1401_v61 = vcvt.s32.f32 %v825_v55  ;;  %v609_v63 = vunpack.c.1.s8 %v423_v30  ;;  %v1491_v2 = vcvt.s32.f32 %v915_v58  ;;  %v699_v4 = vunpack.c.0.s8 %v447_v31  ;;  %v411_v55 = vld [vmem:[#allocation7] sm:$0xff] }
  0x2e   :  { %5850 = vmatmul.msk.bf16.vlgmr.msrb.gmra.mxu1 %vm233_vm0, %v6732_v26  ;;  %v1785_v1 = vpack.c.bf16 %v6774_v57, %v6770_v51  ;;  %v1497_v3 = vcvt.s32.f32 %v921_v59  ;;  %2001 = vmatpush.bf16.msrb.mxu0 %v1749_v25  ;;  %v6786_v7 = vcvt.s32.f32 %v603_v62  ;;  %v705_v9 = vunpack.c.1.s8 %v447_v31 }
  0x2f   :  { %5851 = vmatmul.msk.bf16.vlgmr.msrb.gmra.mxu2 %vm233_vm0, %v6732_v26  ;;  %v1839_v6 = vpack.c.bf16 %v1401_v61, %v1395_v60  ;;  %v6788_v8 = vcvt.s32.f32 %v609_v63  ;;  %2014 = vmatpush.bf16.msrb.mxu1 %v1797_v32  ;;  %v1275_v12 = vcvt.s32.f32 %v699_v4  ;;  %v807_v13 = vunpack.c.2.s8 %v471_v0  ;;  %v435_v60 = vld [vmem:[#allocation7 + $0xc0] sm:$0xff] }
  0x30   :  { %5852 = vmatmul.msk.bf16.vlgmr.msrb.gmra.mxu3 %vm233_vm0, %v6732_v26  ;;  %2027 = vmatpush.bf16.msrb.mxu2 %v1845_v52  ;;  %v1887_v11 = vpack.c.bf16 %v1497_v3, %v1491_v2  ;;  %v813_v14 = vunpack.c.3.s8 %v471_v0  ;;  %v1281_v18 = vcvt.s32.f32 %v705_v9  ;;  %v903_v19 = vunpack.c.2.s8 %v495_v5 }
  0x31   :  { %2040 = vmatpush.bf16.msrb.mxu3 %v1893_v53  ;;  %v1731_v17 = vpack.c.bf16 %v6788_v8, %v6786_v7  ;;  %v909_v20 = vunpack.c.3.s8 %v495_v5  ;;  %v1383_v22 = vcvt.s32.f32 %v807_v13  ;;  %v591_v24 = vunpack.c.2.s8 %v417_v10 }
  0x32   :  { %v1389_v23 = vcvt.s32.f32 %v813_v14  ;;  %v597_v25 = vunpack.c.3.s8 %v417_v10  ;;  %2002 = vmatpush.bf16.msrb.mxu0 %v1743_v33  ;;  %v1779_v27 = vpack.c.bf16 %v1281_v18, %v1275_v12  ;;  %v1479_v28 = vcvt.s32.f32 %v903_v19 }
  0x33   :  { %v1485_v29 = vcvt.s32.f32 %v909_v20  ;;  %v687_v30 = vunpack.c.2.s8 %v441_v16  ;;  %2015 = vmatpush.bf16.msrb.mxu1 %v1791_v44  ;;  %v1167_v32 = vcvt.s32.f32 %v591_v24  ;;  %v693_v35 = vunpack.c.3.s8 %v441_v16  ;;  %v465_v44 = vld [vmem:[#allocation7 + $0x1b0] sm:$0xff] }
  0x34   :  { %2028 = vmatpush.bf16.msrb.mxu2 %v1839_v6  ;;  %v1833_v31 = vpack.c.bf16 %v1389_v23, %v1383_v22  ;;  %v1173_v34 = vcvt.s32.f32 %v597_v25  ;;  %v795_v38 = vunpack.c.0.s8 %v471_v0  ;;  %v801_v39 = vunpack.c.1.s8 %v471_v0 }
  0x35   :  { %2041 = vmatpush.bf16.msrb.mxu3 %v1887_v11  ;;  %v1881_v36 = vpack.c.bf16 %v1485_v29, %v1479_v28  ;;  %v1263_v37 = vcvt.s32.f32 %v687_v30  ;;  %v1269_v41 = vcvt.s32.f32 %v693_v35  ;;  %v891_v42 = vunpack.c.0.s8 %v495_v5  ;;  %v525_v28 = vld [vmem:[#allocation7 + $0x390] sm:$0xff] }
  0x36   :  { %v1725_v40 = vpack.c.bf16 %v1173_v34, %v1167_v32  ;;  %v897_v15 = vunpack.c.1.s8 %v495_v5  ;;  %2003 = vmatpush.bf16.msrb.mxu0 %v1737_v56  ;;  %v1371_v21 = vcvt.s32.f32 %v795_v38  ;;  %v1377_v33 = vcvt.s32.f32 %v801_v39  ;;  %v549_v34 = vld [vmem:[#allocation7 + $0x450] sm:$0xff]  ;;  %v459_v38 = vld [vmem:[#allocation7 + $0x180] sm:$0xff] }
  0x37   :  { %v579_v43 = vunpack.c.0.s8 %v417_v10  ;;  %v585_v45 = vunpack.c.1.s8 %v417_v10  ;;  %2016 = vmatpush.bf16.msrb.mxu1 %v1785_v1  ;;  %v1773_v46 = vpack.c.bf16 %v1269_v41, %v1263_v37  ;;  %v1467_v47 = vcvt.s32.f32 %v891_v42 }
  0x38   :  { %2029 = vmatpush.bf16.msrb.mxu2 %v1833_v31  ;;  %v1473_v48 = vcvt.s32.f32 %v897_v15  ;;  %v675_v49 = vunpack.c.0.s8 %v441_v16  ;;  %v1827_v51 = vpack.c.bf16 %v1377_v33, %v1371_v21  ;;  %v681_v54 = vunpack.c.1.s8 %v441_v16  ;;  %v483_v15 = vld [vmem:[#allocation7 + $0x240] sm:$0xff] }
  0x39   :  { %2042 = vmatpush.bf16.msrb.mxu3 %v1881_v36  ;;  %v1155_v52 = vcvt.s32.f32 %v579_v43  ;;  %v1161_v53 = vcvt.s32.f32 %v585_v45  ;;  %v783_v58 = vunpack.c.2.s8 %v465_v44  ;;  %v789_v59 = vunpack.c.3.s8 %v465_v44 }
  0x3a   :  { %v1875_v57 = vpack.c.bf16 %v1473_v48, %v1467_v47  ;;  %v1251_v56 = vcvt.s32.f32 %v675_v49  ;;  %2004 = vmatpush.bf16.msrb.mxu0 %v1731_v17  ;;  %v1257_v62 = vcvt.s32.f32 %v681_v54  ;;  %v879_v63 = vunpack.c.2.s8 %v489_v50 }
  0x3b   :  { %v1719_v61 = vpack.c.bf16 %v1161_v53, %v1155_v52  ;;  %v885_v0 = vunpack.c.3.s8 %v489_v50  ;;  %2017 = vmatpush.bf16.msrb.mxu1 %v1779_v27  ;;  %v1359_v1 = vcvt.s32.f32 %v783_v58  ;;  %v1365_v2 = vcvt.s32.f32 %v789_v59 }
  0x3c   :  { %2030 = vmatpush.bf16.msrb.mxu2 %v1827_v51  ;;  %v567_v3 = vunpack.c.2.s8 %v411_v55  ;;  %v573_v4 = vunpack.c.3.s8 %v411_v55  ;;  %v1767_v5 = vpack.c.bf16 %v1257_v62, %v1251_v56  ;;  %v1455_v6 = vcvt.s32.f32 %v879_v63 }
  0x3d   :  { %2043 = vmatpush.bf16.msrb.mxu3 %v1875_v57  ;;  %v1461_v7 = vcvt.s32.f32 %v885_v0  ;;  %v663_v8 = vunpack.c.2.s8 %v435_v60  ;;  %5853 = vmatmul.msk.bf16.vlgmr.msra.gmra.mxu0 %vm233_vm0, %v6732_v26  ;;  %v1821_v9 = vpack.c.bf16 %v1365_v2, %v1359_v1  ;;  %v669_v12 = vunpack.c.3.s8 %v435_v60 }
  0x3e   :  { %v1143_v10 = vcvt.s32.f32 %v567_v3  ;;  %v1149_v11 = vcvt.s32.f32 %v573_v4  ;;  %5854 = vmatmul.msk.bf16.vlgmr.msra.gmra.mxu1 %vm233_vm0, %v6732_v26  ;;  %2005 = vmatpush.bf16.msrb.mxu0 %v1725_v40  ;;  %v771_v16 = vunpack.c.0.s8 %v465_v44  ;;  %v777_v17 = vunpack.c.1.s8 %v465_v44 }
  0x3f   :  { %5855 = vmatmul.msk.bf16.vlgmr.msra.gmra.mxu2 %vm233_vm0, %v6732_v26  ;;  %v1869_v13 = vpack.c.bf16 %v1461_v7, %v1455_v6  ;;  %v1239_v14 = vcvt.s32.f32 %v663_v8  ;;  %2018 = vmatpush.bf16.msrb.mxu1 %v1773_v46  ;;  %v1245_v19 = vcvt.s32.f32 %v669_v12  ;;  %v867_v20 = vunpack.c.0.s8 %v489_v50 }
  0x40   :  { %5856 = vmatmul.msk.bf16.vlgmr.msra.gmra.mxu3 %vm233_vm0, %v6732_v26  ;;  %2031 = vmatpush.bf16.msrb.mxu2 %v1821_v9  ;;  %v1713_v18 = vpack.c.bf16 %v1149_v11, %v1143_v10  ;;  %v873_v22 = vunpack.c.1.s8 %v489_v50  ;;  %v1347_v23 = vcvt.s32.f32 %v771_v16  ;;  %v1353_v24 = vcvt.s32.f32 %v777_v17  ;;  %v454_v10 = vld [vmem:[#allocation7 + $0x158] sm:$0xff]  ;;  %v519_v16 = vld [vmem:[#allocation7 + $0x360] sm:$0xff] }
  0x41   :  { %2044 = vmatpush.bf16.msrb.mxu3 %v1869_v13  ;;  %v555_v25 = vunpack.c.0.s8 %v411_v55  ;;  %v561_v27 = vunpack.c.1.s8 %v411_v55  ;;  %v1761_v29 = vpack.c.bf16 %v1245_v19, %v1239_v14  ;;  %v1443_v30 = vcvt.s32.f32 %v867_v20 }
  0x42   :  { %v1449_v31 = vcvt.s32.f32 %v873_v22  ;;  %v651_v32 = vunpack.c.0.s8 %v435_v60  ;;  %2006 = vmatpush.bf16.msrb.mxu0 %v1719_v61  ;;  %v1815_v35 = vpack.c.bf16 %v1353_v24, %v1347_v23  ;;  %v657_v37 = vunpack.c.1.s8 %v435_v60  ;;  %v543_v22 = vld [vmem:[#allocation7 + $0x420] sm:$0xff] }
  0x43   :  { %v1131_v26 = vcvt.s32.f32 %v555_v25  ;;  %v1137_v36 = vcvt.s32.f32 %v561_v27  ;;  %2019 = vmatpush.bf16.msrb.mxu1 %v1767_v5  ;;  %v1023_v41 = vunpack.c.2.s8 %v525_v28  ;;  %v1029_v42 = vunpack.c.3.s8 %v525_v28  ;;  %v430_v5 = vld [vmem:[#allocation7 + $0x98] sm:$0xff] }
  0x44   :  { %v1863_v39 = vpack.c.bf16 %v1449_v31, %v1443_v30  ;;  %v1227_v40 = vcvt.s32.f32 %v651_v32  ;;  %2032 = vmatpush.bf16.msrb.mxu2 %v1815_v35  ;;  %v1233_v33 = vcvt.s32.f32 %v657_v37  ;;  %v1119_v43 = vunpack.c.2.s8 %v549_v34 }
  0x45   :  { %v1707_v21 = vpack.c.bf16 %v1137_v36, %v1131_v26  ;;  %v1125_v45 = vunpack.c.3.s8 %v549_v34  ;;  %v1599_v44 = vcvt.s32.f32 %v1023_v41  ;;  %v1605_v46 = vcvt.s32.f32 %v1029_v42 }
  0x46   :  { %2045 = vmatpush.bf16.msrb.mxu3 %v1863_v39  ;;  %v759_v47 = vunpack.c.2.s8 %v459_v38  ;;  %v765_v48 = vunpack.c.3.s8 %v459_v38  ;;  %2007 = vmatpush.bf16.msrb.mxu0 %v1713_v18  ;;  %v1755_v49 = vpack.c.bf16 %v1233_v33, %v1227_v40  ;;  %v1695_v50 = vcvt.s32.f32 %v1119_v43 }
  0x47   :  { %v1701_v51 = vcvt.s32.f32 %v1125_v45  ;;  %v855_v52 = vunpack.c.2.s8 %v483_v15  ;;  %2020 = vmatpush.bf16.msrb.mxu1 %v1761_v29  ;;  %v1941_v53 = vpack.c.bf16 %v1605_v46, %v1599_v44  ;;  %v861_v57 = vunpack.c.3.s8 %v483_v15 }
  0x48   :  { %v1335_v54 = vcvt.s32.f32 %v759_v47  ;;  %v1341_v55 = vcvt.s32.f32 %v765_v48  ;;  %v1011_v59 = vunpack.c.0.s8 %v525_v28  ;;  %v1017_v60 = vunpack.c.1.s8 %v525_v28 }
  0x49   :  { %v1989_v56 = vpack.c.bf16 %v1701_v51, %v1695_v50  ;;  %v1431_v58 = vcvt.s32.f32 %v855_v52  ;;  %v1437_v62 = vcvt.s32.f32 %v861_v57  ;;  %v1107_v63 = vunpack.c.0.s8 %v549_v34 }
  0x4a   :  { %v1809_v61 = vpack.c.bf16 %v1341_v55, %v1335_v54  ;;  %v1113_v0 = vunpack.c.1.s8 %v549_v34  ;;  %2008 = vmatpush.bf16.msrb.mxu0 %v1707_v21  ;;  %v1587_v1 = vcvt.s32.f32 %v1011_v59  ;;  %v1593_v2 = vcvt.s32.f32 %v1017_v60  ;;  %v448_v54 = vld [vmem:[#allocation7 + $0x128] sm:$0xff]  ;;  %v513_v59 = vld [vmem:[#allocation7 + $0x330] sm:$0xff] }
  0x4b   :  { %v747_v3 = vunpack.c.0.s8 %v459_v38  ;;  %v753_v4 = vunpack.c.1.s8 %v459_v38  ;;  %2021 = vmatpush.bf16.msrb.mxu1 %v1755_v49  ;;  %v1857_v6 = vpack.c.bf16 %v1437_v62, %v1431_v58  ;;  %v1683_v7 = vcvt.s32.f32 %v1107_v63  ;;  %v424_v49 = vld [vmem:[#allocation7 + $0x68] sm:$0xff] }
  0x4c   :  { %v1689_v8 = vcvt.s32.f32 %v1113_v0  ;;  %v843_v9 = vunpack.c.0.s8 %v483_v15  ;;  %2033 = vmatpush.bf16.msrb.mxu2 %v1809_v61  ;;  %v1935_v11 = vpack.c.bf16 %v1593_v2, %v1587_v1  ;;  %v849_v14 = vunpack.c.1.s8 %v483_v15  ;;  %v537_v0 = vld [vmem:[#allocation7 + $0x3f0] sm:$0xff] }
  0x4d   :  { %v1323_v12 = vcvt.s32.f32 %v747_v3  ;;  %v1329_v13 = vcvt.s32.f32 %v753_v4  ;;  %2046 = vmatpush.bf16.msrb.mxu3 %v1857_v6  ;;  %v640_v19 = vunpack.c.2.s8 %v430_v5  ;;  %v646_v20 = vunpack.c.3.s8 %v430_v5 }
  0x4e   :  { %2053 = vmatpush.bf16.msra.mxu0 %v1941_v53  ;;  %v1983_v17 = vpack.c.bf16 %v1689_v8, %v1683_v7  ;;  %v1419_v18 = vcvt.s32.f32 %v843_v9  ;;  %v1425_v24 = vcvt.s32.f32 %v849_v14  ;;  %v736_v25 = vunpack.c.2.s8 %v454_v10 }
  0x4f   :  { %2066 = vmatpush.bf16.msra.mxu1 %v1989_v56  ;;  %v1803_v23 = vpack.c.bf16 %v1329_v13, %v1323_v12  ;;  %v742_v27 = vunpack.c.3.s8 %v454_v10  ;;  %v1216_v28 = vcvt.s32.f32 %v640_v19  ;;  %v1222_v29 = vcvt.s32.f32 %v646_v20 }
  0x50   :  { %v999_v30 = vunpack.c.2.s8 %v519_v16  ;;  %v1005_v31 = vunpack.c.3.s8 %v519_v16  ;;  %v1851_v32 = vpack.c.bf16 %v1425_v24, %v1419_v18  ;;  %v1312_v34 = vcvt.s32.f32 %v736_v25 }
  0x51   :  { %2034 = vmatpush.bf16.msrb.mxu2 %v1803_v23  ;;  %v1318_v35 = vcvt.s32.f32 %v742_v27  ;;  %v1095_v26 = vunpack.c.2.s8 %v543_v22  ;;  %v1750_v36 = vpack.c.bf16 %v1222_v29, %v1216_v28  ;;  %v1101_v39 = vunpack.c.3.s8 %v543_v22 }
  0x52   :  { %2054 = vmatpush.bf16.msra.mxu0 %v1935_v11  ;;  %v1575_v37 = vcvt.s32.f32 %v999_v30  ;;  %v1581_v38 = vcvt.s32.f32 %v1005_v31  ;;  %2047 = vmatpush.bf16.msrb.mxu3 %v1851_v32  ;;  %v628_v42 = vunpack.c.0.s8 %v430_v5  ;;  %v634_v15 = vunpack.c.1.s8 %v430_v5 }
  0x53   :  { %2067 = vmatpush.bf16.msra.mxu1 %v1983_v17  ;;  %v1798_v40 = vpack.c.bf16 %v1318_v35, %v1312_v34  ;;  %v1671_v41 = vcvt.s32.f32 %v1095_v26  ;;  %v1677_v33 = vcvt.s32.f32 %v1101_v39  ;;  %v724_v43 = vunpack.c.0.s8 %v454_v10 }
  0x54   :  { %v1929_v21 = vpack.c.bf16 %v1581_v38, %v1575_v37  ;;  %v730_v45 = vunpack.c.1.s8 %v454_v10  ;;  %v1204_v44 = vcvt.s32.f32 %v628_v42  ;;  %v1210_v46 = vcvt.s32.f32 %v634_v15 }
  0x55   :  { %2079 = vmatpush.bf16.msra.mxu2 %v1750_v36  ;;  %v987_v47 = vunpack.c.0.s8 %v519_v16  ;;  %v993_v48 = vunpack.c.1.s8 %v519_v16  ;;  %v1977_v50 = vpack.c.bf16 %v1677_v33, %v1671_v41  ;;  %v1300_v51 = vcvt.s32.f32 %v724_v43  ;;  %v418_v33 = vld [vmem:[#allocation7 + $0x38] sm:$0xff] }
  0x56   :  { %2092 = vmatpush.bf16.msra.mxu3 %v1798_v40  ;;  %2055 = vmatpush.bf16.msra.mxu0 %v1929_v21  ;;  %v1306_v52 = vcvt.s32.f32 %v730_v45  ;;  %v1083_v53 = vunpack.c.0.s8 %v543_v22  ;;  %v1744_v55 = vpack.c.bf16 %v1210_v46, %v1204_v44  ;;  %v1089_v58 = vunpack.c.1.s8 %v543_v22  ;;  %v442_v43 = vld [vmem:[#allocation7 + $0xf8] sm:$0xff] }
  0x57   :  { %v1563_v57 = vcvt.s32.f32 %v987_v47  ;;  %v1569_v56 = vcvt.s32.f32 %v993_v48  ;;  %2068 = vmatpush.bf16.msra.mxu1 %v1977_v50  ;;  %v616_v62 = vunpack.c.2.s8 %v424_v49  ;;  %v622_v63 = vunpack.c.3.s8 %v424_v49  ;;  %v6803_v48 = vld [vmem:[#allocation8] sm:$0xff] }
  0x58   :  { %v1792_v60 = vpack.c.bf16 %v1306_v52, %v1300_v51  ;;  %v1659_v61 = vcvt.s32.f32 %v1083_v53  ;;  %v1665_v2 = vcvt.s32.f32 %v1089_v58  ;;  %v712_v3 = vunpack.c.2.s8 %v448_v54  ;;  %v531_v50 = vld [vmem:[#allocation7 + $0x3c0] sm:$0xff] }
  0x59   :  { %2080 = vmatpush.bf16.msra.mxu2 %v1744_v55  ;;  %v1923_v1 = vpack.c.bf16 %v1569_v56, %v1563_v57  ;;  %v718_v4 = vunpack.c.3.s8 %v448_v54  ;;  %v1192_v5 = vcvt.s32.f32 %v616_v62  ;;  %v1198_v6 = vcvt.s32.f32 %v622_v63 }
  0x5a   :  { %2093 = vmatpush.bf16.msra.mxu3 %v1792_v60  ;;  %v975_v7 = vunpack.c.2.s8 %v513_v59  ;;  %v981_v8 = vunpack.c.3.s8 %v513_v59  ;;  %v1971_v9 = vpack.c.bf16 %v1665_v2, %v1659_v61  ;;  %v1288_v10 = vcvt.s32.f32 %v712_v3  ;;  %v6806_v60 = vld [vmem:[#allocation8 + $0x8] sm:$0xff] }
  0x5b   :  { %2056 = vmatpush.bf16.msra.mxu0 %v1923_v1  ;;  %v1294_v11 = vcvt.s32.f32 %v718_v4  ;;  %v1071_v12 = vunpack.c.2.s8 %v537_v0  ;;  %v1738_v13 = vpack.c.bf16 %v1198_v6, %v1192_v5  ;;  %v1077_v17 = vunpack.c.3.s8 %v537_v0 }
  0x5c   :  { %v1551_v14 = vcvt.s32.f32 %v975_v7  ;;  %v1557_v16 = vcvt.s32.f32 %v981_v8  ;;  %2069 = vmatpush.bf16.msra.mxu1 %v1971_v9  ;;  %v604_v20 = vunpack.c.0.s8 %v424_v49  ;;  %v610_v22 = vunpack.c.1.s8 %v424_v49  ;;  %v507_v49 = vld [vmem:[#allocation7 + $0x300] sm:$0xff] }
  0x5d   :  { %v1786_v18 = vpack.c.bf16 %v1294_v11, %v1288_v10  ;;  %v1647_v19 = vcvt.s32.f32 %v1071_v12  ;;  %2081 = vmatpush.bf16.msra.mxu2 %v1738_v13  ;;  %v1653_v24 = vcvt.s32.f32 %v1077_v17  ;;  %v700_v25 = vunpack.c.0.s8 %v448_v54  ;;  %v478_v12 = vld [vmem:[#allocation7 + $0x218] sm:$0xff] }
  0x5e   :  { %v1917_v23 = vpack.c.bf16 %v1557_v16, %v1551_v14  ;;  %v706_v27 = vunpack.c.1.s8 %v448_v54  ;;  %v1180_v28 = vcvt.s32.f32 %v604_v20  ;;  %v1186_v29 = vcvt.s32.f32 %v610_v22 }
  0x5f   :  { %2094 = vmatpush.bf16.msra.mxu3 %v1786_v18  ;;  %v963_v30 = vunpack.c.0.s8 %v513_v59  ;;  %v969_v31 = vunpack.c.1.s8 %v513_v59  ;;  %v1965_v32 = vpack.c.bf16 %v1653_v24, %v1647_v19  ;;  %v1276_v34 = vcvt.s32.f32 %v700_v25  ;;  %v412_v24 = vld [vmem:[#allocation7 + $0x8] sm:$0xff] }
  0x60   :  { %2057 = vmatpush.bf16.msra.mxu0 %v1917_v23  ;;  %v1282_v35 = vcvt.s32.f32 %v706_v27  ;;  %v1059_v26 = vunpack.c.0.s8 %v537_v0  ;;  %v1732_v36 = vpack.c.bf16 %v1186_v29, %v1180_v28  ;;  %v1065_v39 = vunpack.c.1.s8 %v537_v0  ;;  %v502_v23 = vld [vmem:[#allocation7 + $0x2d8] sm:$0xff]  ;;  %v6809_v27 = vld [vmem:[#allocation8 + $0x10] sm:$0xff] }
  0x61   :  { %v1539_v37 = vcvt.s32.f32 %v963_v30  ;;  %v1545_v38 = vcvt.s32.f32 %v969_v31  ;;  %2070 = vmatpush.bf16.msra.mxu1 %v1965_v32  ;;  %v592_v45 = vunpack.c.2.s8 %v418_v33  ;;  %v598_v44 = vunpack.c.3.s8 %v418_v33  ;;  %v6811_v28 = vld [vmem:[#allocation8 + $0x18] sm:$0xff]  ;;  %v436_v32 = vld [vmem:[#allocation7 + $0xc8] sm:$0xff] }
  0x62   :  { %v1780_v40 = vpack.c.bf16 %v1282_v35, %v1276_v34  ;;  %v1635_v41 = vcvt.s32.f32 %v1059_v26  ;;  %2082 = vmatpush.bf16.msra.mxu2 %v1732_v36  ;;  %v1641_v15 = vcvt.s32.f32 %v1065_v39  ;;  %v688_v46 = vunpack.c.2.s8 %v442_v43 }
  0x63   :  { %v1911_v42 = vpack.c.bf16 %v1545_v38, %v1539_v37  ;;  %v694_v47 = vunpack.c.3.s8 %v442_v43  ;;  %v1168_v51 = vcvt.s32.f32 %v592_v45  ;;  %v1174_v52 = vcvt.s32.f32 %v598_v44 }
  0x64   :  { %2095 = vmatpush.bf16.msra.mxu3 %v1780_v40  ;;  %v1959_v21 = vpack.c.bf16 %v1641_v15, %v1635_v41  ;;  %v1264_v53 = vcvt.s32.f32 %v688_v46  ;;  %v951_v55 = vunpack.c.2.s8 %v507_v49  ;;  %v957_v57 = vunpack.c.3.s8 %v507_v49 }
  0x65   :  { %2058 = vmatpush.bf16.msra.mxu0 %v1911_v42  ;;  %v1270_v54 = vcvt.s32.f32 %v694_v47  ;;  %v1047_v56 = vunpack.c.2.s8 %v531_v50  ;;  %v1053_v58 = vunpack.c.3.s8 %v531_v50  ;;  %v393_v59 = vperm.slane %v6803_v48, 0 }
  0x66   :  { %2071 = vmatpush.bf16.msra.mxu1 %v1959_v21  ;;  %v1726_v61 = vpack.c.bf16 %v1174_v52, %v1168_v51  ;;  %v580_v63 = vunpack.c.0.s8 %v418_v33  ;;  %v394_v0 = vperm.slane %v6806_v60, 0  ;;  %v1527_v1 = vcvt.s32.f32 %v951_v55 }
  0x67   :  { %v1774_v62 = vpack.c.bf16 %v1270_v54, %v1264_v53  ;;  %v1533_v2 = vcvt.s32.f32 %v957_v57  ;;  %v1623_v3 = vcvt.s32.f32 %v1047_v56  ;;  %v1629_v4 = vcvt.s32.f32 %v1053_v58 }
  0x68   :  { %2083 = vmatpush.bf16.msra.mxu2 %v1726_v61  ;;  %v586_v5 = vunpack.c.1.s8 %v418_v33  ;;  %v1156_v6 = vcvt.s32.f32 %v580_v63  ;;  %v676_v7 = vunpack.c.0.s8 %v442_v43  ;;  %v682_v9 = vunpack.c.1.s8 %v442_v43  ;;  %v526_v61 = vld [vmem:[#allocation7 + $0x398] sm:$0xff] }
  0x69   :  { %2096 = vmatpush.bf16.msra.mxu3 %v1774_v62  ;;  %v1905_v8 = vpack.c.bf16 %v1533_v2, %v1527_v1  ;;  %v939_v10 = vunpack.c.0.s8 %v507_v49  ;;  %v945_v11 = vunpack.c.1.s8 %v507_v49  ;;  %v1953_v13 = vpack.c.bf16 %v1629_v4, %v1623_v3  ;;  %v550_v3 = vld [vmem:[#allocation7 + $0x458] sm:$0xff] }
  0x6a   :  { %v1162_v14 = vcvt.s32.f32 %v586_v5  ;;  %v1252_v16 = vcvt.s32.f32 %v676_v7  ;;  %v1035_v17 = vunpack.c.0.s8 %v531_v50  ;;  %v1258_v18 = vcvt.s32.f32 %v682_v9 }
  0x6b   :  { %2059 = vmatpush.bf16.msra.mxu0 %v1905_v8  ;;  %v1515_v19 = vcvt.s32.f32 %v939_v10  ;;  %v1521_v20 = vcvt.s32.f32 %v945_v11  ;;  %v1041_v22 = vunpack.c.1.s8 %v531_v50  ;;  %2072 = vmatpush.bf16.msra.mxu1 %v1953_v13  ;;  %v832_v30 = vunpack.c.2.s8 %v478_v12  ;;  %v6963_v13 = vld [vmem:[#allocation7 + $0x248] sm:$0xff] }
  0x6c   :  { %v1720_v25 = vpack.c.bf16 %v1162_v14, %v1156_v6  ;;  %v1611_v29 = vcvt.s32.f32 %v1035_v17  ;;  %v838_v31 = vunpack.c.3.s8 %v478_v12  ;;  %v1768_v34 = vpack.c.bf16 %v1258_v18, %v1252_v16  ;;  %v496_v18 = vld [vmem:[#allocation7 + $0x2a8] sm:$0xff] }
  0x6d   :  { %v395_v35 = vperm.slane %v6809_v27, 0  ;;  %v396_v26 = vperm.slane %v6811_v28, 0  ;;  %v1899_v36 = vpack.c.bf16 %v1521_v20, %v1515_v19  ;;  %v1617_v37 = vcvt.s32.f32 %v1041_v22 }
  0x6e   :  { %2084 = vmatpush.bf16.msra.mxu2 %v1720_v25  ;;  %v6815_v38 = vcvt.s32.f32 %v832_v30  ;;  %v6817_v39 = vcvt.s32.f32 %v838_v31  ;;  %v928_v40 = vunpack.c.2.s8 %v502_v23  ;;  %2097 = vmatpush.bf16.msra.mxu3 %v1768_v34  ;;  %v934_v41 = vunpack.c.3.s8 %v502_v23 }
  0x6f   :  { %2060 = vmatpush.bf16.msra.mxu0 %v1899_v36  ;;  %v568_v42 = vunpack.c.2.s8 %v412_v24  ;;  %v574_v15 = vunpack.c.3.s8 %v412_v24  ;;  %v664_v21 = vunpack.c.2.s8 %v436_v32  ;;  %v1947_v33 = vpack.c.bf16 %v1617_v37, %v1611_v29 }
  0x70   :  { %v1846_v43 = vpack.c.bf16 %v6817_v39, %v6815_v38  ;;  %v6821_v45 = vcvt.s32.f32 %v928_v40  ;;  %v670_v44 = vunpack.c.3.s8 %v436_v32  ;;  %v6823_v46 = vcvt.s32.f32 %v934_v41 }
  0x71   :  { %v1144_v47 = vcvt.s32.f32 %v568_v42  ;;  %v1150_v49 = vcvt.s32.f32 %v574_v15  ;;  %v1240_v50 = vcvt.s32.f32 %v664_v21  ;;  %2073 = vmatpush.bf16.msra.mxu1 %v1947_v33  ;;  %v820_v52 = vunpack.c.0.s8 %v478_v12  ;;  %v6935_v33 = vld [vmem:[#allocation7 + $0x3f8] sm:$0xff] }
  0x72   :  { %v1246_v51 = vcvt.s32.f32 %v670_v44  ;;  %v826_v53 = vunpack.c.1.s8 %v478_v12  ;;  %v916_v54 = vunpack.c.0.s8 %v502_v23  ;;  %v1894_v55 = vpack.c.bf16 %v6823_v46, %v6821_v45  ;;  %v472_v12 = vld [vmem:[#allocation7 + $0x1e8] sm:$0xff] }
  0x73   :  { %v1714_v57 = vpack.c.bf16 %v1150_v49, %v1144_v47  ;;  %v922_v56 = vunpack.c.1.s8 %v502_v23  ;;  %v556_v58 = vunpack.c.0.s8 %v412_v24  ;;  %v6827_v63 = vcvt.s32.f32 %v820_v52 }
  0x74   :  { %v1762_v62 = vpack.c.bf16 %v1246_v51, %v1240_v50  ;;  %v6829_v1 = vcvt.s32.f32 %v826_v53  ;;  %v6831_v2 = vcvt.s32.f32 %v916_v54  ;;  %v562_v5 = vunpack.c.1.s8 %v412_v24  ;;  %v6843_v24 = vld [vmem:[#allocation8 + $0x20] sm:$0xff] }
  0x75   :  { %2085 = vmatpush.bf16.msra.mxu2 %v1714_v57  ;;  %v6833_v4 = vcvt.s32.f32 %v922_v56  ;;  %v1132_v6 = vcvt.s32.f32 %v556_v58  ;;  %v652_v7 = vunpack.c.0.s8 %v436_v32  ;;  %v658_v9 = vunpack.c.1.s8 %v436_v32  ;;  %v6847_v32 = vld [vmem:[#allocation8 + $0x28] sm:$0xff] }
  0x76   :  { %2098 = vmatpush.bf16.msra.mxu3 %v1762_v62  ;;  %v1024_v10 = vunpack.c.2.s8 %v526_v61  ;;  %v1030_v11 = vunpack.c.3.s8 %v526_v61  ;;  %v1138_v14 = vcvt.s32.f32 %v562_v5  ;;  %v1120_v17 = vunpack.c.2.s8 %v550_v3  ;;  %v520_v62 = vld [vmem:[#allocation7 + $0x368] sm:$0xff] }
  0x77   :  { %v1228_v16 = vcvt.s32.f32 %v652_v7  ;;  %v1234_v19 = vcvt.s32.f32 %v658_v9  ;;  %v1126_v23 = vunpack.c.3.s8 %v550_v3  ;;  %v808_v30 = vunpack.c.2.s8 %v472_v12 }
  0x78   :  { %v6839_v20 = vcvt.s32.f32 %v1024_v10  ;;  %v6841_v22 = vcvt.s32.f32 %v1030_v11  ;;  %v1708_v25 = vpack.c.bf16 %v1138_v14, %v1132_v6  ;;  %v6845_v29 = vcvt.s32.f32 %v1120_v17  ;;  %v544_v10 = vld [vmem:[#allocation7 + $0x428] sm:$0xff] }
  0x79   :  { %v814_v31 = vunpack.c.3.s8 %v472_v12  ;;  %v1756_v34 = vpack.c.bf16 %v1234_v19, %v1228_v16  ;;  %v6851_v37 = vcvt.s32.f32 %v1126_v23  ;;  %v904_v40 = vunpack.c.2.s8 %v496_v18 }
  0x7a   :  { %2086 = vmatpush.bf16.msra.mxu2 %v1708_v25  ;;  %v6853_v41 = vcvt.s32.f32 %v808_v30  ;;  %v910_v15 = vunpack.c.3.s8 %v496_v18  ;;  %v1012_v49 = vunpack.c.0.s8 %v526_v61  ;;  %v1018_v52 = vunpack.c.1.s8 %v526_v61  ;;  %v490_v25 = vld [vmem:[#allocation7 + $0x278] sm:$0xff] }
  0x7b   :  { %v6855_v42 = vcvt.s32.f32 %v814_v31  ;;  %2099 = vmatpush.bf16.msra.mxu3 %v1756_v34  ;;  %v6860_v44 = vcvt.s32.f32 %v904_v40  ;;  %v1108_v53 = vunpack.c.0.s8 %v550_v3  ;;  %v1114_v57 = vunpack.c.1.s8 %v550_v3  ;;  %v466_v3 = vld [vmem:[#allocation7 + $0x1b8] sm:$0xff] }
  0x7c   :  { %v6865_v51 = vcvt.s32.f32 %v910_v15  ;;  %v6867_v54 = vcvt.s32.f32 %v1012_v49  ;;  %v796_v56 = vunpack.c.0.s8 %v472_v12  ;;  %v802_v58 = vunpack.c.1.s8 %v472_v12 }
  0x7d   :  { %v6871_v6 = vcvt.s32.f32 %v1018_v52  ;;  %v6873_v7 = vcvt.s32.f32 %v1108_v53  ;;  %v892_v9 = vunpack.c.0.s8 %v496_v18  ;;  %v6875_v11 = vcvt.s32.f32 %v1114_v57 }
  0x7e   :  { %v6877_v14 = vcvt.s32.f32 %v796_v56  ;;  %v6879_v61 = vcvt.s32.f32 %v802_v58  ;;  %v898_v16 = vunpack.c.1.s8 %v496_v18  ;;  %v1000_v19 = vunpack.c.2.s8 %v520_v62 }
  0x7f   :  { %v6883_v17 = vcvt.s32.f32 %v892_v9  ;;  %v1006_v23 = vunpack.c.3.s8 %v520_v62  ;;  %v1096_v40 = vunpack.c.2.s8 %v544_v10  ;;  %v1102_v49 = vunpack.c.3.s8 %v544_v10 }
  0x80   :  { %v6889_v34 = vcvt.s32.f32 %v898_v16  ;;  %v6891_v15 = vcvt.s32.f32 %v1000_v19  ;;  %v784_v52 = vunpack.c.2.s8 %v466_v3  ;;  %v790_v56 = vunpack.c.3.s8 %v466_v3 }
  0x81   :  { %v6893_v18 = vcvt.s32.f32 %v1006_v23  ;;  %v6897_v57 = vcvt.s32.f32 %v1096_v40  ;;  %v880_v58 = vunpack.c.2.s8 %v490_v25  ;;  %v6901_v31 = vcvt.s32.f32 %v1102_v49 }
  0x82   :  { %v6903_v16 = vcvt.s32.f32 %v784_v52  ;;  %v886_v19 = vunpack.c.3.s8 %v490_v25  ;;  %v6905_v23 = vcvt.s32.f32 %v790_v56  ;;  %v988_v47 = vunpack.c.0.s8 %v520_v62 }
  0x83   :  { %v6907_v12 = vcvt.s32.f32 %v880_v58  ;;  %v994_v21 = vunpack.c.1.s8 %v520_v62  ;;  %v1084_v49 = vunpack.c.0.s8 %v544_v10  ;;  %v856_v45 = vunpack.c.2.s8 %v6963_v13 }
  0x84   :  { %v6913_v9 = vcvt.s32.f32 %v886_v19  ;;  %v6919_v58 = vcvt.s32.f32 %v988_v47  ;;  %v6927_v19 = vld [vmem:[#allocation7 + $0x338] sm:$0xff]  ;;  %vm5722_vm2 = vcmask 785920   ;;  %vm5728_vm3 = vcmask 1048320  }
  0x85   :  { %v6921_v50 = vcvt.s32.f32 %v994_v21  ;;  %v868_v21 = vunpack.c.0.s8 %v490_v25 }
  0x9a   :  { %v246_v30 = vpop.f32.mrf.mxu0 }
  0x9b   :  { %v399_v40 = vadd.f32 %v393_v59, %v246_v30  ;;  %v259_v53 = vpop.f32.mrf.mxu1  ;;  %v1090_v59 = vunpack.c.1.s8 %v544_v10  ;;  %v6925_v30 = vcvt.s32.f32 %v1084_v49 }
  0x9c   :  { %v400_v52 = vadd.f32 %v394_v0, %v259_v53  ;;  %v772_v0 = vunpack.c.0.s8 %v466_v3  ;;  %v778_v53 = vunpack.c.1.s8 %v466_v3 }
  0x9d   :  { %v405_v62 = vmax.f32 %v399_v40, 0.0  ;;  %v6933_v47 = vcvt.s32.f32 %v1090_v59  ;;  %v874_v40 = vunpack.c.1.s8 %v490_v25  ;;  %v982_v25 = vunpack.c.3.s8 %v6927_v19 }
  0x9e   :  { %v406_v5 = vmax.f32 %v400_v52, 0.0  ;;  %v6939_v10 = vcvt.s32.f32 %v772_v0  ;;  %v6941_v49 = vcvt.s32.f32 %v778_v53  ;;  %v976_v52 = vunpack.c.2.s8 %v6927_v19 }
  0x9f   :  { %v6931_v56 = vpack.c.bf16 %v405_v62, %v405_v62  ;;  %v6947_v62 = vcvt.s32.f32 %v868_v21  ;;  %v6949_v59 = vcvt.s32.f32 %v874_v40  ;;  %v1072_v40 = vunpack.c.2.s8 %v6935_v33 }
  0xa0   :  { %v6937_v48 = vpack.c.bf16 %v406_v5, %v406_v5  ;;  %v460_v5 = vld [vmem:[#allocation7 + $0x188] sm:$0xff]  ;;  %v6960_v3 = vcvt.s32.f32 %v976_v52  ;;  %v6972_v39 = vcvt.s32.f32 %v982_v25 }
  0xa1   :  { %2009 = vmatmul.bf16.vlgmr.msrb.gmra.mxu0 %v6931_v56  ;;  %v1864_v38 = vpack.c.bf16 %v6949_v59, %v6947_v62  ;;  %v760_v52 = vunpack.c.2.s8 %v460_v5  ;;  %v766_v21 = vunpack.c.3.s8 %v460_v5 }
  0xa2   :  { %v272_v36 = vpop.f32.mrf.mxu2  ;;  %2022 = vmatmul.bf16.vlgmr.msrb.gmra.mxu1 %v6937_v48  ;;  %2105 = vmatpush.bf16.msrb.mxu0 %v1846_v43  ;;  %v248_v60 = vpop.f32.mrf.mxu0  ;;  %v1078_v43 = vunpack.c.3.s8 %v6935_v33  ;;  %v1918_v28 = vpack.c.bf16 %v6972_v39, %v6960_v3 }
  0xa3   :  { %v401_v0 = vadd.f32 %v395_v35, %v272_v36  ;;  %v285_v53 = vpop.f32.mrf.mxu3  ;;  %2118 = vmatpush.bf16.msrb.mxu1 %v1894_v55  ;;  %v261_v35 = vpop.f32.mrf.mxu1  ;;  %v6975_v60 = vcvt.s32.f32 %v1072_v40  ;;  %v8285_v55 = vpack.c.bf16 %v6829_v1, %v6827_v63  ;;  %v6987_v25 = vcvt.s32.f32 %v760_v52 }
  0xa4   :  { %v402_v27 = vadd.f32 %v396_v26, %v285_v53  ;;  %v6979_v26 = vcvt.s32.f32 %v1078_v43  ;;  %v862_v53 = vunpack.c.3.s8 %v6963_v13  ;;  %v6999_v43 = vcvt.s32.f32 %v856_v45 }
  0xa5   :  { %v407_v36 = vmax.f32 %v401_v0, 0.0  ;;  %v6989_v0 = vcvt.s32.f32 %v766_v21  ;;  %v964_v63 = vunpack.c.0.s8 %v6927_v19  ;;  %v1066_v45 = vunpack.c.1.s8 %v6935_v33 }
  0xa6   :  { %v408_v8 = vmax.f32 %v402_v27, 0.0  ;;  %2106 = vmatpush.bf16.msrb.mxu0 %v8285_v55  ;;  %v8286_v27 = vpack.c.bf16 %v6833_v4, %v6831_v2  ;;  %v7005_v21 = vcvt.s32.f32 %v862_v53  ;;  %v8287_v2 = vpack.c.bf16 %v6841_v22, %v6839_v20 }
  0xa7   :  { %v6982_v46 = vpack.c.bf16 %v407_v36, %v407_v36  ;;  %v1060_v36 = vunpack.c.0.s8 %v6935_v33  ;;  %v7013_v52 = vcvt.s32.f32 %v964_v63  ;;  %v748_v55 = vunpack.c.0.s8 %v460_v5 }
  0xa8   :  { %v6992_v40 = vpack.c.bf16 %v408_v8, %v408_v8  ;;  %2119 = vmatpush.bf16.msrb.mxu1 %v8286_v27  ;;  %v970_v8 = vunpack.c.1.s8 %v6927_v19  ;;  %v754_v27 = vunpack.c.1.s8 %v460_v5  ;;  %v8288_v53 = vpack.c.bf16 %v6851_v37, %v6845_v29  ;;  %v431_v5 = vld [vmem:[#allocation7 + $0xa0] sm:$0xff] }
  0xa9   :  { %2035 = vmatmul.bf16.vlgmr.msrb.gmra.mxu2 %v6982_v46  ;;  %v8289_v1 = vpack.c.bf16 %v6855_v42, %v6853_v41  ;;  %v1858_v20 = vpack.c.bf16 %v7005_v21, %v6999_v43  ;;  %v7026_v63 = vcvt.s32.f32 %v1060_v36  ;;  %v844_v33 = vunpack.c.0.s8 %v6963_v13 }
  0xaa   :  { %2048 = vmatmul.bf16.vlgmr.msrb.gmra.mxu3 %v6992_v40  ;;  %2131 = vmatpush.bf16.msrb.mxu2 %v8287_v2  ;;  %v274_v4 = vpop.f32.mrf.mxu2  ;;  %v298_v35 = vpop.f32.mrf.mxu0  ;;  %v7024_v22 = vcvt.s32.f32 %v970_v8  ;;  %v8290_v29 = vpack.c.bf16 %v6865_v51, %v6860_v44  ;;  %v8291_v37 = vperm.slane %v6843_v24, 0  ;;  %v7034_v42 = vcvt.s32.f32 %v1066_v45  ;;  %v455_v8 = vld [vmem:[#allocation7 + $0x160] sm:$0xff]  ;;  %v508_v24 = vld [vmem:[#allocation7 + $0x308] sm:$0xff] }
  0xab   :  { %2144 = vmatpush.bf16.msrb.mxu3 %v8288_v53  ;;  %v287_v19 = vpop.f32.mrf.mxu3  ;;  %2107 = vmatpush.bf16.msrb.mxu0 %v8289_v1  ;;  %v311_v41 = vpop.f32.mrf.mxu1  ;;  %v7036_v1 = vcvt.s32.f32 %v748_v55  ;;  %v7038_v4 = vcvt.s32.f32 %v754_v27  ;;  %v8292_v36 = vperm.slane %v6847_v32, 0  ;;  %v850_v44 = vunpack.c.1.s8 %v6963_v13 }
  0xac   :  { %2120 = vmatpush.bf16.msrb.mxu1 %v8290_v29  ;;  %v403_v2 = vadd.f32 %v8291_v37, %v298_v35  ;;  %v1912_v19 = vpack.c.bf16 %v7024_v22, %v7013_v52  ;;  %v7045_v51 = vcvt.s32.f32 %v844_v33  ;;  %v8293_v45 = vpack.c.bf16 %v6871_v6, %v6867_v54  ;;  %v7187_v52 = vld [vmem:[#allocation7 + $0x1f0] sm:$0xff] }
  0xad   :  { %v404_v53 = vadd.f32 %v8292_v36, %v311_v41  ;;  %v1960_v55 = vpack.c.bf16 %v7034_v42, %v7026_v63  ;;  %v1804_v32 = vpack.c.bf16 %v7038_v4, %v7036_v1  ;;  %v641_v27 = vunpack.c.2.s8 %v431_v5 }
  0xae   :  { %v409_v35 = vmax.f32 %v403_v2, 0.0  ;;  %2132 = vmatpush.bf16.msrb.mxu2 %v8293_v45  ;;  %v8294_v37 = vpack.c.bf16 %v6875_v11, %v6873_v7  ;;  %v8295_v13 = vpack.c.bf16 %v6879_v61, %v6877_v14  ;;  %v7060_v33 = vcvt.s32.f32 %v850_v44  ;;  %v532_v2 = vld [vmem:[#allocation7 + $0x3c8] sm:$0xff] }
  0xaf   :  { %v410_v29 = vmax.f32 %v404_v53, 0.0  ;;  %v647_v54 = vunpack.c.3.s8 %v431_v5  ;;  %v737_v6 = vunpack.c.2.s8 %v455_v8  ;;  %v8296_v36 = vpack.c.bf16 %v6889_v34, %v6883_v17 }
  0xb0   :  { %2145 = vmatpush.bf16.msrb.mxu3 %v8294_v37  ;;  %2108 = vmatpush.bf16.msrb.mxu0 %v8295_v13  ;;  %v7062_v41 = vpack.c.bf16 %v409_v35, %v409_v35  ;;  %v7067_v53 = vcvt.s32.f32 %v641_v27  ;;  %v743_v45 = vunpack.c.3.s8 %v455_v8  ;;  %v952_v7 = vunpack.c.2.s8 %v508_v24 }
  0xb1   :  { %2121 = vmatpush.bf16.msrb.mxu1 %v8296_v36  ;;  %v7069_v11 = vpack.c.bf16 %v410_v29, %v410_v29  ;;  %v1852_v14 = vpack.c.bf16 %v7060_v33, %v7045_v51  ;;  %v7073_v61 = vcvt.s32.f32 %v647_v54  ;;  %v7075_v44 = vcvt.s32.f32 %v737_v6  ;;  %v497_v33 = vld [vmem:[#allocation7 + $0x2b0] sm:$0xff] }
  0xb2   :  { %v8297_v35 = vpack.c.bf16 %v6893_v18, %v6891_v15  ;;  %2061 = vmatmul.bf16.vlgmr.msra.gmra.mxu0 %v7062_v41  ;;  %v7081_v17 = vcvt.s32.f32 %v743_v45  ;;  %v958_v34 = vunpack.c.3.s8 %v508_v24  ;;  %v7083_v27 = vcvt.s32.f32 %v952_v7  ;;  %v300_v54 = vpop.f32.mrf.mxu0 }
  0xb3   :  { %v1048_v29 = vunpack.c.2.s8 %v532_v2  ;;  %v8298_v37 = vpack.c.bf16 %v6901_v31, %v6897_v57  ;;  %2074 = vmatmul.bf16.vlgmr.msra.gmra.mxu1 %v7069_v11  ;;  %v1054_v15 = vunpack.c.3.s8 %v532_v2  ;;  %v629_v18 = vunpack.c.0.s8 %v431_v5 }
  0xb4   :  { %2133 = vmatpush.bf16.msrb.mxu2 %v8297_v35  ;;  %v635_v6 = vunpack.c.1.s8 %v431_v5  ;;  %v8299_v36 = vpack.c.bf16 %v6905_v23, %v6903_v16  ;;  %v8300_v45 = vpack.c.bf16 %v6913_v9, %v6907_v12  ;;  %v1799_v31 = vpack.c.bf16 %v7081_v17, %v7075_v44  ;;  %v313_v35 = vpop.f32.mrf.mxu1  ;;  %v479_v23 = vld [vmem:[#allocation7 + $0x220] sm:$0xff] }
  0xb5   :  { %2146 = vmatpush.bf16.msrb.mxu3 %v8298_v37  ;;  %v7099_v57 = vcvt.s32.f32 %v958_v34  ;;  %v7101_v7 = vcvt.s32.f32 %v1048_v29  ;;  %v725_v37 = vunpack.c.0.s8 %v455_v8  ;;  %v7103_v54 = vcvt.s32.f32 %v1054_v15  ;;  %v419_v17 = vld [vmem:[#allocation7 + $0x40] sm:$0xff] }
  0xb6   :  { %2109 = vmatpush.bf16.msrb.mxu0 %v8299_v36  ;;  %2122 = vmatpush.bf16.msrb.mxu1 %v8300_v45  ;;  %v7105_v5 = vcvt.s32.f32 %v629_v18  ;;  %v7107_v13 = vcvt.s32.f32 %v635_v6  ;;  %v731_v16 = vunpack.c.1.s8 %v455_v8  ;;  %v8301_v12 = vpack.c.bf16 %v6921_v50, %v6919_v58  ;;  %v503_v45 = vld [vmem:[#allocation7 + $0x2e0] sm:$0xff] }
  0xb7   :  { %v1906_v9 = vpack.c.bf16 %v7099_v57, %v7083_v27  ;;  %v7114_v34 = vcvt.s32.f32 %v725_v37  ;;  %v940_v29 = vunpack.c.0.s8 %v508_v24  ;;  %v946_v36 = vunpack.c.1.s8 %v508_v24  ;;  %v425_v37 = vld [vmem:[#allocation7 + $0x70] sm:$0xff] }
  0xb8   :  { %2134 = vmatpush.bf16.msrb.mxu2 %v8301_v12  ;;  %v8302_v15 = vpack.c.bf16 %v6933_v47, %v6925_v30  ;;  %v1954_v8 = vpack.c.bf16 %v7103_v54, %v7101_v7  ;;  %v1745_v18 = vpack.c.bf16 %v7107_v13, %v7105_v5  ;;  %v7123_v50 = vcvt.s32.f32 %v731_v16 }
  0xb9   :  { %v1036_v58 = vunpack.c.0.s8 %v532_v2  ;;  %v8303_v6 = vpack.c.bf16 %v6941_v49, %v6939_v10  ;;  %v7131_v24 = vcvt.s32.f32 %v940_v29  ;;  %v7133_v30 = vcvt.s32.f32 %v946_v36  ;;  %2087 = vmatmul.bf16.vlgmr.msra.gmra.mxu2 %v6931_v56 }
  0xba   :  { %2147 = vmatpush.bf16.msrb.mxu3 %v8302_v15  ;;  %2123 = vmatpush.bf16.msrb.mxu1 %v1864_v38  ;;  %v1042_v47 = vunpack.c.1.s8 %v532_v2  ;;  %v833_v35 = vunpack.c.2.s8 %v479_v23  ;;  %v839_v10 = vunpack.c.3.s8 %v479_v23  ;;  %v929_v49 = vunpack.c.2.s8 %v503_v45  ;;  %v449_v15 = vld [vmem:[#allocation7 + $0x130] sm:$0xff] }
  0xbb   :  { %2110 = vmatpush.bf16.msrb.mxu0 %v8303_v6  ;;  %v7138_v12 = vcvt.s32.f32 %v1036_v58  ;;  %2100 = vmatmul.bf16.vlgmr.msra.gmra.mxu3 %v6937_v48  ;;  %v1900_v62 = vpack.c.bf16 %v7133_v30, %v7131_v24  ;;  %v935_v2 = vunpack.c.3.s8 %v503_v45  ;;  %v8304_v29 = vpack.c.bf16 %v6979_v26, %v6975_v60 }
  0xbc   :  { %2135 = vmatpush.bf16.msrb.mxu2 %v1918_v28  ;;  %v7146_v59 = vcvt.s32.f32 %v1042_v47  ;;  %v7148_v38 = vcvt.s32.f32 %v833_v35  ;;  %v7153_v36 = vcvt.s32.f32 %v839_v10  ;;  %v7155_v58 = vcvt.s32.f32 %v929_v49 }
  0xbd   :  { %v617_v6 = vunpack.c.2.s8 %v425_v37  ;;  %v623_v16 = vunpack.c.3.s8 %v425_v37  ;;  %v8305_v3 = vpack.c.bf16 %v6989_v0, %v6987_v25  ;;  %v7165_v28 = vcvt.s32.f32 %v935_v2 }
  0xbe   :  { %2148 = vmatpush.bf16.msrb.mxu3 %v8304_v29  ;;  %2124 = vmatpush.bf16.msrb.mxu1 %v1858_v20  ;;  %v1948_v39 = vpack.c.bf16 %v7146_v59, %v7138_v12  ;;  %v713_v60 = vunpack.c.2.s8 %v449_v15  ;;  %v719_v26 = vunpack.c.3.s8 %v449_v15  ;;  %v1847_v47 = vpack.c.bf16 %v7153_v36, %v7148_v38 }
  0xbf   :  { %2111 = vmatpush.bf16.msrb.mxu0 %v8305_v3  ;;  %v7169_v35 = vcvt.s32.f32 %v617_v6  ;;  %v7171_v10 = vcvt.s32.f32 %v623_v16  ;;  %v821_v25 = vunpack.c.0.s8 %v479_v23  ;;  %v1895_v0 = vpack.c.bf16 %v7165_v28, %v7155_v58 }
  0xc0   :  { %2136 = vmatpush.bf16.msrb.mxu2 %v1912_v19  ;;  %v7178_v43 = vcvt.s32.f32 %v713_v60  ;;  %v1295_v21 = vcvt.s32.f32 %v719_v26  ;;  %v827_v20 = vunpack.c.1.s8 %v479_v23  ;;  %v917_v49 = vunpack.c.0.s8 %v503_v45 }
  0xc1   :  { %v1739_v16 = vpack.c.bf16 %v7171_v10, %v7169_v35  ;;  %v7185_v12 = vcvt.s32.f32 %v821_v25  ;;  %v923_v59 = vunpack.c.1.s8 %v503_v45  ;;  %v605_v42 = vunpack.c.0.s8 %v425_v37  ;;  %v467_v10 = vld [vmem:[#allocation7 + $0x1c0] sm:$0xff] }
  0xc2   :  { %2149 = vmatpush.bf16.msrb.mxu3 %v1960_v55  ;;  %2125 = vmatpush.bf16.msrb.mxu1 %v1852_v14  ;;  %v1787_v22 = vpack.c.bf16 %v1295_v21, %v7178_v43  ;;  %v7196_v63 = vcvt.s32.f32 %v827_v20  ;;  %v611_v19 = vunpack.c.1.s8 %v425_v37  ;;  %v8306_v55 = vpack.c.bf16 %v7073_v61, %v7067_v53 }
  0xc3   :  { %2112 = vmatpush.bf16.msrb.mxu0 %v1804_v32  ;;  %v7204_v1 = vcvt.s32.f32 %v917_v49  ;;  %v7206_v4 = vcvt.s32.f32 %v923_v59  ;;  %v701_v51 = vunpack.c.0.s8 %v449_v15  ;;  %v707_v32 = vunpack.c.1.s8 %v449_v15 }
  0xc4   :  { %2137 = vmatpush.bf16.msrb.mxu2 %v1906_v9  ;;  %v1841_v14 = vpack.c.bf16 %v7196_v63, %v7185_v12  ;;  %v7213_v53 = vcvt.s32.f32 %v605_v42  ;;  %v1187_v61 = vcvt.s32.f32 %v611_v19  ;;  %v809_v44 = vunpack.c.2.s8 %v7187_v52  ;;  %v443_v9 = vld [vmem:[#allocation7 + $0x100] sm:$0xff]  ;;  %v413_v63 = vld [vmem:[#allocation7 + $0x10] sm:$0xff] }
  0xc5   :  { %v1277_v27 = vcvt.s32.f32 %v701_v51  ;;  %v1283_v57 = vcvt.s32.f32 %v707_v32  ;;  %v815_v23 = vunpack.c.3.s8 %v7187_v52  ;;  %2126 = vmatmul.bf16.vlgmr.msrb.gmra.mxu1 %v6992_v40  ;;  %v905_v15 = vunpack.c.2.s8 %v497_v33 }
  0xc6   :  { %2170 = vmatpush.bf16.msra.mxu1 %v1799_v31  ;;  %2150 = vmatpush.bf16.msrb.mxu3 %v1954_v8  ;;  %v1889_v31 = vpack.c.bf16 %v7206_v4, %v7204_v1  ;;  %v1733_v45 = vpack.c.bf16 %v1187_v61, %v7213_v53  ;;  %v1385_v37 = vcvt.s32.f32 %v809_v44  ;;  %v911_v38 = vunpack.c.3.s8 %v497_v33  ;;  %v437_v4 = vld [vmem:[#allocation7 + $0xd0] sm:$0xff] }
  0xc7   :  { %2157 = vmatpush.bf16.msra.mxu0 %v8306_v55  ;;  %v8307_v7 = vpack.c.bf16 %v7123_v50, %v7114_v34  ;;  %v1781_v54 = vpack.c.bf16 %v1283_v57, %v1277_v27  ;;  %v1391_v8 = vcvt.s32.f32 %v815_v23  ;;  %v593_v2 = vunpack.c.2.s8 %v419_v17 }
  0xc8   :  { %2113 = vmatmul.bf16.vlgmr.msrb.gmra.mxu0 %v6982_v46  ;;  %v599_v29 = vunpack.c.3.s8 %v419_v17  ;;  %2138 = vmatpush.bf16.msrb.mxu2 %v1900_v62  ;;  %v1481_v36 = vcvt.s32.f32 %v905_v15  ;;  %v1487_v58 = vcvt.s32.f32 %v911_v38  ;;  %v689_v6 = vunpack.c.2.s8 %v443_v9 }
  0xc9   :  { %v695_v3 = vunpack.c.3.s8 %v443_v9  ;;  %v1835_v13 = vpack.c.bf16 %v1391_v8, %v1385_v37  ;;  %v1169_v5 = vcvt.s32.f32 %v593_v2  ;;  %v797_v34 = vunpack.c.0.s8 %v7187_v52 }
  0xca   :  { %2171 = vmatpush.bf16.msra.mxu1 %v8307_v7  ;;  %2151 = vmatpush.bf16.msrb.mxu3 %v1948_v39  ;;  %v1883_v50 = vpack.c.bf16 %v1487_v58, %v1481_v36  ;;  %v1265_v28 = vcvt.s32.f32 %v689_v6  ;;  %v803_v26 = vunpack.c.1.s8 %v7187_v52  ;;  %v893_v62 = vunpack.c.0.s8 %v497_v33 }
  0xcb   :  { %2158 = vmatpush.bf16.msra.mxu0 %v1745_v18  ;;  %v1175_v18 = vcvt.s32.f32 %v599_v29  ;;  %v1271_v60 = vcvt.s32.f32 %v695_v3  ;;  %v1373_v30 = vcvt.s32.f32 %v797_v34  ;;  %v899_v35 = vunpack.c.1.s8 %v497_v33  ;;  %2139 = vmatmul.bf16.vlgmr.msrb.gmra.mxu2 %v7062_v41  ;;  %v7240_v29 = vpop.f32.mrf.mxu3 }
  0xcc   :  { %2183 = vmatpush.bf16.msra.mxu2 %v1847_v47  ;;  %v1379_v47 = vcvt.s32.f32 %v803_v26  ;;  %v581_v25 = vunpack.c.0.s8 %v419_v17  ;;  %v1469_v43 = vcvt.s32.f32 %v893_v62  ;;  %v677_v20 = vunpack.c.0.s8 %v443_v9 }
  0xcd   :  { %v1727_v24 = vpack.c.bf16 %v1175_v18, %v1169_v5  ;;  %2152 = vmatmul.bf16.vlgmr.msrb.gmra.mxu3 %v7069_v11  ;;  %v1775_v39 = vpack.c.bf16 %v1271_v60, %v1265_v28  ;;  %v1475_v21 = vcvt.s32.f32 %v899_v35  ;;  %v683_v12 = vunpack.c.1.s8 %v443_v9 }
  0xce   :  { %2196 = vmatpush.bf16.msra.mxu3 %v1895_v0  ;;  %2172 = vmatpush.bf16.msra.mxu1 %v1787_v22  ;;  %v587_v0 = vunpack.c.1.s8 %v419_v17  ;;  %v1829_v49 = vpack.c.bf16 %v1379_v47, %v1373_v30  ;;  %v1157_v59 = vcvt.s32.f32 %v581_v25  ;;  %v785_v22 = vunpack.c.2.s8 %v467_v10  ;;  %v551_v30 = vld [vmem:[#allocation7 + $0x460] sm:$0xff]  ;;  %v461_v47 = vld [vmem:[#allocation7 + $0x190] sm:$0xff] }
  0xcf   :  { %2159 = vmatpush.bf16.msra.mxu0 %v1739_v16  ;;  %v491_v16 = vld [vmem:[#allocation7 + $0x280] sm:$0xff]  ;;  %v1877_v42 = vpack.c.bf16 %v1475_v21, %v1469_v43  ;;  %v1253_v19 = vcvt.s32.f32 %v677_v20  ;;  %v1259_v55 = vcvt.s32.f32 %v683_v12  ;;  %v791_v1 = vunpack.c.3.s8 %v467_v10  ;;  %v485_v20 = vld [vmem:[#allocation7 + $0x250] sm:$0xff] }
  0xd0   :  { %2184 = vmatpush.bf16.msra.mxu2 %v1841_v14  ;;  %v1163_v52 = vcvt.s32.f32 %v587_v0  ;;  %v1361_v32 = vcvt.s32.f32 %v785_v22  ;;  %v881_v33 = vunpack.c.2.s8 %v491_v16  ;;  %v887_v14 = vunpack.c.3.s8 %v491_v16 }
  0xd1   :  { %v1769_v53 = vpack.c.bf16 %v1259_v55, %v1253_v19  ;;  %v1367_v61 = vcvt.s32.f32 %v791_v1  ;;  %v569_v44 = vunpack.c.2.s8 %v413_v63  ;;  %v575_v17 = vunpack.c.3.s8 %v413_v63 }
  0xd2   :  { %2197 = vmatpush.bf16.msra.mxu3 %v1889_v31  ;;  %2173 = vmatpush.bf16.msra.mxu1 %v1781_v54  ;;  %v1721_v51 = vpack.c.bf16 %v1163_v52, %v1157_v59  ;;  %v7238_v31 = vpop.f32.mrf.mxu2  ;;  %v1457_v27 = vcvt.s32.f32 %v881_v33  ;;  %v1463_v57 = vcvt.s32.f32 %v887_v14  ;;  %v665_v23 = vunpack.c.2.s8 %v437_v4 }
  0xd3   :  { %2160 = vmatpush.bf16.msra.mxu0 %v1733_v45  ;;  %v671_v9 = vunpack.c.3.s8 %v437_v4  ;;  %v1823_v45 = vpack.c.bf16 %v1367_v61, %v1361_v32  ;;  %v1145_v37 = vcvt.s32.f32 %v569_v44  ;;  %v1151_v15 = vcvt.s32.f32 %v575_v17  ;;  %v339_v32 = vpop.f32.mrf.mxu3 }
  0xd4   :  { %2185 = vmatpush.bf16.msra.mxu2 %v1835_v13  ;;  %v773_v38 = vunpack.c.0.s8 %v467_v10  ;;  %v1871_v7 = vpack.c.bf16 %v1463_v57, %v1457_v27  ;;  %v1241_v54 = vcvt.s32.f32 %v665_v23  ;;  %v779_v2 = vunpack.c.1.s8 %v467_v10  ;;  %v527_v13 = vld [vmem:[#allocation7 + $0x3a0] sm:$0xff] }
  0xd5   :  { %v1247_v8 = vcvt.s32.f32 %v671_v9  ;;  %v1715_v36 = vpack.c.bf16 %v1151_v15, %v1145_v37  ;;  %v869_v6 = vunpack.c.0.s8 %v491_v16  ;;  %v875_v3 = vunpack.c.1.s8 %v491_v16  ;;  %v432_v15 = vld [vmem:[#allocation7 + $0xa8] sm:$0xff] }
  0xd6   :  { %2198 = vmatpush.bf16.msra.mxu3 %v1883_v50  ;;  %2174 = vmatpush.bf16.msra.mxu1 %v1775_v39  ;;  %v1349_v58 = vcvt.s32.f32 %v773_v38  ;;  %v1355_v18 = vcvt.s32.f32 %v779_v2  ;;  %v557_v34 = vunpack.c.0.s8 %v413_v63  ;;  %v563_v50 = vunpack.c.1.s8 %v413_v63 }
  0xd7   :  { %2161 = vmatpush.bf16.msra.mxu0 %v1727_v24  ;;  %v1763_v5 = vpack.c.bf16 %v1247_v8, %v1241_v54  ;;  %v1445_v28 = vcvt.s32.f32 %v869_v6  ;;  %v1451_v60 = vcvt.s32.f32 %v875_v3  ;;  %v653_v26 = vunpack.c.0.s8 %v437_v4  ;;  %v456_v3 = vld [vmem:[#allocation7 + $0x168] sm:$0xff] }
  0xd8   :  { %2186 = vmatpush.bf16.msra.mxu2 %v1829_v49  ;;  %v659_v24 = vunpack.c.1.s8 %v437_v4  ;;  %v1817_v62 = vpack.c.bf16 %v1355_v18, %v1349_v58  ;;  %v1133_v35 = vcvt.s32.f32 %v557_v34  ;;  %v1139_v10 = vcvt.s32.f32 %v563_v50  ;;  %v521_v50 = vld [vmem:[#allocation7 + $0x370] sm:$0xff] }
  0xd9   :  { %v1025_v39 = vunpack.c.2.s8 %v527_v13  ;;  %v1865_v25 = vpack.c.bf16 %v1451_v60, %v1445_v28  ;;  %v1229_v0 = vcvt.s32.f32 %v653_v26  ;;  %v1031_v21 = vunpack.c.3.s8 %v527_v13 }
  0xda   :  { %2199 = vmatpush.bf16.msra.mxu3 %v1877_v42  ;;  %2175 = vmatpush.bf16.msra.mxu1 %v1769_v53  ;;  %v1235_v43 = vcvt.s32.f32 %v659_v24  ;;  %v326_v12 = vpop.f32.mrf.mxu2  ;;  %v1709_v16 = vpack.c.bf16 %v1139_v10, %v1133_v35  ;;  %v1121_v59 = vunpack.c.2.s8 %v551_v30  ;;  %v1127_v52 = vunpack.c.3.s8 %v551_v30 }
  0xdb   :  { %2162 = vmatpush.bf16.msra.mxu0 %v1721_v51  ;;  %v1601_v49 = vcvt.s32.f32 %v1025_v39  ;;  %v1607_v63 = vcvt.s32.f32 %v1031_v21  ;;  %v761_v42 = vunpack.c.2.s8 %v461_v47  ;;  %v767_v19 = vunpack.c.3.s8 %v461_v47 }
  0xdc   :  { %2187 = vmatpush.bf16.msra.mxu2 %v1823_v45  ;;  %v1757_v22 = vpack.c.bf16 %v1235_v43, %v1229_v0  ;;  %v1697_v55 = vcvt.s32.f32 %v1121_v59  ;;  %v1703_v1 = vcvt.s32.f32 %v1127_v52  ;;  %v857_v4 = vunpack.c.2.s8 %v485_v20 }
  0xdd   :  { %v863_v51 = vunpack.c.3.s8 %v485_v20  ;;  %v1943_v33 = vpack.c.bf16 %v1607_v63, %v1601_v49  ;;  %v1337_v14 = vcvt.s32.f32 %v761_v42  ;;  %v1343_v53 = vcvt.s32.f32 %v767_v19 }
  0xde   :  { %2200 = vmatpush.bf16.msra.mxu3 %v1871_v7  ;;  %2176 = vmatpush.bf16.msra.mxu1 %v1763_v5  ;;  %v1013_v61 = vunpack.c.0.s8 %v527_v13  ;;  %v1991_v44 = vpack.c.bf16 %v1703_v1, %v1697_v55  ;;  %v1433_v17 = vcvt.s32.f32 %v857_v4  ;;  %v1019_v57 = vunpack.c.1.s8 %v527_v13 }
  0xdf   :  { %2163 = vmatpush.bf16.msra.mxu0 %v1715_v36  ;;  %v1439_v27 = vcvt.s32.f32 %v863_v51  ;;  %v1811_v23 = vpack.c.bf16 %v1343_v53, %v1337_v14  ;;  %v1109_v45 = vunpack.c.0.s8 %v551_v30  ;;  %v1115_v37 = vunpack.c.1.s8 %v551_v30  ;;  %v545_v30 = vld [vmem:[#allocation7 + $0x430] sm:$0xff] }
  0xe0   :  { %2188 = vmatpush.bf16.msra.mxu2 %v1817_v62  ;;  %v1589_v9 = vcvt.s32.f32 %v1013_v61  ;;  %v1595_v7 = vcvt.s32.f32 %v1019_v57  ;;  %v749_v54 = vunpack.c.0.s8 %v461_v47  ;;  %v755_v8 = vunpack.c.1.s8 %v461_v47 }
  0xe1   :  { %v1859_v38 = vpack.c.bf16 %v1439_v27, %v1433_v17  ;;  %v1685_v2 = vcvt.s32.f32 %v1109_v45  ;;  %v1691_v36 = vcvt.s32.f32 %v1115_v37  ;;  %v845_v58 = vunpack.c.0.s8 %v485_v20 }
  0xe2   :  { %2201 = vmatpush.bf16.msra.mxu3 %v1865_v25  ;;  %2177 = vmatpush.bf16.msra.mxu1 %v1757_v22  ;;  %v851_v6 = vunpack.c.1.s8 %v485_v20  ;;  %v1937_v13 = vpack.c.bf16 %v1595_v7, %v1589_v9  ;;  %v1325_v5 = vcvt.s32.f32 %v749_v54  ;;  %v1331_v18 = vcvt.s32.f32 %v755_v8  ;;  %v450_v9 = vld [vmem:[#allocation7 + $0x138] sm:$0xff]  ;;  %v515_v7 = vld [vmem:[#allocation7 + $0x340] sm:$0xff] }
  0xe3   :  { %2164 = vmatpush.bf16.msra.mxu0 %v1709_v16  ;;  %v642_v34 = vunpack.c.2.s8 %v432_v15  ;;  %v1985_v28 = vpack.c.bf16 %v1691_v36, %v1685_v2  ;;  %v1421_v60 = vcvt.s32.f32 %v845_v58  ;;  %v648_v24 = vunpack.c.3.s8 %v432_v15  ;;  %v539_v58 = vld [vmem:[#allocation7 + $0x400] sm:$0xff] }
  0xe4   :  { %2189 = vmatpush.bf16.msra.mxu2 %v1811_v23  ;;  %v1427_v26 = vcvt.s32.f32 %v851_v6  ;;  %v1805_v62 = vpack.c.bf16 %v1331_v18, %v1325_v5  ;;  %v738_v10 = vunpack.c.2.s8 %v456_v3  ;;  %v744_v39 = vunpack.c.3.s8 %v456_v3 }
  0xe5   :  { %2178 = vmatmul.bf16.vlgmr.msra.gmra.mxu1 %v6937_v48  ;;  %v1218_v35 = vcvt.s32.f32 %v642_v34  ;;  %v1224_v25 = vcvt.s32.f32 %v648_v24  ;;  %v1001_v0 = vunpack.c.2.s8 %v521_v50  ;;  %v1007_v43 = vunpack.c.3.s8 %v521_v50 }
  0xe6   :  { %2222 = vmatpush.bf16.msrb.mxu1 %v1991_v44  ;;  %2202 = vmatpush.bf16.msra.mxu3 %v1859_v38  ;;  %v1853_v47 = vpack.c.bf16 %v1427_v26, %v1421_v60  ;;  %v1314_v21 = vcvt.s32.f32 %v738_v10  ;;  %v1320_v20 = vcvt.s32.f32 %v744_v39  ;;  %v1097_v12 = vunpack.c.2.s8 %v545_v30 }
  0xe7   :  { %2209 = vmatpush.bf16.msrb.mxu0 %v1943_v33  ;;  %v1103_v16 = vunpack.c.3.s8 %v545_v30  ;;  %v1752_v49 = vpack.c.bf16 %v1224_v25, %v1218_v35  ;;  %v1577_v59 = vcvt.s32.f32 %v1001_v0  ;;  %v1583_v52 = vcvt.s32.f32 %v1007_v43  ;;  %v426_v33 = vld [vmem:[#allocation7 + $0x78] sm:$0xff] }
  0xe8   :  { %2165 = vmatmul.bf16.vlgmr.msra.gmra.mxu0 %v6931_v56  ;;  %2190 = vmatpush.bf16.msra.mxu2 %v1805_v62  ;;  %v630_v22 = vunpack.c.0.s8 %v432_v15  ;;  %v1800_v63 = vpack.c.bf16 %v1320_v20, %v1314_v21  ;;  %v1673_v42 = vcvt.s32.f32 %v1097_v12  ;;  %v636_v55 = vunpack.c.1.s8 %v432_v15 }
  0xe9   :  { %v1679_v19 = vcvt.s32.f32 %v1103_v16  ;;  %v1931_v1 = vpack.c.bf16 %v1583_v52, %v1577_v59  ;;  %v726_v51 = vunpack.c.0.s8 %v456_v3  ;;  %v732_v32 = vunpack.c.1.s8 %v456_v3 }
  0xea   :  { %2223 = vmatpush.bf16.msrb.mxu1 %v1985_v28  ;;  %2203 = vmatpush.bf16.msra.mxu3 %v1853_v47  ;;  %v1206_v4 = vcvt.s32.f32 %v630_v22  ;;  %v1212_v53 = vcvt.s32.f32 %v636_v55  ;;  %v989_v61 = vunpack.c.0.s8 %v521_v50  ;;  %v995_v44 = vunpack.c.1.s8 %v521_v50 }
  0xeb   :  { %2210 = vmatpush.bf16.msrb.mxu0 %v1937_v13  ;;  %2191 = vmatmul.bf16.vlgmr.msra.gmra.mxu2 %v6982_v46  ;;  %v1979_v14 = vpack.c.bf16 %v1679_v19, %v1673_v42  ;;  %v1302_v17 = vcvt.s32.f32 %v726_v51  ;;  %v1308_v27 = vcvt.s32.f32 %v732_v32  ;;  %v1085_v57 = vunpack.c.0.s8 %v545_v30  ;;  %v7246_v42 = vpop.f32.mrf.mxu0  ;;  %v444_v51 = vld [vmem:[#allocation7 + $0x108] sm:$0xff] }
  0xec   :  { %2235 = vmatpush.bf16.msrb.mxu2 %v1752_v49  ;;  %v1091_v23 = vunpack.c.1.s8 %v545_v30  ;;  %v1746_v45 = vpack.c.bf16 %v1212_v53, %v1206_v4  ;;  %v1565_v37 = vcvt.s32.f32 %v989_v61  ;;  %v1571_v15 = vcvt.s32.f32 %v995_v44  ;;  %v420_v49 = vld [vmem:[#allocation7 + $0x48] sm:$0xff]  ;;  %v509_v61 = vld [vmem:[#allocation7 + $0x310] sm:$0xff] }
  0xed   :  { %2204 = vmatmul.bf16.vlgmr.msra.gmra.mxu3 %v6992_v40  ;;  %v618_v38 = vunpack.c.2.s8 %v426_v33  ;;  %v1794_v54 = vpack.c.bf16 %v1308_v27, %v1302_v17  ;;  %v1661_v8 = vcvt.s32.f32 %v1085_v57  ;;  %v624_v36 = vunpack.c.3.s8 %v426_v33 }
  0xee   :  { %2248 = vmatpush.bf16.msrb.mxu3 %v1800_v63  ;;  %2224 = vmatpush.bf16.msrb.mxu1 %v1979_v14  ;;  %v1667_v2 = vcvt.s32.f32 %v1091_v23  ;;  %v1925_v6 = vpack.c.bf16 %v1571_v15, %v1565_v37  ;;  %v714_v13 = vunpack.c.2.s8 %v450_v9  ;;  %v720_v5 = vunpack.c.3.s8 %v450_v9  ;;  %v533_v23 = vld [vmem:[#allocation7 + $0x3d0] sm:$0xff] }
  0xef   :  { %2211 = vmatpush.bf16.msrb.mxu0 %v1931_v1  ;;  %v1194_v3 = vcvt.s32.f32 %v618_v38  ;;  %v1200_v34 = vcvt.s32.f32 %v624_v36  ;;  %v977_v50 = vunpack.c.2.s8 %v515_v7  ;;  %v983_v28 = vunpack.c.3.s8 %v515_v7  ;;  %v7250_v36 = vpop.f32.mrf.mxu2 }
  0xf0   :  { %2236 = vmatpush.bf16.msrb.mxu2 %v1746_v45  ;;  %v1973_v18 = vpack.c.bf16 %v1667_v2, %v1661_v8  ;;  %v1290_v60 = vcvt.s32.f32 %v714_v13  ;;  %v1296_v26 = vcvt.s32.f32 %v720_v5  ;;  %v1073_v24 = vunpack.c.2.s8 %v539_v58 }
  0xf1   :  { %v1079_v30 = vunpack.c.3.s8 %v539_v58  ;;  %v1740_v62 = vpack.c.bf16 %v1200_v34, %v1194_v3  ;;  %v1553_v35 = vcvt.s32.f32 %v977_v50  ;;  %v1559_v10 = vcvt.s32.f32 %v983_v28 }
  0xf2   :  { %2249 = vmatpush.bf16.msrb.mxu3 %v1794_v54  ;;  %2225 = vmatpush.bf16.msrb.mxu1 %v1973_v18  ;;  %v606_v39 = vunpack.c.0.s8 %v426_v33  ;;  %v1788_v47 = vpack.c.bf16 %v1296_v26, %v1290_v60  ;;  %v1649_v25 = vcvt.s32.f32 %v1073_v24  ;;  %v612_v43 = vunpack.c.1.s8 %v426_v33 }
  0xf3   :  { %2212 = vmatpush.bf16.msrb.mxu0 %v1925_v6  ;;  %v1655_v0 = vcvt.s32.f32 %v1079_v30  ;;  %v1919_v21 = vpack.c.bf16 %v1559_v10, %v1553_v35  ;;  %v702_v12 = vunpack.c.0.s8 %v450_v9  ;;  %v708_v16 = vunpack.c.1.s8 %v450_v9  ;;  %v7248_v9 = vpop.f32.mrf.mxu1  ;;  %v7252_v30 = vpop.f32.mrf.mxu3 }
  0xf4   :  { %2237 = vmatpush.bf16.msrb.mxu2 %v1740_v62  ;;  %v1182_v20 = vcvt.s32.f32 %v606_v39  ;;  %v1188_v52 = vcvt.s32.f32 %v612_v43  ;;  %v965_v22 = vunpack.c.0.s8 %v515_v7  ;;  %v971_v63 = vunpack.c.1.s8 %v515_v7  ;;  %v352_v62 = vpop.f32.mrf.mxu0 }
  0xf5   :  { %v1967_v59 = vpack.c.bf16 %v1655_v0, %v1649_v25  ;;  %v1278_v19 = vcvt.s32.f32 %v702_v12  ;;  %v1284_v55 = vcvt.s32.f32 %v708_v16  ;;  %v1061_v1 = vunpack.c.0.s8 %v539_v58  ;;  %v480_v25 = vld [vmem:[#allocation7 + $0x228] sm:$0xff] }
  0xf6   :  { %2250 = vmatpush.bf16.msrb.mxu3 %v1788_v47  ;;  %v1067_v4 = vunpack.c.1.s8 %v539_v58  ;;  %v1734_v32 = vpack.c.bf16 %v1188_v52, %v1182_v20  ;;  %v1541_v33 = vcvt.s32.f32 %v965_v22  ;;  %v1547_v14 = vcvt.s32.f32 %v971_v63  ;;  %v528_v62 = vld [vmem:[#allocation7 + $0x3a8] sm:$0xff] }
  0xf7   :  { %2213 = vmatpush.bf16.msrb.mxu0 %v1919_v21  ;;  %2226 = vmatpush.bf16.msrb.mxu1 %v1967_v59  ;;  %v594_v53 = vunpack.c.2.s8 %v420_v49  ;;  %v1782_v44 = vpack.c.bf16 %v1284_v55, %v1278_v19  ;;  %v1637_v17 = vcvt.s32.f32 %v1061_v1  ;;  %v600_v57 = vunpack.c.3.s8 %v420_v49 }
  0xf8   :  { %v1643_v27 = vcvt.s32.f32 %v1067_v4  ;;  %2238 = vmatpush.bf16.msrb.mxu2 %v1734_v32  ;;  %v1913_v45 = vpack.c.bf16 %v1547_v14, %v1541_v33  ;;  %v690_v15 = vunpack.c.2.s8 %v444_v51  ;;  %v696_v38 = vunpack.c.3.s8 %v444_v51  ;;  %v414_v4 = vld [vmem:[#allocation7 + $0x18] sm:$0xff] }
  0xf9   :  { %v1170_v37 = vcvt.s32.f32 %v594_v53  ;;  %v1176_v54 = vcvt.s32.f32 %v600_v57  ;;  %v953_v8 = vunpack.c.2.s8 %v509_v61  ;;  %v959_v2 = vunpack.c.3.s8 %v509_v61  ;;  %v438_v53 = vld [vmem:[#allocation7 + $0xd8] sm:$0xff] }
  0xfa   :  { %2251 = vmatpush.bf16.msrb.mxu3 %v1782_v44  ;;  %v1961_v7 = vpack.c.bf16 %v1643_v27, %v1637_v17  ;;  %v1266_v58 = vcvt.s32.f32 %v690_v15  ;;  %v1272_v6 = vcvt.s32.f32 %v696_v38  ;;  %v1049_v3 = vunpack.c.2.s8 %v533_v23  ;;  %v378_v44 = vpop.f32.mrf.mxu2 }
  0xfb   :  { %2214 = vmatpush.bf16.msrb.mxu0 %v1913_v45  ;;  %v1055_v13 = vunpack.c.3.s8 %v533_v23  ;;  %v1728_v5 = vpack.c.bf16 %v1176_v54, %v1170_v37  ;;  %v1529_v18 = vcvt.s32.f32 %v953_v8  ;;  %v1535_v34 = vcvt.s32.f32 %v959_v2  ;;  %v365_v22 = vpop.f32.mrf.mxu1  ;;  %v391_v2 = vpop.f32.mrf.mxu3 }
  0xfc   :  { %2227 = vmatpush.bf16.msrb.mxu1 %v1961_v7  ;;  %v582_v50 = vunpack.c.0.s8 %v420_v49  ;;  %v1776_v28 = vpack.c.bf16 %v1272_v6, %v1266_v58  ;;  %v1625_v60 = vcvt.s32.f32 %v1049_v3  ;;  %v588_v24 = vunpack.c.1.s8 %v420_v49  ;;  %v504_v49 = vld [vmem:[#allocation7 + $0x2e8] sm:$0xff] }
  0xfd   :  { %v1631_v26 = vcvt.s32.f32 %v1055_v13  ;;  %2239 = vmatpush.bf16.msrb.mxu2 %v1728_v5  ;;  %v1907_v35 = vpack.c.bf16 %v1535_v34, %v1529_v18  ;;  %v678_v39 = vunpack.c.0.s8 %v444_v51  ;;  %v684_v47 = vunpack.c.1.s8 %v444_v51 }
  0xfe   :  { %v1158_v10 = vcvt.s32.f32 %v582_v50  ;;  %2252 = vmatpush.bf16.msrb.mxu3 %v1776_v28  ;;  %v1164_v43 = vcvt.s32.f32 %v588_v24  ;;  %v941_v21 = vunpack.c.0.s8 %v509_v61  ;;  %v947_v20 = vunpack.c.1.s8 %v509_v61 }
  0xff   :  { %v1955_v0 = vpack.c.bf16 %v1631_v26, %v1625_v60  ;;  %2215 = vmatpush.bf16.msrb.mxu0 %v1907_v35  ;;  %v1254_v12 = vcvt.s32.f32 %v678_v39  ;;  %v1260_v16 = vcvt.s32.f32 %v684_v47  ;;  %v1037_v59 = vunpack.c.0.s8 %v533_v23 }
 0x100   :  { %v1043_v52 = vunpack.c.1.s8 %v533_v23  ;;  %v1722_v63 = vpack.c.bf16 %v1164_v43, %v1158_v10  ;;  %v1517_v19 = vcvt.s32.f32 %v941_v21  ;;  %v1523_v55 = vcvt.s32.f32 %v947_v20  ;;  %v552_v20 = vld [vmem:[#allocation7 + $0x468] sm:$0xff] }
 0x101   :  { %2228 = vmatpush.bf16.msrb.mxu1 %v1955_v0  ;;  %v834_v1 = vunpack.c.2.s8 %v480_v25  ;;  %v1770_v51 = vpack.c.bf16 %v1260_v16, %v1254_v12  ;;  %v1613_v32 = vcvt.s32.f32 %v1037_v59  ;;  %v840_v14 = vunpack.c.3.s8 %v480_v25 }
 0x102   :  { %v1619_v33 = vcvt.s32.f32 %v1043_v52  ;;  %2240 = vmatpush.bf16.msrb.mxu2 %v1722_v63  ;;  %v1901_v61 = vpack.c.bf16 %v1523_v55, %v1517_v19  ;;  %v930_v27 = vunpack.c.2.s8 %v504_v49  ;;  %v936_v57 = vunpack.c.3.s8 %v504_v49 }
 0x103   :  { %v1410_v17 = vcvt.s32.f32 %v834_v1  ;;  %2253 = vmatpush.bf16.msrb.mxu3 %v1770_v51  ;;  %v1416_v45 = vcvt.s32.f32 %v840_v14  ;;  %v570_v37 = vunpack.c.2.s8 %v414_v4  ;;  %v576_v15 = vunpack.c.3.s8 %v414_v4  ;;  %v498_v1 = vld [vmem:[#allocation7 + $0x2b8] sm:$0xff] }
 0x104   :  { %v1949_v23 = vpack.c.bf16 %v1619_v33, %v1613_v32  ;;  %2216 = vmatpush.bf16.msrb.mxu0 %v1901_v61  ;;  %v1506_v38 = vcvt.s32.f32 %v930_v27  ;;  %v1512_v7 = vcvt.s32.f32 %v936_v57  ;;  %v666_v54 = vunpack.c.2.s8 %v438_v53 }
 0x105   :  { %v672_v8 = vunpack.c.3.s8 %v438_v53  ;;  %v1848_v58 = vpack.c.bf16 %v1416_v45, %v1410_v17  ;;  %v1146_v6 = vcvt.s32.f32 %v570_v37  ;;  %v1152_v3 = vcvt.s32.f32 %v576_v15 }
 0x106   :  { %2229 = vmatpush.bf16.msrb.mxu1 %v1949_v23  ;;  %v822_v13 = vunpack.c.0.s8 %v480_v25  ;;  %v1896_v5 = vpack.c.bf16 %v1512_v7, %v1506_v38  ;;  %v1242_v18 = vcvt.s32.f32 %v666_v54  ;;  %v828_v50 = vunpack.c.1.s8 %v480_v25 }
 0x107   :  { %v1248_v34 = vcvt.s32.f32 %v672_v8  ;;  %v1716_v28 = vpack.c.bf16 %v1152_v3, %v1146_v6  ;;  %v918_v26 = vunpack.c.0.s8 %v504_v49  ;;  %v924_v24 = vunpack.c.1.s8 %v504_v49  ;;  %2217 = vmatmul.bf16.vlgmr.msrb.gmra.mxu0 %v7062_v41  ;;  %v474_v49 = vld [vmem:[#allocation7 + $0x1f8] sm:$0xff] }
 0x108   :  { %2261 = vmatpush.bf16.msra.mxu0 %v1848_v58  ;;  %v1398_v60 = vcvt.s32.f32 %v822_v13  ;;  %v1404_v10 = vcvt.s32.f32 %v828_v50  ;;  %v558_v39 = vunpack.c.0.s8 %v414_v4  ;;  %v564_v47 = vunpack.c.1.s8 %v414_v4 }
 0x109   :  { %v1764_v35 = vpack.c.bf16 %v1248_v34, %v1242_v18  ;;  %2241 = vmatpush.bf16.msrb.mxu2 %v1716_v28  ;;  %2230 = vmatmul.bf16.vlgmr.msrb.gmra.mxu1 %v7069_v11  ;;  %v1494_v0 = vcvt.s32.f32 %v918_v26  ;;  %v1500_v43 = vcvt.s32.f32 %v924_v24  ;;  %v654_v21 = vunpack.c.0.s8 %v438_v53 }
 0x10a   :  { %2274 = vmatpush.bf16.msra.mxu1 %v1896_v5  ;;  %v660_v25 = vunpack.c.1.s8 %v438_v53  ;;  %v1842_v12 = vpack.c.bf16 %v1404_v10, %v1398_v60  ;;  %v1134_v16 = vcvt.s32.f32 %v558_v39  ;;  %v1140_v59 = vcvt.s32.f32 %v564_v47  ;;  %v522_v5 = vld [vmem:[#allocation7 + $0x378] sm:$0xff] }
 0x10b   :  { %2254 = vmatpush.bf16.msrb.mxu3 %v1764_v35  ;;  %v1026_v52 = vunpack.c.2.s8 %v528_v62  ;;  %v1890_v22 = vpack.c.bf16 %v1500_v43, %v1494_v0  ;;  %v1230_v63 = vcvt.s32.f32 %v654_v21  ;;  %v1032_v55 = vunpack.c.3.s8 %v528_v62  ;;  %v546_v35 = vld [vmem:[#allocation7 + $0x438] sm:$0xff]  ;;  %v468_v43 = vld [vmem:[#allocation7 + $0x1c8] sm:$0xff] }
 0x10c   :  { %v1236_v19 = vcvt.s32.f32 %v660_v25  ;;  %2262 = vmatpush.bf16.msra.mxu0 %v1842_v12  ;;  %v1710_v4 = vpack.c.bf16 %v1140_v59, %v1134_v16  ;;  %v1122_v32 = vunpack.c.2.s8 %v552_v20  ;;  %v1128_v33 = vunpack.c.3.s8 %v552_v20  ;;  %v492_v16 = vld [vmem:[#allocation7 + $0x288] sm:$0xff] }
 0x10d   :  { %v1602_v51 = vcvt.s32.f32 %v1026_v52  ;;  %v1608_v53 = vcvt.s32.f32 %v1032_v55  ;;  %v810_v44 = vunpack.c.2.s8 %v474_v49  ;;  %v816_v61 = vunpack.c.3.s8 %v474_v49 }
 0x10e   :  { %2275 = vmatpush.bf16.msra.mxu1 %v1890_v22  ;;  %v1758_v14 = vpack.c.bf16 %v1236_v19, %v1230_v63  ;;  %2242 = vmatpush.bf16.msrb.mxu2 %v1710_v4  ;;  %v1698_v17 = vcvt.s32.f32 %v1122_v32  ;;  %v1704_v27 = vcvt.s32.f32 %v1128_v33  ;;  %v906_v57 = vunpack.c.2.s8 %v498_v1 }
 0x10f   :  { %v912_v23 = vunpack.c.3.s8 %v498_v1  ;;  %v1944_v45 = vpack.c.bf16 %v1608_v53, %v1602_v51  ;;  %v1386_v37 = vcvt.s32.f32 %v810_v44  ;;  %v1392_v15 = vcvt.s32.f32 %v816_v61 }
 0x110   :  { %2255 = vmatpush.bf16.msrb.mxu3 %v1758_v14  ;;  %v1014_v38 = vunpack.c.0.s8 %v528_v62  ;;  %v1992_v7 = vpack.c.bf16 %v1704_v27, %v1698_v17  ;;  %v1482_v54 = vcvt.s32.f32 %v906_v57  ;;  %v1020_v2 = vunpack.c.1.s8 %v528_v62 }
 0x111   :  { %v1488_v8 = vcvt.s32.f32 %v912_v23  ;;  %v1836_v58 = vpack.c.bf16 %v1392_v15, %v1386_v37  ;;  %v1110_v3 = vunpack.c.0.s8 %v552_v20  ;;  %v1116_v13 = vunpack.c.1.s8 %v552_v20  ;;  %2243 = vmatmul.bf16.vlgmr.msrb.gmra.mxu2 %v6931_v56 }
 0x112   :  { %2287 = vmatpush.bf16.msra.mxu2 %v1944_v45  ;;  %v1590_v6 = vcvt.s32.f32 %v1014_v38  ;;  %v1596_v34 = vcvt.s32.f32 %v1020_v2  ;;  %v798_v50 = vunpack.c.0.s8 %v474_v49  ;;  %v804_v28 = vunpack.c.1.s8 %v474_v49 }
 0x113   :  { %v1884_v18 = vpack.c.bf16 %v1488_v8, %v1482_v54  ;;  %2256 = vmatmul.bf16.vlgmr.msrb.gmra.mxu3 %v6937_v48  ;;  %2263 = vmatpush.bf16.msra.mxu0 %v1836_v58  ;;  %v1686_v60 = vcvt.s32.f32 %v1110_v3  ;;  %v1692_v26 = vcvt.s32.f32 %v1116_v13  ;;  %v894_v24 = vunpack.c.0.s8 %v498_v1 }
 0x114   :  { %2300 = vmatpush.bf16.msra.mxu3 %v1992_v7  ;;  %v900_v62 = vunpack.c.1.s8 %v498_v1  ;;  %v1938_v10 = vpack.c.bf16 %v1596_v34, %v1590_v6  ;;  %v1374_v39 = vcvt.s32.f32 %v798_v50  ;;  %v1380_v47 = vcvt.s32.f32 %v804_v28  ;;  %v516_v7 = vld [vmem:[#allocation7 + $0x348] sm:$0xff] }
 0x115   :  { %2276 = vmatpush.bf16.msra.mxu1 %v1884_v18  ;;  %v1002_v0 = vunpack.c.2.s8 %v522_v5  ;;  %v1986_v21 = vpack.c.bf16 %v1692_v26, %v1686_v60  ;;  %v1470_v25 = vcvt.s32.f32 %v894_v24  ;;  %v1008_v12 = vunpack.c.3.s8 %v522_v5  ;;  %v540_v34 = vld [vmem:[#allocation7 + $0x408] sm:$0xff]  ;;  %v462_v26 = vld [vmem:[#allocation7 + $0x198] sm:$0xff] }
 0x116   :  { %v1476_v20 = vcvt.s32.f32 %v900_v62  ;;  %2288 = vmatpush.bf16.msra.mxu2 %v1938_v10  ;;  %v1830_v59 = vpack.c.bf16 %v1380_v47, %v1374_v39  ;;  %v1098_v49 = vunpack.c.2.s8 %v546_v35  ;;  %v1104_v22 = vunpack.c.3.s8 %v546_v35  ;;  %v486_v39 = vld [vmem:[#allocation7 + $0x258] sm:$0xff] }
 0x117   :  { %v1578_v52 = vcvt.s32.f32 %v1002_v0  ;;  %v1584_v19 = vcvt.s32.f32 %v1008_v12  ;;  %v786_v55 = vunpack.c.2.s8 %v468_v43  ;;  %v792_v1 = vunpack.c.3.s8 %v468_v43 }
 0x118   :  { %2301 = vmatpush.bf16.msra.mxu3 %v1986_v21  ;;  %v1878_v63 = vpack.c.bf16 %v1476_v20, %v1470_v25  ;;  %2264 = vmatpush.bf16.msra.mxu0 %v1830_v59  ;;  %v1674_v4 = vcvt.s32.f32 %v1098_v49  ;;  %v1680_v51 = vcvt.s32.f32 %v1104_v22  ;;  %v882_v32 = vunpack.c.2.s8 %v492_v16 }
 0x119   :  { %v888_v33 = vunpack.c.3.s8 %v492_v16  ;;  %v1932_v14 = vpack.c.bf16 %v1584_v19, %v1578_v52  ;;  %v1362_v53 = vcvt.s32.f32 %v786_v55  ;;  %v1368_v44 = vcvt.s32.f32 %v792_v1 }
 0x11a   :  { %2277 = vmatpush.bf16.msra.mxu1 %v1878_v63  ;;  %v990_v61 = vunpack.c.0.s8 %v522_v5  ;;  %v1980_v17 = vpack.c.bf16 %v1680_v51, %v1674_v4  ;;  %v1458_v27 = vcvt.s32.f32 %v882_v32  ;;  %v996_v23 = vunpack.c.1.s8 %v522_v5 }
 0x11b   :  { %v1464_v57 = vcvt.s32.f32 %v888_v33  ;;  %2289 = vmatpush.bf16.msra.mxu2 %v1932_v14  ;;  %v1824_v45 = vpack.c.bf16 %v1368_v44, %v1362_v53  ;;  %v1086_v15 = vunpack.c.0.s8 %v546_v35  ;;  %v1092_v38 = vunpack.c.1.s8 %v546_v35 }
 0x11c   :  { %v1566_v37 = vcvt.s32.f32 %v990_v61  ;;  %2302 = vmatpush.bf16.msra.mxu3 %v1980_v17  ;;  %v1572_v8 = vcvt.s32.f32 %v996_v23  ;;  %v774_v2 = vunpack.c.0.s8 %v468_v43  ;;  %v780_v58 = vunpack.c.1.s8 %v468_v43 }
 0x11d   :  { %v1872_v54 = vpack.c.bf16 %v1464_v57, %v1458_v27  ;;  %2265 = vmatpush.bf16.msra.mxu0 %v1824_v45  ;;  %v1662_v6 = vcvt.s32.f32 %v1086_v15  ;;  %v1668_v3 = vcvt.s32.f32 %v1092_v38  ;;  %v870_v13 = vunpack.c.0.s8 %v492_v16  ;;  %v433_v57 = vld [vmem:[#allocation7 + $0xb0] sm:$0xff] }
 0x11e   :  { %v876_v18 = vunpack.c.1.s8 %v492_v16  ;;  %v1926_v50 = vpack.c.bf16 %v1572_v8, %v1566_v37  ;;  %v1350_v5 = vcvt.s32.f32 %v774_v2  ;;  %v1356_v28 = vcvt.s32.f32 %v780_v58  ;;  %v7258_v59 = vpop.f32.mrf.mxu0  ;;  %v457_v58 = vld [vmem:[#allocation7 + $0x170] sm:$0xff] }
 0x11f   :  { %2278 = vmatpush.bf16.msra.mxu1 %v1872_v54  ;;  %v978_v60 = vunpack.c.2.s8 %v516_v7  ;;  %v1974_v24 = vpack.c.bf16 %v1668_v3, %v1662_v6  ;;  %v1446_v62 = vcvt.s32.f32 %v870_v13  ;;  %v984_v10 = vunpack.c.3.s8 %v516_v7  ;;  %v7260_v19 = vpop.f32.mrf.mxu1 }
 0x120   :  { %v1452_v35 = vcvt.s32.f32 %v876_v18  ;;  %2290 = vmatpush.bf16.msra.mxu2 %v1926_v50  ;;  %v1818_v47 = vpack.c.bf16 %v1356_v28, %v1350_v5  ;;  %v1074_v43 = vunpack.c.2.s8 %v540_v34  ;;  %v1080_v21 = vunpack.c.3.s8 %v540_v34  ;;  %v510_v18 = vld [vmem:[#allocation7 + $0x318] sm:$0xff] }
 0x121   :  { %v1554_v0 = vcvt.s32.f32 %v978_v60  ;;  %2303 = vmatpush.bf16.msra.mxu3 %v1974_v24  ;;  %v1560_v20 = vcvt.s32.f32 %v984_v10  ;;  %v762_v12 = vunpack.c.2.s8 %v462_v26  ;;  %v768_v16 = vunpack.c.3.s8 %v462_v26  ;;  %v534_v60 = vld [vmem:[#allocation7 + $0x3d8] sm:$0xff] }
 0x122   :  { %v1866_v25 = vpack.c.bf16 %v1452_v35, %v1446_v62  ;;  %2266 = vmatpush.bf16.msra.mxu0 %v1818_v47  ;;  %v1650_v52 = vcvt.s32.f32 %v1074_v43  ;;  %v1656_v49 = vcvt.s32.f32 %v1080_v21  ;;  %v858_v22 = vunpack.c.2.s8 %v486_v39 }
 0x123   :  { %v864_v63 = vunpack.c.3.s8 %v486_v39  ;;  %v1920_v55 = vpack.c.bf16 %v1560_v20, %v1554_v0  ;;  %v1338_v1 = vcvt.s32.f32 %v762_v12  ;;  %v1344_v4 = vcvt.s32.f32 %v768_v16 }
 0x124   :  { %2279 = vmatpush.bf16.msra.mxu1 %v1866_v25  ;;  %v966_v51 = vunpack.c.0.s8 %v516_v7  ;;  %v1968_v32 = vpack.c.bf16 %v1656_v49, %v1650_v52  ;;  %v1434_v33 = vcvt.s32.f32 %v858_v22  ;;  %v972_v53 = vunpack.c.1.s8 %v516_v7 }
 0x125   :  { %v1440_v14 = vcvt.s32.f32 %v864_v63  ;;  %2291 = vmatpush.bf16.msra.mxu2 %v1920_v55  ;;  %v1812_v44 = vpack.c.bf16 %v1344_v4, %v1338_v1  ;;  %v1062_v17 = vunpack.c.0.s8 %v540_v34  ;;  %v1068_v27 = vunpack.c.1.s8 %v540_v34 }
 0x126   :  { %v1542_v61 = vcvt.s32.f32 %v966_v51  ;;  %2304 = vmatpush.bf16.msra.mxu3 %v1968_v32  ;;  %v1548_v45 = vcvt.s32.f32 %v972_v53  ;;  %v750_v37 = vunpack.c.0.s8 %v462_v26  ;;  %v756_v15 = vunpack.c.1.s8 %v462_v26  ;;  %v2012_v24 = vpop.f32.mrf.mxu0 }
 0x127   :  { %v1860_v23 = vpack.c.bf16 %v1440_v14, %v1434_v33  ;;  %2267 = vmatpush.bf16.msra.mxu0 %v1812_v44  ;;  %v1638_v38 = vcvt.s32.f32 %v1062_v17  ;;  %v1644_v54 = vcvt.s32.f32 %v1068_v27  ;;  %v846_v8 = vunpack.c.0.s8 %v486_v39  ;;  %v2025_v47 = vpop.f32.mrf.mxu1  ;;  %v451_v24 = vld [vmem:[#allocation7 + $0x140] sm:$0xff] }
 0x128   :  { %v852_v2 = vunpack.c.1.s8 %v486_v39  ;;  %v1914_v6 = vpack.c.bf16 %v1548_v45, %v1542_v61  ;;  %v1326_v7 = vcvt.s32.f32 %v750_v37  ;;  %v1332_v3 = vcvt.s32.f32 %v756_v15  ;;  %v7264_v61 = vld [vmem:[#allocation7 + $0x230] sm:$0xff] }
 0x129   :  { %2280 = vmatpush.bf16.msra.mxu1 %v1860_v23  ;;  %v643_v13 = vunpack.c.2.s8 %v433_v57  ;;  %v1962_v50 = vpack.c.bf16 %v1644_v54, %v1638_v38  ;;  %v1422_v34 = vcvt.s32.f32 %v846_v8  ;;  %v649_v28 = vunpack.c.3.s8 %v433_v57  ;;  %v505_v8 = vld [vmem:[#allocation7 + $0x2f0] sm:$0xff] }
 0x12a   :  { %v1428_v5 = vcvt.s32.f32 %v852_v2  ;;  %2292 = vmatpush.bf16.msra.mxu2 %v1914_v6  ;;  %v1806_v26 = vpack.c.bf16 %v1332_v3, %v1326_v7  ;;  %v739_v35 = vunpack.c.2.s8 %v457_v58  ;;  %v745_v10 = vunpack.c.3.s8 %v457_v58 }
 0x12b   :  { %v1219_v62 = vcvt.s32.f32 %v643_v13  ;;  %2305 = vmatpush.bf16.msra.mxu3 %v1962_v50  ;;  %v1225_v0 = vcvt.s32.f32 %v649_v28  ;;  %v954_v43 = vunpack.c.2.s8 %v510_v18  ;;  %v960_v21 = vunpack.c.3.s8 %v510_v18  ;;  %v427_v13 = vld [vmem:[#allocation7 + $0x80] sm:$0xff] }
 0x12c   :  { %v1854_v39 = vpack.c.bf16 %v1428_v5, %v1422_v34  ;;  %2268 = vmatpush.bf16.msra.mxu0 %v1806_v26  ;;  %v1315_v25 = vcvt.s32.f32 %v739_v35  ;;  %v1321_v20 = vcvt.s32.f32 %v745_v10  ;;  %v1050_v12 = vunpack.c.2.s8 %v534_v60  ;;  %v7262_v32 = vpop.f32.mrf.mxu2 }
 0x12d   :  { %v1056_v16 = vunpack.c.3.s8 %v534_v60  ;;  %v1753_v52 = vpack.c.bf16 %v1225_v0, %v1219_v62  ;;  %v1530_v49 = vcvt.s32.f32 %v954_v43  ;;  %v1536_v22 = vcvt.s32.f32 %v960_v21  ;;  %v7266_v17 = vpop.f32.mrf.mxu3 }
 0x12e   :  { %2281 = vmatpush.bf16.msra.mxu1 %v1854_v39  ;;  %v631_v63 = vunpack.c.0.s8 %v433_v57  ;;  %v1801_v55 = vpack.c.bf16 %v1321_v20, %v1315_v25  ;;  %v1626_v1 = vcvt.s32.f32 %v1050_v12  ;;  %v637_v51 = vunpack.c.1.s8 %v433_v57 }
 0x12f   :  { %v1632_v4 = vcvt.s32.f32 %v1056_v16  ;;  %v1908_v33 = vpack.c.bf16 %v1536_v22, %v1530_v49  ;;  %v727_v53 = vunpack.c.0.s8 %v457_v58  ;;  %v733_v44 = vunpack.c.1.s8 %v457_v58  ;;  %2269 = vmatmul.bf16.vlgmr.msra.gmra.mxu0 %v6982_v46  ;;  %v7270_v2 = vpop.f32.mrf.mxu0 }
 0x130   :  { %2313 = vmatpush.bf16.msrb.mxu0 %v1753_v52  ;;  %v1207_v14 = vcvt.s32.f32 %v631_v63  ;;  %v1213_v23 = vcvt.s32.f32 %v637_v51  ;;  %v942_v45 = vunpack.c.0.s8 %v510_v18  ;;  %v948_v37 = vunpack.c.1.s8 %v510_v18  ;;  %v7273_v50 = vpop.f32.mrf.mxu1 }
 0x131   :  { %v1956_v27 = vpack.c.bf16 %v1632_v4, %v1626_v1  ;;  %2293 = vmatpush.bf16.msra.mxu2 %v1908_v33  ;;  %2282 = vmatmul.bf16.vlgmr.msra.gmra.mxu1 %v6992_v40  ;;  %v1303_v57 = vcvt.s32.f32 %v727_v53  ;;  %v1309_v15 = vcvt.s32.f32 %v733_v44  ;;  %v1038_v38 = vunpack.c.0.s8 %v534_v60 }
 0x132   :  { %2326 = vmatpush.bf16.msrb.mxu1 %v1801_v55  ;;  %v1044_v54 = vunpack.c.1.s8 %v534_v60  ;;  %v1747_v58 = vpack.c.bf16 %v1213_v23, %v1207_v14  ;;  %v1518_v6 = vcvt.s32.f32 %v942_v45  ;;  %v1524_v7 = vcvt.s32.f32 %v948_v37 }
 0x133   :  { %2306 = vmatpush.bf16.msra.mxu3 %v1956_v27  ;;  %v835_v3 = vunpack.c.2.s8 %v7264_v61  ;;  %v1795_v18 = vpack.c.bf16 %v1309_v15, %v1303_v57  ;;  %v1614_v34 = vcvt.s32.f32 %v1038_v38  ;;  %v841_v28 = vunpack.c.3.s8 %v7264_v61  ;;  %v475_v27 = vld [vmem:[#allocation7 + $0x200] sm:$0xff] }
 0x134   :  { %v1620_v5 = vcvt.s32.f32 %v1044_v54  ;;  %2314 = vmatpush.bf16.msrb.mxu0 %v1747_v58  ;;  %v1902_v60 = vpack.c.bf16 %v1524_v7, %v1518_v6  ;;  %v931_v62 = vunpack.c.2.s8 %v505_v8  ;;  %v937_v35 = vunpack.c.3.s8 %v505_v8  ;;  %v2038_v12 = vpop.f32.mrf.mxu2 }
 0x135   :  { %v1411_v26 = vcvt.s32.f32 %v835_v3  ;;  %v1417_v47 = vcvt.s32.f32 %v841_v28  ;;  %v619_v39 = vunpack.c.2.s8 %v427_v13  ;;  %v625_v0 = vunpack.c.3.s8 %v427_v13  ;;  %v2051_v63 = vpop.f32.mrf.mxu3 }
 0x136   :  { %2327 = vmatpush.bf16.msrb.mxu1 %v1795_v18  ;;  %v1950_v10 = vpack.c.bf16 %v1620_v5, %v1614_v34  ;;  %2294 = vmatpush.bf16.msra.mxu2 %v1902_v60  ;;  %v1507_v43 = vcvt.s32.f32 %v931_v62  ;;  %v1513_v21 = vcvt.s32.f32 %v937_v35  ;;  %v715_v25 = vunpack.c.2.s8 %v451_v24  ;;  %v421_v18 = vld [vmem:[#allocation7 + $0x50] sm:$0xff] }
 0x137   :  { %v721_v20 = vunpack.c.3.s8 %v451_v24  ;;  %v1849_v16 = vpack.c.bf16 %v1417_v47, %v1411_v26  ;;  %v1195_v52 = vcvt.s32.f32 %v619_v39  ;;  %v1201_v49 = vcvt.s32.f32 %v625_v0  ;;  %v2064_v23 = vpop.f32.mrf.mxu0 }
 0x138   :  { %2307 = vmatpush.bf16.msra.mxu3 %v1950_v10  ;;  %v7278_v22 = vadd.f32 %v7260_v19, %v7258_v59  ;;  %v1897_v55 = vpack.c.bf16 %v1513_v21, %v1507_v43  ;;  %v1291_v1 = vcvt.s32.f32 %v715_v25  ;;  %v823_v51 = vunpack.c.0.s8 %v7264_v61  ;;  %v2077_v57 = vpop.f32.mrf.mxu1 }
 0x139   :  { %v1297_v4 = vcvt.s32.f32 %v721_v20  ;;  %v1741_v33 = vpack.c.bf16 %v1201_v49, %v1195_v52  ;;  %v829_v14 = vunpack.c.1.s8 %v7264_v61  ;;  %v919_v53 = vunpack.c.0.s8 %v505_v8  ;;  %2295 = vmatmul.bf16.vlgmr.msra.gmra.mxu2 %v7062_v41  ;;  %v499_v61 = vld [vmem:[#allocation7 + $0x2c0] sm:$0xff] }
 0x13a   :  { %2339 = vmatpush.bf16.msrb.mxu2 %v1849_v16  ;;  %v925_v44 = vunpack.c.1.s8 %v505_v8  ;;  %v1399_v59 = vcvt.s32.f32 %v823_v51  ;;  %v607_v19 = vunpack.c.0.s8 %v427_v13  ;;  %v613_v37 = vunpack.c.1.s8 %v427_v13  ;;  %v445_v13 = vld [vmem:[#allocation7 + $0x110] sm:$0xff] }
 0x13b   :  { %v1789_v45 = vpack.c.bf16 %v1297_v4, %v1291_v1  ;;  %2308 = vmatmul.bf16.vlgmr.msra.gmra.mxu3 %v7069_v11  ;;  %2315 = vmatpush.bf16.msrb.mxu0 %v1741_v33  ;;  %v1405_v15 = vcvt.s32.f32 %v829_v14  ;;  %v1495_v38 = vcvt.s32.f32 %v919_v53  ;;  %v703_v58 = vunpack.c.0.s8 %v451_v24 }
 0x13c   :  { %2352 = vmatpush.bf16.msrb.mxu3 %v1897_v55  ;;  %v1501_v54 = vcvt.s32.f32 %v925_v44  ;;  %v1183_v8 = vcvt.s32.f32 %v607_v19  ;;  %v1189_v6 = vcvt.s32.f32 %v613_v37  ;;  %v709_v7 = vunpack.c.1.s8 %v451_v24  ;;  %v7284_v19 = vld [vmem:[#allocation7 + $0x1d0] sm:$0xff] }
 0x13d   :  { %2328 = vmatpush.bf16.msrb.mxu1 %v1789_v45  ;;  %v811_v3 = vunpack.c.2.s8 %v475_v27  ;;  %v1843_v34 = vpack.c.bf16 %v1405_v15, %v1399_v59  ;;  %v1279_v28 = vcvt.s32.f32 %v703_v58  ;;  %v817_v60 = vunpack.c.3.s8 %v475_v27  ;;  %v7286_v58 = vpop.f32.mrf.mxu2 }
 0x13e   :  { %v1891_v5 = vpack.c.bf16 %v1501_v54, %v1495_v38  ;;  %v1735_v26 = vpack.c.bf16 %v1189_v6, %v1183_v8  ;;  %v1285_v62 = vcvt.s32.f32 %v709_v7  ;;  %v907_v10 = vunpack.c.2.s8 %v499_v61  ;;  %v493_v54 = vld [vmem:[#allocation7 + $0x290] sm:$0xff] }
 0x13f   :  { %v1387_v35 = vcvt.s32.f32 %v811_v3  ;;  %2340 = vmatpush.bf16.msrb.mxu2 %v1843_v34  ;;  %v1393_v47 = vcvt.s32.f32 %v817_v60  ;;  %v913_v39 = vunpack.c.3.s8 %v499_v61  ;;  %v595_v0 = vunpack.c.2.s8 %v421_v18  ;;  %v415_v3 = vld [vmem:[#allocation7 + $0x20] sm:$0xff] }
 0x140   :  { %2353 = vmatpush.bf16.msrb.mxu3 %v1891_v5  ;;  %v601_v43 = vunpack.c.3.s8 %v421_v18  ;;  %2316 = vmatpush.bf16.msrb.mxu0 %v1735_v26  ;;  %v1783_v21 = vpack.c.bf16 %v1285_v62, %v1279_v28  ;;  %v1483_v24 = vcvt.s32.f32 %v907_v10  ;;  %v691_v25 = vunpack.c.2.s8 %v445_v13  ;;  %v439_v10 = vld [vmem:[#allocation7 + $0xe0] sm:$0xff] }
 0x141   :  { %v697_v20 = vunpack.c.3.s8 %v445_v13  ;;  %v1837_v12 = vpack.c.bf16 %v1393_v47, %v1387_v35  ;;  %v1489_v16 = vcvt.s32.f32 %v913_v39  ;;  %v1171_v52 = vcvt.s32.f32 %v595_v0 }
 0x142   :  { %v1177_v49 = vcvt.s32.f32 %v601_v43  ;;  %2329 = vmatpush.bf16.msrb.mxu1 %v1783_v21  ;;  %v1267_v63 = vcvt.s32.f32 %v691_v25  ;;  %v799_v1 = vunpack.c.0.s8 %v475_v27  ;;  %v805_v4 = vunpack.c.1.s8 %v475_v27  ;;  %v7288_v27 = vpop.f32.mrf.mxu3  ;;  %v7297_v25 = vpop.f32.mrf.mxu1 }
 0x143   :  { %v1273_v55 = vcvt.s32.f32 %v697_v20  ;;  %2341 = vmatpush.bf16.msrb.mxu2 %v1837_v12  ;;  %v1885_v51 = vpack.c.bf16 %v1489_v16, %v1483_v24  ;;  %v895_v14 = vunpack.c.0.s8 %v499_v61  ;;  %v901_v53 = vunpack.c.1.s8 %v499_v61 }
 0x144   :  { %v1729_v33 = vpack.c.bf16 %v1177_v49, %v1171_v52  ;;  %v1375_v23 = vcvt.s32.f32 %v799_v1  ;;  %v1381_v45 = vcvt.s32.f32 %v805_v4  ;;  %v583_v59 = vunpack.c.0.s8 %v421_v18 }
 0x145   :  { %v1777_v44 = vpack.c.bf16 %v1273_v55, %v1267_v63  ;;  %2354 = vmatpush.bf16.msrb.mxu3 %v1885_v51  ;;  %v1471_v37 = vcvt.s32.f32 %v895_v14  ;;  %v1477_v57 = vcvt.s32.f32 %v901_v53  ;;  %v589_v15 = vunpack.c.1.s8 %v421_v18  ;;  %v7295_v24 = vpop.f32.mrf.mxu0  ;;  %v2090_v51 = vpop.f32.mrf.mxu2 }
 0x146   :  { %2317 = vmatpush.bf16.msrb.mxu0 %v1729_v33  ;;  %v679_v38 = vunpack.c.0.s8 %v445_v13  ;;  %v1831_v8 = vpack.c.bf16 %v1381_v45, %v1375_v23  ;;  %v1159_v61 = vcvt.s32.f32 %v583_v59  ;;  %v685_v6 = vunpack.c.1.s8 %v445_v13 }
 0x147   :  { %2330 = vmatpush.bf16.msrb.mxu1 %v1777_v44  ;;  %v2037_v7 = vadd.f32 %v7262_v32, %v7278_v22  ;;  %v1879_v34 = vpack.c.bf16 %v1477_v57, %v1471_v37  ;;  %v1165_v5 = vcvt.s32.f32 %v589_v15  ;;  %v787_v60 = vunpack.c.2.s8 %v7284_v19 }
 0x148   :  { %v1255_v28 = vcvt.s32.f32 %v679_v38  ;;  %2342 = vmatpush.bf16.msrb.mxu2 %v1831_v8  ;;  %v1261_v18 = vcvt.s32.f32 %v685_v6  ;;  %v793_v62 = vunpack.c.3.s8 %v7284_v19  ;;  %v883_v35 = vunpack.c.2.s8 %v493_v54  ;;  %v529_v8 = vld [vmem:[#allocation7 + $0x3b0] sm:$0xff] }
 0x149   :  { %v2050_v26 = vadd.f32 %v7266_v17, %v2037_v7  ;;  %2355 = vmatpush.bf16.msrb.mxu3 %v1879_v34  ;;  %v1723_v47 = vpack.c.bf16 %v1165_v5, %v1159_v61  ;;  %v1363_v13 = vcvt.s32.f32 %v787_v60  ;;  %v889_v39 = vunpack.c.3.s8 %v493_v54  ;;  %v553_v34 = vld [vmem:[#allocation7 + $0x470] sm:$0xff] }
 0x14a   :  { %v571_v0 = vunpack.c.2.s8 %v415_v3  ;;  %v1771_v32 = vpack.c.bf16 %v1261_v18, %v1255_v28  ;;  %v1369_v22 = vcvt.s32.f32 %v793_v62  ;;  %v1459_v43 = vcvt.s32.f32 %v883_v35  ;;  %v2103_v33 = vpop.f32.mrf.mxu3 }
 0x14b   :  { %v577_v21 = vunpack.c.3.s8 %v415_v3  ;;  %2318 = vmatpush.bf16.msrb.mxu0 %v1723_v47  ;;  %v1465_v20 = vcvt.s32.f32 %v889_v39  ;;  %v667_v12 = vunpack.c.2.s8 %v439_v10  ;;  %v673_v16 = vunpack.c.3.s8 %v439_v10 }
 0x14c   :  { %v1147_v17 = vcvt.s32.f32 %v571_v0  ;;  %2331 = vmatpush.bf16.msrb.mxu1 %v1771_v32  ;;  %v1825_v52 = vpack.c.bf16 %v1369_v22, %v1363_v13  ;;  %v2063_v63 = vadd.f32 %v7270_v2, %v2050_v26  ;;  %v775_v44 = vunpack.c.0.s8 %v7284_v19  ;;  %v2129_v26 = vpop.f32.mrf.mxu1  ;;  %v487_v0 = vld [vmem:[#allocation7 + $0x260] sm:$0xff] }
 0x14d   :  { %v1153_v49 = vcvt.s32.f32 %v577_v21  ;;  %v1873_v55 = vpack.c.bf16 %v1465_v20, %v1459_v43  ;;  %v1243_v1 = vcvt.s32.f32 %v667_v12  ;;  %v1249_v4 = vcvt.s32.f32 %v673_v16  ;;  %v2116_v18 = vpop.f32.mrf.mxu0 }
 0x14e   :  { %2343 = vmatpush.bf16.msrb.mxu2 %v1825_v52  ;;  %v7301_v53 = vadd.f32 %v7273_v50, %v2063_v63  ;;  %v781_v23 = vunpack.c.1.s8 %v7284_v19  ;;  %v871_v59 = vunpack.c.0.s8 %v493_v54  ;;  %v877_v37 = vunpack.c.1.s8 %v493_v54  ;;  %v463_v19 = vld [vmem:[#allocation7 + $0x1a0] sm:$0xff] }
 0x14f   :  { %v1717_v14 = vpack.c.bf16 %v1153_v49, %v1147_v17  ;;  %2356 = vmatpush.bf16.msrb.mxu3 %v1873_v55  ;;  %v1765_v45 = vpack.c.bf16 %v1249_v4, %v1243_v1  ;;  %v559_v57 = vunpack.c.0.s8 %v415_v3  ;;  %v1351_v2 = vcvt.s32.f32 %v775_v44 }
 0x150   :  { %v1357_v15 = vcvt.s32.f32 %v781_v23  ;;  %v565_v38 = vunpack.c.1.s8 %v415_v3  ;;  %v1447_v61 = vcvt.s32.f32 %v871_v59  ;;  %v1453_v6 = vcvt.s32.f32 %v877_v37  ;;  %v7305_v23 = vpop.f32.mrf.mxu2 }
 0x151   :  { %2319 = vmatpush.bf16.msrb.mxu0 %v1717_v14  ;;  %2332 = vmatpush.bf16.msrb.mxu1 %v1765_v45  ;;  %v1135_v7 = vcvt.s32.f32 %v559_v57  ;;  %v655_v50 = vunpack.c.0.s8 %v439_v10  ;;  %v661_v60 = vunpack.c.1.s8 %v439_v10  ;;  %v1027_v35 = vunpack.c.2.s8 %v529_v8 }
 0x152   :  { %v1819_v5 = vpack.c.bf16 %v1357_v15, %v1351_v2  ;;  %v1141_v28 = vcvt.s32.f32 %v565_v38  ;;  %v1867_v62 = vpack.c.bf16 %v1453_v6, %v1447_v61  ;;  %v1033_v47 = vunpack.c.3.s8 %v529_v8  ;;  %v7307_v45 = vpop.f32.mrf.mxu3  ;;  %v434_v15 = vld [vmem:[#allocation7 + $0xb8] sm:$0xff] }
 0x153   :  { %v1231_v54 = vcvt.s32.f32 %v655_v50  ;;  %v1237_v3 = vcvt.s32.f32 %v661_v60  ;;  %v1123_v39 = vunpack.c.2.s8 %v553_v34  ;;  %v1603_v32 = vcvt.s32.f32 %v1027_v35 }
 0x154   :  { %2344 = vmatpush.bf16.msrb.mxu2 %v1819_v5  ;;  %v1711_v13 = vpack.c.bf16 %v1141_v28, %v1135_v7  ;;  %2357 = vmatpush.bf16.msrb.mxu3 %v1867_v62  ;;  %v1609_v22 = vcvt.s32.f32 %v1033_v47  ;;  %v1129_v43 = vunpack.c.3.s8 %v553_v34  ;;  %v763_v21 = vunpack.c.2.s8 %v463_v19  ;;  %v458_v7 = vld [vmem:[#allocation7 + $0x178] sm:$0xff] }
 0x155   :  { %v1759_v20 = vpack.c.bf16 %v1237_v3, %v1231_v54  ;;  %v1699_v10 = vcvt.s32.f32 %v1123_v39  ;;  %v769_v17 = vunpack.c.3.s8 %v463_v19  ;;  %v859_v49 = vunpack.c.2.s8 %v487_v0  ;;  %v523_v54 = vld [vmem:[#allocation7 + $0x380] sm:$0xff] }
 0x156   :  { %2320 = vmatpush.bf16.msrb.mxu0 %v1711_v13  ;;  %v1945_v12 = vpack.c.bf16 %v1609_v22, %v1603_v32  ;;  %v1705_v16 = vcvt.s32.f32 %v1129_v43  ;;  %v1339_v52 = vcvt.s32.f32 %v763_v21  ;;  %v865_v55 = vunpack.c.3.s8 %v487_v0 }
 0x157   :  { %2333 = vmatpush.bf16.msrb.mxu1 %v1759_v20  ;;  %v1345_v63 = vcvt.s32.f32 %v769_v17  ;;  %v1015_v1 = vunpack.c.0.s8 %v529_v8  ;;  %v1021_v4 = vunpack.c.1.s8 %v529_v8  ;;  %v1435_v33 = vcvt.s32.f32 %v859_v49 }
 0x158   :  { %v1993_v51 = vpack.c.bf16 %v1705_v16, %v1699_v10  ;;  %v1111_v14 = vunpack.c.0.s8 %v553_v34  ;;  %v1117_v44 = vunpack.c.1.s8 %v553_v34  ;;  %v1441_v37 = vcvt.s32.f32 %v865_v55  ;;  %v2142_v49 = vpop.f32.mrf.mxu2 }
 0x159   :  { %v1813_v59 = vpack.c.bf16 %v1345_v63, %v1339_v52  ;;  %2321 = vmatmul.bf16.vlgmr.msrb.gmra.mxu0 %v6931_v56  ;;  %v1591_v57 = vcvt.s32.f32 %v1015_v1  ;;  %v1597_v2 = vcvt.s32.f32 %v1021_v4  ;;  %v751_v8 = vunpack.c.0.s8 %v463_v19 }
 0x15a   :  { %2365 = vmatpush.bf16.msra.mxu0 %v1945_v12  ;;  %v1687_v38 = vcvt.s32.f32 %v1111_v14  ;;  %v1693_v61 = vcvt.s32.f32 %v1117_v44  ;;  %v757_v6 = vunpack.c.1.s8 %v463_v19  ;;  %v1861_v50 = vpack.c.bf16 %v1441_v37, %v1435_v33  ;;  %2334 = vmatmul.bf16.vlgmr.msrb.gmra.mxu1 %v6937_v48  ;;  %v547_v19 = vld [vmem:[#allocation7 + $0x440] sm:$0xff]  ;;  %v2155_v63 = vpop.f32.mrf.mxu3 }
 0x15b   :  { %2378 = vmatpush.bf16.msra.mxu1 %v1993_v51  ;;  %2345 = vmatpush.bf16.msrb.mxu2 %v1813_v59  ;;  %v1939_v34 = vpack.c.bf16 %v1597_v2, %v1591_v57  ;;  %v847_v5 = vunpack.c.0.s8 %v487_v0  ;;  %v853_v28 = vunpack.c.1.s8 %v487_v0  ;;  %v1327_v18 = vcvt.s32.f32 %v751_v8 }
 0x15c   :  { %v1987_v60 = vpack.c.bf16 %v1693_v61, %v1687_v38  ;;  %v1333_v26 = vcvt.s32.f32 %v757_v6  ;;  %v644_v62 = vunpack.c.2.s8 %v434_v15  ;;  %2358 = vmatpush.bf16.msrb.mxu3 %v1861_v50  ;;  %v650_v13 = vunpack.c.3.s8 %v434_v15  ;;  %v428_v6 = vld [vmem:[#allocation7 + $0x88] sm:$0xff] }
 0x15d   :  { %v1423_v35 = vcvt.s32.f32 %v847_v5  ;;  %v1429_v47 = vcvt.s32.f32 %v853_v28  ;;  %v740_v3 = vunpack.c.2.s8 %v458_v7  ;;  %v746_v22 = vunpack.c.3.s8 %v458_v7  ;;  %v452_v28 = vld [vmem:[#allocation7 + $0x148] sm:$0xff] }
 0x15e   :  { %2366 = vmatpush.bf16.msra.mxu0 %v1939_v34  ;;  %v1807_v39 = vpack.c.bf16 %v1333_v26, %v1327_v18  ;;  %v1220_v32 = vcvt.s32.f32 %v644_v62  ;;  %v2102_v43 = vadd.f32 %v7288_v27, %v7286_v58  ;;  %v1226_v21 = vcvt.s32.f32 %v650_v13  ;;  %v517_v62 = vld [vmem:[#allocation7 + $0x350] sm:$0xff] }
 0x15f   :  { %2379 = vmatpush.bf16.msra.mxu1 %v1987_v60  ;;  %v1855_v0 = vpack.c.bf16 %v1429_v47, %v1423_v35  ;;  %v1316_v20 = vcvt.s32.f32 %v740_v3  ;;  %v1003_v10 = vunpack.c.2.s8 %v523_v54  ;;  %v1322_v17 = vcvt.s32.f32 %v746_v22 }
 0x160   :  { %2346 = vmatpush.bf16.msrb.mxu2 %v1807_v39  ;;  %v1009_v12 = vunpack.c.3.s8 %v523_v54  ;;  %v1099_v16 = vunpack.c.2.s8 %v547_v19  ;;  %v1105_v52 = vunpack.c.3.s8 %v547_v19  ;;  %v1754_v55 = vpack.c.bf16 %v1226_v21, %v1220_v32 }
 0x161   :  { %2359 = vmatpush.bf16.msrb.mxu3 %v1855_v0  ;;  %v1579_v1 = vcvt.s32.f32 %v1003_v10  ;;  %v632_v4 = vunpack.c.0.s8 %v434_v15  ;;  %v638_v51 = vunpack.c.1.s8 %v434_v15  ;;  %v1802_v33 = vpack.c.bf16 %v1322_v17, %v1316_v20 }
 0x162   :  { %v1585_v14 = vcvt.s32.f32 %v1009_v12  ;;  %v1675_v44 = vcvt.s32.f32 %v1099_v16  ;;  %v1681_v58 = vcvt.s32.f32 %v1105_v52  ;;  %v728_v37 = vunpack.c.0.s8 %v458_v7 }
 0x163   :  { %v1208_v27 = vcvt.s32.f32 %v632_v4  ;;  %v1214_v59 = vcvt.s32.f32 %v638_v51  ;;  %v734_v57 = vunpack.c.1.s8 %v458_v7  ;;  %2347 = vmatmul.bf16.vlgmr.msrb.gmra.mxu2 %v6982_v46  ;;  %v2115_v61 = vadd.f32 %v7295_v24, %v2102_v43 }
 0x164   :  { %2391 = vmatpush.bf16.msra.mxu2 %v1754_v55  ;;  %v1933_v2 = vpack.c.bf16 %v1585_v14, %v1579_v1  ;;  %v1981_v38 = vpack.c.bf16 %v1681_v58, %v1675_v44  ;;  %v991_v8 = vunpack.c.0.s8 %v523_v54  ;;  %2360 = vmatmul.bf16.vlgmr.msrb.gmra.mxu3 %v6992_v40  ;;  %v1304_v50 = vcvt.s32.f32 %v728_v37 }
 0x165   :  { %2404 = vmatpush.bf16.msra.mxu3 %v1802_v33  ;;  %v1748_v15 = vpack.c.bf16 %v1214_v59, %v1208_v27  ;;  %v1310_v34 = vcvt.s32.f32 %v734_v57  ;;  %v997_v5 = vunpack.c.1.s8 %v523_v54  ;;  %v7317_v7 = vadd.f32 %v7297_v25, %v2115_v61  ;;  %v541_v54 = vld [vmem:[#allocation7 + $0x410] sm:$0xff]  ;;  %v422_v57 = vld [vmem:[#allocation7 + $0x58] sm:$0xff] }
 0x166   :  { %2367 = vmatpush.bf16.msra.mxu0 %v1933_v2  ;;  %2380 = vmatpush.bf16.msra.mxu1 %v1981_v38  ;;  %v1567_v60 = vcvt.s32.f32 %v991_v8  ;;  %v1087_v18 = vunpack.c.0.s8 %v547_v19  ;;  %v1093_v26 = vunpack.c.1.s8 %v547_v19  ;;  %v620_v47 = vunpack.c.2.s8 %v428_v6 }
 0x167   :  { %v1796_v24 = vpack.c.bf16 %v1310_v34, %v1304_v50  ;;  %v1573_v35 = vcvt.s32.f32 %v997_v5  ;;  %v626_v13 = vunpack.c.3.s8 %v428_v6  ;;  %v716_v32 = vunpack.c.2.s8 %v452_v28 }
 0x168   :  { %2392 = vmatpush.bf16.msra.mxu2 %v1748_v15  ;;  %v1663_v3 = vcvt.s32.f32 %v1087_v18  ;;  %v1669_v39 = vcvt.s32.f32 %v1093_v26  ;;  %v722_v22 = vunpack.c.3.s8 %v452_v28  ;;  %v1196_v0 = vcvt.s32.f32 %v620_v47  ;;  %v446_v15 = vld [vmem:[#allocation7 + $0x118] sm:$0xff] }
 0x169   :  { %2405 = vmatpush.bf16.msra.mxu3 %v1796_v24  ;;  %v1927_v43 = vpack.c.bf16 %v1573_v35, %v1567_v60  ;;  %v1202_v21 = vcvt.s32.f32 %v626_v13  ;;  %v979_v25 = vunpack.c.2.s8 %v517_v62  ;;  %v1292_v10 = vcvt.s32.f32 %v716_v32 }
 0x16a   :  { %v1975_v20 = vpack.c.bf16 %v1669_v39, %v1663_v3  ;;  %v1298_v17 = vcvt.s32.f32 %v722_v22  ;;  %v985_v19 = vunpack.c.3.s8 %v517_v62  ;;  %v1075_v52 = vunpack.c.2.s8 %v541_v54  ;;  %v511_v3 = vld [vmem:[#allocation7 + $0x320] sm:$0xff] }
 0x16b   :  { %2368 = vmatpush.bf16.msra.mxu0 %v1927_v43  ;;  %v1742_v12 = vpack.c.bf16 %v1202_v21, %v1196_v0  ;;  %v1555_v16 = vcvt.s32.f32 %v979_v25  ;;  %v1081_v49 = vunpack.c.3.s8 %v541_v54  ;;  %v608_v1 = vunpack.c.0.s8 %v428_v6  ;;  %v535_v43 = vld [vmem:[#allocation7 + $0x3e0] sm:$0xff]  ;;  %v7323_v0 = vpop.f32.mrf.mxu1 }
 0x16c   :  { %2381 = vmatpush.bf16.msra.mxu1 %v1975_v20  ;;  %v1790_v63 = vpack.c.bf16 %v1298_v17, %v1292_v10  ;;  %v1561_v55 = vcvt.s32.f32 %v985_v19  ;;  %v614_v4 = vunpack.c.1.s8 %v428_v6  ;;  %v1651_v51 = vcvt.s32.f32 %v1075_v52 }
 0x16d   :  { %2393 = vmatpush.bf16.msra.mxu2 %v1742_v12  ;;  %v1657_v33 = vcvt.s32.f32 %v1081_v49  ;;  %v704_v14 = vunpack.c.0.s8 %v452_v28  ;;  %v710_v44 = vunpack.c.1.s8 %v452_v28  ;;  %v1184_v27 = vcvt.s32.f32 %v608_v1 }
 0x16e   :  { %2406 = vmatpush.bf16.msra.mxu3 %v1790_v63  ;;  %v1921_v58 = vpack.c.bf16 %v1561_v55, %v1555_v16  ;;  %v1190_v59 = vcvt.s32.f32 %v614_v4  ;;  %v967_v37 = vunpack.c.0.s8 %v517_v62  ;;  %v973_v8 = vunpack.c.1.s8 %v517_v62 }
 0x16f   :  { %v1969_v2 = vpack.c.bf16 %v1657_v33, %v1651_v51  ;;  %v1280_v38 = vcvt.s32.f32 %v704_v14  ;;  %v1286_v61 = vcvt.s32.f32 %v710_v44  ;;  %v1063_v6 = vunpack.c.0.s8 %v541_v54 }
 0x170   :  { %2369 = vmatpush.bf16.msra.mxu0 %v1921_v58  ;;  %v1736_v50 = vpack.c.bf16 %v1190_v59, %v1184_v27  ;;  %v1543_v34 = vcvt.s32.f32 %v967_v37  ;;  %v1069_v5 = vunpack.c.1.s8 %v541_v54  ;;  %v1549_v18 = vcvt.s32.f32 %v973_v8  ;;  %v7321_v54 = vpop.f32.mrf.mxu0  ;;  %v506_v8 = vld [vmem:[#allocation7 + $0x2f8] sm:$0xff] }
 0x171   :  { %2382 = vmatpush.bf16.msra.mxu1 %v1969_v2  ;;  %v1784_v60 = vpack.c.bf16 %v1286_v61, %v1280_v38  ;;  %v596_v28 = vunpack.c.2.s8 %v422_v57  ;;  %v602_v26 = vunpack.c.3.s8 %v422_v57  ;;  %v1639_v24 = vcvt.s32.f32 %v1063_v6 }
 0x172   :  { %2394 = vmatpush.bf16.msra.mxu2 %v1736_v50  ;;  %v1645_v35 = vcvt.s32.f32 %v1069_v5  ;;  %v692_v47 = vunpack.c.2.s8 %v446_v15  ;;  %v698_v13 = vunpack.c.3.s8 %v446_v15  ;;  %v1915_v39 = vpack.c.bf16 %v1549_v18, %v1543_v34  ;;  %v416_v18 = vld [vmem:[#allocation7 + $0x28] sm:$0xff] }
 0x173   :  { %2407 = vmatpush.bf16.msra.mxu3 %v1784_v60  ;;  %v1172_v62 = vcvt.s32.f32 %v596_v28  ;;  %v1178_v32 = vcvt.s32.f32 %v602_v26  ;;  %v2141_v22 = vadd.f32 %v7305_v23, %v7317_v7  ;;  %v955_v19 = vunpack.c.2.s8 %v511_v3  ;;  %v2181_v34 = vpop.f32.mrf.mxu1 }
 0x174   :  { %v1963_v21 = vpack.c.bf16 %v1645_v35, %v1639_v24  ;;  %v1268_v25 = vcvt.s32.f32 %v692_v47  ;;  %v1274_v20 = vcvt.s32.f32 %v698_v13  ;;  %2370 = vmatpush.bf16.msra.mxu0 %v1915_v39  ;;  %v961_v16 = vunpack.c.3.s8 %v511_v3  ;;  %v440_v24 = vld [vmem:[#allocation7 + $0xe8] sm:$0xff] }
 0x175   :  { %v1730_v10 = vpack.c.bf16 %v1178_v32, %v1172_v62  ;;  %v7326_v17 = vadd.f32 %v7307_v45, %v2141_v22  ;;  %v1051_v52 = vunpack.c.2.s8 %v535_v43  ;;  %v1057_v49 = vunpack.c.3.s8 %v535_v43  ;;  %v482_v45 = vld [vmem:[#allocation7 + $0x238] sm:$0xff] }
 0x176   :  { %2383 = vmatpush.bf16.msra.mxu1 %v1963_v21  ;;  %v1778_v12 = vpack.c.bf16 %v1274_v20, %v1268_v25  ;;  %v1531_v23 = vcvt.s32.f32 %v955_v19  ;;  %v584_v7 = vunpack.c.0.s8 %v422_v57  ;;  %v590_v63 = vunpack.c.1.s8 %v422_v57 }
 0x177   :  { %2395 = vmatpush.bf16.msra.mxu2 %v1730_v10  ;;  %v1537_v55 = vcvt.s32.f32 %v961_v16  ;;  %v1627_v1 = vcvt.s32.f32 %v1051_v52  ;;  %v1633_v4 = vcvt.s32.f32 %v1057_v49  ;;  %v680_v51 = vunpack.c.0.s8 %v446_v15 }
 0x178   :  { %2408 = vmatpush.bf16.msra.mxu3 %v1778_v12  ;;  %v1160_v33 = vcvt.s32.f32 %v584_v7  ;;  %v1166_v14 = vcvt.s32.f32 %v590_v63  ;;  %v686_v44 = vunpack.c.1.s8 %v446_v15  ;;  %v943_v37 = vunpack.c.0.s8 %v511_v3  ;;  %v2168_v50 = vpop.f32.mrf.mxu0 }
 0x179   :  { %v1909_v58 = vpack.c.bf16 %v1537_v55, %v1531_v23  ;;  %v1957_v27 = vpack.c.bf16 %v1633_v4, %v1627_v1  ;;  %v1256_v59 = vcvt.s32.f32 %v680_v51  ;;  %v949_v61 = vunpack.c.1.s8 %v511_v3  ;;  %v7328_v51 = vpop.f32.mrf.mxu2 }
 0x17a   :  { %v1724_v2 = vpack.c.bf16 %v1166_v14, %v1160_v33  ;;  %v1262_v38 = vcvt.s32.f32 %v686_v44  ;;  %v1519_v57 = vcvt.s32.f32 %v943_v37  ;;  %v1039_v6 = vunpack.c.0.s8 %v535_v43  ;;  %v7330_v33 = vpop.f32.mrf.mxu3 }
 0x17b   :  { %2371 = vmatpush.bf16.msra.mxu0 %v1909_v58  ;;  %2384 = vmatpush.bf16.msra.mxu1 %v1957_v27  ;;  %v1045_v5 = vunpack.c.1.s8 %v535_v43  ;;  %v836_v60 = vunpack.c.2.s8 %v482_v45  ;;  %v1525_v28 = vcvt.s32.f32 %v949_v61  ;;  %v842_v26 = vunpack.c.3.s8 %v482_v45  ;;  %v554_v61 = vld [vmem:[#allocation7 + $0x478] sm:$0xff] }
 0x17c   :  { %2396 = vmatpush.bf16.msra.mxu2 %v1724_v2  ;;  %v1772_v15 = vpack.c.bf16 %v1262_v38, %v1256_v59  ;;  %v1615_v35 = vcvt.s32.f32 %v1039_v6  ;;  %v932_v39 = vunpack.c.2.s8 %v506_v8  ;;  %v938_v32 = vunpack.c.3.s8 %v506_v8  ;;  %v530_v59 = vld [vmem:[#allocation7 + $0x3b8] sm:$0xff]  ;;  %v7334_v6 = vld [vmem:[#allocation7 + $0x208] sm:$0xff] }
 0x17d   :  { %v1621_v47 = vcvt.s32.f32 %v1045_v5  ;;  %v1412_v13 = vcvt.s32.f32 %v836_v60  ;;  %v1903_v3 = vpack.c.bf16 %v1525_v28, %v1519_v57  ;;  %v1418_v62 = vcvt.s32.f32 %v842_v26 }
 0x17e   :  { %2409 = vmatpush.bf16.msra.mxu3 %v1772_v15  ;;  %v572_v22 = vunpack.c.2.s8 %v416_v18  ;;  %v1508_v25 = vcvt.s32.f32 %v932_v39  ;;  %v578_v20 = vunpack.c.3.s8 %v416_v18  ;;  %v668_v43 = vunpack.c.2.s8 %v440_v24 }
 0x17f   :  { %v1951_v21 = vpack.c.bf16 %v1621_v47, %v1615_v35  ;;  %2372 = vmatpush.bf16.msra.mxu0 %v1903_v3  ;;  %v1850_v10 = vpack.c.bf16 %v1418_v62, %v1412_v13  ;;  %v1514_v19 = vcvt.s32.f32 %v938_v32  ;;  %v674_v16 = vunpack.c.3.s8 %v440_v24  ;;  %v500_v13 = vld [vmem:[#allocation7 + $0x2c8] sm:$0xff] }
 0x180   :  { %v1148_v12 = vcvt.s32.f32 %v572_v22  ;;  %v1154_v52 = vcvt.s32.f32 %v578_v20  ;;  %v1244_v49 = vcvt.s32.f32 %v668_v43  ;;  %v824_v23 = vunpack.c.0.s8 %v482_v45 }
 0x181   :  { %2385 = vmatpush.bf16.msra.mxu1 %v1951_v21  ;;  %v830_v7 = vunpack.c.1.s8 %v482_v45  ;;  %v1898_v63 = vpack.c.bf16 %v1514_v19, %v1508_v25  ;;  %v1250_v55 = vcvt.s32.f32 %v674_v16  ;;  %v920_v1 = vunpack.c.0.s8 %v506_v8 }
 0x182   :  { %v926_v4 = vunpack.c.1.s8 %v506_v8  ;;  %v1718_v14 = vpack.c.bf16 %v1154_v52, %v1148_v12  ;;  %2373 = vmatmul.bf16.vlgmr.msra.gmra.mxu0 %v7062_v41  ;;  %v1400_v44 = vcvt.s32.f32 %v824_v23  ;;  %v560_v27 = vunpack.c.0.s8 %v416_v18  ;;  %v2194_v12 = vpop.f32.mrf.mxu2  ;;  %v2207_v16 = vpop.f32.mrf.mxu3 }
 0x183   :  { %2417 = vmatpush.bf16.msrb.mxu0 %v1850_v10  ;;  %v1406_v58 = vcvt.s32.f32 %v830_v7  ;;  %v1766_v37 = vpack.c.bf16 %v1250_v55, %v1244_v49  ;;  %v1496_v2 = vcvt.s32.f32 %v920_v1  ;;  %v566_v38 = vunpack.c.1.s8 %v416_v18 }
 0x184   :  { %v1502_v45 = vcvt.s32.f32 %v926_v4  ;;  %2397 = vmatpush.bf16.msra.mxu2 %v1718_v14  ;;  %2386 = vmatmul.bf16.vlgmr.msra.gmra.mxu1 %v7069_v11  ;;  %v1136_v50 = vcvt.s32.f32 %v560_v27  ;;  %v656_v34 = vunpack.c.0.s8 %v440_v24  ;;  %v662_v57 = vunpack.c.1.s8 %v440_v24 }
 0x185   :  { %2430 = vmatpush.bf16.msrb.mxu1 %v1898_v63  ;;  %v1844_v8 = vpack.c.bf16 %v1406_v58, %v1400_v44  ;;  %2410 = vmatpush.bf16.msra.mxu3 %v1766_v37  ;;  %v1142_v60 = vcvt.s32.f32 %v566_v38  ;;  %v1028_v15 = vunpack.c.2.s8 %v530_v59  ;;  %v1034_v28 = vunpack.c.3.s8 %v530_v59  ;;  %v524_v37 = vld [vmem:[#allocation7 + $0x388] sm:$0xff] }
 0x186   :  { %v1892_v5 = vpack.c.bf16 %v1502_v45, %v1496_v2  ;;  %v1232_v26 = vcvt.s32.f32 %v656_v34  ;;  %v1238_v35 = vcvt.s32.f32 %v662_v57  ;;  %v1124_v47 = vunpack.c.2.s8 %v554_v61  ;;  %v470_v57 = vld [vmem:[#allocation7 + $0x1d8] sm:$0xff] }
 0x187   :  { %2418 = vmatpush.bf16.msrb.mxu0 %v1844_v8  ;;  %v1130_v18 = vunpack.c.3.s8 %v554_v61  ;;  %v1712_v39 = vpack.c.bf16 %v1142_v60, %v1136_v50  ;;  %v1604_v3 = vcvt.s32.f32 %v1028_v15  ;;  %v1610_v62 = vcvt.s32.f32 %v1034_v28  ;;  %v548_v8 = vld [vmem:[#allocation7 + $0x448] sm:$0xff] }
 0x188   :  { %v812_v32 = vunpack.c.2.s8 %v7334_v6  ;;  %v1760_v24 = vpack.c.bf16 %v1238_v35, %v1232_v26  ;;  %v1700_v22 = vcvt.s32.f32 %v1124_v47  ;;  %v818_v25 = vunpack.c.3.s8 %v7334_v6  ;;  %v494_v35 = vld [vmem:[#allocation7 + $0x298] sm:$0xff] }
 0x189   :  { %2431 = vmatpush.bf16.msrb.mxu1 %v1892_v5  ;;  %v1706_v21 = vcvt.s32.f32 %v1130_v18  ;;  %2398 = vmatpush.bf16.msra.mxu2 %v1712_v39  ;;  %v1946_v20 = vpack.c.bf16 %v1610_v62, %v1604_v3  ;;  %v908_v10 = vunpack.c.2.s8 %v500_v13  ;;  %v914_v19 = vunpack.c.3.s8 %v500_v13 }
 0x18a   :  { %v1388_v43 = vcvt.s32.f32 %v812_v32  ;;  %2411 = vmatpush.bf16.msra.mxu3 %v1760_v24  ;;  %v1394_v49 = vcvt.s32.f32 %v818_v25  ;;  %v1016_v23 = vunpack.c.0.s8 %v530_v59  ;;  %v1022_v7 = vunpack.c.1.s8 %v530_v59 }
 0x18b   :  { %v1994_v52 = vpack.c.bf16 %v1706_v21, %v1700_v22  ;;  %v1484_v63 = vcvt.s32.f32 %v908_v10  ;;  %v1490_v55 = vcvt.s32.f32 %v914_v19  ;;  %v1112_v1 = vunpack.c.0.s8 %v554_v61 }
 0x18c   :  { %v1118_v4 = vunpack.c.1.s8 %v554_v61  ;;  %2399 = vmatmul.bf16.vlgmr.msra.gmra.mxu2 %v6931_v56  ;;  %v1838_v14 = vpack.c.bf16 %v1394_v49, %v1388_v43  ;;  %v1592_v44 = vcvt.s32.f32 %v1016_v23  ;;  %v1598_v58 = vcvt.s32.f32 %v1022_v7  ;;  %v7348_v43 = vpop.f32.mrf.mxu1 }
 0x18d   :  { %2443 = vmatpush.bf16.msrb.mxu2 %v1946_v20  ;;  %v7341_v27 = vadd.f32 %v7323_v0, %v7321_v54  ;;  %2412 = vmatmul.bf16.vlgmr.msra.gmra.mxu3 %v6937_v48  ;;  %v1886_v2 = vpack.c.bf16 %v1490_v55, %v1484_v63  ;;  %v1688_v59 = vcvt.s32.f32 %v1112_v1  ;;  %v800_v38 = vunpack.c.0.s8 %v7334_v6  ;;  %v7346_v20 = vpop.f32.mrf.mxu0 }
 0x18e   :  { %2456 = vmatpush.bf16.msrb.mxu3 %v1994_v52  ;;  %v1694_v45 = vcvt.s32.f32 %v1118_v4  ;;  %2419 = vmatpush.bf16.msrb.mxu0 %v1838_v14  ;;  %v1940_v61 = vpack.c.bf16 %v1598_v58, %v1592_v44  ;;  %v806_v56 = vunpack.c.1.s8 %v7334_v6  ;;  %v896_v50 = vunpack.c.0.s8 %v500_v13  ;;  %v518_v14 = vld [vmem:[#allocation7 + $0x358] sm:$0xff] }
 0x18f   :  { %v902_v34 = vunpack.c.1.s8 %v500_v13  ;;  %2432 = vmatpush.bf16.msrb.mxu1 %v1886_v2  ;;  %v1376_v54 = vcvt.s32.f32 %v800_v38  ;;  %v1004_v0 = vunpack.c.2.s8 %v524_v37  ;;  %v1010_v60 = vunpack.c.3.s8 %v524_v37 }
 0x190   :  { %v1988_v5 = vpack.c.bf16 %v1694_v45, %v1688_v59  ;;  %v1382_v48 = vcvt.s32.f32 %v806_v56  ;;  %v1472_v15 = vcvt.s32.f32 %v896_v50  ;;  %v1100_v26 = vunpack.c.2.s8 %v548_v8  ;;  %v542_v45 = vld [vmem:[#allocation7 + $0x418] sm:$0xff] }
 0x191   :  { %2444 = vmatpush.bf16.msrb.mxu2 %v1940_v61  ;;  %v1478_v28 = vcvt.s32.f32 %v902_v34  ;;  %v1580_v47 = vcvt.s32.f32 %v1004_v0  ;;  %v1586_v18 = vcvt.s32.f32 %v1010_v60  ;;  %v1106_v39 = vunpack.c.3.s8 %v548_v8 }
 0x192   :  { %2457 = vmatpush.bf16.msrb.mxu3 %v1988_v5  ;;  %v788_v3 = vunpack.c.2.s8 %v470_v57  ;;  %v1832_v6 = vpack.c.bf16 %v1382_v48, %v1376_v54  ;;  %v1676_v13 = vcvt.s32.f32 %v1100_v26  ;;  %v794_v32 = vunpack.c.3.s8 %v470_v57  ;;  %v464_v54 = vld [vmem:[#allocation7 + $0x1a8] sm:$0xff] }
 0x193   :  { %v1880_v62 = vpack.c.bf16 %v1478_v28, %v1472_v15  ;;  %v1934_v24 = vpack.c.bf16 %v1586_v18, %v1580_v47  ;;  %v1682_v22 = vcvt.s32.f32 %v1106_v39  ;;  %v884_v25 = vunpack.c.2.s8 %v494_v35  ;;  %v488_v28 = vld [vmem:[#allocation7 + $0x268] sm:$0xff] }
 0x194   :  { %v1364_v21 = vcvt.s32.f32 %v788_v3  ;;  %2420 = vmatpush.bf16.msrb.mxu0 %v1832_v6  ;;  %v1370_v10 = vcvt.s32.f32 %v794_v32  ;;  %v890_v19 = vunpack.c.3.s8 %v494_v35  ;;  %v992_v12 = vunpack.c.0.s8 %v524_v37  ;;  %v2233_v39 = vpop.f32.mrf.mxu1 }
 0x195   :  { %2433 = vmatpush.bf16.msrb.mxu1 %v1880_v62  ;;  %v998_v16 = vunpack.c.1.s8 %v524_v37  ;;  %2445 = vmatpush.bf16.msrb.mxu2 %v1934_v24  ;;  %v1982_v52 = vpack.c.bf16 %v1682_v22, %v1676_v13  ;;  %v1460_v49 = vcvt.s32.f32 %v884_v25  ;;  %v1088_v23 = vunpack.c.0.s8 %v548_v8  ;;  %v2220_v18 = vpop.f32.mrf.mxu0 }
 0x196   :  { %v1094_v7 = vunpack.c.1.s8 %v548_v8  ;;  %v1826_v63 = vpack.c.bf16 %v1370_v10, %v1364_v21  ;;  %v1466_v55 = vcvt.s32.f32 %v890_v19  ;;  %v1568_v1 = vcvt.s32.f32 %v992_v12  ;;  %v6430_v18 = vld [vmem:[%s8282_s3 + $0x78] sm:$0xff] }
 0x197   :  { %v1574_v4 = vcvt.s32.f32 %v998_v16  ;;  %2458 = vmatpush.bf16.msrb.mxu3 %v1982_v52  ;;  %v1664_v44 = vcvt.s32.f32 %v1088_v23  ;;  %v776_v2 = vunpack.c.0.s8 %v470_v57  ;;  %v782_v59 = vunpack.c.1.s8 %v470_v57  ;;  %v7352_v23 = vpop.f32.mrf.mxu3 }
 0x198   :  { %v1670_v58 = vcvt.s32.f32 %v1094_v7  ;;  %2421 = vmatpush.bf16.msrb.mxu0 %v1826_v63  ;;  %v1874_v38 = vpack.c.bf16 %v1466_v55, %v1460_v49  ;;  %v872_v37 = vunpack.c.0.s8 %v494_v35  ;;  %v878_v56 = vunpack.c.1.s8 %v494_v35  ;;  %v7350_v49 = vpop.f32.mrf.mxu2 }
 0x199   :  { %v1928_v61 = vpack.c.bf16 %v1574_v4, %v1568_v1  ;;  %v1352_v34 = vcvt.s32.f32 %v776_v2  ;;  %v1358_v5 = vcvt.s32.f32 %v782_v59  ;;  %v980_v8 = vunpack.c.2.s8 %v518_v14  ;;  %v512_v59 = vld [vmem:[#allocation7 + $0x328] sm:$0xff] }
 0x19a   :  { %v1976_v50 = vpack.c.bf16 %v1670_v58, %v1664_v44  ;;  %2434 = vmatpush.bf16.msrb.mxu1 %v1874_v38  ;;  %v1448_v0 = vcvt.s32.f32 %v872_v37  ;;  %v1454_v60 = vcvt.s32.f32 %v878_v56  ;;  %v986_v48 = vunpack.c.3.s8 %v518_v14 }
 0x19b   :  { %2446 = vmatpush.bf16.msrb.mxu2 %v1928_v61  ;;  %v1076_v15 = vunpack.c.2.s8 %v542_v45  ;;  %v1820_v57 = vpack.c.bf16 %v1358_v5, %v1352_v34  ;;  %v1556_v26 = vcvt.s32.f32 %v980_v8  ;;  %v1082_v47 = vunpack.c.3.s8 %v542_v45 }
 0x19c   :  { %2459 = vmatpush.bf16.msrb.mxu3 %v1976_v50  ;;  %v1868_v3 = vpack.c.bf16 %v1454_v60, %v1448_v0  ;;  %v1562_v35 = vcvt.s32.f32 %v986_v48  ;;  %v764_v62 = vunpack.c.2.s8 %v464_v54  ;;  %v770_v32 = vunpack.c.3.s8 %v464_v54 }
 0x19d   :  { %v1652_v6 = vcvt.s32.f32 %v1076_v15  ;;  %2422 = vmatpush.bf16.msrb.mxu0 %v1820_v57  ;;  %v1658_v13 = vcvt.s32.f32 %v1082_v47  ;;  %v860_v24 = vunpack.c.2.s8 %v488_v28  ;;  %v866_v25 = vunpack.c.3.s8 %v488_v28 }
 0x19e   :  { %2435 = vmatpush.bf16.msrb.mxu1 %v1868_v3  ;;  %v1922_v22 = vpack.c.bf16 %v1562_v35, %v1556_v26  ;;  %v1340_v21 = vcvt.s32.f32 %v764_v62  ;;  %v968_v10 = vunpack.c.0.s8 %v518_v14  ;;  %v1346_v12 = vcvt.s32.f32 %v770_v32 }
 0x19f   :  { %v1970_v19 = vpack.c.bf16 %v1658_v13, %v1652_v6  ;;  %v1436_v16 = vcvt.s32.f32 %v860_v24  ;;  %v974_v52 = vunpack.c.1.s8 %v518_v14  ;;  %v1442_v7 = vcvt.s32.f32 %v866_v25  ;;  %v536_v14 = vld [vmem:[#allocation7 + $0x3e8] sm:$0xff] }
 0x1a0   :  { %2447 = vmatpush.bf16.msrb.mxu2 %v1922_v22  ;;  %v1544_v63 = vcvt.s32.f32 %v968_v10  ;;  %v1064_v55 = vunpack.c.0.s8 %v542_v45  ;;  %v1070_v1 = vunpack.c.1.s8 %v542_v45  ;;  %v1814_v4 = vpack.c.bf16 %v1346_v12, %v1340_v21  ;;  %v6422_v45 = vld [vmem:[%s8282_s3 + $0x38] sm:$0xff]  ;;  %v2246_v24 = vpop.f32.mrf.mxu2  ;;  %v2259_v22 = vpop.f32.mrf.mxu3  ;;  %v6421_v25 = vld [vmem:[%s8282_s3 + $0x30] sm:$0xff] }
 0x1a1   :  { %2460 = vmatpush.bf16.msrb.mxu3 %v1970_v19  ;;  %v1550_v44 = vcvt.s32.f32 %v974_v52  ;;  %v752_v58 = vunpack.c.0.s8 %v464_v54  ;;  %v758_v2 = vunpack.c.1.s8 %v464_v54  ;;  %v1862_v38 = vpack.c.bf16 %v1442_v7, %v1436_v16  ;;  %v6429_v7 = vld [vmem:[%s8282_s3 + $0x70] sm:$0xff]  ;;  %v6416_v24 = vld [vmem:[%s8282_s3 + $0x8] sm:$0xff] }
 0x1a2   :  { %v1640_v61 = vcvt.s32.f32 %v1064_v55  ;;  %v1646_v37 = vcvt.s32.f32 %v1070_v1  ;;  %v848_v56 = vunpack.c.0.s8 %v488_v28  ;;  %2423 = vmatpush.bf16.msrb.mxu0 %v1814_v4  ;;  %v854_v8 = vunpack.c.1.s8 %v488_v28  ;;  %v6438_v1 = vld [vmem:[%s8282_s3 + $0xb8] sm:$0xff] }
 0x1a3   :  { %v1916_v50 = vpack.c.bf16 %v1550_v44, %v1544_v63  ;;  %v1328_v34 = vcvt.s32.f32 %v752_v58  ;;  %v1334_v5 = vcvt.s32.f32 %v758_v2  ;;  %2436 = vmatpush.bf16.msrb.mxu1 %v1862_v38  ;;  %v956_v48 = vunpack.c.2.s8 %v512_v59  ;;  %v6420_v44 = vld [vmem:[%s8282_s3 + $0x28] sm:$0xff]  ;;  %v6446_v58 = vld [vmem:[%s8282_s3 + $0xf8] sm:$0xff]  ;;  %v6419_v38 = vld [vmem:[%s8282_s3 + $0x20] sm:$0xff] }
 0x1a4   :  { %v1964_v0 = vpack.c.bf16 %v1646_v37, %v1640_v61  ;;  %v1424_v60 = vcvt.s32.f32 %v848_v56  ;;  %v962_v54 = vunpack.c.3.s8 %v512_v59  ;;  %v1430_v57 = vcvt.s32.f32 %v854_v8  ;;  %v6445_v61 = vld [vmem:[%s8282_s3 + $0xf0] sm:$0xff]  ;;  %v6427_v56 = vld [vmem:[%s8282_s3 + $0x60] sm:$0xff] }
 0x1a5   :  { %2448 = vmatpush.bf16.msrb.mxu2 %v1916_v50  ;;  %v1808_v15 = vpack.c.bf16 %v1334_v5, %v1328_v34  ;;  %v1052_v26 = vunpack.c.2.s8 %v536_v14  ;;  %v1058_v47 = vunpack.c.3.s8 %v536_v14  ;;  %v1532_v28 = vcvt.s32.f32 %v956_v48 }
 0x1a6   :  { %2461 = vmatpush.bf16.msrb.mxu3 %v1964_v0  ;;  %v1538_v39 = vcvt.s32.f32 %v962_v54  ;;  %v944_v3 = vunpack.c.0.s8 %v512_v59  ;;  %v950_v35 = vunpack.c.1.s8 %v512_v59  ;;  %v1856_v6 = vpack.c.bf16 %v1430_v57, %v1424_v60  ;;  %v6537_v0 = vld [vmem:[#allocation8 + $0x8] sm:$0xff]  ;;  %v6443_v54 = vld [vmem:[%s8282_s3 + $0xe0] sm:$0xff] }
 0x1a7   :  { %2424 = vmatpush.bf16.msrb.mxu0 %v1808_v15  ;;  %v1628_v62 = vcvt.s32.f32 %v1052_v26  ;;  %v1634_v13 = vcvt.s32.f32 %v1058_v47  ;;  %v1040_v32 = vunpack.c.0.s8 %v536_v14  ;;  %v1046_v12 = vunpack.c.1.s8 %v536_v14  ;;  %v6436_v14 = vld [vmem:[%s8282_s3 + $0xa8] sm:$0xff] }
 0x1a8   :  { %v1910_v21 = vpack.c.bf16 %v1538_v39, %v1532_v28  ;;  %v1520_v10 = vcvt.s32.f32 %v944_v3  ;;  %v1526_v19 = vcvt.s32.f32 %v950_v35  ;;  %2437 = vmatpush.bf16.msrb.mxu1 %v1856_v6  ;;  %v2193_v37 = vadd.f32 %v7328_v51, %v7341_v27  ;;  %v7407_v51 = vld [vmem:[#allocation8] sm:$0xff]  ;;  %v6434_v39 = vld [vmem:[%s8282_s3 + $0x98] sm:$0xff] }
 0x1a9   :  { %v1958_v16 = vpack.c.bf16 %v1634_v13, %v1628_v62  ;;  %v1616_v52 = vcvt.s32.f32 %v1040_v32  ;;  %v1622_v55 = vcvt.s32.f32 %v1046_v12  ;;  %v2258_v50 = vadd.f32 %v7352_v23, %v7350_v49  ;;  %v6426_v49 = vld [vmem:[%s8282_s3 + $0x58] sm:$0xff] }
 0x1aa   :  { %2449 = vmatpush.bf16.msrb.mxu2 %v1910_v21  ;;  %v1904_v63 = vpack.c.bf16 %v1526_v19, %v1520_v10  ;;  %2425 = vmatmul.bf16.vlgmr.msrb.gmra.mxu0 %v6982_v46  ;;  %v6428_v46 = vld [vmem:[%s8282_s3 + $0x68] sm:$0xff]  ;;  %v2469_v27 = vperm.slane %v7407_v51, 6  ;;  %v2206_v5 = vadd.f32 %v7330_v33, %v2193_v37  ;;  %v2470_v60 = vperm.slane %v6537_v0, 6  ;;  %v6417_v33 = vld [vmem:[%s8282_s3 + $0x10] sm:$0xff]  ;;  %v6539_v13 = vld [vmem:[#allocation8 + $0x10] sm:$0xff] }
 0x1ab   :  { %2890 = vmatpush.bf16.msra.mxu0 %v6422_v45  ;;  %2462 = vmatpush.bf16.msrb.mxu3 %v1958_v16  ;;  %v1952_v4 = vpack.c.bf16 %v1622_v55, %v1616_v52  ;;  %v6435_v45 = vld [vmem:[%s8282_s3 + $0xa0] sm:$0xff]  ;;  %v2481_v57 = vperm.slane %v7407_v51, 1  ;;  %v2482_v28 = vperm.slane %v6537_v0, 1  ;;  %v2471_v32 = vperm.slane %v6539_v13, 6  ;;  %v6433_v10 = vld [vmem:[%s8282_s3 + $0x90] sm:$0xff] }
 0x1ac   :  { %2903 = vmatpush.bf16.msra.mxu1 %v6430_v18  ;;  %v2270_v2 = vpop.f32.mrf.mxu0  ;;  %v2219_v48 = vadd.f32 %v7346_v20, %v2206_v5  ;;  %v2475_v15 = vmul.f32 %v2469_v27, %v7301_v53  ;;  %v6425_v20 = vld [vmem:[%s8282_s3 + $0x50] sm:$0xff]  ;;  %v2476_v18 = vmul.f32 %v2470_v60, %v7326_v17  ;;  %v6538_v53 = vld [vmem:[#allocation8 + $0x18] sm:$0xff]  ;;  %v6442_v17 = vld [vmem:[%s8282_s3 + $0xd8] sm:$0xff]  ;;  %v2483_v52 = vperm.slane %v6539_v13, 1 }
 0x1ad   :  { %2438 = vmatmul.bf16.vlgmr.msrb.gmra.mxu1 %v6992_v40  ;;  %v6437_v40 = vld [vmem:[%s8282_s3 + $0xb0] sm:$0xff]  ;;  %v2271_v34 = vadd.f32 %v2270_v2, %v2258_v50  ;;  %v2472_v6 = vperm.slane %v6538_v53, 6  ;;  %v2484_v12 = vperm.slane %v6538_v53, 1  ;;  %v6452_v27 = vld [vmem:[%s8282_s3 + $0x128] sm:$0xff] }
 0x1ae   :  { %2450 = vmatpush.bf16.msrb.mxu2 %v1904_v63  ;;  %v2283_v59 = vpop.f32.mrf.mxu1  ;;  %v2232_v62 = vadd.f32 %v7348_v43, %v2219_v48  ;;  %v2487_v22 = vadd.f32 %v2481_v57, %v2475_v15  ;;  %v2488_v43 = vadd.f32 %v2482_v28, %v2476_v18  ;;  %v6441_v63 = vld [vmem:[%s8282_s3 + $0xd0] sm:$0xff]  ;;  %v6448_v15 = vld [vmem:[%s8282_s3 + $0x108] sm:$0xff]  ;;  %v6462_v18 = vld [vmem:[%s8282_s3 + $0x178] sm:$0xff] }
 0x1af   :  { %2891 = vmatpush.bf16.msra.mxu0 %v6421_v25  ;;  %2463 = vmatpush.bf16.msrb.mxu3 %v1952_v4  ;;  %v2284_v26 = vadd.f32 %v2283_v59, %v2271_v34  ;;  %v6424_v25 = vld [vmem:[%s8282_s3 + $0x48] sm:$0xff]  ;;  %v6423_v4 = vld [vmem:[%s8282_s3 + $0x40] sm:$0xff] }
 0x1b0   :  { %2904 = vmatpush.bf16.msra.mxu1 %v6429_v7  ;;  %v2477_v16 = vmul.f32 %v2471_v32, %v2232_v62  ;;  %v6415_v7 = vld [vmem:[%s8282_s3] sm:$0xff]  ;;  %v2493_v55 = vmax.f32 %v2487_v22, 0.0 }
 0x1b1   :  { %2451 = vmatmul.bf16.vlgmr.msrb.gmra.mxu2 %v7062_v41  ;;  %v6418_v41 = vld [vmem:[%s8282_s3 + $0x18] sm:$0xff] }
 0x1b2   :  { %2916 = vmatpush.bf16.msra.mxu2 %v6438_v1  ;;  %2464 = vmatmul.bf16.vlgmr.msrb.gmra.mxu3 %v7069_v11  ;;  %v6444_v11 = vld [vmem:[%s8282_s3 + $0xe8] sm:$0xff]  ;;  %v6454_v1 = vld [vmem:[%s8282_s3 + $0x138] sm:$0xff] }
 0x1b3   :  { %2892 = vmatpush.bf16.msra.mxu0 %v6420_v44  ;;  %2929 = vmatpush.bf16.msra.mxu3 %v6446_v58  ;;  %v2494_v58 = vmax.f32 %v2488_v43, 0.0 }
 0x1b4   :  { %2905 = vmatpush.bf16.msra.mxu1 %v6428_v46  ;;  %v2272_v23 = vpop.f32.mrf.mxu0  ;;  %v6432_v46 = vld [vmem:[%s8282_s3 + $0x88] sm:$0xff] }
 0x1b5   :  { %v2500_v37 = vpack.c.bf16 %v2494_v58, %v2494_v58  ;;  %v6450_v23 = vld [vmem:[%s8282_s3 + $0x118] sm:$0xff] }
 0x1b6   :  { %2917 = vmatpush.bf16.msra.mxu2 %v6437_v40  ;;  %v2285_v8 = vpop.f32.mrf.mxu1  ;;  %v2489_v40 = vadd.f32 %v2483_v52, %v2477_v16 }
 0x1b7   :  { %2893 = vmatpush.bf16.msra.mxu0 %v6419_v38  ;;  %2930 = vmatpush.bf16.msra.mxu3 %v6445_v61  ;;  %v6440_v38 = vld [vmem:[%s8282_s3 + $0xc8] sm:$0xff]  ;;  %v2499_v61 = vpack.c.bf16 %v2493_v55, %v2493_v55 }
 0x1b8   :  { %2906 = vmatpush.bf16.msra.mxu1 %v6427_v56  ;;  %v6431_v56 = vld [vmem:[%s8282_s3 + $0x80] sm:$0xff]  ;;  %v2495_v50 = vmax.f32 %v2489_v40, 0.0 }
 0x1ba   :  { %2918 = vmatpush.bf16.msra.mxu2 %v6436_v14  ;;  %v2501_v5 = vpack.c.bf16 %v2495_v50, %v2495_v50  ;;  %v7519_v50 = vld [vmem:[#allocation8 + $0x28] sm:$0xff] }
 0x1bb   :  { %2894 = vmatpush.bf16.msra.mxu0 %v6418_v41  ;;  %2931 = vmatpush.bf16.msra.mxu3 %v6444_v11  ;;  %v6439_v41 = vld [vmem:[%s8282_s3 + $0xc0] sm:$0xff]  ;;  %v6453_v11 = vld [vmem:[%s8282_s3 + $0x130] sm:$0xff] }
 0x1bc   :  { %2907 = vmatpush.bf16.msra.mxu1 %v6426_v49  ;;  %v2296_v47 = vpop.f32.mrf.mxu2  ;;  %v6451_v49 = vld [vmem:[%s8282_s3 + $0x120] sm:$0xff] }
 0x1bd   :  { %v2297_v3 = vadd.f32 %v2296_v47, %v2284_v26 }
 0x1be   :  { %2919 = vmatpush.bf16.msra.mxu2 %v6435_v45  ;;  %v2309_v35 = vpop.f32.mrf.mxu3 }
 0x1bf   :  { %2895 = vmatpush.bf16.msra.mxu0 %v6417_v33  ;;  %2932 = vmatpush.bf16.msra.mxu3 %v6443_v54  ;;  %v2310_v21 = vadd.f32 %v2309_v35, %v2297_v3  ;;  %v6449_v54 = vld [vmem:[%s8282_s3 + $0x110] sm:$0xff] }
 0x1c0   :  { %2908 = vmatpush.bf16.msra.mxu1 %v6425_v20  ;;  %v6447_v20 = vld [vmem:[%s8282_s3 + $0x100] sm:$0xff] }
 0x1c1   :  { %v2478_v19 = vmul.f32 %v2472_v6, %v2310_v21  ;;  %v7497_v6 = vld [vmem:[#allocation8 + $0x20] sm:$0xff] }
 0x1c2   :  { %2920 = vmatpush.bf16.msra.mxu2 %v6434_v39  ;;  %v6461_v39 = vld [vmem:[%s8282_s3 + $0x170] sm:$0xff]  ;;  %v2473_v62 = vperm.slane %v7497_v6, 6 }
 0x1c3   :  { %2896 = vmatpush.bf16.msra.mxu0 %v6416_v24  ;;  %2933 = vmatpush.bf16.msra.mxu3 %v6442_v17  ;;  %v2490_v2 = vadd.f32 %v2484_v12, %v2478_v19  ;;  %v2485_v24 = vperm.slane %v7497_v6, 1  ;;  %v6459_v12 = vld [vmem:[%s8282_s3 + $0x160] sm:$0xff] }
 0x1c4   :  { %2909 = vmatpush.bf16.msra.mxu1 %v6424_v25  ;;  %v2298_v44 = vpop.f32.mrf.mxu2 }
 0x1c5   :  { %v2496_v14 = vmax.f32 %v2490_v2, 0.0  ;;  %v6455_v44 = vld [vmem:[%s8282_s3 + $0x140] sm:$0xff] }
 0x1c6   :  { %2921 = vmatpush.bf16.msra.mxu2 %v6433_v10  ;;  %v2311_v59 = vpop.f32.mrf.mxu3  ;;  %v6460_v10 = vld [vmem:[%s8282_s3 + $0x168] sm:$0xff] }
 0x1c7   :  { %2897 = vmatpush.bf16.msra.mxu0 %v6415_v7  ;;  %2934 = vmatpush.bf16.msra.mxu3 %v6441_v63  ;;  %v2502_v34 = vpack.c.bf16 %v2496_v14, %v2496_v14  ;;  %v6458_v7 = vld [vmem:[%s8282_s3 + $0x158] sm:$0xff]  ;;  %v6457_v63 = vld [vmem:[%s8282_s3 + $0x150] sm:$0xff] }
 0x1c8   :  { %2910 = vmatpush.bf16.msra.mxu1 %v6423_v4  ;;  %v6456_v4 = vld [vmem:[%s8282_s3 + $0x148] sm:$0xff] }
 0x1ca   :  { %2922 = vmatpush.bf16.msra.mxu2 %v6432_v46  ;;  %2898 = vmatmul.bf16.vlgmr.msra.gmra.mxu0 %v2499_v61 }
 0x1cb   :  { %2942 = vmatpush.bf16.msrb.mxu0 %v6454_v1  ;;  %2935 = vmatpush.bf16.msra.mxu3 %v6440_v38 }
 0x1cc   :  { %2911 = vmatmul.bf16.vlgmr.msra.gmra.mxu1 %v2500_v37 }
 0x1cd   :  { %2955 = vmatpush.bf16.msrb.mxu1 %v6462_v18 }
 0x1ce   :  { %2923 = vmatpush.bf16.msra.mxu2 %v6431_v56 }
 0x1cf   :  { %2943 = vmatpush.bf16.msrb.mxu0 %v6453_v11  ;;  %2936 = vmatpush.bf16.msra.mxu3 %v6439_v41  ;;  %v2474_v41 = vperm.slane %v7519_v50, 6 }
 0x1d1   :  { %2924 = vmatmul.bf16.vlgmr.msra.gmra.mxu2 %v2501_v5  ;;  %2956 = vmatpush.bf16.msrb.mxu1 %v6461_v39 }
 0x1d2   :  { %2937 = vmatmul.bf16.vlgmr.msra.gmra.mxu3 %v2502_v34 }
 0x1d3   :  { %2944 = vmatpush.bf16.msrb.mxu0 %v6452_v27  ;;  %v2486_v27 = vperm.slane %v7519_v50, 1 }
 0x1d5   :  { %2957 = vmatpush.bf16.msrb.mxu1 %v6460_v10 }
 0x1d6   :  { %v2322_v8 = vpop.f32.mrf.mxu0 }
 0x1d7   :  { %2945 = vmatpush.bf16.msrb.mxu0 %v6451_v49  ;;  %v2335_v0 = vpop.f32.mrf.mxu1 }
 0x1d8   :  { %v2336_v47 = vadd.f32 %v2335_v0, %v2322_v8 }
 0x1d9   :  { %2958 = vmatpush.bf16.msrb.mxu1 %v6459_v12 }
 0x1db   :  { %2946 = vmatpush.bf16.msrb.mxu0 %v6450_v23 }
 0x1dd   :  { %2959 = vmatpush.bf16.msrb.mxu1 %v6458_v7 }
 0x1de   :  { %v2324_v60 = vpop.f32.mrf.mxu0 }
 0x1df   :  { %v2337_v45 = vpop.f32.mrf.mxu1  ;;  %2947 = vmatpush.bf16.msrb.mxu0 %v6449_v54  ;;  %v2601_v60 = vperm.slane %v7407_v51, 4  ;;  %v6091_v51 = vld [vmem:[#allocation5 + $0x148] sm:$0xf] }
 0x1e1   :  { %2960 = vmatpush.bf16.msrb.mxu1 %v6457_v63 }
 0x1e3   :  { %2948 = vmatpush.bf16.msrb.mxu0 %v6448_v15 }
 0x1e5   :  { %2961 = vmatpush.bf16.msrb.mxu1 %v6456_v4  ;;  %v6542_v4 = vld [vmem:[#allocation2] sm:$0xff] }
 0x1e6   :  { %v2348_v48 = vpop.f32.mrf.mxu2 }
 0x1e7   :  { %v2361_v33 = vpop.f32.mrf.mxu3  ;;  %2949 = vmatpush.bf16.msrb.mxu0 %v6447_v20  ;;  %v2349_v28 = vadd.f32 %v2348_v48, %v2336_v47 }
 0x1e9   :  { %v2362_v3 = vadd.f32 %v2361_v33, %v2349_v28  ;;  %2962 = vmatpush.bf16.msrb.mxu1 %v6455_v44 }
 0x1ee   :  { %v2350_v57 = vpop.f32.mrf.mxu2 }
 0x1ef   :  { %v2363_v26 = vpop.f32.mrf.mxu3 }
 0x1ff   :  { %v2374_v35 = vpop.f32.mrf.mxu0 }
 0x200   :  { %v2375_v53 = vadd.f32 %v2374_v35, %v2362_v3 }
 0x201   :  { %v2387_v13 = vpop.f32.mrf.mxu1 }
 0x202   :  { %v2388_v32 = vadd.f32 %v2387_v13, %v2375_v53  ;;  %v6075_v53 = vld [vmem:[#allocation5 + $0x138] sm:$0xf]  ;;  %v6469_v13 = vld [vmem:[#allocation5 + $0x13c] sm:$0xf] }
 0x204   :  { %v2479_v17 = vmul.f32 %v2473_v62, %v2388_v32  ;;  %v6472_v62 = vld [vmem:[#allocation5 + $0x164] sm:$0xf0] }
 0x205   :  { %v6076_v32 = vor.u32 %v6472_v62, %v6075_v53  ;;  %v3169_v53 = vld [vmem:[#allocation7 + $0x4e0] sm:$0xff] }
 0x206   :  { %v2491_v22 = vadd.f32 %v2485_v24, %v2479_v17  ;;  %v6077_v24 = vld [vmem:[#allocation5 + $0x168] sm:$0xf0]  ;;  %v6474_v17 = vld [vmem:[#allocation5 + $0x174] sm:$0xf0]  ;;  %v3193_v62 = vld [vmem:[#allocation7 + $0x5a0] sm:$0xff] }
 0x207   :  { %v2376_v21 = vpop.f32.mrf.mxu0  ;;  %3060 = vmatpush.bf16.msrb.mxu2 %v6076_v32 }
 0x208   :  { %v2497_v25 = vmax.f32 %v2491_v22, 0.0  ;;  %v6080_v22 = vor.u32 %v6469_v13, %v6077_v24  ;;  %v6092_v21 = vor.u32 %v6474_v17, %v6091_v51 }
 0x209   :  { %v2389_v43 = vpop.f32.mrf.mxu1 }
 0x20a   :  { %v2503_v19 = vpack.c.bf16 %v2497_v25, %v2497_v25  ;;  %v6471_v25 = vld [vmem:[#allocation5 + $0x14c] sm:$0xf]  ;;  %v6093_v43 = vld [vmem:[#allocation5 + $0x178] sm:$0xf0]  ;;  %3073 = vmatpush.bf16.msrb.mxu3 %v6080_v22  ;;  %3112 = vmatpush.bf16.msra.mxu0 %v6092_v21  ;;  %v3361_v21 = vunpack.c.2.s8 %v3169_v53 }
 0x20b   :  { %v6096_v10 = vor.u32 %v6471_v25, %v6093_v43  ;;  %v3367_v25 = vunpack.c.3.s8 %v3169_v53 }
 0x20c   :  { %2950 = vmatmul.bf16.vlgmr.msrb.gmra.mxu0 %v2503_v19 }
 0x20d   :  { %3125 = vmatpush.bf16.msra.mxu1 %v6096_v10 }
 0x20f   :  { %v2400_v16 = vpop.f32.mrf.mxu2 }
 0x210   :  { %v2413_v52 = vpop.f32.mrf.mxu3 }
 0x211   :  { %v2414_v2 = vadd.f32 %v2413_v52, %v2400_v16 }
 0x217   :  { %v2402_v55 = vpop.f32.mrf.mxu2 }
 0x218   :  { %v2415_v1 = vpop.f32.mrf.mxu3 }
 0x227   :  { %v2426_v58 = vpop.f32.mrf.mxu0 }
 0x228   :  { %v2427_v59 = vadd.f32 %v2426_v58, %v2414_v2  ;;  %v6051_v58 = vld [vmem:[#allocation5 + $0xd8] sm:$0xf]  ;;  %v6463_v2 = vld [vmem:[#allocation5 + $0xdc] sm:$0xf] }
 0x22a   :  { %v2439_v46 = vpop.f32.mrf.mxu1 }
 0x22b   :  { %v2440_v61 = vadd.f32 %v2439_v46, %v2427_v59  ;;  %v6466_v46 = vld [vmem:[#allocation5 + $0x104] sm:$0xf0] }
 0x22c   :  { %v6052_v59 = vor.u32 %v6466_v46, %v6051_v58  ;;  %v3445_v58 = vunpack.c.0.s8 %v3193_v62  ;;  %v3451_v46 = vunpack.c.1.s8 %v3193_v62 }
 0x22e   :  { %3061 = vmatpush.bf16.msrb.mxu2 %v6052_v59 }
 0x22f   :  { %v2428_v40 = vpop.f32.mrf.mxu0 }
 0x230   :  { %v6053_v40 = vld [vmem:[#allocation5 + $0x108] sm:$0xf0] }
 0x232   :  { %v2441_v38 = vpop.f32.mrf.mxu1 }
 0x233   :  { %v6067_v38 = vld [vmem:[#allocation5 + $0xe8] sm:$0xf] }
 0x234   :  { %v2452_v37 = vpop.f32.mrf.mxu2 }
 0x235   :  { %v2453_v56 = vadd.f32 %v2452_v37, %v2440_v61  ;;  %v2465_v14 = vpop.f32.mrf.mxu3  ;;  %v6468_v61 = vld [vmem:[#allocation5 + $0x114] sm:$0xf0]  ;;  %v6056_v37 = vor.u32 %v6463_v2, %v6053_v40 }
 0x237   :  { %v2466_v11 = vadd.f32 %v2465_v14, %v2453_v56  ;;  %v6068_v56 = vor.u32 %v6468_v61, %v6067_v38  ;;  %v6465_v14 = vld [vmem:[#allocation5 + $0xec] sm:$0xf]  ;;  %3074 = vmatpush.bf16.msrb.mxu3 %v6056_v37  ;;  %v7559_v38 = vld [vmem:[#allocation7 + $0x570] sm:$0xff] }
 0x238   :  { %v3223_v61 = vld [vmem:[#allocation7 + $0x690] sm:$0xff] }
 0x239   :  { %v2480_v34 = vmul.f32 %v2474_v41, %v2466_v11  ;;  %v6069_v41 = vld [vmem:[#allocation5 + $0x118] sm:$0xf0]  ;;  %3113 = vmatpush.bf16.msra.mxu0 %v6068_v56 }
 0x23a   :  { %v6072_v11 = vor.u32 %v6465_v14, %v6069_v41 }
 0x23b   :  { %v2492_v5 = vadd.f32 %v2486_v27, %v2480_v34  ;;  %v6083_v27 = vld [vmem:[#allocation5 + $0x140] sm:$0xf]  ;;  %v6473_v34 = vld [vmem:[#allocation5 + $0x16c] sm:$0xf0] }
 0x23c   :  { %v2454_v49 = vpop.f32.mrf.mxu2  ;;  %3126 = vmatpush.bf16.msra.mxu1 %v6072_v11  ;;  %v3247_v11 = vld [vmem:[#allocation7 + $0x750] sm:$0xff] }
 0x23d   :  { %v2498_v23 = vmax.f32 %v2492_v5, 0.0  ;;  %v2467_v8 = vpop.f32.mrf.mxu3  ;;  %v6470_v5 = vld [vmem:[#allocation5 + $0x144] sm:$0xf]  ;;  %v6084_v49 = vor.u32 %v6473_v34, %v6083_v27 }
 0x23e   :  { %v6059_v8 = vld [vmem:[#allocation5 + $0xe0] sm:$0xf] }
 0x23f   :  { %v2504_v0 = vpack.c.bf16 %v2498_v23, %v2498_v23  ;;  %v6085_v23 = vld [vmem:[#allocation5 + $0x170] sm:$0xf0]  ;;  %3086 = vmatpush.bf16.msra.mxu2 %v6084_v49  ;;  %v7572_v49 = vcvt.s32.f32 %v3445_v58 }
 0x241   :  { %2963 = vmatmul.bf16.vlgmr.msrb.gmra.mxu1 %v2504_v0  ;;  %v6467_v0 = vld [vmem:[#allocation5 + $0x10c] sm:$0xf0] }
 0x247   :  { %v2899_v45 = vpop.f32.mrf.mxu0 }
 0x248   :  { %v2900_v48 = vadd.f32 %v2899_v45, %v2601_v60  ;;  %v6088_v60 = vor.u32 %v6470_v5, %v6085_v23  ;;  %v6464_v45 = vld [vmem:[#allocation5 + $0xe4] sm:$0xf]  ;;  %v7574_v23 = vcvt.s32.f32 %v3451_v46 }
 0x249   :  { %v2912_v33 = vpop.f32.mrf.mxu1 }
 0x24a   :  { %v2913_v54 = vadd.f32 %v2912_v33, %v2900_v48  ;;  %v6061_v48 = vld [vmem:[#allocation5 + $0x110] sm:$0xf0]  ;;  %v6060_v33 = vor.u32 %v6467_v0, %v6059_v8  ;;  %3099 = vmatpush.bf16.msra.mxu3 %v6088_v60  ;;  %v3433_v60 = vunpack.c.2.s8 %v7559_v38 }
 0x24c   :  { %3087 = vmatpush.bf16.msra.mxu2 %v6060_v33  ;;  %v3439_v33 = vunpack.c.3.s8 %v7559_v38 }
 0x24f   :  { %v2901_v15 = vpop.f32.mrf.mxu0 }
 0x250   :  { %v3175_v15 = vld [vmem:[#allocation7 + $0x510] sm:$0xff] }
 0x251   :  { %v2914_v57 = vpop.f32.mrf.mxu1 }
 0x252   :  { %v3199_v57 = vld [vmem:[#allocation7 + $0x5d0] sm:$0xff] }
 0x254   :  { %v2925_v26 = vpop.f32.mrf.mxu2 }
 0x255   :  { %v2926_v20 = vadd.f32 %v2925_v26, %v2913_v54  ;;  %v2938_v47 = vpop.f32.mrf.mxu3  ;;  %v6064_v54 = vor.u32 %v6464_v45, %v6061_v48  ;;  %v3385_v26 = vunpack.c.2.s8 %v3175_v15  ;;  %v3577_v45 = vunpack.c.2.s8 %v3223_v61 }
 0x257   :  { %v2939_v18 = vadd.f32 %v2938_v47, %v2926_v20  ;;  %3100 = vmatpush.bf16.msra.mxu3 %v6064_v54  ;;  %v3391_v20 = vunpack.c.3.s8 %v3175_v15  ;;  %v3481_v47 = vunpack.c.2.s8 %v3199_v57  ;;  %v7528_v13 = vcvt.s32.f32 %v3385_v26 }
 0x258   :  { %v3583_v54 = vunpack.c.3.s8 %v3223_v61 }
 0x259   :  { %v7530_v32 = vcvt.s32.f32 %v3391_v20  ;;  %v7532_v24 = vcvt.s32.f32 %v3481_v47  ;;  %v4153_v20 = vcvt.s32.f32 %v3577_v45  ;;  %v3679_v47 = vunpack.c.3.s8 %v3247_v11 }
 0x25b   :  { %v4495_v2 = vpack.c.bf16 %v7530_v32, %v7528_v13  ;;  %v7603_v13 = vcvt.s32.f32 %v3439_v33 }
 0x25c   :  { %v2927_v28 = vpop.f32.mrf.mxu2 }
 0x25d   :  { %v2940_v39 = vpop.f32.mrf.mxu3  ;;  %v3373_v28 = vunpack.c.0.s8 %v3175_v15 }
 0x25e   :  { %v3379_v39 = vunpack.c.1.s8 %v3175_v15  ;;  %v3673_v15 = vunpack.c.2.s8 %v3247_v11 }
 0x25f   :  { %v7536_v17 = vcvt.s32.f32 %v3373_v28  ;;  %v4159_v28 = vcvt.s32.f32 %v3583_v54 }
 0x260   :  { %v7538_v22 = vcvt.s32.f32 %v3379_v39  ;;  %v4249_v39 = vcvt.s32.f32 %v3673_v15 }
 0x261   :  { %v4591_v32 = vpack.c.bf16 %v4159_v28, %v4153_v20 }
 0x262   :  { %v4489_v37 = vpack.c.bf16 %v7538_v22, %v7536_v17  ;;  %v3157_v17 = vld [vmem:[#allocation7 + $0x480] sm:$0xff] }
 0x263   :  { %4773 = vmatpush.bf16.msrb.mxu0 %v4591_v32 }
 0x289   :  { %v2951_v3 = vpop.f32.mrf.mxu0 }
 0x28a   :  { %v2952_v19 = vadd.f32 %v2951_v3, %v2939_v18  ;;  %v3487_v18 = vunpack.c.3.s8 %v3199_v57  ;;  %v3469_v3 = vunpack.c.0.s8 %v3199_v57 }
 0x28c   :  { %v7534_v51 = vcvt.s32.f32 %v3487_v18  ;;  %v7540_v43 = vcvt.s32.f32 %v3469_v3  ;;  %v4525_v18 = vpack.c.bf16 %v7574_v23, %v7572_v49  ;;  %v7595_v3 = vcvt.s32.f32 %v3433_v60  ;;  %v3235_v49 = vld [vmem:[#allocation7 + $0x6f0] sm:$0xff] }
 0x28e   :  { %v4543_v59 = vpack.c.bf16 %v7534_v51, %v7532_v24  ;;  %v3565_v24 = vunpack.c.0.s8 %v3223_v61  ;;  %v3571_v51 = vunpack.c.1.s8 %v3223_v61 }
 0x291   :  { %v2953_v35 = vpop.f32.mrf.mxu0 }
 0x292   :  { %v3475_v35 = vunpack.c.1.s8 %v3199_v57 }
 0x294   :  { %v7542_v10 = vcvt.s32.f32 %v3475_v35  ;;  %v4255_v35 = vcvt.s32.f32 %v3679_v47 }
 0x296   :  { %v4537_v56 = vpack.c.bf16 %v7542_v10, %v7540_v43  ;;  %v3427_v43 = vunpack.c.1.s8 %v7559_v38  ;;  %v3181_v10 = vld [vmem:[#allocation7 + $0x540] sm:$0xff] }
 0x298   :  { %v7615_v60 = vcvt.s32.f32 %v3427_v43 }
 0x2be   :  { %v2964_v12 = vpop.f32.mrf.mxu1 }
 0x2bf   :  { %v7524_v16 = vadd.f32 %v2964_v12, %v2952_v19  ;;  %v3457_v19 = vunpack.c.2.s8 %v3193_v62  ;;  %v3463_v12 = vunpack.c.3.s8 %v3193_v62 }
 0x2c1   :  { %v2968_v52 = vmax.f32 %v7524_v16, -4.0 }
 0x2c3   :  { %v2969_v7 = vmin.f32 %v2968_v52, 15.0  ;;  %v7544_v52 = vld [vmem:[#allocation7 + $0x4b0] sm:$0xff] }
 0x2c4   :  { %v3337_v40 = vunpack.c.2.s8 %v7544_v52  ;;  %v3343_v41 = vunpack.c.3.s8 %v7544_v52  ;;  %v3331_v62 = vunpack.c.1.s8 %v7544_v52 }
 0x2c5   :  { %v2970_v63 = vmul.f32 1.442695, %v2969_v7  ;;  %v7546_v7 = vcvt.s32.f32 %v3361_v21  ;;  %v4639_v21 = vpack.c.bf16 %v4255_v35, %v4249_v39 }
 0x2c6   :  { %v2966_v55 = vpop.f32.mrf.mxu1  ;;  %v7580_v48 = vcvt.s32.f32 %v3337_v40  ;;  %v7585_v26 = vcvt.s32.f32 %v3343_v41  ;;  %v7611_v46 = vcvt.s32.f32 %v3331_v62  ;;  %v3241_v40 = vld [vmem:[#allocation7 + $0x720] sm:$0xff]  ;;  %v3307_v62 = vunpack.c.1.s8 %v3157_v17 }
 0x2c7   :  { %6532 = vpow2.f32 %v2970_v63  ;;  %v7548_v63 = vcvt.s32.f32 %v3367_v25  ;;  %v3349_v55 = vunpack.c.0.s8 %v3169_v53  ;;  %v3421_v25 = vunpack.c.0.s8 %v7559_v38  ;;  %4786 = vmatpush.bf16.msrb.mxu1 %v4639_v21 }
 0x2c8   :  { %v4471_v22 = vpack.c.bf16 %v7585_v26, %v7580_v48  ;;  %v3649_v20 = vunpack.c.2.s8 %v3241_v40  ;;  %v3655_v35 = vunpack.c.3.s8 %v3241_v40  ;;  %v3403_v21 = vunpack.c.1.s8 %v3181_v10  ;;  %v7666_v26 = vld [vmem:[#allocation7 + $0x7e0] sm:$0xff] }
 0x2c9   :  { %v4483_v14 = vpack.c.bf16 %v7548_v63, %v7546_v7  ;;  %v7568_v34 = vcvt.s32.f32 %v3349_v55  ;;  %v3667_v55 = vunpack.c.1.s8 %v3247_v11  ;;  %v7613_v38 = vcvt.s32.f32 %v3421_v25 }
 0x2ca   :  { %v7637_v7 = vcvt.s32.f32 %v3403_v21 }
 0x2cd   :  { %v6533_v1 = vpop.eup %6532 }
 0x2ce   :  { %5725 = vrot.lane.b32.xlu1 %v6533_v1, %s6687_s20  ;;  %v2972_v44 = vmul.f32 %v6542_v4, %v6533_v1  ;;  %v3355_v1 = vunpack.c.1.s8 %v3169_v53  ;;  %v7550_v4 = vcvt.s32.f32 %v3457_v19  ;;  %v3325_v53 = vunpack.c.0.s8 %v7544_v52 }
 0x2cf   :  { %v4141_v19 = vcvt.s32.f32 %v3565_v24  ;;  %v3661_v52 = vunpack.c.0.s8 %v3247_v11  ;;  %v3415_v11 = vunpack.c.3.s8 %v3181_v10  ;;  %v4231_v24 = vcvt.s32.f32 %v3655_v35 }
 0x2d0   :  { %2974 = vrot.lane.b32.xlu0 %v2972_v44, %s6688_s21  ;;  %v7552_v44 = vcvt.s32.f32 %v3463_v12  ;;  %v7570_v5 = vcvt.s32.f32 %v3355_v1  ;;  %v4147_v12 = vcvt.s32.f32 %v3571_v51  ;;  %v3217_v1 = vld [vmem:[#allocation7 + $0x660] sm:$0xff]  ;;  %v7609_v58 = vcvt.s32.f32 %v3325_v53 }
 0x2d1   :  { %v4237_v41 = vcvt.s32.f32 %v3661_v52  ;;  %v3553_v45 = vunpack.c.2.s8 %v3217_v1  ;;  %v3559_v15 = vunpack.c.3.s8 %v3217_v1  ;;  %v3301_v53 = vunpack.c.0.s8 %v3157_v17 }
 0x2d2   :  { %v4531_v0 = vpack.c.bf16 %v7552_v44, %v7550_v4  ;;  %v4585_v61 = vpack.c.bf16 %v4147_v12, %v4141_v19  ;;  %v7629_v32 = vcvt.s32.f32 %v3415_v11  ;;  %v3397_v51 = vunpack.c.0.s8 %v3181_v10 }
 0x2d3   :  { %v4129_v39 = vcvt.s32.f32 %v3553_v45  ;;  %v7631_v43 = vcvt.s32.f32 %v3301_v53  ;;  %v7633_v19 = vcvt.s32.f32 %v3307_v62  ;;  %v3541_v12 = vunpack.c.0.s8 %v3217_v1 }
 0x2d4   :  { %4774 = vmatpush.bf16.msrb.mxu0 %v4585_v61  ;;  %v7635_v52 = vcvt.s32.f32 %v3397_v51  ;;  %v3547_v63 = vunpack.c.1.s8 %v3217_v1  ;;  %v4519_v4 = vpack.c.bf16 %v7603_v13, %v7595_v3  ;;  %v4465_v1 = vpack.c.bf16 %v7611_v46, %v7609_v58 }
 0x2d5   :  { %v4117_v44 = vcvt.s32.f32 %v3541_v12  ;;  %v4453_v23 = vpack.c.bf16 %v7633_v19, %v7631_v43  ;;  %v3631_v11 = vunpack.c.3.s8 %v3235_v49  ;;  %v3619_v12 = vunpack.c.1.s8 %v3235_v49 }
 0x2d6   :  { %v4123_v13 = vcvt.s32.f32 %v3547_v63 }
 0x2d8   :  { %5719 = vrot.lane.b32.xlu0 %v7524_v16, %s6687_s20  ;;  %v4573_v58 = vpack.c.bf16 %v4123_v13, %v4117_v44  ;;  %v3745_v44 = vunpack.c.2.s8 %v7666_v26 }
 0x342   :  { %v2975_v27 = vpop.permute.xlu0 %2974 }
 0x343   :  { %v2977_v8 = vadd.f32 %v2975_v27, %v7524_v16  ;;  %v4477_v16 = vpack.c.bf16 %v7570_v5, %v7568_v34  ;;  %v4243_v27 = vcvt.s32.f32 %v3667_v55  ;;  %v3211_v55 = vld [vmem:[#allocation7 + $0x630] sm:$0xff] }
 0x344   :  { %v3529_v46 = vunpack.c.2.s8 %v3211_v55  ;;  %v3517_v48 = vunpack.c.0.s8 %v3211_v55 }
 0x345   :  { %v7583_v57 = vpack.c.bf16 %v2977_v8, %v2977_v8  ;;  %v3409_v8 = vunpack.c.2.s8 %v3181_v10  ;;  %v4633_v33 = vpack.c.bf16 %v4243_v27, %v4237_v41  ;;  %v3643_v10 = vunpack.c.1.s8 %v3241_v40 }
 0x346   :  { %v4093_v21 = vcvt.s32.f32 %v3517_v48 }
 0x347   :  { %6097 = vmatmul.msk.bf16.vlgmr.msrb.gmra.mxu2 %vm233_vm0, %v7583_v57  ;;  %6098 = vmatmul.msk.bf16.vlgmr.msrb.gmra.mxu3 %vm233_vm0, %v7583_v57  ;;  %v7621_v28 = vcvt.s32.f32 %v3409_v8  ;;  %v4219_v5 = vcvt.s32.f32 %v3643_v10  ;;  %v3535_v8 = vunpack.c.3.s8 %v3211_v55  ;;  %v4195_v10 = vcvt.s32.f32 %v3619_v12 }
 0x348   :  { %6101 = vmatmul.msk.bf16.vlgmr.msra.gmra.mxu0 %vm233_vm0, %v7583_v57  ;;  %6102 = vmatmul.msk.bf16.vlgmr.msra.gmra.mxu1 %vm233_vm0, %v7583_v57 }
 0x349   :  { %4747 = vmatpush.bf16.msrb.mxu2 %v4495_v2  ;;  %4760 = vmatpush.bf16.msrb.mxu3 %v4543_v59  ;;  %v3313_v2 = vunpack.c.2.s8 %v3157_v17  ;;  %v3319_v59 = vunpack.c.3.s8 %v3157_v17 }
 0x34a   :  { %4787 = vmatpush.bf16.msrb.mxu1 %v4633_v33  ;;  %v4111_v33 = vcvt.s32.f32 %v3535_v8 }
 0x34b   :  { %v7617_v54 = vcvt.s32.f32 %v3313_v2  ;;  %v7619_v47 = vcvt.s32.f32 %v3319_v59  ;;  %v4513_v2 = vpack.c.bf16 %v7615_v60, %v7613_v38  ;;  %v3295_v59 = vld [vmem:[#allocation7 + $0x8d0] sm:$0xff]  ;;  %v4105_v60 = vcvt.s32.f32 %v3529_v46 }
 0x34c   :  { %v3865_v27 = vunpack.c.2.s8 %v3295_v59  ;;  %v3871_v38 = vunpack.c.3.s8 %v3295_v59 }
 0x34d   :  { %4748 = vmatpush.bf16.msrb.mxu2 %v4489_v37  ;;  %4761 = vmatpush.bf16.msrb.mxu3 %v4537_v56  ;;  %v4135_v37 = vcvt.s32.f32 %v3559_v15  ;;  %v4225_v56 = vcvt.s32.f32 %v3649_v20  ;;  %v4459_v3 = vpack.c.bf16 %v7619_v47, %v7617_v54  ;;  %v4207_v47 = vcvt.s32.f32 %v3631_v11 }
 0x34f   :  { %v4579_v25 = vpack.c.bf16 %v4135_v37, %v4129_v39  ;;  %v4627_v17 = vpack.c.bf16 %v4231_v24, %v4225_v56  ;;  %v3859_v39 = vunpack.c.1.s8 %v3295_v59  ;;  %v4441_v37 = vcvt.s32.f32 %v3865_v27  ;;  %v3289_v24 = vld [vmem:[#allocation7 + $0x8a0] sm:$0xff] }
 0x350   :  { %v4567_v56 = vpack.c.bf16 %v4111_v33, %v4105_v60  ;;  %v3733_v33 = vunpack.c.0.s8 %v7666_v26 }
 0x351   :  { %4749 = vmatpush.bf16.msrb.mxu2 %v4483_v14  ;;  %4762 = vmatpush.bf16.msrb.mxu3 %v4531_v0  ;;  %v3271_v14 = vld [vmem:[#allocation7 + $0x810] sm:$0xff]  ;;  %v3637_v0 = vunpack.c.0.s8 %v3241_v40  ;;  %v4507_v40 = vpack.c.bf16 %v7629_v32, %v7621_v28  ;;  %v3853_v28 = vunpack.c.0.s8 %v3295_v59  ;;  %v3523_v32 = vunpack.c.1.s8 %v3211_v55  ;;  %v7672_v55 = vld [vmem:[#allocation7 + $0x6c0] sm:$0xff] }
 0x352   :  { %4775 = vmatpush.bf16.msrb.mxu0 %v4579_v25  ;;  %4788 = vmatpush.bf16.msrb.mxu1 %v4627_v17  ;;  %v3775_v41 = vunpack.c.3.s8 %v3271_v14  ;;  %v3757_v54 = vunpack.c.0.s8 %v3271_v14  ;;  %v3763_v15 = vunpack.c.1.s8 %v3271_v14  ;;  %v3613_v25 = vunpack.c.0.s8 %v3235_v49  ;;  %v7668_v17 = vld [vmem:[#allocation7 + $0x600] sm:$0xff] }
 0x353   :  { %v4213_v34 = vcvt.s32.f32 %v3637_v0  ;;  %v4429_v63 = vcvt.s32.f32 %v3853_v28  ;;  %v3511_v46 = vunpack.c.3.s8 %v7668_v17  ;;  %v3601_v27 = vunpack.c.2.s8 %v7672_v55 }
 0x354   :  { %v4351_v35 = vcvt.s32.f32 %v3775_v41  ;;  %v4333_v62 = vcvt.s32.f32 %v3757_v54  ;;  %v4339_v51 = vcvt.s32.f32 %v3763_v15  ;;  %v4189_v0 = vcvt.s32.f32 %v3613_v25 }
 0x355   :  { %4750 = vmatpush.bf16.msrb.mxu2 %v4477_v16  ;;  %4763 = vmatpush.bf16.msrb.mxu3 %v4525_v18  ;;  %v3769_v16 = vunpack.c.2.s8 %v3271_v14  ;;  %v4501_v18 = vpack.c.bf16 %v7637_v7, %v7635_v52  ;;  %v4621_v61 = vpack.c.bf16 %v4219_v5, %v4213_v34  ;;  %v4435_v14 = vcvt.s32.f32 %v3859_v39 }
 0x356   :  { %4776 = vmatpush.bf16.msrb.mxu0 %v4573_v58  ;;  %v3847_v34 = vunpack.c.3.s8 %v3289_v24  ;;  %v3505_v5 = vunpack.c.2.s8 %v7668_v17  ;;  %v4609_v58 = vpack.c.bf16 %v4195_v10, %v4189_v0  ;;  %v3607_v8 = vunpack.c.3.s8 %v7672_v55 }
 0x357   :  { %6099 = vmatmul.msk.bf16.vlgmr.msra.gmra.mxu2 %vm233_vm0, %v7583_v57  ;;  %6100 = vmatmul.msk.bf16.vlgmr.msra.gmra.mxu3 %vm233_vm0, %v7583_v57  ;;  %v3625_v57 = vunpack.c.2.s8 %v3235_v49  ;;  %v4345_v45 = vcvt.s32.f32 %v3769_v16  ;;  %v4681_v49 = vpack.c.bf16 %v4339_v51, %v4333_v62  ;;  %v4087_v60 = vcvt.s32.f32 %v3511_v46 }
 0x358   :  { %4789 = vmatpush.bf16.msrb.mxu1 %v4621_v61  ;;  %v4729_v61 = vpack.c.bf16 %v4435_v14, %v4429_v63  ;;  %v4081_v41 = vcvt.s32.f32 %v3505_v5  ;;  %v4177_v11 = vcvt.s32.f32 %v3601_v27  ;;  %v3739_v15 = vunpack.c.1.s8 %v7666_v26 }
 0x359   :  { %4751 = vmatpush.bf16.msrb.mxu2 %v4471_v22  ;;  %4764 = vmatpush.bf16.msrb.mxu3 %v4519_v4  ;;  %v4201_v20 = vcvt.s32.f32 %v3625_v57  ;;  %v4447_v22 = vcvt.s32.f32 %v3871_v38  ;;  %v4099_v4 = vcvt.s32.f32 %v3523_v32  ;;  %v4687_v13 = vpack.c.bf16 %v4351_v35, %v4345_v45 }
 0x35a   :  { %4777 = vmatpush.bf16.msrb.mxu0 %v4567_v56  ;;  %v4423_v57 = vcvt.s32.f32 %v3847_v34  ;;  %v4183_v45 = vcvt.s32.f32 %v3607_v8  ;;  %v4555_v54 = vpack.c.bf16 %v4087_v60, %v4081_v41  ;;  %v4309_v52 = vcvt.s32.f32 %v3733_v33 }
 0x35b   :  { %v4615_v53 = vpack.c.bf16 %v4207_v47, %v4201_v20  ;;  %v4561_v59 = vpack.c.bf16 %v4099_v4, %v4093_v21  ;;  %v4735_v16 = vpack.c.bf16 %v4447_v22, %v4441_v37  ;;  %v3829_v20 = vunpack.c.0.s8 %v3289_v24  ;;  %v3259_v22 = vld [vmem:[#allocation7 + $0x7b0] sm:$0xff]  ;;  %v3176_v21 = vld [vmem:[#allocation7 + $0x518] sm:$0xff] }
 0x35c   :  { %v3835_v47 = vunpack.c.1.s8 %v3289_v24  ;;  %v4603_v28 = vpack.c.bf16 %v4183_v45, %v4177_v11  ;;  %v4315_v7 = vcvt.s32.f32 %v3739_v15  ;;  %v3493_v37 = vunpack.c.0.s8 %v7668_v17  ;;  %v3200_v4 = vld [vmem:[#allocation7 + $0x5d8] sm:$0xff]  ;;  %v3253_v11 = vld [vmem:[#allocation7 + $0x780] sm:$0xff] }
 0x35d   :  { %4752 = vmatpush.bf16.msrb.mxu2 %v4465_v1  ;;  %4765 = vmatpush.bf16.msrb.mxu3 %v4513_v2  ;;  %v3751_v1 = vunpack.c.3.s8 %v7666_v26  ;;  %v3841_v2 = vunpack.c.2.s8 %v3289_v24  ;;  %v3499_v56 = vunpack.c.1.s8 %v7668_v17  ;;  %v3589_v48 = vunpack.c.0.s8 %v7672_v55 }
 0x35e   :  { %4790 = vmatpush.bf16.msrb.mxu1 %v4615_v53  ;;  %4778 = vmatpush.bf16.msrb.mxu0 %v4561_v59  ;;  %v4669_v39 = vpack.c.bf16 %v4315_v7, %v4309_v52  ;;  %v3595_v26 = vunpack.c.1.s8 %v7672_v55  ;;  %v3283_v53 = vld [vmem:[#allocation7 + $0x870] sm:$0xff]  ;;  %v3721_v62 = vunpack.c.2.s8 %v3259_v22  ;;  %v3727_v32 = vunpack.c.3.s8 %v3259_v22 }
 0x35f   :  { %v4417_v38 = vcvt.s32.f32 %v3841_v2  ;;  %v3817_v24 = vunpack.c.2.s8 %v3283_v53  ;;  %v3823_v51 = vunpack.c.3.s8 %v3283_v53  ;;  %v4069_v25 = vcvt.s32.f32 %v3493_v37 }
 0x360   :  { %v4075_v12 = vcvt.s32.f32 %v3499_v56  ;;  %v4165_v63 = vcvt.s32.f32 %v3589_v48  ;;  %v4171_v14 = vcvt.s32.f32 %v3595_v26  ;;  %v4303_v0 = vcvt.s32.f32 %v3727_v32  ;;  %v7695_v56 = vld [vmem:[#allocation8 + $0x8] sm:$0xff] }
 0x361   :  { %4753 = vmatpush.bf16.msrb.mxu2 %v4459_v3  ;;  %4766 = vmatpush.bf16.msrb.mxu3 %v4507_v40  ;;  %v4321_v3 = vcvt.s32.f32 %v3745_v44  ;;  %v4327_v40 = vcvt.s32.f32 %v3751_v1  ;;  %v4723_v19 = vpack.c.bf16 %v4423_v57, %v4417_v38  ;;  %v4297_v44 = vcvt.s32.f32 %v3721_v62 }
 0x362   :  { %4791 = vmatpush.bf16.msrb.mxu1 %v4609_v58  ;;  %4779 = vmatpush.bf16.msrb.mxu0 %v4555_v54  ;;  %v4393_v10 = vcvt.s32.f32 %v3817_v24  ;;  %v4399_v17 = vcvt.s32.f32 %v3823_v51  ;;  %v4549_v1 = vpack.c.bf16 %v4075_v12, %v4069_v25  ;;  %v4597_v2 = vpack.c.bf16 %v4171_v14, %v4165_v63 }
 0x363   :  { %v4675_v43 = vpack.c.bf16 %v4327_v40, %v4321_v3  ;;  %v3392_v55 = vunpack.c.3.s8 %v3176_v21  ;;  %v4663_v59 = vpack.c.bf16 %v4303_v0, %v4297_v44  ;;  %v3482_v5 = vunpack.c.2.s8 %v3200_v4 }
 0x364   :  { %v4711_v34 = vpack.c.bf16 %v4399_v17, %v4393_v10  ;;  %v3143_v58 = vperm.slane %v7519_v50, 2  ;;  %v3709_v8 = vunpack.c.0.s8 %v3259_v22  ;;  %v3715_v3 = vunpack.c.1.s8 %v3259_v22 }
 0x365   :  { %4754 = vmatpush.bf16.msrb.mxu2 %v4453_v23  ;;  %4767 = vmatpush.bf16.msrb.mxu3 %v4501_v18  ;;  %v4405_v23 = vcvt.s32.f32 %v3829_v20  ;;  %v4411_v18 = vcvt.s32.f32 %v3835_v47  ;;  %v4058_v41 = vcvt.s32.f32 %v3482_v5  ;;  %v3805_v38 = vunpack.c.0.s8 %v3283_v53 }
 0x366   :  { %4792 = vmatpush.bf16.msrb.mxu1 %v4603_v28  ;;  %4780 = vmatpush.bf16.msrb.mxu0 %v4549_v1  ;;  %v3811_v60 = vunpack.c.1.s8 %v3283_v53  ;;  %v3374_v57 = vunpack.c.0.s8 %v3176_v21  ;;  %v4285_v33 = vcvt.s32.f32 %v3709_v8  ;;  %v4291_v54 = vcvt.s32.f32 %v3715_v3  ;;  %v3194_v53 = vld [vmem:[#allocation7 + $0x5a8] sm:$0xff] }
 0x367   :  { %v4717_v35 = vpack.c.bf16 %v4411_v18, %v4405_v23  ;;  %v3380_v15 = vunpack.c.1.s8 %v3176_v21  ;;  %v4381_v20 = vcvt.s32.f32 %v3805_v38  ;;  %v3476_v7 = vunpack.c.1.s8 %v3200_v4  ;;  %v3277_v18 = vld [vmem:[#allocation7 + $0x840] sm:$0xff] }
 0x368   :  { %v4387_v47 = vcvt.s32.f32 %v3811_v60  ;;  %v3950_v28 = vcvt.s32.f32 %v3374_v57  ;;  %v3697_v23 = vunpack.c.2.s8 %v3253_v11  ;;  %v3139_v48 = vperm.slane %v7695_v56, 2 }
 0x369   :  { %4799 = vmatpush.bf16.msra.mxu2 %v4687_v13  ;;  %4812 = vmatpush.bf16.msra.mxu3 %v4735_v16  ;;  %v3386_v13 = vunpack.c.2.s8 %v3176_v21  ;;  %v3488_v16 = vunpack.c.3.s8 %v3200_v4  ;;  %v3956_v52 = vcvt.s32.f32 %v3380_v15  ;;  %v4052_v32 = vcvt.s32.f32 %v3476_v7  ;;  %v3188_v7 = vld [vmem:[#allocation7 + $0x578] sm:$0xff] }
 0x36a   :  { %4793 = vmatpush.bf16.msrb.mxu1 %v4597_v2  ;;  %v4705_v26 = vpack.c.bf16 %v4387_v47, %v4381_v20  ;;  %v3703_v24 = vunpack.c.3.s8 %v3253_v11  ;;  %v4273_v51 = vcvt.s32.f32 %v3697_v23  ;;  %v3793_v21 = vunpack.c.2.s8 %v3277_v18 }
 0x36b   :  { %v3962_v46 = vcvt.s32.f32 %v3386_v13  ;;  %v4064_v27 = vcvt.s32.f32 %v3488_v16  ;;  %v4490_v62 = vpack.c.bf16 %v3956_v52, %v3950_v28  ;;  %v3799_v25 = vunpack.c.3.s8 %v3277_v18 }
 0x36c   :  { %v3458_v44 = vunpack.c.2.s8 %v3194_v53  ;;  %v3464_v0 = vunpack.c.3.s8 %v3194_v53  ;;  %v4369_v10 = vcvt.s32.f32 %v3793_v21  ;;  %v3787_v3 = vunpack.c.1.s8 %v3277_v18 }
 0x36d   :  { %4800 = vmatpush.bf16.msra.mxu2 %v4681_v49  ;;  %4813 = vmatpush.bf16.msra.mxu3 %v4729_v61  ;;  %v3142_v49 = vperm.slane %v7497_v6, 2  ;;  %v3968_v61 = vcvt.s32.f32 %v3392_v55  ;;  %v4544_v45 = vpack.c.bf16 %v4064_v27, %v4058_v41  ;;  %v4375_v17 = vcvt.s32.f32 %v3799_v25  ;;  %v3224_v41 = vld [vmem:[#allocation7 + $0x698] sm:$0xff] }
 0x36e   :  { %v4034_v55 = vcvt.s32.f32 %v3458_v44  ;;  %v3452_v20 = vunpack.c.1.s8 %v3194_v53  ;;  %v3578_v47 = vunpack.c.2.s8 %v3224_v41  ;;  %v3584_v52 = vunpack.c.3.s8 %v3224_v41 }
 0x36f   :  { %v4496_v40 = vpack.c.bf16 %v3968_v61, %v3962_v46  ;;  %4838 = vmatpush.bf16.msra.mxu1 %v4544_v45  ;;  %v4699_v5 = vpack.c.bf16 %v4375_v17, %v4369_v10  ;;  %v3691_v46 = vunpack.c.1.s8 %v3253_v11  ;;  %v3781_v61 = vunpack.c.0.s8 %v3277_v18 }
 0x370   :  { %v3446_v45 = vunpack.c.0.s8 %v3194_v53  ;;  %v4028_v18 = vcvt.s32.f32 %v3452_v20  ;;  %v3434_v25 = vunpack.c.2.s8 %v3188_v7  ;;  %v3566_v10 = vunpack.c.0.s8 %v3224_v41 }
 0x371   :  { %4801 = vmatpush.bf16.msra.mxu2 %v4675_v43  ;;  %4814 = vmatpush.bf16.msra.mxu3 %v4723_v19  ;;  %v3470_v43 = vunpack.c.0.s8 %v3200_v4  ;;  %v4657_v19 = vpack.c.bf16 %v4291_v54, %v4285_v33  ;;  %v4279_v4 = vcvt.s32.f32 %v3703_v24  ;;  %v4267_v38 = vcvt.s32.f32 %v3691_v46  ;;  %v3248_v33 = vld [vmem:[#allocation7 + $0x758] sm:$0xff] }
 0x372   :  { %4825 = vmatpush.bf16.msra.mxu0 %v4496_v40  ;;  %v4357_v60 = vcvt.s32.f32 %v3781_v61  ;;  %v4363_v54 = vcvt.s32.f32 %v3787_v3  ;;  %v3572_v17 = vunpack.c.1.s8 %v3224_v41  ;;  %v3218_v61 = vld [vmem:[#allocation7 + $0x668] sm:$0xff]  ;;  %v7721_v3 = vld [vmem:[#allocation8 + $0x18] sm:$0xff] }
 0x373   :  { %v4046_v22 = vcvt.s32.f32 %v3470_v43  ;;  %v4651_v13 = vpack.c.bf16 %v4279_v4, %v4273_v51  ;;  %v3440_v4 = vunpack.c.3.s8 %v3188_v7  ;;  %v3554_v20 = vunpack.c.2.s8 %v3218_v61 }
 0x374   :  { %v4693_v23 = vpack.c.bf16 %v4363_v54, %v4357_v60 }
 0x375   :  { %4802 = vmatpush.bf16.msra.mxu2 %v4669_v39  ;;  %4815 = vmatpush.bf16.msra.mxu3 %v4717_v35  ;;  %v3170_v39 = vld [vmem:[#allocation7 + $0x4e8] sm:$0xff]  ;;  %v7692_v35 = vld [vmem:[#allocation8] sm:$0xff]  ;;  %v4538_v14 = vpack.c.bf16 %v4052_v32, %v4046_v22  ;;  %v3674_v22 = vunpack.c.2.s8 %v3248_v33  ;;  %v3680_v32 = vunpack.c.3.s8 %v3248_v33 }
 0x376   :  { %v3138_v37 = vperm.slane %v7692_v35, 2  ;;  %v3362_v12 = vunpack.c.2.s8 %v3170_v39  ;;  %v3368_v63 = vunpack.c.3.s8 %v3170_v39  ;;  %4826 = vmatpush.bf16.msra.mxu0 %v4490_v62  ;;  %v3350_v40 = vunpack.c.0.s8 %v3170_v39  ;;  %v3296_v35 = vld [vmem:[#allocation7 + $0x8d8] sm:$0xff] }
 0x377   :  { %4839 = vmatpush.bf16.msra.mxu1 %v4538_v14  ;;  %v3356_v57 = vunpack.c.1.s8 %v3170_v39  ;;  %v7700_v62 = vcvt.s32.f32 %v3584_v52  ;;  %v7702_v51 = vcvt.s32.f32 %v3674_v22 }
 0x378   :  { %v3938_v1 = vcvt.s32.f32 %v3362_v12  ;;  %v3944_v2 = vcvt.s32.f32 %v3368_v63  ;;  %v3926_v15 = vcvt.s32.f32 %v3350_v40  ;;  %v7706_v63 = vcvt.s32.f32 %v3680_v32 }
 0x379   :  { %4803 = vmatpush.bf16.msra.mxu2 %v4663_v59  ;;  %4816 = vmatpush.bf16.msra.mxu3 %v4711_v34  ;;  %v4040_v59 = vcvt.s32.f32 %v3464_v0  ;;  %v3685_v34 = vunpack.c.0.s8 %v3253_v11  ;;  %v3164_v11 = vld [vmem:[#allocation7 + $0x4b8] sm:$0xff]  ;;  %v3932_v43 = vcvt.s32.f32 %v3356_v57  ;;  %v4010_v0 = vcvt.s32.f32 %v3434_v25 }
 0x37a   :  { %v4484_v16 = vpack.c.bf16 %v3944_v2, %v3938_v1  ;;  %v3338_v24 = vunpack.c.2.s8 %v3164_v11  ;;  %v3344_v21 = vunpack.c.3.s8 %v3164_v11  ;;  %v4640_v1 = vpack.c.bf16 %v7706_v63, %v7702_v51 }
 0x37b   :  { %v4532_v27 = vpack.c.bf16 %v4040_v59, %v4034_v55  ;;  %v4261_v8 = vcvt.s32.f32 %v3685_v34  ;;  %v4478_v39 = vpack.c.bf16 %v3932_v43, %v3926_v15  ;;  %v4016_v2 = vcvt.s32.f32 %v3440_v4 }
 0x37c   :  { %4827 = vmatpush.bf16.msra.mxu0 %v4484_v16  ;;  %v3914_v14 = vcvt.s32.f32 %v3338_v24  ;;  %v3920_v44 = vcvt.s32.f32 %v3344_v21  ;;  %v3668_v55 = vunpack.c.1.s8 %v3248_v33  ;;  %v7710_v34 = vcvt.s32.f32 %v3566_v10  ;;  %v7714_v16 = vld [vmem:[#allocation8 + $0x10] sm:$0xff] }
 0x37d   :  { %4804 = vmatpush.bf16.msra.mxu2 %v4657_v19  ;;  %4817 = vmatpush.bf16.msra.mxu3 %v4705_v26  ;;  %v4645_v28 = vpack.c.bf16 %v4267_v38, %v4261_v8  ;;  %v4022_v19 = vcvt.s32.f32 %v3446_v45  ;;  %v7698_v26 = vcvt.s32.f32 %v3578_v47  ;;  %v3140_v46 = vperm.slane %v7714_v16, 2  ;;  %v3242_v38 = vld [vmem:[#allocation7 + $0x728] sm:$0xff] }
 0x37e   :  { %4840 = vmatpush.bf16.msra.mxu1 %v4532_v27  ;;  %v4472_v59 = vpack.c.bf16 %v3920_v44, %v3914_v14  ;;  %v4520_v27 = vpack.c.bf16 %v4016_v2, %v4010_v0  ;;  %v7719_v41 = vcvt.s32.f32 %v3668_v55  ;;  %v3141_v40 = vperm.slane %v7721_v3, 2 }
 0x37f   :  { %v4526_v53 = vpack.c.bf16 %v4028_v18, %v4022_v19  ;;  %v4592_v12 = vpack.c.bf16 %v7700_v62, %v7698_v26  ;;  %v3326_v57 = vunpack.c.0.s8 %v3164_v11  ;;  %v3332_v45 = vunpack.c.1.s8 %v3164_v11  ;;  %v7728_v18 = vld [vmem:[#allocation7 + $0x548] sm:$0xff] }
 0x380   :  { %4828 = vmatpush.bf16.msra.mxu0 %v4478_v39  ;;  %v3428_v15 = vunpack.c.1.s8 %v3188_v7  ;;  %v3560_v47 = vunpack.c.3.s8 %v3218_v61  ;;  %v7730_v39 = vcvt.s32.f32 %v3554_v20  ;;  %v3656_v11 = vunpack.c.3.s8 %v3242_v38  ;;  %v7810_v62 = vld [vmem:[#allocation7 + $0x608] sm:$0xff] }
 0x381   :  { %4805 = vmatpush.bf16.msra.mxu2 %v4651_v13  ;;  %4818 = vmatpush.bf16.msra.mxu3 %v4699_v5  ;;  %v3662_v13 = vunpack.c.0.s8 %v3248_v33  ;;  %v7712_v5 = vcvt.s32.f32 %v3572_v17  ;;  %v3422_v33 = vunpack.c.0.s8 %v3188_v7  ;;  %v3902_v43 = vcvt.s32.f32 %v3326_v57 }
 0x382   :  { %4841 = vmatpush.bf16.msra.mxu1 %v4526_v53  ;;  %v3908_v19 = vcvt.s32.f32 %v3332_v45  ;;  %v4004_v22 = vcvt.s32.f32 %v3428_v15  ;;  %v7732_v32 = vcvt.s32.f32 %v3560_v47  ;;  %v7738_v4 = vcvt.s32.f32 %v3656_v11 }
 0x383   :  { %v7717_v8 = vcvt.s32.f32 %v3662_v13  ;;  %v4586_v60 = vpack.c.bf16 %v7712_v5, %v7710_v34  ;;  %v3998_v52 = vcvt.s32.f32 %v3422_v33  ;;  %v3410_v44 = vunpack.c.2.s8 %v7728_v18  ;;  %v7841_v5 = vld [vmem:[#allocation7 + $0x7e8] sm:$0xff] }
 0x384   :  { %4829 = vmatpush.bf16.msra.mxu0 %v4472_v59  ;;  %v4466_v24 = vpack.c.bf16 %v3908_v19, %v3902_v43  ;;  %v4580_v14 = vpack.c.bf16 %v7732_v32, %v7730_v39  ;;  %v3416_v13 = vunpack.c.3.s8 %v7728_v18  ;;  %v3542_v55 = vunpack.c.0.s8 %v3218_v61 }
 0x385   :  { %4806 = vmatpush.bf16.msra.mxu2 %v4645_v28  ;;  %4819 = vmatpush.bf16.msra.mxu3 %v4693_v23  ;;  %v4634_v54 = vpack.c.bf16 %v7719_v41, %v7717_v8  ;;  %v3158_v28 = vld [vmem:[#allocation7 + $0x488] sm:$0xff]  ;;  %v3650_v23 = vunpack.c.2.s8 %v3242_v38  ;;  %v4514_v25 = vpack.c.bf16 %v4004_v22, %v3998_v52  ;;  %v3986_v45 = vcvt.s32.f32 %v3410_v44 }
 0x386   :  { %4842 = vmatpush.bf16.msra.mxu1 %v4520_v27  ;;  %v3314_v21 = vunpack.c.2.s8 %v3158_v28  ;;  %v3320_v7 = vunpack.c.3.s8 %v3158_v28  ;;  %v3992_v15 = vcvt.s32.f32 %v3416_v13  ;;  %v3548_v20 = vunpack.c.1.s8 %v3218_v61 }
 0x387   :  { %v7734_v53 = vcvt.s32.f32 %v3650_v23  ;;  %v7746_v47 = vcvt.s32.f32 %v3542_v55  ;;  %v3638_v52 = vunpack.c.0.s8 %v3242_v38  ;;  %v3302_v22 = vunpack.c.0.s8 %v3158_v28 }
 0x388   :  { %4830 = vmatpush.bf16.msra.mxu0 %v4466_v24  ;;  %v3890_v17 = vcvt.s32.f32 %v3314_v21  ;;  %v3896_v2 = vcvt.s32.f32 %v3320_v7  ;;  %v7752_v23 = vcvt.s32.f32 %v3548_v20  ;;  %v3308_v11 = vunpack.c.1.s8 %v3158_v28 }
 0x389   :  { %v4628_v57 = vpack.c.bf16 %v7738_v4, %v7734_v53  ;;  %v3494_v16 = vunpack.c.0.s8 %v7810_v62 }
 0x38a   :  { %4843 = vmatpush.bf16.msra.mxu1 %v4514_v25  ;;  %v4460_v33 = vpack.c.bf16 %v3896_v2, %v3890_v17  ;;  %v7754_v25 = vcvt.s32.f32 %v3638_v52  ;;  %v3884_v2 = vcvt.s32.f32 %v3308_v11 }
 0x38c   :  { %4831 = vmatpush.bf16.msra.mxu0 %v4460_v33 }
 0x3c5   :  { %v3115_v0 = vpop.f32.mrf.mxu0  ;;  %v3128_v10 = vpop.f32.mrf.mxu1 }
 0x3c6   :  { %v3136_v59 = vadd.f32 %v3115_v0, %v7250_v36  ;;  %v3137_v27 = vadd.f32 %v3128_v10, %v7252_v30  ;;  %v3644_v36 = vunpack.c.1.s8 %v3242_v38  ;;  %v4508_v30 = vpack.c.bf16 %v3992_v15, %v3986_v45  ;;  %v3212_v38 = vld [vmem:[#allocation7 + $0x638] sm:$0xff] }
 0x3c7   :  { %v3236_v0 = vld [vmem:[#allocation7 + $0x6f8] sm:$0xff]  ;;  %v3530_v33 = vunpack.c.2.s8 %v3212_v38  ;;  %v3536_v15 = vunpack.c.3.s8 %v3212_v38 }
 0x3c8   :  { %v3148_v43 = vadd.f32 %v3142_v49, %v3136_v59  ;;  %v3149_v19 = vadd.f32 %v3143_v58, %v3137_v27  ;;  %v7756_v44 = vcvt.s32.f32 %v3644_v36  ;;  %4844 = vmatpush.bf16.msra.mxu1 %v4508_v30  ;;  %v4574_v49 = vpack.c.bf16 %v7752_v23, %v7746_v47  ;;  %v3177_v23 = vld [vmem:[#allocation7 + $0x520] sm:$0xff] }
 0x3c9   :  { %v3878_v58 = vcvt.s32.f32 %v3302_v22  ;;  %v3398_v59 = vunpack.c.0.s8 %v7728_v18  ;;  %v3404_v27 = vunpack.c.1.s8 %v7728_v18  ;;  %v3626_v20 = vunpack.c.2.s8 %v3236_v0 }
 0x3ca   :  { %v3154_v24 = vmax.f32 %v3148_v43, 0.0  ;;  %v3155_v21 = vmax.f32 %v3149_v19, 0.0  ;;  %v3063_v7 = vpop.f32.mrf.mxu2  ;;  %v3076_v61 = vpop.f32.mrf.mxu3  ;;  %v4622_v17 = vpack.c.bf16 %v7756_v44, %v7754_v25  ;;  %v3272_v43 = vld [vmem:[#allocation7 + $0x818] sm:$0xff]  ;;  %v7776_v56 = vcvt.s32.f32 %v3536_v15 }
 0x3cb   :  { %v3132_v6 = vadd.f32 %v3063_v7, %v7238_v31  ;;  %v3133_v50 = vadd.f32 %v3076_v61, %v7240_v29  ;;  %v4454_v45 = vpack.c.bf16 %v3884_v2, %v3878_v58  ;;  %v3974_v36 = vcvt.s32.f32 %v3398_v59 }
 0x3cc   :  { %v7762_v28 = vpack.c.bf16 %v3154_v24, %v3154_v24  ;;  %v7764_v10 = vpack.c.bf16 %v3155_v21, %v3155_v21  ;;  %v3980_v30 = vcvt.s32.f32 %v3404_v27  ;;  %v7778_v22 = vcvt.s32.f32 %v3626_v20 }
 0x3cd   :  { %v3144_v31 = vadd.f32 %v3138_v37, %v3132_v6  ;;  %v3145_v29 = vadd.f32 %v3139_v48, %v3133_v50  ;;  %v3117_v13 = vpop.f32.mrf.mxu0  ;;  %v3130_v55 = vpop.f32.mrf.mxu1  ;;  %4832 = vmatpush.bf16.msra.mxu0 %v4454_v45  ;;  %v7774_v37 = vcvt.s32.f32 %v3530_v33  ;;  %v3632_v48 = vunpack.c.3.s8 %v3236_v0 }
 0x3ce   :  { %v4502_v24 = vpack.c.bf16 %v3980_v30, %v3974_v36  ;;  %v3770_v21 = vunpack.c.2.s8 %v3272_v43  ;;  %v3776_v58 = vunpack.c.3.s8 %v3272_v43  ;;  %v3866_v2 = vunpack.c.2.s8 %v3296_v35 }
 0x3cf   :  { %v3150_v19 = vmax.f32 %v3144_v31, 0.0  ;;  %v3151_v52 = vmax.f32 %v3145_v29, 0.0  ;;  %v4568_v6 = vpack.c.bf16 %v7776_v56, %v7774_v37  ;;  %v7786_v50 = vcvt.s32.f32 %v3632_v48 }
 0x3d0   :  { %v7790_v31 = vcvt.s32.f32 %v3770_v21  ;;  %v3872_v29 = vunpack.c.3.s8 %v3296_v35  ;;  %v3518_v13 = vunpack.c.0.s8 %v3212_v38  ;;  %v3524_v55 = vunpack.c.1.s8 %v3212_v38  ;;  %4845 = vmatpush.bf16.msra.mxu1 %v4502_v24 }
 0x3d1   :  { %v7780_v11 = vpack.c.bf16 %v3150_v19, %v3150_v19  ;;  %v7782_v18 = vpack.c.bf16 %v3151_v52, %v3151_v52  ;;  %v4616_v59 = vpack.c.bf16 %v7786_v50, %v7778_v22  ;;  %v7800_v27 = vcvt.s32.f32 %v3776_v58  ;;  %v7816_v19 = vld [vmem:[#allocation7 + $0x6c8] sm:$0xff] }
 0x3d2   :  { %v3065_v7 = vpop.f32.mrf.mxu2  ;;  %v3078_v61 = vpop.f32.mrf.mxu3  ;;  %v7802_v45 = vcvt.s32.f32 %v3866_v2  ;;  %v3614_v33 = vunpack.c.0.s8 %v3236_v0  ;;  %v7804_v15 = vcvt.s32.f32 %v3872_v29  ;;  %v7806_v38 = vcvt.s32.f32 %v3518_v13  ;;  %v3290_v29 = vld [vmem:[#allocation7 + $0x8a8] sm:$0xff] }
 0x3d3   :  { %4755 = vmatmul.bf16.vlgmr.msrb.gmra.mxu2 %v7780_v11  ;;  %4768 = vmatmul.bf16.vlgmr.msrb.gmra.mxu3 %v7782_v18  ;;  %v7808_v20 = vcvt.s32.f32 %v3524_v55  ;;  %v3620_v26 = vunpack.c.1.s8 %v3236_v0  ;;  %v4688_v51 = vpack.c.bf16 %v7800_v27, %v7790_v31  ;;  %v3758_v63 = vunpack.c.0.s8 %v3272_v43 }
 0x3d4   :  { %4851 = vmatpush.bf16.msrb.mxu2 %v4592_v12  ;;  %4864 = vmatpush.bf16.msrb.mxu3 %v4640_v1  ;;  %v7814_v12 = vcvt.s32.f32 %v3614_v33  ;;  %v3764_v1 = vunpack.c.1.s8 %v3272_v43  ;;  %v4736_v52 = vpack.c.bf16 %v7804_v15, %v7802_v45  ;;  %v3854_v0 = vunpack.c.0.s8 %v3296_v35 }
 0x3d5   :  { %v4562_v36 = vpack.c.bf16 %v7808_v20, %v7806_v38  ;;  %v7822_v30 = vcvt.s32.f32 %v3620_v26  ;;  %v7830_v43 = vcvt.s32.f32 %v3758_v63  ;;  %v3860_v24 = vunpack.c.1.s8 %v3296_v35 }
 0x3d6   :  { %v7832_v48 = vcvt.s32.f32 %v3764_v1  ;;  %v3506_v21 = vunpack.c.2.s8 %v7810_v62  ;;  %v7837_v61 = vcvt.s32.f32 %v3854_v0  ;;  %v3512_v58 = vunpack.c.3.s8 %v7810_v62 }
 0x3d7   :  { %v4610_v7 = vpack.c.bf16 %v7822_v30, %v7814_v12  ;;  %v3602_v34 = vunpack.c.2.s8 %v7816_v19  ;;  %v3608_v2 = vunpack.c.3.s8 %v7816_v19  ;;  %v3842_v53 = vunpack.c.2.s8 %v3290_v29 }
 0x3d8   :  { %4852 = vmatpush.bf16.msrb.mxu2 %v4586_v60  ;;  %4865 = vmatpush.bf16.msrb.mxu3 %v4634_v54  ;;  %v4682_v60 = vpack.c.bf16 %v7832_v48, %v7830_v43  ;;  %v7845_v54 = vcvt.s32.f32 %v3860_v24  ;;  %v7847_v35 = vcvt.s32.f32 %v3506_v21  ;;  %v7852_v33 = vcvt.s32.f32 %v3512_v58 }
 0x3d9   :  { %v7854_v26 = vcvt.s32.f32 %v3602_v34  ;;  %v7864_v1 = vcvt.s32.f32 %v3608_v2  ;;  %v3848_v24 = vunpack.c.3.s8 %v3290_v29  ;;  %v7880_v34 = vcvt.s32.f32 %v3842_v53 }
 0x3da   :  { %v3089_v8 = vpop.f32.mrf.mxu2  ;;  %v3102_v41 = vpop.f32.mrf.mxu3  ;;  %v4730_v63 = vpack.c.bf16 %v7845_v54, %v7837_v61  ;;  %v4556_v32 = vpack.c.bf16 %v7852_v33, %v7847_v35  ;;  %v3596_v47 = vunpack.c.1.s8 %v7816_v19 }
 0x3db   :  { %v3134_v13 = vadd.f32 %v3089_v8, %v7246_v42  ;;  %v3135_v55 = vadd.f32 %v3102_v41, %v7248_v9  ;;  %v3746_v42 = vunpack.c.2.s8 %v7841_v5  ;;  %v3752_v9 = vunpack.c.3.s8 %v7841_v5 }
 0x3dc   :  { %4853 = vmatpush.bf16.msrb.mxu2 %v4580_v14  ;;  %4866 = vmatpush.bf16.msrb.mxu3 %v4628_v57  ;;  %v4604_v14 = vpack.c.bf16 %v7864_v1, %v7854_v26  ;;  %v7891_v3 = vcvt.s32.f32 %v3848_v24  ;;  %v3590_v8 = vunpack.c.0.s8 %v7816_v19  ;;  %v3740_v19 = vunpack.c.1.s8 %v7841_v5 }
 0x3dd   :  { %v3146_v0 = vadd.f32 %v3140_v46, %v3134_v13  ;;  %v3147_v39 = vadd.f32 %v3141_v40, %v3135_v55  ;;  %v7876_v4 = vcvt.s32.f32 %v3746_v42  ;;  %v7878_v57 = vcvt.s32.f32 %v3752_v9 }
 0x3de   :  { %v3500_v40 = vunpack.c.1.s8 %v7810_v62  ;;  %v7899_v13 = vcvt.s32.f32 %v3494_v16  ;;  %v7906_v55 = vcvt.s32.f32 %v3590_v8  ;;  %v3734_v62 = vunpack.c.0.s8 %v7841_v5  ;;  %v3260_v16 = vld [vmem:[#allocation7 + $0x7b8] sm:$0xff] }
 0x3df   :  { %v3152_v21 = vmax.f32 %v3146_v0, 0.0  ;;  %v3153_v58 = vmax.f32 %v3147_v39, 0.0  ;;  %v4676_v46 = vpack.c.bf16 %v7878_v57, %v7876_v4  ;;  %v7911_v42 = vcvt.s32.f32 %v3596_v47  ;;  %v3201_v39 = vld [vmem:[#allocation7 + $0x5e0] sm:$0xff]  ;;  %v3284_v47 = vld [vmem:[#allocation7 + $0x878] sm:$0xff]  ;;  %v3278_v57 = vld [vmem:[#allocation7 + $0x848] sm:$0xff] }
 0x3e0   :  { %4854 = vmatpush.bf16.msrb.mxu2 %v4574_v49  ;;  %4867 = vmatpush.bf16.msrb.mxu3 %v4622_v17  ;;  %v4724_v49 = vpack.c.bf16 %v7891_v3, %v7880_v34  ;;  %v7904_v17 = vcvt.s32.f32 %v3500_v40  ;;  %v3830_v9 = vunpack.c.0.s8 %v3290_v29  ;;  %v3836_v0 = vunpack.c.1.s8 %v3290_v29 }
 0x3e1   :  { %v7895_v41 = vpack.c.bf16 %v3152_v21, %v3152_v21  ;;  %v7897_v2 = vpack.c.bf16 %v3153_v58, %v3153_v58  ;;  %v7918_v24 = vcvt.s32.f32 %v3734_v62  ;;  %v3387_v21 = vunpack.c.2.s8 %v3177_v23 }
 0x3e2   :  { %v3091_v25 = vpop.f32.mrf.mxu2  ;;  %v3104_v44 = vpop.f32.mrf.mxu3  ;;  %v4550_v53 = vpack.c.bf16 %v7904_v17, %v7899_v13  ;;  %v3393_v58 = vunpack.c.3.s8 %v3177_v23  ;;  %v4598_v5 = vpack.c.bf16 %v7911_v42, %v7906_v55  ;;  %v7928_v29 = vcvt.s32.f32 %v3740_v19 }
 0x3e3   :  { %4781 = vmatmul.bf16.vlgmr.msrb.gmra.mxu0 %v7895_v41  ;;  %4794 = vmatmul.bf16.vlgmr.msrb.gmra.mxu1 %v7897_v2  ;;  %v7930_v40 = vcvt.s32.f32 %v3830_v9  ;;  %v7932_v8 = vcvt.s32.f32 %v3836_v0  ;;  %v7940_v37 = vcvt.s32.f32 %v3387_v21  ;;  %v3483_v22 = vunpack.c.2.s8 %v3201_v39  ;;  %v3195_v21 = vld [vmem:[#allocation7 + $0x5b0] sm:$0xff] }
 0x3e4   :  { %4807 = vmatmul.bf16.vlgmr.msra.gmra.mxu2 %v7762_v28  ;;  %4820 = vmatmul.bf16.vlgmr.msra.gmra.mxu3 %v7764_v10  ;;  %v7942_v56 = vcvt.s32.f32 %v3393_v58  ;;  %v4670_v50 = vpack.c.bf16 %v7928_v29, %v7918_v24  ;;  %v3722_v25 = vunpack.c.2.s8 %v3260_v16  ;;  %v3728_v44 = vunpack.c.3.s8 %v3260_v16  ;;  %v3171_v24 = vld [vmem:[#allocation7 + $0x4f0] sm:$0xff] }
 0x3e5   :  { %4855 = vmatpush.bf16.msrb.mxu2 %v4568_v6  ;;  %4868 = vmatpush.bf16.msrb.mxu3 %v4616_v59  ;;  %v3489_v6 = vunpack.c.3.s8 %v3201_v39  ;;  %v4718_v59 = vpack.c.bf16 %v7932_v8, %v7930_v40  ;;  %v4059_v27 = vcvt.s32.f32 %v3483_v22  ;;  %v3818_v15 = vunpack.c.2.s8 %v3284_v47 }
 0x3e6   :  { %4877 = vmatpush.bf16.msrb.mxu0 %v4688_v51  ;;  %4890 = vmatpush.bf16.msrb.mxu1 %v4736_v52  ;;  %v4497_v31 = vpack.c.bf16 %v7942_v56, %v7940_v37  ;;  %v7956_v51 = vcvt.s32.f32 %v3722_v25  ;;  %v7958_v52 = vcvt.s32.f32 %v3728_v44  ;;  %v3824_v62 = vunpack.c.3.s8 %v3284_v47 }
 0x3e7   :  { %v4065_v45 = vcvt.s32.f32 %v3489_v6  ;;  %v3375_v19 = vunpack.c.0.s8 %v3177_v23  ;;  %v7966_v20 = vcvt.s32.f32 %v3818_v15  ;;  %v3471_v12 = vunpack.c.0.s8 %v3201_v39 }
 0x3e8   :  { %v4664_v30 = vpack.c.bf16 %v7958_v52, %v7956_v51  ;;  %v3477_v0 = vunpack.c.1.s8 %v3201_v39  ;;  %v3710_v61 = vunpack.c.0.s8 %v3260_v16  ;;  %v3812_v39 = vunpack.c.1.s8 %v3284_v47 }
 0x3e9   :  { %4856 = vmatpush.bf16.msrb.mxu2 %v4562_v36  ;;  %4869 = vmatpush.bf16.msrb.mxu3 %v4610_v7  ;;  %v4545_v38 = vpack.c.bf16 %v4065_v45, %v4059_v27  ;;  %v3381_v36 = vunpack.c.1.s8 %v3177_v23  ;;  %v7970_v7 = vcvt.s32.f32 %v3824_v62  ;;  %v7972_v9 = vcvt.s32.f32 %v3375_v19  ;;  %v3165_v45 = vld [vmem:[#allocation7 + $0x4c0] sm:$0xff] }
 0x3ea   :  { %4878 = vmatpush.bf16.msrb.mxu0 %v4682_v60  ;;  %4891 = vmatpush.bf16.msrb.mxu1 %v4730_v63  ;;  %v7976_v48 = vcvt.s32.f32 %v3471_v12  ;;  %v3716_v60 = vunpack.c.1.s8 %v3260_v16  ;;  %v4053_v63 = vcvt.s32.f32 %v3477_v0  ;;  %v3806_v23 = vunpack.c.0.s8 %v3284_v47  ;;  %v3189_v12 = vld [vmem:[#allocation7 + $0x580] sm:$0xff] }
 0x3eb   :  { %v7974_v43 = vcvt.s32.f32 %v3381_v36  ;;  %v4712_v54 = vpack.c.bf16 %v7970_v7, %v7966_v20  ;;  %v7994_v33 = vcvt.s32.f32 %v3710_v61  ;;  %v3363_v1 = vunpack.c.2.s8 %v3171_v24 }
 0x3ec   :  { %v7996_v26 = vcvt.s32.f32 %v3716_v60  ;;  %v7999_v58 = vcvt.s32.f32 %v3806_v23  ;;  %v4388_v16 = vcvt.s32.f32 %v3812_v39  ;;  %v3369_v4 = vunpack.c.3.s8 %v3171_v24 }
 0x3ed   :  { %4857 = vmatpush.bf16.msrb.mxu2 %v4556_v32  ;;  %4870 = vmatpush.bf16.msrb.mxu3 %v4604_v14  ;;  %v4491_v35 = vpack.c.bf16 %v7974_v43, %v7972_v9  ;;  %v3254_v32 = vld [vmem:[#allocation7 + $0x788] sm:$0xff]  ;;  %v4539_v14 = vpack.c.bf16 %v4053_v63, %v7976_v48  ;;  %v3459_v3 = vunpack.c.2.s8 %v3195_v21  ;;  %v3794_v22 = vunpack.c.2.s8 %v3278_v57  ;;  %v3225_v43 = vld [vmem:[#allocation7 + $0x6a0] sm:$0xff] }
 0x3ee   :  { %4879 = vmatpush.bf16.msrb.mxu0 %v4676_v46  ;;  %4892 = vmatpush.bf16.msrb.mxu1 %v4724_v49  ;;  %v4658_v34 = vpack.c.bf16 %v7996_v26, %v7994_v33  ;;  %v8003_v46 = vcvt.s32.f32 %v3363_v1  ;;  %v3465_v49 = vunpack.c.3.s8 %v3195_v21  ;;  %v4706_v29 = vpack.c.bf16 %v4388_v16, %v7999_v58 }
 0x3ef   :  { %v3945_v40 = vcvt.s32.f32 %v3369_v4  ;;  %v3698_v8 = vunpack.c.2.s8 %v3254_v32  ;;  %v3704_v47 = vunpack.c.3.s8 %v3254_v32  ;;  %v4035_v37 = vcvt.s32.f32 %v3459_v3 }
 0x3f0   :  { %v4041_v56 = vcvt.s32.f32 %v3465_v49  ;;  %v3800_v6 = vunpack.c.3.s8 %v3278_v57  ;;  %v3351_v25 = vunpack.c.0.s8 %v3171_v24  ;;  %v4370_v42 = vcvt.s32.f32 %v3794_v22  ;;  %v3159_v22 = vld [vmem:[#allocation7 + $0x490] sm:$0xff] }
 0x3f1   :  { %4858 = vmatpush.bf16.msrb.mxu2 %v4550_v53  ;;  %4871 = vmatpush.bf16.msrb.mxu3 %v4598_v5  ;;  %v4485_v13 = vpack.c.bf16 %v3945_v40, %v8003_v46  ;;  %v4274_v17 = vcvt.s32.f32 %v3698_v8  ;;  %v4280_v53 = vcvt.s32.f32 %v3704_v47  ;;  %v3453_v27 = vunpack.c.1.s8 %v3195_v21 }
 0x3f2   :  { %4880 = vmatpush.bf16.msrb.mxu0 %v4670_v50  ;;  %4893 = vmatpush.bf16.msrb.mxu1 %v4718_v59  ;;  %v4533_v55 = vpack.c.bf16 %v4041_v56, %v4035_v37  ;;  %v4376_v5 = vcvt.s32.f32 %v3800_v6  ;;  %v3357_v50 = vunpack.c.1.s8 %v3171_v24  ;;  %v3927_v44 = vcvt.s32.f32 %v3351_v25 }
 0x3f3   :  { %4833 = vmatmul.bf16.vlgmr.msra.gmra.mxu0 %v7780_v11  ;;  %4846 = vmatmul.bf16.vlgmr.msra.gmra.mxu1 %v7782_v18  ;;  %v4652_v59 = vpack.c.bf16 %v4280_v53, %v4274_v17  ;;  %v3686_v52 = vunpack.c.0.s8 %v3254_v32  ;;  %v3692_v62 = vunpack.c.1.s8 %v3254_v32  ;;  %v3782_v20 = vunpack.c.0.s8 %v3278_v57 }
 0x3f4   :  { %4859 = vmatmul.bf16.vlgmr.msrb.gmra.mxu2 %v7895_v41  ;;  %4872 = vmatmul.bf16.vlgmr.msrb.gmra.mxu3 %v7897_v2  ;;  %v4700_v15 = vpack.c.bf16 %v4376_v5, %v4370_v42  ;;  %v3933_v51 = vcvt.s32.f32 %v3357_v50  ;;  %v3788_v36 = vunpack.c.1.s8 %v3278_v57  ;;  %v3339_v24 = vunpack.c.2.s8 %v3165_v45  ;;  %v3183_v50 = vld [vmem:[#allocation7 + $0x550] sm:$0xff] }
 0x3f5   :  { %4903 = vmatpush.bf16.msra.mxu2 %v4497_v31  ;;  %4916 = vmatpush.bf16.msra.mxu3 %v4545_v38  ;;  %v3447_v31 = vunpack.c.0.s8 %v3195_v21  ;;  %v4029_v38 = vcvt.s32.f32 %v3453_v27  ;;  %v4262_v9 = vcvt.s32.f32 %v3686_v52  ;;  %v4268_v0 = vcvt.s32.f32 %v3692_v62 }
 0x3f6   :  { %4881 = vmatpush.bf16.msrb.mxu0 %v4664_v30  ;;  %4894 = vmatpush.bf16.msrb.mxu1 %v4712_v54  ;;  %v4479_v7 = vpack.c.bf16 %v3933_v51, %v3927_v44  ;;  %v4358_v61 = vcvt.s32.f32 %v3782_v20  ;;  %v4364_v30 = vcvt.s32.f32 %v3788_v36  ;;  %v3345_v60 = vunpack.c.3.s8 %v3165_v45  ;;  %v3249_v54 = vld [vmem:[#allocation7 + $0x760] sm:$0xff] }
 0x3f7   :  { %v4023_v19 = vcvt.s32.f32 %v3447_v31  ;;  %v4646_v63 = vpack.c.bf16 %v4268_v0, %v4262_v9  ;;  %v3915_v23 = vcvt.s32.f32 %v3339_v24  ;;  %v3435_v39 = vunpack.c.2.s8 %v3189_v12 }
 0x3f8   :  { %v3441_v21 = vunpack.c.3.s8 %v3189_v12  ;;  %v3921_v33 = vcvt.s32.f32 %v3345_v60  ;;  %v3579_v26 = vunpack.c.2.s8 %v3225_v43  ;;  %v3585_v1 = vunpack.c.3.s8 %v3225_v43 }
 0x3f9   :  { %4904 = vmatpush.bf16.msra.mxu2 %v4491_v35  ;;  %4917 = vmatpush.bf16.msra.mxu3 %v4539_v14  ;;  %v4527_v48 = vpack.c.bf16 %v4029_v38, %v4023_v19  ;;  %v4694_v35 = vpack.c.bf16 %v4364_v30, %v4358_v61  ;;  %v4011_v32 = vcvt.s32.f32 %v3435_v39  ;;  %v3675_v58 = vunpack.c.2.s8 %v3249_v54  ;;  %v3243_v19 = vld [vmem:[#allocation7 + $0x730] sm:$0xff] }
 0x3fa   :  { %4882 = vmatpush.bf16.msrb.mxu0 %v4658_v34  ;;  %4895 = vmatpush.bf16.msrb.mxu1 %v4706_v29  ;;  %v4017_v14 = vcvt.s32.f32 %v3441_v21  ;;  %v3681_v16 = vunpack.c.3.s8 %v3249_v54  ;;  %v4473_v4 = vpack.c.bf16 %v3921_v33, %v3915_v23  ;;  %v4155_v57 = vcvt.s32.f32 %v3579_v26 }
 0x3fb   :  { %v4161_v46 = vcvt.s32.f32 %v3585_v1  ;;  %v3327_v3 = vunpack.c.0.s8 %v3165_v45  ;;  %v4251_v49 = vcvt.s32.f32 %v3675_v58  ;;  %v3333_v40 = vunpack.c.1.s8 %v3165_v45  ;;  %v3219_v45 = vld [vmem:[#allocation7 + $0x670] sm:$0xff]  ;;  %v3273_v58 = vld [vmem:[#allocation7 + $0x820] sm:$0xff] }
 0x3fc   :  { %v4521_v34 = vpack.c.bf16 %v4017_v14, %v4011_v32  ;;  %v4257_v29 = vcvt.s32.f32 %v3681_v16  ;;  %v3423_v37 = vunpack.c.0.s8 %v3189_v12  ;;  %v3429_v56 = vunpack.c.1.s8 %v3189_v12 }
 0x3fd   :  { %4905 = vmatpush.bf16.msra.mxu2 %v4485_v13  ;;  %4918 = vmatpush.bf16.msra.mxu3 %v4533_v55  ;;  %v4593_v8 = vpack.c.bf16 %v4161_v46, %v4155_v57  ;;  %v3903_v47 = vcvt.s32.f32 %v3327_v3  ;;  %v3909_v13 = vcvt.s32.f32 %v3333_v40  ;;  %v3567_v17 = vunpack.c.0.s8 %v3225_v43  ;;  %v3297_v40 = vld [vmem:[#allocation7 + $0x8e0] sm:$0xff] }
 0x3fe   :  { %4883 = vmatpush.bf16.msrb.mxu0 %v4652_v59  ;;  %4896 = vmatpush.bf16.msrb.mxu1 %v4700_v15  ;;  %v4641_v6 = vpack.c.bf16 %v4257_v29, %v4251_v49  ;;  %v3573_v53 = vunpack.c.1.s8 %v3225_v43  ;;  %v3999_v25 = vcvt.s32.f32 %v3423_v37  ;;  %v4005_v55 = vcvt.s32.f32 %v3429_v56 }
 0x3ff   :  { %v3663_v42 = vunpack.c.0.s8 %v3249_v54  ;;  %v3669_v5 = vunpack.c.1.s8 %v3249_v54  ;;  %v4467_v59 = vpack.c.bf16 %v3909_v13, %v3903_v47  ;;  %v4143_v44 = vcvt.s32.f32 %v3567_v17 }
 0x400   :  { %v4149_v31 = vcvt.s32.f32 %v3573_v53  ;;  %v3315_v27 = vunpack.c.2.s8 %v3159_v22  ;;  %v4515_v15 = vpack.c.bf16 %v4005_v55, %v3999_v25  ;;  %v3321_v62 = vunpack.c.3.s8 %v3159_v22  ;;  %v3237_v25 = vld [vmem:[#allocation7 + $0x700] sm:$0xff] }
 0x401   :  { %4906 = vmatpush.bf16.msra.mxu2 %v4479_v7  ;;  %4919 = vmatpush.bf16.msra.mxu3 %v4527_v48  ;;  %v4239_v51 = vcvt.s32.f32 %v3663_v42  ;;  %v4245_v52 = vcvt.s32.f32 %v3669_v5  ;;  %v3411_v36 = vunpack.c.2.s8 %v3183_v50  ;;  %v3417_v12 = vunpack.c.3.s8 %v3183_v50 }
 0x402   :  { %4884 = vmatpush.bf16.msrb.mxu0 %v4646_v63  ;;  %4897 = vmatpush.bf16.msrb.mxu1 %v4694_v35  ;;  %v4587_v38 = vpack.c.bf16 %v4149_v31, %v4143_v44  ;;  %v3891_v20 = vcvt.s32.f32 %v3315_v27  ;;  %v3897_v9 = vcvt.s32.f32 %v3321_v62  ;;  %v3555_v0 = vunpack.c.2.s8 %v3219_v45 }
 0x403   :  { %v4635_v7 = vpack.c.bf16 %v4245_v52, %v4239_v51  ;;  %v3561_v24 = vunpack.c.3.s8 %v3219_v45  ;;  %v3987_v43 = vcvt.s32.f32 %v3411_v36  ;;  %v3993_v48 = vcvt.s32.f32 %v3417_v12 }
 0x404   :  { %v3651_v61 = vunpack.c.2.s8 %v3243_v19  ;;  %v3657_v30 = vunpack.c.3.s8 %v3243_v19  ;;  %v4461_v60 = vpack.c.bf16 %v3897_v9, %v3891_v20  ;;  %v4131_v54 = vcvt.s32.f32 %v3555_v0 }
 0x405   :  { %4907 = vmatpush.bf16.msra.mxu2 %v4473_v4  ;;  %4920 = vmatpush.bf16.msra.mxu3 %v4521_v34  ;;  %v4137_v63 = vcvt.s32.f32 %v3561_v24  ;;  %v3303_v23 = vunpack.c.0.s8 %v3159_v22  ;;  %v4509_v39 = vpack.c.bf16 %v3993_v48, %v3987_v43  ;;  %v3309_v33 = vunpack.c.1.s8 %v3159_v22  ;;  %v3213_v22 = vld [vmem:[#allocation7 + $0x640] sm:$0xff] }
 0x406   :  { %4929 = vmatpush.bf16.msra.mxu0 %v4593_v8  ;;  %4942 = vmatpush.bf16.msra.mxu1 %v4641_v6  ;;  %v4227_v21 = vcvt.s32.f32 %v3651_v61  ;;  %v4233_v35 = vcvt.s32.f32 %v3657_v30  ;;  %v3399_v32 = vunpack.c.0.s8 %v3183_v50  ;;  %v3405_v14 = vunpack.c.1.s8 %v3183_v50  ;;  %v3267_v61 = vld [vmem:[#allocation7 + $0x7f0] sm:$0xff] }
 0x407   :  { %4885 = vmatmul.bf16.vlgmr.msrb.gmra.mxu0 %v7762_v28  ;;  %4898 = vmatmul.bf16.vlgmr.msrb.gmra.mxu1 %v7764_v10  ;;  %v4581_v26 = vpack.c.bf16 %v4137_v63, %v4131_v54  ;;  %v3879_v1 = vcvt.s32.f32 %v3303_v23  ;;  %v3885_v4 = vcvt.s32.f32 %v3309_v33  ;;  %v3543_v57 = vunpack.c.0.s8 %v3219_v45  ;;  %v3291_v33 = vld [vmem:[#allocation7 + $0x8b0] sm:$0xff] }
 0x408   :  { %v4629_v16 = vpack.c.bf16 %v4233_v35, %v4227_v21  ;;  %v3549_v46 = vunpack.c.1.s8 %v3219_v45  ;;  %v3975_v3 = vcvt.s32.f32 %v3399_v32  ;;  %v3981_v34 = vcvt.s32.f32 %v3405_v14 }
 0x409   :  { %4908 = vmatpush.bf16.msra.mxu2 %v4467_v59  ;;  %4921 = vmatpush.bf16.msra.mxu3 %v4515_v15  ;;  %v3639_v49 = vunpack.c.0.s8 %v3243_v19  ;;  %v3645_v29 = vunpack.c.1.s8 %v3243_v19  ;;  %v4455_v8 = vpack.c.bf16 %v3885_v4, %v3879_v1  ;;  %v4119_v47 = vcvt.s32.f32 %v3543_v57 }
 0x40a   :  { %4930 = vmatpush.bf16.msra.mxu0 %v4587_v38  ;;  %4943 = vmatpush.bf16.msra.mxu1 %v4635_v7  ;;  %v4125_v37 = vcvt.s32.f32 %v3549_v46  ;;  %v3771_v56 = vunpack.c.2.s8 %v3273_v58  ;;  %v4503_v6 = vpack.c.bf16 %v3981_v34, %v3975_v3  ;;  %v3777_v53 = vunpack.c.3.s8 %v3273_v58  ;;  %v3231_v3 = vld [vmem:[#allocation7 + $0x6d0] sm:$0xff] }
 0x40b   :  { %v4215_v13 = vcvt.s32.f32 %v3639_v49  ;;  %v4221_v17 = vcvt.s32.f32 %v3645_v29  ;;  %v3867_v5 = vunpack.c.2.s8 %v3297_v40  ;;  %v3873_v50 = vunpack.c.3.s8 %v3297_v40 }
 0x40c   :  { %v4575_v55 = vpack.c.bf16 %v4125_v37, %v4119_v47  ;;  %v4347_v42 = vcvt.s32.f32 %v3771_v56  ;;  %v4353_v44 = vcvt.s32.f32 %v3777_v53  ;;  %v3531_v31 = vunpack.c.2.s8 %v3213_v22 }
 0x40d   :  { %4909 = vmatpush.bf16.msra.mxu2 %v4461_v60  ;;  %4922 = vmatpush.bf16.msra.mxu3 %v4509_v39  ;;  %v4623_v59 = vpack.c.bf16 %v4221_v17, %v4215_v13  ;;  %v3537_v27 = vunpack.c.3.s8 %v3213_v22  ;;  %v4443_v45 = vcvt.s32.f32 %v3867_v5  ;;  %v4449_v15 = vcvt.s32.f32 %v3873_v50 }
 0x40e   :  { %4931 = vmatpush.bf16.msra.mxu0 %v4581_v26  ;;  %4944 = vmatpush.bf16.msra.mxu1 %v4629_v16  ;;  %v3627_v51 = vunpack.c.2.s8 %v3237_v25  ;;  %v3633_v52 = vunpack.c.3.s8 %v3237_v25  ;;  %v4689_v62 = vpack.c.bf16 %v4353_v44, %v4347_v42  ;;  %v4107_v19 = vcvt.s32.f32 %v3531_v31 }
 0x40f   :  { %v4113_v38 = vcvt.s32.f32 %v3537_v27  ;;  %v3759_v20 = vunpack.c.0.s8 %v3273_v58  ;;  %v4737_v36 = vpack.c.bf16 %v4449_v15, %v4443_v45  ;;  %v3765_v9 = vunpack.c.1.s8 %v3273_v58  ;;  %v3207_v58 = vld [vmem:[#allocation7 + $0x610] sm:$0xff] }
 0x410   :  { %v4203_v12 = vcvt.s32.f32 %v3627_v51  ;;  %v4209_v7 = vcvt.s32.f32 %v3633_v52  ;;  %v3855_v43 = vunpack.c.0.s8 %v3297_v40  ;;  %v3861_v48 = vunpack.c.1.s8 %v3297_v40  ;;  %v3261_v51 = vld [vmem:[#allocation7 + $0x7c0] sm:$0xff] }
 0x411   :  { %4910 = vmatpush.bf16.msra.mxu2 %v4455_v8  ;;  %4923 = vmatpush.bf16.msra.mxu3 %v4503_v6  ;;  %v4569_v0 = vpack.c.bf16 %v4113_v38, %v4107_v19  ;;  %v4335_v24 = vcvt.s32.f32 %v3759_v20  ;;  %v4341_v60 = vcvt.s32.f32 %v3765_v9  ;;  %v3519_v54 = vunpack.c.0.s8 %v3213_v22  ;;  %v3285_v9 = vld [vmem:[#allocation7 + $0x880] sm:$0xff] }
 0x412   :  { %4932 = vmatpush.bf16.msra.mxu0 %v4575_v55  ;;  %4945 = vmatpush.bf16.msra.mxu1 %v4623_v59  ;;  %v4617_v30 = vpack.c.bf16 %v4209_v7, %v4203_v12  ;;  %v3525_v63 = vunpack.c.1.s8 %v3213_v22  ;;  %v4431_v23 = vcvt.s32.f32 %v3855_v43  ;;  %v4437_v39 = vcvt.s32.f32 %v3861_v48 }
 0x413   :  { %v3615_v21 = vunpack.c.0.s8 %v3237_v25  ;;  %v3621_v35 = vunpack.c.1.s8 %v3237_v25  ;;  %v4683_v26 = vpack.c.bf16 %v4341_v60, %v4335_v24  ;;  %v4095_v1 = vcvt.s32.f32 %v3519_v54 }
 0x414   :  { %4911 = vmatmul.bf16.vlgmr.msra.gmra.mxu2 %v7780_v11  ;;  %4924 = vmatmul.bf16.vlgmr.msra.gmra.mxu3 %v7782_v18  ;;  %v4101_v32 = vcvt.s32.f32 %v3525_v63  ;;  %v3747_v14 = vunpack.c.2.s8 %v3267_v61  ;;  %v4731_v16 = vpack.c.bf16 %v4437_v39, %v4431_v23  ;;  %v3753_v46 = vunpack.c.3.s8 %v3267_v61  ;;  %v3202_v23 = vld [vmem:[#allocation7 + $0x5e8] sm:$0xff] }
 0x415   :  { %4955 = vmatpush.bf16.msrb.mxu2 %v4689_v62  ;;  %4968 = vmatpush.bf16.msrb.mxu3 %v4737_v36  ;;  %v4191_v4 = vcvt.s32.f32 %v3615_v21  ;;  %v4197_v57 = vcvt.s32.f32 %v3621_v35  ;;  %v3843_v29 = vunpack.c.2.s8 %v3291_v33  ;;  %v3849_v40 = vunpack.c.3.s8 %v3291_v33 }
 0x416   :  { %4933 = vmatpush.bf16.msra.mxu0 %v4569_v0  ;;  %4946 = vmatpush.bf16.msra.mxu1 %v4617_v30  ;;  %v4563_v34 = vpack.c.bf16 %v4101_v32, %v4095_v1  ;;  %v4323_v49 = vcvt.s32.f32 %v3747_v14  ;;  %v4329_v47 = vcvt.s32.f32 %v3753_v46  ;;  %v3507_v37 = vunpack.c.2.s8 %v3207_v58 }
 0x417   :  { %v4611_v8 = vpack.c.bf16 %v4197_v57, %v4191_v4  ;;  %v3513_v56 = vunpack.c.3.s8 %v3207_v58  ;;  %v4419_v22 = vcvt.s32.f32 %v3843_v29  ;;  %v4425_v6 = vcvt.s32.f32 %v3849_v40 }
 0x418   :  { %v3603_v13 = vunpack.c.2.s8 %v3231_v3  ;;  %v3609_v17 = vunpack.c.3.s8 %v3231_v3  ;;  %v4677_v53 = vpack.c.bf16 %v4329_v47, %v4323_v49  ;;  %v4083_v25 = vcvt.s32.f32 %v3507_v37 }
 0x419   :  { %4956 = vmatpush.bf16.msrb.mxu2 %v4683_v26  ;;  %4969 = vmatpush.bf16.msrb.mxu3 %v4731_v16  ;;  %v4089_v55 = vcvt.s32.f32 %v3513_v56  ;;  %v3735_v42 = vunpack.c.0.s8 %v3267_v61  ;;  %v4725_v5 = vpack.c.bf16 %v4425_v6, %v4419_v22  ;;  %v3741_v44 = vunpack.c.1.s8 %v3267_v61  ;;  %v3178_v61 = vld [vmem:[#allocation7 + $0x528] sm:$0xff] }
 0x41a   :  { %4934 = vmatpush.bf16.msra.mxu0 %v4563_v34  ;;  %4947 = vmatpush.bf16.msra.mxu1 %v4611_v8  ;;  %v4179_v50 = vcvt.s32.f32 %v3603_v13  ;;  %v4185_v59 = vcvt.s32.f32 %v3609_v17  ;;  %v3831_v45 = vunpack.c.0.s8 %v3291_v33  ;;  %v3837_v15 = vunpack.c.1.s8 %v3291_v33  ;;  %v3255_v13 = vld [vmem:[#allocation7 + $0x790] sm:$0xff] }
 0x41b   :  { %v4557_v31 = vpack.c.bf16 %v4089_v55, %v4083_v25  ;;  %v4311_v27 = vcvt.s32.f32 %v3735_v42  ;;  %v4317_v62 = vcvt.s32.f32 %v3741_v44  ;;  %v3495_v19 = vunpack.c.0.s8 %v3207_v58  ;;  %v3279_v44 = vld [vmem:[#allocation7 + $0x850] sm:$0xff] }
 0x41c   :  { %v4605_v52 = vpack.c.bf16 %v4185_v59, %v4179_v50  ;;  %v3501_v38 = vunpack.c.1.s8 %v3207_v58  ;;  %v4407_v20 = vcvt.s32.f32 %v3831_v45  ;;  %v4413_v36 = vcvt.s32.f32 %v3837_v15 }
 0x41d   :  { %4957 = vmatpush.bf16.msrb.mxu2 %v4677_v53  ;;  %4970 = vmatpush.bf16.msrb.mxu3 %v4725_v5  ;;  %v3591_v12 = vunpack.c.0.s8 %v3231_v3  ;;  %v3597_v7 = vunpack.c.1.s8 %v3231_v3  ;;  %v4671_v0 = vpack.c.bf16 %v4317_v62, %v4311_v27  ;;  %v4071_v24 = vcvt.s32.f32 %v3495_v19 }
 0x41e   :  { %4935 = vmatpush.bf16.msra.mxu0 %v4557_v31  ;;  %4948 = vmatpush.bf16.msra.mxu1 %v4605_v52  ;;  %v4077_v43 = vcvt.s32.f32 %v3501_v38  ;;  %v3723_v48 = vunpack.c.2.s8 %v3261_v51  ;;  %v4719_v30 = vpack.c.bf16 %v4413_v36, %v4407_v20  ;;  %v3729_v63 = vunpack.c.3.s8 %v3261_v51  ;;  %v3196_v20 = vld [vmem:[#allocation7 + $0x5b8] sm:$0xff] }
 0x41f   :  { %v4167_v60 = vcvt.s32.f32 %v3591_v12  ;;  %v4173_v54 = vcvt.s32.f32 %v3597_v7  ;;  %v3819_v35 = vunpack.c.2.s8 %v3285_v9  ;;  %v3825_v33 = vunpack.c.3.s8 %v3285_v9 }
 0x420   :  { %v4551_v39 = vpack.c.bf16 %v4077_v43, %v4071_v24  ;;  %v4299_v21 = vcvt.s32.f32 %v3723_v48  ;;  %v4305_v1 = vcvt.s32.f32 %v3729_v63  ;;  %v3388_v32 = vunpack.c.2.s8 %v3178_v61 }
 0x421   :  { %4958 = vmatpush.bf16.msrb.mxu2 %v4671_v0  ;;  %4971 = vmatpush.bf16.msrb.mxu3 %v4719_v30  ;;  %v4599_v26 = vpack.c.bf16 %v4173_v54, %v4167_v60  ;;  %v3394_v14 = vunpack.c.3.s8 %v3178_v61  ;;  %v4395_v58 = vcvt.s32.f32 %v3819_v35  ;;  %v4401_v16 = vcvt.s32.f32 %v3825_v33 }
 0x422   :  { %4936 = vmatpush.bf16.msra.mxu0 %v4551_v39  ;;  %v3484_v4 = vunpack.c.2.s8 %v3202_v23  ;;  %v3490_v57 = vunpack.c.3.s8 %v3202_v23  ;;  %v4665_v46 = vpack.c.bf16 %v4305_v1, %v4299_v21  ;;  %v3964_v3 = vcvt.s32.f32 %v3388_v32 }
 0x423   :  { %4949 = vmatpush.bf16.msra.mxu1 %v4599_v26  ;;  %v3970_v34 = vcvt.s32.f32 %v3394_v14  ;;  %v3711_v49 = vunpack.c.0.s8 %v3261_v51  ;;  %v4713_v29 = vpack.c.bf16 %v4401_v16, %v4395_v58  ;;  %v3717_v47 = vunpack.c.1.s8 %v3261_v51  ;;  %v3172_v51 = vld [vmem:[#allocation7 + $0x4f8] sm:$0xff] }
 0x424   :  { %v4060_v40 = vcvt.s32.f32 %v3484_v4  ;;  %v4066_v8 = vcvt.s32.f32 %v3490_v57  ;;  %v3807_v22 = vunpack.c.0.s8 %v3285_v9  ;;  %v3813_v6 = vunpack.c.1.s8 %v3285_v9  ;;  %v3226_v4 = vld [vmem:[#allocation7 + $0x6a8] sm:$0xff] }
 0x425   :  { %4959 = vmatpush.bf16.msrb.mxu2 %v4665_v46  ;;  %v4498_v37 = vpack.c.bf16 %v3970_v34, %v3964_v3  ;;  %4937 = vmatmul.bf16.vlgmr.msra.gmra.mxu0 %v7895_v41  ;;  %v4287_v56 = vcvt.s32.f32 %v3711_v49  ;;  %v4293_v53 = vcvt.s32.f32 %v3717_v47  ;;  %v3376_v25 = vunpack.c.0.s8 %v3178_v61  ;;  %v3250_v47 = vld [vmem:[#allocation7 + $0x768] sm:$0xff] }
 0x426   :  { %4972 = vmatpush.bf16.msrb.mxu3 %v4713_v29  ;;  %v4546_v17 = vpack.c.bf16 %v4066_v8, %v4060_v40  ;;  %4950 = vmatmul.bf16.vlgmr.msra.gmra.mxu1 %v7897_v2  ;;  %v3382_v55 = vunpack.c.1.s8 %v3178_v61  ;;  %v4383_v42 = vcvt.s32.f32 %v3807_v22  ;;  %v4389_v5 = vcvt.s32.f32 %v3813_v6 }
 0x427   :  { %4981 = vmatpush.bf16.msrb.mxu0 %v4498_v37  ;;  %v3472_v50 = vunpack.c.0.s8 %v3202_v23  ;;  %v3478_v59 = vunpack.c.1.s8 %v3202_v23  ;;  %v4659_v31 = vpack.c.bf16 %v4293_v53, %v4287_v56  ;;  %v3952_v27 = vcvt.s32.f32 %v3376_v25 }
 0x428   :  { %4994 = vmatpush.bf16.msrb.mxu1 %v4546_v17  ;;  %v3958_v45 = vcvt.s32.f32 %v3382_v55  ;;  %v3699_v15 = vunpack.c.2.s8 %v3255_v13  ;;  %v4707_v52 = vpack.c.bf16 %v4389_v5, %v4383_v42  ;;  %v3705_v38 = vunpack.c.3.s8 %v3255_v13  ;;  %v3190_v42 = vld [vmem:[#allocation7 + $0x588] sm:$0xff] }
 0x429   :  { %v4048_v62 = vcvt.s32.f32 %v3472_v50  ;;  %v4054_v19 = vcvt.s32.f32 %v3478_v59  ;;  %4960 = vmatpush.bf16.msrb.mxu2 %v4659_v31  ;;  %v3795_v7 = vunpack.c.2.s8 %v3279_v44  ;;  %v3801_v9 = vunpack.c.3.s8 %v3279_v44 }
 0x42a   :  { %v4492_v36 = vpack.c.bf16 %v3958_v45, %v3952_v27  ;;  %v4275_v12 = vcvt.s32.f32 %v3699_v15  ;;  %4973 = vmatpush.bf16.msrb.mxu3 %v4707_v52  ;;  %v4281_v24 = vcvt.s32.f32 %v3705_v38  ;;  %v3364_v43 = vunpack.c.2.s8 %v3172_v51 }
 0x42b   :  { %v4540_v0 = vpack.c.bf16 %v4054_v19, %v4048_v62  ;;  %v3370_v48 = vunpack.c.3.s8 %v3172_v51  ;;  %v4371_v61 = vcvt.s32.f32 %v3795_v7  ;;  %v4377_v30 = vcvt.s32.f32 %v3801_v9 }
 0x42c   :  { %4982 = vmatpush.bf16.msrb.mxu0 %v4492_v36  ;;  %v3460_v60 = vunpack.c.2.s8 %v3196_v20  ;;  %v3466_v54 = vunpack.c.3.s8 %v3196_v20  ;;  %v4653_v63 = vpack.c.bf16 %v4281_v24, %v4275_v12  ;;  %v3940_v23 = vcvt.s32.f32 %v3364_v43 }
 0x42d   :  { %4995 = vmatpush.bf16.msrb.mxu1 %v4540_v0  ;;  %v3946_v39 = vcvt.s32.f32 %v3370_v48  ;;  %v3687_v21 = vunpack.c.0.s8 %v3255_v13  ;;  %v4701_v35 = vpack.c.bf16 %v4377_v30, %v4371_v61  ;;  %v3693_v1 = vunpack.c.1.s8 %v3255_v13  ;;  %v3166_v13 = vld [vmem:[#allocation7 + $0x4c8] sm:$0xff] }
 0x42e   :  { %v4036_v33 = vcvt.s32.f32 %v3460_v60  ;;  %v4042_v26 = vcvt.s32.f32 %v3466_v54  ;;  %4961 = vmatpush.bf16.msrb.mxu2 %v4653_v63  ;;  %v3783_v58 = vunpack.c.0.s8 %v3279_v44  ;;  %v3789_v16 = vunpack.c.1.s8 %v3279_v44  ;;  %v3220_v60 = vld [vmem:[#allocation7 + $0x678] sm:$0xff] }
 0x42f   :  { %v4486_v32 = vpack.c.bf16 %v3946_v39, %v3940_v23  ;;  %v4263_v14 = vcvt.s32.f32 %v3687_v21  ;;  %4974 = vmatpush.bf16.msrb.mxu3 %v4701_v35  ;;  %v4269_v46 = vcvt.s32.f32 %v3693_v1  ;;  %v3352_v3 = vunpack.c.0.s8 %v3172_v51  ;;  %v3244_v1 = vld [vmem:[#allocation7 + $0x738] sm:$0xff] }
 0x430   :  { %v4534_v57 = vpack.c.bf16 %v4042_v26, %v4036_v33  ;;  %v3358_v34 = vunpack.c.1.s8 %v3172_v51  ;;  %v4359_v49 = vcvt.s32.f32 %v3783_v58  ;;  %v4365_v29 = vcvt.s32.f32 %v3789_v16 }
 0x431   :  { %4983 = vmatpush.bf16.msrb.mxu0 %v4486_v32  ;;  %v3448_v40 = vunpack.c.0.s8 %v3196_v20  ;;  %v3454_v8 = vunpack.c.1.s8 %v3196_v20  ;;  %v4647_v37 = vpack.c.bf16 %v4269_v46, %v4263_v14  ;;  %v3928_v56 = vcvt.s32.f32 %v3352_v3 }
 0x432   :  { %4996 = vmatpush.bf16.msrb.mxu1 %v4534_v57  ;;  %v3934_v22 = vcvt.s32.f32 %v3358_v34  ;;  %v3580_v6 = vunpack.c.2.s8 %v3226_v4  ;;  %v4695_v17 = vpack.c.bf16 %v4365_v29, %v4359_v49  ;;  %v3586_v55 = vunpack.c.3.s8 %v3226_v4  ;;  %v3184_v49 = vld [vmem:[#allocation7 + $0x558] sm:$0xff] }
 0x433   :  { %v4024_v53 = vcvt.s32.f32 %v3448_v40  ;;  %v4030_v25 = vcvt.s32.f32 %v3454_v8  ;;  %4962 = vmatpush.bf16.msrb.mxu2 %v4647_v37  ;;  %v3676_v59 = vunpack.c.2.s8 %v3250_v47  ;;  %v3682_v44 = vunpack.c.3.s8 %v3250_v47 }
 0x434   :  { %v4480_v5 = vpack.c.bf16 %v3934_v22, %v3928_v56  ;;  %v4156_v50 = vcvt.s32.f32 %v3580_v6  ;;  %4975 = vmatpush.bf16.msrb.mxu3 %v4695_v17  ;;  %v4162_v27 = vcvt.s32.f32 %v3586_v55  ;;  %v3340_v45 = vunpack.c.2.s8 %v3166_v13 }
 0x435   :  { %v4528_v31 = vpack.c.bf16 %v4030_v25, %v4024_v53  ;;  %v3346_v15 = vunpack.c.3.s8 %v3166_v13  ;;  %v4252_v51 = vcvt.s32.f32 %v3676_v59  ;;  %v4258_v52 = vcvt.s32.f32 %v3682_v44 }
 0x436   :  { %4984 = vmatpush.bf16.msrb.mxu0 %v4480_v5  ;;  %v3436_v62 = vunpack.c.2.s8 %v3190_v42  ;;  %v3442_v19 = vunpack.c.3.s8 %v3190_v42  ;;  %v4594_v38 = vpack.c.bf16 %v4162_v27, %v4156_v50  ;;  %4963 = vmatmul.bf16.vlgmr.msrb.gmra.mxu2 %v7762_v28  ;;  %v3916_v20 = vcvt.s32.f32 %v3340_v45 }
 0x437   :  { %4997 = vmatpush.bf16.msrb.mxu1 %v4528_v31  ;;  %v3922_v36 = vcvt.s32.f32 %v3346_v15  ;;  %v3568_v12 = vunpack.c.0.s8 %v3226_v4  ;;  %v4642_v7 = vpack.c.bf16 %v4258_v52, %v4252_v51  ;;  %4976 = vmatmul.bf16.vlgmr.msrb.gmra.mxu3 %v7764_v10  ;;  %v3574_v24 = vunpack.c.1.s8 %v3226_v4  ;;  %v3160_v4 = vld [vmem:[#allocation7 + $0x498] sm:$0xff] }
 0x438   :  { %v4012_v9 = vcvt.s32.f32 %v3436_v62  ;;  %v4018_v0 = vcvt.s32.f32 %v3442_v19  ;;  %5007 = vmatpush.bf16.msra.mxu2 %v4594_v38  ;;  %v3664_v61 = vunpack.c.0.s8 %v3250_v47  ;;  %v3670_v30 = vunpack.c.1.s8 %v3250_v47  ;;  %v3214_v62 = vld [vmem:[#allocation7 + $0x648] sm:$0xff] }
 0x439   :  { %v4474_v43 = vpack.c.bf16 %v3922_v36, %v3916_v20  ;;  %v4144_v48 = vcvt.s32.f32 %v3568_v12  ;;  %5020 = vmatpush.bf16.msra.mxu3 %v4642_v7  ;;  %v4150_v63 = vcvt.s32.f32 %v3574_v24  ;;  %v3328_v23 = vunpack.c.0.s8 %v3166_v13  ;;  %v3238_v24 = vld [vmem:[#allocation7 + $0x708] sm:$0xff] }
 0x43a   :  { %v4522_v54 = vpack.c.bf16 %v4018_v0, %v4012_v9  ;;  %v3334_v39 = vunpack.c.1.s8 %v3166_v13  ;;  %v4240_v21 = vcvt.s32.f32 %v3664_v61  ;;  %v4246_v35 = vcvt.s32.f32 %v3670_v30 }
 0x43b   :  { %4985 = vmatpush.bf16.msrb.mxu0 %v4474_v43  ;;  %v3424_v33 = vunpack.c.0.s8 %v3190_v42  ;;  %v3430_v26 = vunpack.c.1.s8 %v3190_v42  ;;  %v4588_v32 = vpack.c.bf16 %v4150_v63, %v4144_v48  ;;  %v3904_v14 = vcvt.s32.f32 %v3328_v23 }
 0x43c   :  { %4998 = vmatpush.bf16.msrb.mxu1 %v4522_v54  ;;  %v3910_v58 = vcvt.s32.f32 %v3334_v39  ;;  %v3556_v16 = vunpack.c.2.s8 %v3220_v60  ;;  %v4636_v57 = vpack.c.bf16 %v4246_v35, %v4240_v21  ;;  %v3562_v34 = vunpack.c.3.s8 %v3220_v60  ;;  %v3298_v21 = vld [vmem:[#allocation7 + $0x8e8] sm:$0xff] }
 0x43d   :  { %v4000_v46 = vcvt.s32.f32 %v3424_v33  ;;  %v4006_v3 = vcvt.s32.f32 %v3430_v26  ;;  %5008 = vmatpush.bf16.msra.mxu2 %v4588_v32  ;;  %v3652_v8 = vunpack.c.2.s8 %v3244_v1  ;;  %v3658_v47 = vunpack.c.3.s8 %v3244_v1 }
 0x43e   :  { %v4468_v29 = vpack.c.bf16 %v3910_v58, %v3904_v14  ;;  %v4132_v40 = vcvt.s32.f32 %v3556_v16  ;;  %5021 = vmatpush.bf16.msra.mxu3 %v4636_v57  ;;  %v4138_v56 = vcvt.s32.f32 %v3562_v34  ;;  %v3316_v22 = vunpack.c.2.s8 %v3160_v4 }
 0x43f   :  { %v4516_v37 = vpack.c.bf16 %v4006_v3, %v4000_v46  ;;  %v3322_v6 = vunpack.c.3.s8 %v3160_v4  ;;  %v4228_v13 = vcvt.s32.f32 %v3652_v8  ;;  %v4234_v17 = vcvt.s32.f32 %v3658_v47 }
 0x440   :  { %4986 = vmatpush.bf16.msrb.mxu0 %v4468_v29  ;;  %v3412_v53 = vunpack.c.2.s8 %v3184_v49  ;;  %v3418_v25 = vunpack.c.3.s8 %v3184_v49  ;;  %v4582_v55 = vpack.c.bf16 %v4138_v56, %v4132_v40  ;;  %v3892_v42 = vcvt.s32.f32 %v3316_v22 }
 0x441   :  { %4999 = vmatpush.bf16.msrb.mxu1 %v4516_v37  ;;  %v3898_v5 = vcvt.s32.f32 %v3322_v6  ;;  %v3544_v50 = vunpack.c.0.s8 %v3220_v60  ;;  %v4630_v59 = vpack.c.bf16 %v4234_v17, %v4228_v13  ;;  %v3550_v27 = vunpack.c.1.s8 %v3220_v60  ;;  %v3274_v60 = vld [vmem:[#allocation7 + $0x828] sm:$0xff] }
 0x442   :  { %v3988_v44 = vcvt.s32.f32 %v3412_v53  ;;  %v3994_v31 = vcvt.s32.f32 %v3418_v25  ;;  %5009 = vmatpush.bf16.msra.mxu2 %v4582_v55  ;;  %v3640_v51 = vunpack.c.0.s8 %v3244_v1  ;;  %v3646_v52 = vunpack.c.1.s8 %v3244_v1  ;;  %v3208_v53 = vld [vmem:[#allocation7 + $0x618] sm:$0xff] }
 0x443   :  { %v4462_v45 = vpack.c.bf16 %v3898_v5, %v3892_v42  ;;  %v4120_v15 = vcvt.s32.f32 %v3544_v50  ;;  %5022 = vmatpush.bf16.msra.mxu3 %v4630_v59  ;;  %v4126_v38 = vcvt.s32.f32 %v3550_v27  ;;  %v3304_v20 = vunpack.c.0.s8 %v3160_v4  ;;  %v3232_v27 = vld [vmem:[#allocation7 + $0x6d8] sm:$0xff] }
 0x444   :  { %v4510_v19 = vpack.c.bf16 %v3994_v31, %v3988_v44  ;;  %v3310_v36 = vunpack.c.1.s8 %v3160_v4  ;;  %v4216_v12 = vcvt.s32.f32 %v3640_v51  ;;  %v4222_v7 = vcvt.s32.f32 %v3646_v52 }
 0x445   :  { %4987 = vmatpush.bf16.msrb.mxu0 %v4462_v45  ;;  %v3400_v9 = vunpack.c.0.s8 %v3184_v49  ;;  %v3406_v0 = vunpack.c.1.s8 %v3184_v49  ;;  %v4576_v43 = vpack.c.bf16 %v4126_v38, %v4120_v15  ;;  %v3880_v48 = vcvt.s32.f32 %v3304_v20 }
 0x446   :  { %5000 = vmatpush.bf16.msrb.mxu1 %v4510_v19  ;;  %v3886_v61 = vcvt.s32.f32 %v3310_v36  ;;  %v3532_v30 = vunpack.c.2.s8 %v3214_v62  ;;  %v4624_v54 = vpack.c.bf16 %v4222_v7, %v4216_v12  ;;  %v3538_v39 = vunpack.c.3.s8 %v3214_v62  ;;  %v3292_v12 = vld [vmem:[#allocation7 + $0x8b8] sm:$0xff] }
 0x447   :  { %v3976_v63 = vcvt.s32.f32 %v3400_v9  ;;  %v3982_v23 = vcvt.s32.f32 %v3406_v0  ;;  %5010 = vmatpush.bf16.msra.mxu2 %v4576_v43  ;;  %v3628_v26 = vunpack.c.2.s8 %v3238_v24  ;;  %v3634_v1 = vunpack.c.3.s8 %v3238_v24 }
 0x448   :  { %v4456_v35 = vpack.c.bf16 %v3886_v61, %v3880_v48  ;;  %v4108_v33 = vcvt.s32.f32 %v3532_v30  ;;  %5023 = vmatpush.bf16.msra.mxu3 %v4624_v54  ;;  %v4114_v14 = vcvt.s32.f32 %v3538_v39  ;;  %v3772_v58 = vunpack.c.2.s8 %v3274_v60 }
 0x449   :  { %v4504_v32 = vpack.c.bf16 %v3982_v23, %v3976_v63  ;;  %v3778_v16 = vunpack.c.3.s8 %v3274_v60  ;;  %v4204_v4 = vcvt.s32.f32 %v3628_v26  ;;  %v4210_v57 = vcvt.s32.f32 %v3634_v1 }
 0x44a   :  { %4988 = vmatpush.bf16.msrb.mxu0 %v4456_v35  ;;  %v3868_v46 = vunpack.c.2.s8 %v3298_v21  ;;  %v3874_v3 = vunpack.c.3.s8 %v3298_v21  ;;  %v4570_v34 = vpack.c.bf16 %v4114_v14, %v4108_v33  ;;  %v4348_v49 = vcvt.s32.f32 %v3772_v58 }
 0x44b   :  { %5001 = vmatpush.bf16.msrb.mxu1 %v4504_v32  ;;  %v4354_v29 = vcvt.s32.f32 %v3778_v16  ;;  %v3520_v40 = vunpack.c.0.s8 %v3214_v62  ;;  %v4618_v8 = vpack.c.bf16 %v4210_v57, %v4204_v4  ;;  %v3526_v56 = vunpack.c.1.s8 %v3214_v62  ;;  %v3268_v62 = vld [vmem:[#allocation7 + $0x7f8] sm:$0xff] }
 0x44c   :  { %v4444_v47 = vcvt.s32.f32 %v3868_v46  ;;  %v4450_v37 = vcvt.s32.f32 %v3874_v3  ;;  %5011 = vmatpush.bf16.msra.mxu2 %v4570_v34  ;;  %v3616_v13 = vunpack.c.0.s8 %v3238_v24  ;;  %v3622_v17 = vunpack.c.1.s8 %v3238_v24  ;;  %v3179_v34 = vld [vmem:[#allocation7 + $0x530] sm:$0xff] }
 0x44d   :  { %v4690_v22 = vpack.c.bf16 %v4354_v29, %v4348_v49  ;;  %4989 = vmatmul.bf16.vlgmr.msrb.gmra.mxu0 %v7780_v11  ;;  %v4096_v6 = vcvt.s32.f32 %v3520_v40  ;;  %5024 = vmatpush.bf16.msra.mxu3 %v4618_v8  ;;  %v4102_v55 = vcvt.s32.f32 %v3526_v56  ;;  %v3760_v42 = vunpack.c.0.s8 %v3274_v60 }
 0x44e   :  { %v4738_v25 = vpack.c.bf16 %v4450_v37, %v4444_v47  ;;  %5002 = vmatmul.bf16.vlgmr.msrb.gmra.mxu1 %v7782_v18  ;;  %v3766_v5 = vunpack.c.1.s8 %v3274_v60  ;;  %v4192_v50 = vcvt.s32.f32 %v3616_v13  ;;  %v4198_v59 = vcvt.s32.f32 %v3622_v17 }
 0x44f   :  { %5033 = vmatpush.bf16.msra.mxu0 %v4690_v22  ;;  %v3856_v44 = vunpack.c.0.s8 %v3298_v21  ;;  %v3862_v31 = vunpack.c.1.s8 %v3298_v21  ;;  %v4564_v45 = vpack.c.bf16 %v4102_v55, %v4096_v6  ;;  %v4336_v15 = vcvt.s32.f32 %v3760_v42  ;;  %v3203_v6 = vld [vmem:[#allocation7 + $0x5f0] sm:$0xff]  ;;  %v3262_v55 = vld [vmem:[#allocation7 + $0x7c8] sm:$0xff] }
 0x450   :  { %5046 = vmatpush.bf16.msra.mxu1 %v4738_v25  ;;  %v4342_v51 = vcvt.s32.f32 %v3766_v5  ;;  %v3508_v52 = vunpack.c.2.s8 %v3208_v53  ;;  %v4612_v19 = vpack.c.bf16 %v4198_v59, %v4192_v50  ;;  %v3514_v36 = vunpack.c.3.s8 %v3208_v53 }
 0x451   :  { %v4432_v38 = vcvt.s32.f32 %v3856_v44  ;;  %v4438_v20 = vcvt.s32.f32 %v3862_v31  ;;  %5012 = vmatpush.bf16.msra.mxu2 %v4564_v45  ;;  %v3604_v0 = vunpack.c.2.s8 %v3232_v27  ;;  %v3610_v24 = vunpack.c.3.s8 %v3232_v27  ;;  %v3286_v44 = vld [vmem:[#allocation7 + $0x888] sm:$0xff] }
 0x452   :  { %v4684_v7 = vpack.c.bf16 %v4342_v51, %v4336_v15  ;;  %v4084_v9 = vcvt.s32.f32 %v3508_v52  ;;  %5025 = vmatpush.bf16.msra.mxu3 %v4612_v19  ;;  %v4090_v48 = vcvt.s32.f32 %v3514_v36  ;;  %v3748_v61 = vunpack.c.2.s8 %v3268_v62 }
 0x453   :  { %v4732_v43 = vpack.c.bf16 %v4438_v20, %v4432_v38  ;;  %v3754_v30 = vunpack.c.3.s8 %v3268_v62  ;;  %v4180_v60 = vcvt.s32.f32 %v3604_v0  ;;  %v4186_v54 = vcvt.s32.f32 %v3610_v24 }
 0x454   :  { %5034 = vmatpush.bf16.msra.mxu0 %v4684_v7  ;;  %v3844_v63 = vunpack.c.2.s8 %v3292_v12  ;;  %v3850_v23 = vunpack.c.3.s8 %v3292_v12  ;;  %v4558_v35 = vpack.c.bf16 %v4090_v48, %v4084_v9  ;;  %v4324_v33 = vcvt.s32.f32 %v3748_v61 }
 0x455   :  { %5047 = vmatpush.bf16.msra.mxu1 %v4732_v43  ;;  %v4330_v26 = vcvt.s32.f32 %v3754_v30  ;;  %v3496_v1 = vunpack.c.0.s8 %v3208_v53  ;;  %v4606_v32 = vpack.c.bf16 %v4186_v54, %v4180_v60  ;;  %v3502_v16 = vunpack.c.1.s8 %v3208_v53 }
 0x456   :  { %v8027_v39 = vpop.f32.mrf.mxu2  ;;  %v8029_v21 = vpop.f32.mrf.mxu3  ;;  %v4420_v14 = vcvt.s32.f32 %v3844_v63  ;;  %v4426_v58 = vcvt.s32.f32 %v3850_v23  ;;  %5013 = vmatpush.bf16.msra.mxu2 %v4558_v35  ;;  %v3592_v46 = vunpack.c.0.s8 %v3232_v27  ;;  %v3598_v3 = vunpack.c.1.s8 %v3232_v27 }
 0x457   :  { %v4678_v4 = vpack.c.bf16 %v4330_v26, %v4324_v33  ;;  %v4072_v57 = vcvt.s32.f32 %v3496_v1  ;;  %5026 = vmatpush.bf16.msra.mxu3 %v4606_v32  ;;  %v4078_v29 = vcvt.s32.f32 %v3502_v16  ;;  %v3736_v40 = vunpack.c.0.s8 %v3268_v62  ;;  %v3173_v26 = vld [vmem:[#allocation7 + $0x500] sm:$0xff] }
 0x458   :  { %v4726_v49 = vpack.c.bf16 %v4426_v58, %v4420_v14  ;;  %v3742_v8 = vunpack.c.1.s8 %v3268_v62  ;;  %v4168_v47 = vcvt.s32.f32 %v3592_v46  ;;  %v4174_v37 = vcvt.s32.f32 %v3598_v3  ;;  %v3197_v3 = vld [vmem:[#allocation7 + $0x5c0] sm:$0xff] }
 0x459   :  { %5035 = vmatpush.bf16.msra.mxu0 %v4678_v4  ;;  %v3832_v56 = vunpack.c.0.s8 %v3292_v12  ;;  %v3838_v22 = vunpack.c.1.s8 %v3292_v12  ;;  %v4552_v13 = vpack.c.bf16 %v4078_v29, %v4072_v57  ;;  %v4312_v17 = vcvt.s32.f32 %v3736_v40 }
 0x45a   :  { %5048 = vmatpush.bf16.msra.mxu1 %v4726_v49  ;;  %v4318_v53 = vcvt.s32.f32 %v3742_v8  ;;  %v3389_v25 = vunpack.c.2.s8 %v3179_v34  ;;  %v4600_v42 = vpack.c.bf16 %v4174_v37, %v4168_v47  ;;  %v3395_v59 = vunpack.c.3.s8 %v3179_v34  ;;  %v3256_v37 = vld [vmem:[#allocation7 + $0x798] sm:$0xff] }
 0x45b   :  { %v4408_v5 = vcvt.s32.f32 %v3832_v56  ;;  %v4414_v50 = vcvt.s32.f32 %v3838_v22  ;;  %5014 = vmatpush.bf16.msra.mxu2 %v4552_v13  ;;  %v3485_v45 = vunpack.c.2.s8 %v3203_v6  ;;  %v3491_v15 = vunpack.c.3.s8 %v3203_v6 }
 0x45c   :  { %v4672_v31 = vpack.c.bf16 %v4318_v53, %v4312_v17  ;;  %v3965_v27 = vcvt.s32.f32 %v3389_v25  ;;  %5027 = vmatpush.bf16.msra.mxu3 %v4600_v42  ;;  %v3971_v19 = vcvt.s32.f32 %v3395_v59  ;;  %v3724_v38 = vunpack.c.2.s8 %v3262_v55  ;;  %v3280_v17 = vld [vmem:[#allocation7 + $0x858] sm:$0xff] }
 0x45d   :  { %v4720_v62 = vpack.c.bf16 %v4414_v50, %v4408_v5  ;;  %v3730_v20 = vunpack.c.3.s8 %v3262_v55  ;;  %v4061_v36 = vcvt.s32.f32 %v3485_v45  ;;  %v4067_v12 = vcvt.s32.f32 %v3491_v15 }
 0x45e   :  { %v4758_v51 = vpop.f32.mrf.mxu2  ;;  %v4771_v52 = vpop.f32.mrf.mxu3  ;;  %5036 = vmatpush.bf16.msra.mxu0 %v4672_v31  ;;  %v3820_v7 = vunpack.c.2.s8 %v3286_v44  ;;  %v3826_v9 = vunpack.c.3.s8 %v3286_v44  ;;  %v4499_v0 = vpack.c.bf16 %v3971_v19, %v3965_v27  ;;  %5015 = vmatmul.bf16.vlgmr.msra.gmra.mxu2 %v7895_v41  ;;  %v4300_v24 = vcvt.s32.f32 %v3724_v38 }
 0x45f   :  { %5049 = vmatpush.bf16.msra.mxu1 %v4720_v62  ;;  %v4306_v43 = vcvt.s32.f32 %v3730_v20  ;;  %v3377_v48 = vunpack.c.0.s8 %v3179_v34  ;;  %v4547_v61 = vpack.c.bf16 %v4067_v12, %v4061_v36  ;;  %5028 = vmatmul.bf16.vlgmr.msra.gmra.mxu3 %v7897_v2  ;;  %v3383_v54 = vunpack.c.1.s8 %v3179_v34 }
 0x460   :  { %v4396_v30 = vcvt.s32.f32 %v3820_v7  ;;  %v4402_v60 = vcvt.s32.f32 %v3826_v9  ;;  %5059 = vmatpush.bf16.msrb.mxu2 %v4499_v0  ;;  %v3473_v35 = vunpack.c.0.s8 %v3203_v6  ;;  %v3479_v33 = vunpack.c.1.s8 %v3203_v6  ;;  %v8033_v49 = vpop.f32.mrf.mxu0  ;;  %v8035_v34 = vpop.f32.mrf.mxu1 }
 0x461   :  { %v4666_v63 = vpack.c.bf16 %v4306_v43, %v4300_v24  ;;  %v3953_v23 = vcvt.s32.f32 %v3377_v48  ;;  %5072 = vmatpush.bf16.msrb.mxu3 %v4547_v61  ;;  %v3959_v32 = vcvt.s32.f32 %v3383_v54  ;;  %v3712_v14 = vunpack.c.0.s8 %v3262_v55  ;;  %v3167_v43 = vld [vmem:[#allocation7 + $0x4d0] sm:$0xff] }
 0x462   :  { %v4714_v1 = vpack.c.bf16 %v4402_v60, %v4396_v30  ;;  %v3718_v58 = vunpack.c.1.s8 %v3262_v55  ;;  %v4049_v16 = vcvt.s32.f32 %v3473_v35  ;;  %v4055_v4 = vcvt.s32.f32 %v3479_v33 }
 0x463   :  { %5037 = vmatpush.bf16.msra.mxu0 %v4666_v63  ;;  %v3808_v57 = vunpack.c.0.s8 %v3286_v44  ;;  %v3814_v46 = vunpack.c.1.s8 %v3286_v44  ;;  %v4493_v29 = vpack.c.bf16 %v3959_v32, %v3953_v23  ;;  %v4288_v40 = vcvt.s32.f32 %v3712_v14  ;;  %v3191_v14 = vld [vmem:[#allocation7 + $0x590] sm:$0xff] }
 0x464   :  { %5050 = vmatpush.bf16.msra.mxu1 %v4714_v1  ;;  %v4294_v8 = vcvt.s32.f32 %v3718_v58  ;;  %v3365_v47 = vunpack.c.2.s8 %v3173_v26  ;;  %v4541_v56 = vpack.c.bf16 %v4055_v4, %v4049_v16  ;;  %v3371_v13 = vunpack.c.3.s8 %v3173_v26 }
 0x465   :  { %v4384_v22 = vcvt.s32.f32 %v3808_v57  ;;  %v4390_v6 = vcvt.s32.f32 %v3814_v46  ;;  %5060 = vmatpush.bf16.msrb.mxu2 %v4493_v29  ;;  %v3461_v55 = vunpack.c.2.s8 %v3197_v3  ;;  %v3467_v42 = vunpack.c.3.s8 %v3197_v3  ;;  %v3227_v46 = vld [vmem:[#allocation7 + $0x6b0] sm:$0xff] }
 0x466   :  { %v4660_v53 = vpack.c.bf16 %v4294_v8, %v4288_v40  ;;  %v3941_v25 = vcvt.s32.f32 %v3365_v47  ;;  %5073 = vmatpush.bf16.msrb.mxu3 %v4541_v56  ;;  %v3947_v50 = vcvt.s32.f32 %v3371_v13  ;;  %v3700_v59 = vunpack.c.2.s8 %v3256_v37 }
 0x467   :  { %v4708_v5 = vpack.c.bf16 %v4390_v6, %v4384_v22  ;;  %v3706_v44 = vunpack.c.3.s8 %v3256_v37  ;;  %v4037_v31 = vcvt.s32.f32 %v3461_v55  ;;  %v4043_v27 = vcvt.s32.f32 %v3467_v42  ;;  %v8037_v48 = vpop.f32.mrf.mxu2  ;;  %v8039_v61 = vpop.f32.mrf.mxu3 }
 0x468   :  { %5038 = vmatpush.bf16.msra.mxu0 %v4660_v53  ;;  %v3796_v45 = vunpack.c.2.s8 %v3280_v17  ;;  %v3802_v15 = vunpack.c.3.s8 %v3280_v17  ;;  %v4487_v51 = vpack.c.bf16 %v3947_v50, %v3941_v25  ;;  %v4276_v52 = vcvt.s32.f32 %v3700_v59  ;;  %v4784_v23 = vpop.f32.mrf.mxu0  ;;  %v4797_v35 = vpop.f32.mrf.mxu1 }
 0x469   :  { %5051 = vmatpush.bf16.msra.mxu1 %v4708_v5  ;;  %v4282_v62 = vcvt.s32.f32 %v3706_v44  ;;  %v3353_v19 = vunpack.c.0.s8 %v3173_v26  ;;  %v4535_v38 = vpack.c.bf16 %v4043_v27, %v4037_v31  ;;  %v3359_v12 = vunpack.c.1.s8 %v3173_v26 }
 0x46a   :  { %v4372_v20 = vcvt.s32.f32 %v3796_v45  ;;  %v4378_v36 = vcvt.s32.f32 %v3802_v15  ;;  %5061 = vmatpush.bf16.msrb.mxu2 %v4487_v51  ;;  %v3449_v0 = vunpack.c.0.s8 %v3197_v3  ;;  %v3455_v24 = vunpack.c.1.s8 %v3197_v3 }
 0x46b   :  { %v4654_v7 = vpack.c.bf16 %v4282_v62, %v4276_v52  ;;  %v3929_v9 = vcvt.s32.f32 %v3353_v19  ;;  %5074 = vmatpush.bf16.msrb.mxu3 %v4535_v38  ;;  %v3935_v60 = vcvt.s32.f32 %v3359_v12  ;;  %v8043_v54 = vadd.f32 %v8029_v21, %v8027_v39  ;;  %v3251_v21 = vld [vmem:[#allocation7 + $0x770] sm:$0xff] }
 0x46c   :  { %v4702_v30 = vpack.c.bf16 %v4378_v36, %v4372_v20  ;;  %v3688_v63 = vunpack.c.0.s8 %v3256_v37  ;;  %v4025_v33 = vcvt.s32.f32 %v3449_v0  ;;  %v4031_v26 = vcvt.s32.f32 %v3455_v24  ;;  %v3161_v0 = vld [vmem:[#allocation7 + $0x4a0] sm:$0xff] }
 0x46d   :  { %5039 = vmatpush.bf16.msra.mxu0 %v4654_v7  ;;  %v3694_v1 = vunpack.c.1.s8 %v3256_v37  ;;  %v3784_v32 = vunpack.c.0.s8 %v3280_v17  ;;  %v4481_v58 = vpack.c.bf16 %v3935_v60, %v3929_v9  ;;  %v3790_v4 = vunpack.c.1.s8 %v3280_v17 }
 0x46e   :  { %5052 = vmatpush.bf16.msra.mxu1 %v4702_v30  ;;  %v4264_v16 = vcvt.s32.f32 %v3688_v63  ;;  %v3341_v57 = vunpack.c.2.s8 %v3167_v43  ;;  %v4529_v3 = vpack.c.bf16 %v4031_v26, %v4025_v33  ;;  %v3347_v39 = vunpack.c.3.s8 %v3167_v43  ;;  %v3185_v63 = vld [vmem:[#allocation7 + $0x560] sm:$0xff] }
 0x46f   :  { %v4270_v29 = vcvt.s32.f32 %v3694_v1  ;;  %v4360_v40 = vcvt.s32.f32 %v3784_v32  ;;  %5062 = vmatpush.bf16.msrb.mxu2 %v4481_v58  ;;  %v4366_v8 = vcvt.s32.f32 %v3790_v4  ;;  %v3437_v56 = vunpack.c.2.s8 %v3191_v14  ;;  %v4810_v31 = vpop.f32.mrf.mxu2  ;;  %v4823_v27 = vpop.f32.mrf.mxu3  ;;  %v3221_v1 = vld [vmem:[#allocation7 + $0x680] sm:$0xff] }
 0x470   :  { %v3917_v47 = vcvt.s32.f32 %v3341_v57  ;;  %v3443_v22 = vunpack.c.3.s8 %v3191_v14  ;;  %5075 = vmatpush.bf16.msrb.mxu3 %v4529_v3  ;;  %v3923_v6 = vcvt.s32.f32 %v3347_v39  ;;  %v3581_v13 = vunpack.c.2.s8 %v3227_v46  ;;  %v3245_v4 = vld [vmem:[#allocation7 + $0x740] sm:$0xff]  ;;  %v8047_v57 = vpop.f32.mrf.mxu0 }
 0x471   :  { %v4648_v37 = vpack.c.bf16 %v4270_v29, %v4264_v16  ;;  %v3587_v53 = vunpack.c.3.s8 %v3227_v46  ;;  %v4696_v25 = vpack.c.bf16 %v4366_v8, %v4360_v40  ;;  %v4013_v55 = vcvt.s32.f32 %v3437_v56 }
 0x472   :  { %v4019_v17 = vcvt.s32.f32 %v3443_v22  ;;  %v3677_v42 = vunpack.c.2.s8 %v3251_v21  ;;  %v4475_v5 = vpack.c.bf16 %v3923_v6, %v3917_v47  ;;  %v4157_v50 = vcvt.s32.f32 %v3581_v13 }
 0x473   :  { %5040 = vmatpush.bf16.msra.mxu0 %v4648_v37  ;;  %v4163_v59 = vcvt.s32.f32 %v3587_v53  ;;  %v3683_v44 = vunpack.c.3.s8 %v3251_v21  ;;  %5053 = vmatpush.bf16.msra.mxu1 %v4696_v25  ;;  %v3329_v51 = vunpack.c.0.s8 %v3167_v43  ;;  %v3335_v52 = vunpack.c.1.s8 %v3167_v43 }
 0x474   :  { %v4523_v45 = vpack.c.bf16 %v4019_v17, %v4013_v55  ;;  %v4253_v15 = vcvt.s32.f32 %v3677_v42  ;;  %5063 = vmatpush.bf16.msrb.mxu2 %v4475_v5  ;;  %v3425_v38 = vunpack.c.0.s8 %v3191_v14  ;;  %v3431_v20 = vunpack.c.1.s8 %v3191_v14 }
 0x475   :  { %v4595_v62 = vpack.c.bf16 %v4163_v59, %v4157_v50  ;;  %v4259_v19 = vcvt.s32.f32 %v3683_v44  ;;  %v3905_v36 = vcvt.s32.f32 %v3329_v51  ;;  %v3911_v12 = vcvt.s32.f32 %v3335_v52 }
 0x476   :  { %5076 = vmatpush.bf16.msrb.mxu3 %v4523_v45  ;;  %5041 = vmatmul.bf16.vlgmr.msra.gmra.mxu0 %v7762_v28  ;;  %v3569_v7 = vunpack.c.0.s8 %v3227_v46  ;;  %v3575_v9 = vunpack.c.1.s8 %v3227_v46  ;;  %v4001_v30 = vcvt.s32.f32 %v3425_v38  ;;  %v4007_v60 = vcvt.s32.f32 %v3431_v20  ;;  %v8049_v46 = vpop.f32.mrf.mxu1 }
 0x477   :  { %5085 = vmatpush.bf16.msrb.mxu0 %v4595_v62  ;;  %v4643_v24 = vpack.c.bf16 %v4259_v19, %v4253_v15  ;;  %5054 = vmatmul.bf16.vlgmr.msra.gmra.mxu1 %v7764_v10  ;;  %v3665_v43 = vunpack.c.0.s8 %v3251_v21  ;;  %v4469_v23 = vpack.c.bf16 %v3911_v12, %v3905_v36  ;;  %v3671_v26 = vunpack.c.1.s8 %v3251_v21  ;;  %v3275_v19 = vld [vmem:[#allocation7 + $0x830] sm:$0xff] }
 0x478   :  { %v4145_v35 = vcvt.s32.f32 %v3569_v7  ;;  %v4151_v33 = vcvt.s32.f32 %v3575_v9  ;;  %v4517_v32 = vpack.c.bf16 %v4007_v60, %v4001_v30  ;;  %v3317_v58 = vunpack.c.2.s8 %v3161_v0  ;;  %v3299_v7 = vld [vmem:[#allocation7 + $0x8f0] sm:$0xff] }
 0x479   :  { %5098 = vmatpush.bf16.msrb.mxu1 %v4643_v24  ;;  %v4241_v14 = vcvt.s32.f32 %v3665_v43  ;;  %v3323_v16 = vunpack.c.3.s8 %v3161_v0  ;;  %5064 = vmatpush.bf16.msrb.mxu2 %v4469_v23  ;;  %v4247_v29 = vcvt.s32.f32 %v3671_v26  ;;  %v3413_v40 = vunpack.c.2.s8 %v3185_v63 }
 0x47a   :  { %v4589_v3 = vpack.c.bf16 %v4151_v33, %v4145_v35  ;;  %v3419_v39 = vunpack.c.3.s8 %v3185_v63  ;;  %5077 = vmatpush.bf16.msrb.mxu3 %v4517_v32  ;;  %v3893_v8 = vcvt.s32.f32 %v3317_v58  ;;  %v3557_v21 = vunpack.c.2.s8 %v3221_v1  ;;  %v8056_v35 = vpop.f32.mrf.mxu3 }
 0x47b   :  { %v3899_v47 = vcvt.s32.f32 %v3323_v16  ;;  %v3563_v56 = vunpack.c.3.s8 %v3221_v1  ;;  %v4637_v22 = vpack.c.bf16 %v4247_v29, %v4241_v14  ;;  %v3989_v37 = vcvt.s32.f32 %v3413_v40  ;;  %v3215_v14 = vld [vmem:[#allocation7 + $0x650] sm:$0xff] }
 0x47c   :  { %5086 = vmatpush.bf16.msrb.mxu0 %v4589_v3  ;;  %v3995_v6 = vcvt.s32.f32 %v3419_v39  ;;  %v3653_v13 = vunpack.c.2.s8 %v3245_v4  ;;  %v4133_v25 = vcvt.s32.f32 %v3557_v21  ;;  %v3659_v17 = vunpack.c.3.s8 %v3245_v4 }
 0x47d   :  { %v4463_v53 = vpack.c.bf16 %v3899_v47, %v3893_v8  ;;  %v4139_v55 = vcvt.s32.f32 %v3563_v56  ;;  %5099 = vmatpush.bf16.msrb.mxu1 %v4637_v22  ;;  %v4783_v50 = vadd.f32 %v8033_v49, %v8043_v54  ;;  %v3305_v59 = vunpack.c.0.s8 %v3161_v0  ;;  %v4836_v49 = vpop.f32.mrf.mxu0 }
 0x47e   :  { %v4511_v42 = vpack.c.bf16 %v3995_v6, %v3989_v37  ;;  %v4229_v5 = vcvt.s32.f32 %v3653_v13  ;;  %v4235_v31 = vcvt.s32.f32 %v3659_v17  ;;  %v3311_v27 = vunpack.c.1.s8 %v3161_v0  ;;  %v4849_v54 = vpop.f32.mrf.mxu1 }
 0x47f   :  { %5065 = vmatpush.bf16.msrb.mxu2 %v4463_v53  ;;  %v4583_v44 = vpack.c.bf16 %v4139_v55, %v4133_v25  ;;  %v3401_v45 = vunpack.c.0.s8 %v3185_v63  ;;  %v4796_v15 = vadd.f32 %v8035_v34, %v4783_v50  ;;  %v3881_v51 = vcvt.s32.f32 %v3305_v59 }
 0x480   :  { %5078 = vmatpush.bf16.msrb.mxu3 %v4511_v42  ;;  %v3407_v52 = vunpack.c.1.s8 %v3185_v63  ;;  %v3545_v62 = vunpack.c.0.s8 %v3221_v1  ;;  %v4631_v38 = vpack.c.bf16 %v4235_v31, %v4229_v5  ;;  %v3887_v20 = vcvt.s32.f32 %v3311_v27  ;;  %v8054_v63 = vpop.f32.mrf.mxu2 }
 0x481   :  { %5087 = vmatpush.bf16.msrb.mxu0 %v4583_v44  ;;  %v3977_v36 = vcvt.s32.f32 %v3401_v45  ;;  %v3551_v12 = vunpack.c.1.s8 %v3221_v1  ;;  %v3641_v30 = vunpack.c.0.s8 %v3245_v4  ;;  %v3647_v0 = vunpack.c.1.s8 %v3245_v4  ;;  %v3239_v4 = vld [vmem:[#allocation7 + $0x710] sm:$0xff] }
 0x482   :  { %v3983_v9 = vcvt.s32.f32 %v3407_v52  ;;  %v4121_v24 = vcvt.s32.f32 %v3545_v62  ;;  %5100 = vmatpush.bf16.msrb.mxu1 %v4631_v38  ;;  %v4457_v60 = vpack.c.bf16 %v3887_v20, %v3881_v51  ;;  %v3773_v34 = vunpack.c.2.s8 %v3275_v19  ;;  %v4875_v27 = vpop.f32.mrf.mxu3  ;;  %v3269_v52 = vld [vmem:[#allocation7 + $0x800] sm:$0xff] }
 0x483   :  { %v4127_v43 = vcvt.s32.f32 %v3551_v12  ;;  %v3779_v23 = vunpack.c.3.s8 %v3275_v19  ;;  %v4217_v26 = vcvt.s32.f32 %v3641_v30  ;;  %v4223_v32 = vcvt.s32.f32 %v3647_v0  ;;  %v3293_v12 = vld [vmem:[#allocation7 + $0x8c0] sm:$0xff] }
 0x484   :  { %v4505_v33 = vpack.c.bf16 %v3983_v9, %v3977_v36  ;;  %v3869_v1 = vunpack.c.2.s8 %v3299_v7  ;;  %5066 = vmatpush.bf16.msrb.mxu2 %v4457_v60  ;;  %v4349_v16 = vcvt.s32.f32 %v3773_v34  ;;  %v3875_v29 = vunpack.c.3.s8 %v3299_v7 }
 0x485   :  { %v4577_v58 = vpack.c.bf16 %v4127_v43, %v4121_v24  ;;  %v4355_v3 = vcvt.s32.f32 %v3779_v23  ;;  %v4625_v40 = vpack.c.bf16 %v4223_v32, %v4217_v26  ;;  %v4809_v8 = vadd.f32 %v8037_v48, %v4796_v15  ;;  %v8064_v9 = vpop.f32.mrf.mxu0  ;;  %v3209_v43 = vld [vmem:[#allocation7 + $0x620] sm:$0xff] }
 0x486   :  { %5079 = vmatpush.bf16.msrb.mxu3 %v4505_v33  ;;  %v4445_v39 = vcvt.s32.f32 %v3869_v1  ;;  %v4451_v21 = vcvt.s32.f32 %v3875_v29  ;;  %v3533_v56 = vunpack.c.2.s8 %v3215_v14  ;;  %v3539_v37 = vunpack.c.3.s8 %v3215_v14  ;;  %v8066_v24 = vpop.f32.mrf.mxu1  ;;  %v3233_v26 = vld [vmem:[#allocation7 + $0x6e0] sm:$0xff] }
 0x487   :  { %5088 = vmatpush.bf16.msrb.mxu0 %v4577_v58  ;;  %v4691_v47 = vpack.c.bf16 %v4355_v3, %v4349_v16  ;;  %5101 = vmatpush.bf16.msrb.mxu1 %v4625_v40  ;;  %v8060_v22 = vadd.f32 %v8039_v61, %v4809_v8  ;;  %v3629_v6 = vunpack.c.2.s8 %v3239_v4  ;;  %v3635_v13 = vunpack.c.3.s8 %v3239_v4 }
 0x488   :  { %5067 = vmatmul.bf16.vlgmr.msrb.gmra.mxu2 %v7780_v11  ;;  %v4739_v53 = vpack.c.bf16 %v4451_v21, %v4445_v39  ;;  %v4109_v25 = vcvt.s32.f32 %v3533_v56  ;;  %v3761_v55 = vunpack.c.0.s8 %v3275_v19  ;;  %v3767_v48 = vunpack.c.1.s8 %v3275_v19  ;;  %v4862_v31 = vpop.f32.mrf.mxu2 }
 0x489   :  { %5111 = vmatpush.bf16.msra.mxu2 %v4691_v47  ;;  %5080 = vmatmul.bf16.vlgmr.msrb.gmra.mxu3 %v7782_v18  ;;  %v4115_v17 = vcvt.s32.f32 %v3539_v37  ;;  %v4205_v42 = vcvt.s32.f32 %v3629_v6  ;;  %v4211_v5 = vcvt.s32.f32 %v3635_v13  ;;  %v3857_v61 = vunpack.c.0.s8 %v3299_v7 }
 0x48a   :  { %5124 = vmatpush.bf16.msra.mxu3 %v4739_v53  ;;  %v4337_v50 = vcvt.s32.f32 %v3761_v55  ;;  %v4343_v59 = vcvt.s32.f32 %v3767_v48  ;;  %v3863_v44 = vunpack.c.1.s8 %v3299_v7  ;;  %v3521_v51 = vunpack.c.0.s8 %v3215_v14 }
 0x48b   :  { %v4571_v45 = vpack.c.bf16 %v4115_v17, %v4109_v25  ;;  %v4619_v15 = vpack.c.bf16 %v4211_v5, %v4205_v42  ;;  %v4433_v38 = vcvt.s32.f32 %v3857_v61  ;;  %v3527_v36 = vunpack.c.1.s8 %v3215_v14 }
 0x48c   :  { %v4685_v62 = vpack.c.bf16 %v4343_v59, %v4337_v50  ;;  %v4439_v20 = vcvt.s32.f32 %v3863_v44  ;;  %v4097_v19 = vcvt.s32.f32 %v3521_v51  ;;  %v3617_v49 = vunpack.c.0.s8 %v3239_v4  ;;  %v8070_v50 = vld [vmem:[#allocation7 + $0x7d0] sm:$0xff] }
 0x48d   :  { %5089 = vmatpush.bf16.msrb.mxu0 %v4571_v45  ;;  %5102 = vmatpush.bf16.msrb.mxu1 %v4619_v15  ;;  %v3623_v54 = vunpack.c.1.s8 %v3239_v4  ;;  %v4103_v30 = vcvt.s32.f32 %v3527_v36  ;;  %v3749_v0 = vunpack.c.2.s8 %v3269_v52  ;;  %v3755_v60 = vunpack.c.3.s8 %v3269_v52  ;;  %v4888_v59 = vpop.f32.mrf.mxu0 }
 0x48e   :  { %5112 = vmatpush.bf16.msra.mxu2 %v4685_v62  ;;  %v4733_v7 = vpack.c.bf16 %v4439_v20, %v4433_v38  ;;  %v4193_v34 = vcvt.s32.f32 %v3617_v49  ;;  %v3845_v33 = vunpack.c.2.s8 %v3293_v12  ;;  %v3851_v58 = vunpack.c.3.s8 %v3293_v12  ;;  %v4901_v61 = vpop.f32.mrf.mxu1  ;;  %v3287_v62 = vld [vmem:[#allocation7 + $0x890] sm:$0xff] }
 0x48f   :  { %v4199_v23 = vcvt.s32.f32 %v3623_v54  ;;  %v4565_v32 = vpack.c.bf16 %v4103_v30, %v4097_v19  ;;  %v4325_v1 = vcvt.s32.f32 %v3749_v0  ;;  %v4331_v14 = vcvt.s32.f32 %v3755_v60  ;;  %v3204_v30 = vld [vmem:[#allocation7 + $0x5f8] sm:$0xff]  ;;  %v3281_v61 = vld [vmem:[#allocation7 + $0x860] sm:$0xff] }
 0x490   :  { %5125 = vmatpush.bf16.msra.mxu3 %v4733_v7  ;;  %v4421_v3 = vcvt.s32.f32 %v3845_v33  ;;  %v3509_v29 = vunpack.c.2.s8 %v3209_v43  ;;  %v3515_v4 = vunpack.c.3.s8 %v3209_v43  ;;  %v4427_v39 = vcvt.s32.f32 %v3851_v58 }
 0x491   :  { %v4613_v16 = vpack.c.bf16 %v4199_v23, %v4193_v34  ;;  %5090 = vmatpush.bf16.msrb.mxu0 %v4565_v32  ;;  %v4679_v40 = vpack.c.bf16 %v4331_v14, %v4325_v1  ;;  %v3605_v8 = vunpack.c.2.s8 %v3233_v26  ;;  %v3611_v47 = vunpack.c.3.s8 %v3233_v26 }
 0x492   :  { %v4085_v21 = vcvt.s32.f32 %v3509_v29  ;;  %v4091_v56 = vcvt.s32.f32 %v3515_v4  ;;  %v4848_v37 = vadd.f32 %v8049_v46, %v8047_v57  ;;  %v3737_v6 = vunpack.c.0.s8 %v3269_v52 }
 0x493   :  { %5103 = vmatpush.bf16.msrb.mxu1 %v4613_v16  ;;  %5113 = vmatpush.bf16.msra.mxu2 %v4679_v40  ;;  %v4727_v13 = vpack.c.bf16 %v4427_v39, %v4421_v3  ;;  %v4181_v53 = vcvt.s32.f32 %v3605_v8  ;;  %v4187_v25 = vcvt.s32.f32 %v3611_v47  ;;  %v3743_v55 = vunpack.c.1.s8 %v3269_v52 }
 0x494   :  { %v4559_v48 = vpack.c.bf16 %v4091_v56, %v4085_v21  ;;  %v4313_v17 = vcvt.s32.f32 %v3737_v6  ;;  %v3833_v42 = vunpack.c.0.s8 %v3293_v12  ;;  %v3839_v5 = vunpack.c.1.s8 %v3293_v12  ;;  %v3180_v12 = vld [vmem:[#allocation7 + $0x538] sm:$0xff] }
 0x495   :  { %5126 = vmatpush.bf16.msra.mxu3 %v4727_v13  ;;  %v4607_v44 = vpack.c.bf16 %v4187_v25, %v4181_v53  ;;  %v4319_v31 = vcvt.s32.f32 %v3743_v55  ;;  %v3497_v27 = vunpack.c.0.s8 %v3209_v43  ;;  %v3503_v45 = vunpack.c.1.s8 %v3209_v43  ;;  %v3257_v25 = vld [vmem:[#allocation7 + $0x7a0] sm:$0xff] }
 0x496   :  { %5091 = vmatpush.bf16.msrb.mxu0 %v4559_v48  ;;  %v4409_v57 = vcvt.s32.f32 %v3833_v42  ;;  %v4415_v46 = vcvt.s32.f32 %v3839_v5  ;;  %v3593_v15 = vunpack.c.0.s8 %v3233_v26  ;;  %v3599_v51 = vunpack.c.1.s8 %v3233_v26 }
 0x497   :  { %5104 = vmatpush.bf16.msrb.mxu1 %v4607_v44  ;;  %v4673_v52 = vpack.c.bf16 %v4319_v31, %v4313_v17  ;;  %v4073_v38 = vcvt.s32.f32 %v3497_v27  ;;  %v4079_v20 = vcvt.s32.f32 %v3503_v45  ;;  %v3725_v36 = vunpack.c.2.s8 %v8070_v50  ;;  %v3174_v27 = vld [vmem:[#allocation7 + $0x508] sm:$0xff] }
 0x498   :  { %v4721_v19 = vpack.c.bf16 %v4415_v46, %v4409_v57  ;;  %v4169_v49 = vcvt.s32.f32 %v3593_v15  ;;  %v4175_v54 = vcvt.s32.f32 %v3599_v51  ;;  %v3731_v7 = vunpack.c.3.s8 %v8070_v50  ;;  %v3198_v51 = vld [vmem:[#allocation7 + $0x5c8] sm:$0xff] }
 0x499   :  { %5114 = vmatpush.bf16.msra.mxu2 %v4673_v52  ;;  %v4553_v0 = vpack.c.bf16 %v4079_v20, %v4073_v38  ;;  %v4301_v60 = vcvt.s32.f32 %v3725_v36  ;;  %v3821_v43 = vunpack.c.2.s8 %v3287_v62  ;;  %v3827_v34 = vunpack.c.3.s8 %v3287_v62 }
 0x49a   :  { %5127 = vmatpush.bf16.msra.mxu3 %v4721_v19  ;;  %v4601_v23 = vpack.c.bf16 %v4175_v54, %v4169_v49  ;;  %v4307_v33 = vcvt.s32.f32 %v3731_v7  ;;  %v3390_v26 = vunpack.c.2.s8 %v3180_v12  ;;  %v3396_v32 = vunpack.c.3.s8 %v3180_v12 }
 0x49b   :  { %5092 = vmatpush.bf16.msrb.mxu0 %v4553_v0  ;;  %v4397_v1 = vcvt.s32.f32 %v3821_v43  ;;  %v4403_v14 = vcvt.s32.f32 %v3827_v34  ;;  %v3486_v58 = vunpack.c.2.s8 %v3204_v30  ;;  %v3492_v16 = vunpack.c.3.s8 %v3204_v30 }
 0x49c   :  { %5105 = vmatpush.bf16.msrb.mxu1 %v4601_v23  ;;  %v4667_v3 = vpack.c.bf16 %v4307_v33, %v4301_v60  ;;  %v3966_v29 = vcvt.s32.f32 %v3390_v26  ;;  %v3972_v4 = vcvt.s32.f32 %v3396_v32  ;;  %v4861_v40 = vadd.f32 %v8054_v63, %v4848_v37 }
 0x49d   :  { %v4715_v39 = vpack.c.bf16 %v4403_v14, %v4397_v1  ;;  %v4062_v8 = vcvt.s32.f32 %v3486_v58  ;;  %v4068_v47 = vcvt.s32.f32 %v3492_v16  ;;  %v3713_v21 = vunpack.c.0.s8 %v8070_v50 }
 0x49e   :  { %5115 = vmatpush.bf16.msra.mxu2 %v4667_v3  ;;  %v4500_v56 = vpack.c.bf16 %v3972_v4, %v3966_v29  ;;  %v4874_v6 = vadd.f32 %v8056_v35, %v4861_v40  ;;  %5093 = vmatmul.bf16.vlgmr.msrb.gmra.mxu0 %v7895_v41  ;;  %v3719_v13 = vunpack.c.1.s8 %v8070_v50  ;;  %v3809_v53 = vunpack.c.0.s8 %v3287_v62 }
 0x49f   :  { %5128 = vmatpush.bf16.msra.mxu3 %v4715_v39  ;;  %v4548_v55 = vpack.c.bf16 %v4068_v47, %v4062_v8  ;;  %5106 = vmatmul.bf16.vlgmr.msrb.gmra.mxu1 %v7897_v2  ;;  %v4289_v63 = vcvt.s32.f32 %v3713_v21  ;;  %v3815_v37 = vunpack.c.1.s8 %v3287_v62  ;;  %v3378_v48 = vunpack.c.0.s8 %v3180_v12  ;;  %v3228_v21 = vld [vmem:[#allocation7 + $0x6b8] sm:$0xff] }
 0x4a0   :  { %5137 = vmatpush.bf16.msra.mxu0 %v4500_v56  ;;  %v4295_v17 = vcvt.s32.f32 %v3719_v13  ;;  %v4385_v42 = vcvt.s32.f32 %v3809_v53  ;;  %v3384_v5 = vunpack.c.1.s8 %v3180_v12  ;;  %v3474_v59 = vunpack.c.0.s8 %v3204_v30 }
 0x4a1   :  { %5150 = vmatpush.bf16.msra.mxu1 %v4548_v55  ;;  %v4391_v35 = vcvt.s32.f32 %v3815_v37  ;;  %v3954_v44 = vcvt.s32.f32 %v3378_v48  ;;  %v3480_v31 = vunpack.c.1.s8 %v3204_v30  ;;  %v3701_v50 = vunpack.c.2.s8 %v3257_v25  ;;  %v3252_v37 = vld [vmem:[#allocation7 + $0x778] sm:$0xff] }
 0x4a2   :  { %v4661_v45 = vpack.c.bf16 %v4295_v17, %v4289_v63  ;;  %v3960_v57 = vcvt.s32.f32 %v3384_v5  ;;  %v4050_v46 = vcvt.s32.f32 %v3474_v59  ;;  %v3707_v15 = vunpack.c.3.s8 %v3257_v25  ;;  %v3168_v5 = vld [vmem:[#allocation7 + $0x4d8] sm:$0xff] }
 0x4a3   :  { %v4709_v52 = vpack.c.bf16 %v4391_v35, %v4385_v42  ;;  %v4056_v62 = vcvt.s32.f32 %v3480_v31  ;;  %v4277_v38 = vcvt.s32.f32 %v3701_v50  ;;  %v3797_v20 = vunpack.c.2.s8 %v3281_v61  ;;  %v3192_v31 = vld [vmem:[#allocation7 + $0x598] sm:$0xff] }
 0x4a4   :  { %5116 = vmatpush.bf16.msra.mxu2 %v4661_v45  ;;  %v4494_v36 = vpack.c.bf16 %v3960_v57, %v3954_v44  ;;  %v4283_v12 = vcvt.s32.f32 %v3707_v15  ;;  %v3803_v19 = vunpack.c.3.s8 %v3281_v61  ;;  %v3366_v49 = vunpack.c.2.s8 %v3174_v27 }
 0x4a5   :  { %5129 = vmatpush.bf16.msra.mxu3 %v4709_v52  ;;  %v4542_v54 = vpack.c.bf16 %v4056_v62, %v4050_v46  ;;  %v4373_v7 = vcvt.s32.f32 %v3797_v20  ;;  %v3372_v30 = vunpack.c.3.s8 %v3174_v27  ;;  %v3462_v0 = vunpack.c.2.s8 %v3198_v51 }
 0x4a6   :  { %5138 = vmatpush.bf16.msra.mxu0 %v4494_v36  ;;  %v4655_v60 = vpack.c.bf16 %v4283_v12, %v4277_v38  ;;  %v4379_v43 = vcvt.s32.f32 %v3803_v19  ;;  %v3942_v34 = vcvt.s32.f32 %v3366_v49  ;;  %v3468_v23 = vunpack.c.3.s8 %v3198_v51 }
 0x4a7   :  { %5151 = vmatpush.bf16.msra.mxu1 %v4542_v54  ;;  %v3948_v33 = vcvt.s32.f32 %v3372_v30  ;;  %v4038_v26 = vcvt.s32.f32 %v3462_v0  ;;  %v4887_v32 = vadd.f32 %v8064_v9, %v4874_v6  ;;  %v3689_v58 = vunpack.c.0.s8 %v3257_v25 }
 0x4a8   :  { %5117 = vmatpush.bf16.msra.mxu2 %v4655_v60  ;;  %v4703_v1 = vpack.c.bf16 %v4379_v43, %v4373_v7  ;;  %v4044_v14 = vcvt.s32.f32 %v3468_v23  ;;  %v3695_v29 = vunpack.c.1.s8 %v3257_v25  ;;  %v3785_v4 = vunpack.c.0.s8 %v3281_v61  ;;  %v8086_v25 = vpop.f32.mrf.mxu3 }
 0x4a9   :  { %v4488_v16 = vpack.c.bf16 %v3948_v33, %v3942_v34  ;;  %v8082_v3 = vadd.f32 %v8066_v24, %v4887_v32  ;;  %v4265_v39 = vcvt.s32.f32 %v3689_v58  ;;  %v3791_v8 = vunpack.c.1.s8 %v3281_v61  ;;  %v8084_v24 = vpop.f32.mrf.mxu2  ;;  %v3222_v58 = vld [vmem:[#allocation7 + $0x688] sm:$0xff] }
 0x4aa   :  { %5130 = vmatpush.bf16.msra.mxu3 %v4703_v1  ;;  %v4536_v40 = vpack.c.bf16 %v4044_v14, %v4038_v26  ;;  %v3354_v47 = vunpack.c.0.s8 %v3174_v27  ;;  %v4271_v56 = vcvt.s32.f32 %v3695_v29  ;;  %v4361_v13 = vcvt.s32.f32 %v3785_v4 }
 0x4ab   :  { %5139 = vmatpush.bf16.msra.mxu0 %v4488_v16  ;;  %v3360_v9 = vunpack.c.1.s8 %v3174_v27  ;;  %v4367_v6 = vcvt.s32.f32 %v3791_v8  ;;  %v3450_v55 = vunpack.c.0.s8 %v3198_v51  ;;  %v3456_v63 = vunpack.c.1.s8 %v3198_v51  ;;  %v8090_v8 = vpop.f32.mrf.mxu0 }
 0x4ac   :  { %5152 = vmatpush.bf16.msra.mxu1 %v4536_v40  ;;  %v3930_v53 = vcvt.s32.f32 %v3354_v47  ;;  %v4649_v48 = vpack.c.bf16 %v4271_v56, %v4265_v39  ;;  %v3582_v42 = vunpack.c.2.s8 %v3228_v21  ;;  %v3588_v44 = vunpack.c.3.s8 %v3228_v21  ;;  %v3246_v39 = vld [vmem:[#allocation7 + $0x748] sm:$0xff]  ;;  %v8092_v47 = vpop.f32.mrf.mxu1 }
 0x4ad   :  { %v3936_v17 = vcvt.s32.f32 %v3360_v9  ;;  %v4697_v59 = vpack.c.bf16 %v4367_v6, %v4361_v13  ;;  %v4026_v61 = vcvt.s32.f32 %v3450_v55  ;;  %v4032_v35 = vcvt.s32.f32 %v3456_v63  ;;  %v3162_v6 = vld [vmem:[#allocation7 + $0x4a8] sm:$0xff] }
 0x4ae   :  { %5118 = vmatpush.bf16.msra.mxu2 %v4649_v48  ;;  %v4158_v27 = vcvt.s32.f32 %v3582_v42  ;;  %v3678_v45 = vunpack.c.2.s8 %v3252_v37  ;;  %v4164_v46 = vcvt.s32.f32 %v3588_v44  ;;  %v3684_v15 = vunpack.c.3.s8 %v3252_v37 }
 0x4af   :  { %v4482_v50 = vpack.c.bf16 %v3936_v17, %v3930_v53  ;;  %5131 = vmatpush.bf16.msra.mxu3 %v4697_v59  ;;  %v4530_v57 = vpack.c.bf16 %v4032_v35, %v4026_v61  ;;  %v3342_v51 = vunpack.c.2.s8 %v3168_v5  ;;  %v3348_v62 = vunpack.c.3.s8 %v3168_v5  ;;  %v3186_v59 = vld [vmem:[#allocation7 + $0x568] sm:$0xff] }
 0x4b0   :  { %v4254_v52 = vcvt.s32.f32 %v3678_v45  ;;  %v3438_v38 = vunpack.c.2.s8 %v3192_v31  ;;  %v4596_v20 = vpack.c.bf16 %v4164_v46, %v4158_v27  ;;  %v4260_v36 = vcvt.s32.f32 %v3684_v15  ;;  %v4927_v33 = vpop.f32.mrf.mxu3 }
 0x4b1   :  { %5140 = vmatpush.bf16.msra.mxu0 %v4482_v50  ;;  %5153 = vmatpush.bf16.msra.mxu1 %v4530_v57  ;;  %v3918_v12 = vcvt.s32.f32 %v3342_v51  ;;  %v3444_v19 = vunpack.c.3.s8 %v3192_v31  ;;  %v3924_v49 = vcvt.s32.f32 %v3348_v62  ;;  %v3570_v7 = vunpack.c.0.s8 %v3228_v21  ;;  %v4914_v23 = vpop.f32.mrf.mxu2 }
 0x4b2   :  { %5119 = vmatmul.bf16.vlgmr.msra.gmra.mxu2 %v7762_v28  ;;  %5132 = vmatmul.bf16.vlgmr.msra.gmra.mxu3 %v7764_v10  ;;  %v4014_v54 = vcvt.s32.f32 %v3438_v38  ;;  %v3576_v30 = vunpack.c.1.s8 %v3228_v21  ;;  %v4644_v0 = vpack.c.bf16 %v4260_v36, %v4254_v52  ;;  %v3666_v43 = vunpack.c.0.s8 %v3252_v37  ;;  %v3216_v23 = vld [vmem:[#allocation7 + $0x658] sm:$0xff] }
 0x4b3   :  { %5163 = vmatpush.bf16.msrb.mxu2 %v4596_v20  ;;  %v4020_v60 = vcvt.s32.f32 %v3444_v19  ;;  %v3672_v34 = vunpack.c.1.s8 %v3252_v37  ;;  %v4476_v26 = vpack.c.bf16 %v3924_v49, %v3918_v12  ;;  %v4146_v32 = vcvt.s32.f32 %v3570_v7  ;;  %v4940_v7 = vpop.f32.mrf.mxu0 }
 0x4b4   :  { %v4152_v1 = vcvt.s32.f32 %v3576_v30  ;;  %v3330_v14 = vunpack.c.0.s8 %v3168_v5  ;;  %5176 = vmatpush.bf16.msrb.mxu3 %v4644_v0  ;;  %v4242_v29 = vcvt.s32.f32 %v3666_v43  ;;  %v3336_v40 = vunpack.c.1.s8 %v3168_v5  ;;  %v4953_v30 = vpop.f32.mrf.mxu1 }
 0x4b5   :  { %v4524_v16 = vpack.c.bf16 %v4020_v60, %v4014_v54  ;;  %v4248_v4 = vcvt.s32.f32 %v3672_v34  ;;  %5141 = vmatpush.bf16.msra.mxu0 %v4476_v26  ;;  %v3426_v13 = vunpack.c.0.s8 %v3192_v31  ;;  %v3432_v9 = vunpack.c.1.s8 %v3192_v31 }
 0x4b6   :  { %v4590_v21 = vpack.c.bf16 %v4152_v1, %v4146_v32  ;;  %v3906_v56 = vcvt.s32.f32 %v3330_v14  ;;  %v3912_v55 = vcvt.s32.f32 %v3336_v40  ;;  %v3558_v63 = vunpack.c.2.s8 %v3222_v58  ;;  %v3240_v14 = vld [vmem:[#allocation7 + $0x718] sm:$0xff] }
 0x4b7   :  { %5154 = vmatpush.bf16.msra.mxu1 %v4524_v16  ;;  %v4638_v53 = vpack.c.bf16 %v4248_v4, %v4242_v29  ;;  %v3564_v37 = vunpack.c.3.s8 %v3222_v58  ;;  %v4002_v48 = vcvt.s32.f32 %v3426_v13  ;;  %v4008_v17 = vcvt.s32.f32 %v3432_v9  ;;  %v3276_v40 = vld [vmem:[#allocation7 + $0x838] sm:$0xff] }
 0x4b8   :  { %5164 = vmatpush.bf16.msrb.mxu2 %v4590_v21  ;;  %v3654_v42 = vunpack.c.2.s8 %v3246_v39  ;;  %v3660_v5 = vunpack.c.3.s8 %v3246_v39  ;;  %v4470_v61 = vpack.c.bf16 %v3912_v55, %v3906_v56  ;;  %v4134_v35 = vcvt.s32.f32 %v3558_v63 }
 0x4b9   :  { %5177 = vmatpush.bf16.msrb.mxu3 %v4638_v53  ;;  %v4140_v44 = vcvt.s32.f32 %v3564_v37  ;;  %v3318_v50 = vunpack.c.2.s8 %v3162_v6  ;;  %v4518_v27 = vpack.c.bf16 %v4008_v17, %v4002_v48  ;;  %v3324_v57 = vunpack.c.3.s8 %v3162_v6  ;;  %v3300_v37 = vld [vmem:[#allocation7 + $0x8f8] sm:$0xff] }
 0x4ba   :  { %v4230_v45 = vcvt.s32.f32 %v3654_v42  ;;  %v4236_v31 = vcvt.s32.f32 %v3660_v5  ;;  %5142 = vmatpush.bf16.msra.mxu0 %v4470_v61  ;;  %v3414_v51 = vunpack.c.2.s8 %v3186_v59  ;;  %v3420_v52 = vunpack.c.3.s8 %v3186_v59 }
 0x4bb   :  { %v4584_v46 = vpack.c.bf16 %v4140_v44, %v4134_v35  ;;  %v3894_v15 = vcvt.s32.f32 %v3318_v50  ;;  %5155 = vmatpush.bf16.msra.mxu1 %v4518_v27  ;;  %v3900_v38 = vcvt.s32.f32 %v3324_v57  ;;  %v3546_v20 = vunpack.c.0.s8 %v3222_v58 }
 0x4bc   :  { %v4632_v62 = vpack.c.bf16 %v4236_v31, %v4230_v45  ;;  %v3552_v36 = vunpack.c.1.s8 %v3222_v58  ;;  %v3990_v12 = vcvt.s32.f32 %v3414_v51  ;;  %v3996_v19 = vcvt.s32.f32 %v3420_v52 }
 0x4bd   :  { %5165 = vmatpush.bf16.msrb.mxu2 %v4584_v46  ;;  %v3642_v49 = vunpack.c.0.s8 %v3246_v39  ;;  %v3648_v54 = vunpack.c.1.s8 %v3246_v39  ;;  %v4464_v0 = vpack.c.bf16 %v3900_v38, %v3894_v15  ;;  %v4122_v60 = vcvt.s32.f32 %v3546_v20 }
 0x4be   :  { %5178 = vmatpush.bf16.msrb.mxu3 %v4632_v62  ;;  %v4128_v43 = vcvt.s32.f32 %v3552_v36  ;;  %v3306_v34 = vunpack.c.0.s8 %v3162_v6  ;;  %v4512_v33 = vpack.c.bf16 %v3996_v19, %v3990_v12  ;;  %v3312_v1 = vunpack.c.1.s8 %v3162_v6 }
 0x4bf   :  { %v4218_v26 = vcvt.s32.f32 %v3642_v49  ;;  %v4224_v32 = vcvt.s32.f32 %v3648_v54  ;;  %5143 = vmatpush.bf16.msra.mxu0 %v4464_v0  ;;  %v3402_v29 = vunpack.c.0.s8 %v3186_v59  ;;  %v3408_v4 = vunpack.c.1.s8 %v3186_v59  ;;  %v3210_v49 = vld [vmem:[#allocation7 + $0x628] sm:$0xff] }
 0x4c0   :  { %v4578_v58 = vpack.c.bf16 %v4128_v43, %v4122_v60  ;;  %v3882_v16 = vcvt.s32.f32 %v3306_v34  ;;  %5156 = vmatpush.bf16.msra.mxu1 %v4512_v33  ;;  %v3888_v21 = vcvt.s32.f32 %v3312_v1  ;;  %v3534_v56 = vunpack.c.2.s8 %v3216_v23  ;;  %v8100_v1 = vpop.f32.mrf.mxu2 }
 0x4c1   :  { %v4626_v39 = vpack.c.bf16 %v4224_v32, %v4218_v26  ;;  %v3540_v13 = vunpack.c.3.s8 %v3216_v23  ;;  %v3978_v9 = vcvt.s32.f32 %v3402_v29  ;;  %v3984_v53 = vcvt.s32.f32 %v3408_v4  ;;  %v3270_v32 = vld [vmem:[#allocation7 + $0x808] sm:$0xff] }
 0x4c2   :  { %5166 = vmatpush.bf16.msrb.mxu2 %v4578_v58  ;;  %v3630_v55 = vunpack.c.2.s8 %v3240_v14  ;;  %v3636_v63 = vunpack.c.3.s8 %v3240_v14  ;;  %v4458_v6 = vpack.c.bf16 %v3888_v21, %v3882_v16  ;;  %v4110_v48 = vcvt.s32.f32 %v3534_v56  ;;  %v3294_v4 = vld [vmem:[#allocation7 + $0x8c8] sm:$0xff] }
 0x4c3   :  { %5179 = vmatpush.bf16.msrb.mxu3 %v4626_v39  ;;  %v4116_v17 = vcvt.s32.f32 %v3540_v13  ;;  %v3774_v42 = vunpack.c.2.s8 %v3276_v40  ;;  %v4506_v5 = vpack.c.bf16 %v3984_v53, %v3978_v9  ;;  %v3780_v35 = vunpack.c.3.s8 %v3276_v40 }
 0x4c4   :  { %v4206_v61 = vcvt.s32.f32 %v3630_v55  ;;  %v4212_v59 = vcvt.s32.f32 %v3636_v63  ;;  %5144 = vmatpush.bf16.msra.mxu0 %v4458_v6  ;;  %v3870_v27 = vunpack.c.2.s8 %v3300_v37  ;;  %v3876_v45 = vunpack.c.3.s8 %v3300_v37 }
 0x4c5   :  { %v4572_v44 = vpack.c.bf16 %v4116_v17, %v4110_v48  ;;  %v4350_v50 = vcvt.s32.f32 %v3774_v42  ;;  %5157 = vmatpush.bf16.msra.mxu1 %v4506_v5  ;;  %v4356_v57 = vcvt.s32.f32 %v3780_v35  ;;  %v4926_v46 = vadd.f32 %v8086_v25, %v8084_v24  ;;  %v8098_v25 = vld [vmem:[#allocation7 + $0x6e8] sm:$0xff] }
 0x4c6   :  { %v4620_v31 = vpack.c.bf16 %v4212_v59, %v4206_v61  ;;  %v3522_v15 = vunpack.c.0.s8 %v3216_v23  ;;  %v4446_v51 = vcvt.s32.f32 %v3870_v27  ;;  %v4452_v52 = vcvt.s32.f32 %v3876_v45 }
 0x4c7   :  { %5167 = vmatpush.bf16.msrb.mxu2 %v4572_v44  ;;  %v3528_v62 = vunpack.c.1.s8 %v3216_v23  ;;  %v3618_v38 = vunpack.c.0.s8 %v3240_v14  ;;  %v4692_v20 = vpack.c.bf16 %v4356_v57, %v4350_v50  ;;  %5145 = vmatmul.bf16.vlgmr.msra.gmra.mxu0 %v7780_v11  ;;  %v3624_v12 = vunpack.c.1.s8 %v3240_v14  ;;  %v8102_v14 = vpop.f32.mrf.mxu3 }
 0x4c8   :  { %5180 = vmatpush.bf16.msrb.mxu3 %v4620_v31  ;;  %v4098_v36 = vcvt.s32.f32 %v3522_v15  ;;  %v3762_v19 = vunpack.c.0.s8 %v3276_v40  ;;  %v4740_v54 = vpack.c.bf16 %v4452_v52, %v4446_v51  ;;  %5158 = vmatmul.bf16.vlgmr.msra.gmra.mxu1 %v7782_v18  ;;  %v3768_v24 = vunpack.c.1.s8 %v3276_v40  ;;  %v3264_v15 = vld [vmem:[#allocation7 + $0x7d8] sm:$0xff] }
 0x4c9   :  { %v4104_v7 = vcvt.s32.f32 %v3528_v62  ;;  %v4194_v30 = vcvt.s32.f32 %v3618_v38  ;;  %5189 = vmatpush.bf16.msrb.mxu0 %v4692_v20  ;;  %v4200_v0 = vcvt.s32.f32 %v3624_v12  ;;  %v3858_v43 = vunpack.c.0.s8 %v3300_v37 }
 0x4ca   :  { %v4338_v60 = vcvt.s32.f32 %v3762_v19  ;;  %v3864_v34 = vunpack.c.1.s8 %v3300_v37  ;;  %5202 = vmatpush.bf16.msrb.mxu1 %v4740_v54  ;;  %v4344_v11 = vcvt.s32.f32 %v3768_v24  ;;  %v3510_v33 = vunpack.c.2.s8 %v3210_v49  ;;  %v8115_v54 = vpop.f32.mrf.mxu0 }
 0x4cb   :  { %v4566_v23 = vpack.c.bf16 %v4104_v7, %v4098_v36  ;;  %v3516_v26 = vunpack.c.3.s8 %v3210_v49  ;;  %v4614_v18 = vpack.c.bf16 %v4200_v0, %v4194_v30  ;;  %v4434_v58 = vcvt.s32.f32 %v3858_v43  ;;  %v8117_v7 = vpop.f32.mrf.mxu1 }
 0x4cc   :  { %v4440_v16 = vcvt.s32.f32 %v3864_v34  ;;  %v3606_v29 = vunpack.c.2.s8 %v8098_v25  ;;  %v4686_v40 = vpack.c.bf16 %v4344_v11, %v4338_v60  ;;  %v4086_v39 = vcvt.s32.f32 %v3510_v33  ;;  %v6490_v33 = vld [vmem:[%s8282_s3 + $0x1f8] sm:$0xff] }
 0x4cd   :  { %5168 = vmatpush.bf16.msrb.mxu2 %v4566_v23  ;;  %v4092_v21 = vcvt.s32.f32 %v3516_v26  ;;  %v3612_v56 = vunpack.c.3.s8 %v8098_v25  ;;  %5181 = vmatpush.bf16.msrb.mxu3 %v4614_v18  ;;  %v3750_v53 = vunpack.c.2.s8 %v3270_v32  ;;  %v3756_v55 = vunpack.c.3.s8 %v3270_v32 }
 0x4ce   :  { %v4734_v13 = vpack.c.bf16 %v4440_v16, %v4434_v58  ;;  %v4182_v9 = vcvt.s32.f32 %v3606_v29  ;;  %5190 = vmatpush.bf16.msrb.mxu0 %v4686_v40  ;;  %v3846_v6 = vunpack.c.2.s8 %v3294_v4  ;;  %v3852_v48 = vunpack.c.3.s8 %v3294_v4  ;;  %v3258_v58 = vld [vmem:[#allocation7 + $0x7a8] sm:$0xff] }
 0x4cf   :  { %v4560_v63 = vpack.c.bf16 %v4092_v21, %v4086_v39  ;;  %v4188_v37 = vcvt.s32.f32 %v3612_v56  ;;  %v4326_v17 = vcvt.s32.f32 %v3750_v53  ;;  %v4332_v42 = vcvt.s32.f32 %v3756_v55  ;;  %v4979_v38 = vpop.f32.mrf.mxu3  ;;  %v6481_v40 = vld [vmem:[%s8282_s3 + $0x1b0] sm:$0xff] }
 0x4d0   :  { %5203 = vmatpush.bf16.msrb.mxu1 %v4734_v13  ;;  %v4939_v5 = vadd.f32 %v8090_v8, %v4926_v46  ;;  %v3498_v61 = vunpack.c.0.s8 %v3210_v49  ;;  %v4422_v35 = vcvt.s32.f32 %v3846_v6  ;;  %v4428_v44 = vcvt.s32.f32 %v3852_v48  ;;  %v4966_v46 = vpop.f32.mrf.mxu2  ;;  %v3282_v53 = vld [vmem:[#allocation7 + $0x868] sm:$0xff]  ;;  %v6488_v38 = vld [vmem:[%s8282_s3 + $0x1e8] sm:$0xff] }
 0x4d1   :  { %5169 = vmatpush.bf16.msrb.mxu2 %v4560_v63  ;;  %v4608_v59 = vpack.c.bf16 %v4188_v37, %v4182_v9  ;;  %v3504_v50 = vunpack.c.1.s8 %v3210_v49  ;;  %v4680_v27 = vpack.c.bf16 %v4332_v42, %v4326_v17  ;;  %v3594_v57 = vunpack.c.0.s8 %v8098_v25  ;;  %v3288_v49 = vld [vmem:[#allocation7 + $0x898] sm:$0xff]  ;;  %v6489_v17 = vld [vmem:[%s8282_s3 + $0x1f0] sm:$0xff] }
 0x4d2   :  { %v8108_v45 = vadd.f32 %v8092_v47, %v4939_v5  ;;  %v4074_v31 = vcvt.s32.f32 %v3498_v61  ;;  %v4728_v51 = vpack.c.bf16 %v4428_v44, %v4422_v35  ;;  %v3600_v62 = vunpack.c.1.s8 %v8098_v25  ;;  %v6482_v47 = vld [vmem:[%s8282_s3 + $0x1b8] sm:$0xff]  ;;  %v6480_v35 = vld [vmem:[%s8282_s3 + $0x1a8] sm:$0xff] }
 0x4d3   :  { %5182 = vmatpush.bf16.msrb.mxu3 %v4608_v59  ;;  %v4080_v52 = vcvt.s32.f32 %v3504_v50  ;;  %v3738_v8 = vunpack.c.0.s8 %v3270_v32  ;;  %5191 = vmatpush.bf16.msrb.mxu0 %v4680_v27  ;;  %v4170_v20 = vcvt.s32.f32 %v3594_v57  ;;  %v3744_v36 = vunpack.c.1.s8 %v3270_v32 }
 0x4d4   :  { %v3834_v12 = vunpack.c.0.s8 %v3294_v4  ;;  %v3840_v19 = vunpack.c.1.s8 %v3294_v4  ;;  %5204 = vmatpush.bf16.msrb.mxu1 %v4728_v51  ;;  %v4176_v24 = vcvt.s32.f32 %v3600_v62  ;;  %v3726_v0 = vunpack.c.2.s8 %v3264_v15 }
 0x4d5   :  { %v4554_v30 = vpack.c.bf16 %v4080_v52, %v4074_v31  ;;  %v4314_v25 = vcvt.s32.f32 %v3738_v8  ;;  %v4320_v60 = vcvt.s32.f32 %v3744_v36  ;;  %v3732_v23 = vunpack.c.3.s8 %v3264_v15  ;;  %v5005_v31 = vpop.f32.mrf.mxu1  ;;  %v6479_v36 = vld [vmem:[%s8282_s3 + $0x1a0] sm:$0xff] }
 0x4d6   :  { %v4410_v43 = vcvt.s32.f32 %v3834_v12  ;;  %v4416_v34 = vcvt.s32.f32 %v3840_v19  ;;  %v4602_v11 = vpack.c.bf16 %v4176_v24, %v4170_v20  ;;  %v4302_v26 = vcvt.s32.f32 %v3726_v0  ;;  %v6478_v0 = vld [vmem:[%s8282_s3 + $0x198] sm:$0xff] }
 0x4d7   :  { %5170 = vmatpush.bf16.msrb.mxu2 %v4554_v30  ;;  %v3822_v32 = vunpack.c.2.s8 %v3288_v49  ;;  %v3828_v18 = vunpack.c.3.s8 %v3288_v49  ;;  %v4674_v16 = vpack.c.bf16 %v4320_v60, %v4314_v25  ;;  %v4308_v4 = vcvt.s32.f32 %v3732_v23  ;;  %v6487_v25 = vld [vmem:[%s8282_s3 + $0x1e0] sm:$0xff]  ;;  %v8145_v60 = vld [vmem:[#allocation8] sm:$0xff]  ;;  %v6494_v31 = vld [vmem:[%s8282_s3 + $0x218] sm:$0xff] }
 0x4d8   :  { %v4722_v29 = vpack.c.bf16 %v4416_v34, %v4410_v43  ;;  %v3714_v39 = vunpack.c.0.s8 %v3264_v15  ;;  %5183 = vmatpush.bf16.msrb.mxu3 %v4602_v11  ;;  %v3720_v13 = vunpack.c.1.s8 %v3264_v15  ;;  %v3810_v9 = vunpack.c.0.s8 %v3288_v49  ;;  %v6486_v11 = vld [vmem:[%s8282_s3 + $0x1d8] sm:$0xff] }
 0x4d9   :  { %v4398_v21 = vcvt.s32.f32 %v3822_v32  ;;  %v4404_v56 = vcvt.s32.f32 %v3828_v18  ;;  %5192 = vmatpush.bf16.msrb.mxu0 %v4674_v16  ;;  %v4668_v55 = vpack.c.bf16 %v4308_v4, %v4302_v26  ;;  %v3816_v37 = vunpack.c.1.s8 %v3288_v49  ;;  %v6548_v18 = vld [vmem:[#allocation8 + $0x8] sm:$0xff] }
 0x4da   :  { %5205 = vmatpush.bf16.msrb.mxu1 %v4722_v29  ;;  %v4290_v63 = vcvt.s32.f32 %v3714_v39  ;;  %v3702_v6 = vunpack.c.2.s8 %v3258_v58  ;;  %5171 = vmatmul.bf16.vlgmr.msrb.gmra.mxu2 %v7895_v41  ;;  %v4296_v42 = vcvt.s32.f32 %v3720_v13  ;;  %v4386_v5 = vcvt.s32.f32 %v3810_v9  ;;  %v4992_v41 = vpop.f32.mrf.mxu0  ;;  %v6477_v16 = vld [vmem:[%s8282_s3 + $0x190] sm:$0xff]  ;;  %v6506_v29 = vld [vmem:[%s8282_s3 + $0x278] sm:$0xff]  ;;  %v6476_v9 = vld [vmem:[%s8282_s3 + $0x188] sm:$0xff] }
 0x4db   :  { %5637 = vmatpush.bf16.msra.mxu2 %v6482_v47  ;;  %v4716_v48 = vpack.c.bf16 %v4404_v56, %v4398_v21  ;;  %v3708_v61 = vunpack.c.3.s8 %v3258_v58  ;;  %5184 = vmatmul.bf16.vlgmr.msrb.gmra.mxu3 %v7897_v2  ;;  %v4392_v59 = vcvt.s32.f32 %v3816_v37  ;;  %v3798_v50 = vunpack.c.2.s8 %v3282_v53  ;;  %v6485_v39 = vld [vmem:[%s8282_s3 + $0x1d0] sm:$0xff] }
 0x4dc   :  { %5650 = vmatpush.bf16.msra.mxu3 %v6490_v33  ;;  %v4278_v44 = vcvt.s32.f32 %v3702_v6  ;;  %v3804_v27 = vunpack.c.3.s8 %v3282_v53  ;;  %v4662_v57 = vpack.c.bf16 %v4296_v42, %v4290_v63  ;;  %v3690_v51 = vunpack.c.0.s8 %v3258_v58  ;;  %v6498_v33 = vld [vmem:[%s8282_s3 + $0x238] sm:$0xff]  ;;  %v6497_v21 = vld [vmem:[%s8282_s3 + $0x230] sm:$0xff] }
 0x4dd   :  { %v4284_v15 = vcvt.s32.f32 %v3708_v61  ;;  %v3696_v52 = vunpack.c.1.s8 %v3258_v58  ;;  %5193 = vmatpush.bf16.msrb.mxu0 %v4668_v55  ;;  %v4710_v62 = vpack.c.bf16 %v4392_v59, %v4386_v5  ;;  %v4374_v8 = vcvt.s32.f32 %v3798_v50  ;;  %v6483_v61 = vld [vmem:[%s8282_s3 + $0x1c0] sm:$0xff] }
 0x4de   :  { %5206 = vmatpush.bf16.msrb.mxu1 %v4716_v48  ;;  %v4380_v2 = vcvt.s32.f32 %v3804_v27  ;;  %v3786_v46 = vunpack.c.0.s8 %v3282_v53  ;;  %v3792_v20 = vunpack.c.1.s8 %v3282_v53  ;;  %v4266_v19 = vcvt.s32.f32 %v3690_v51  ;;  %v6505_v53 = vld [vmem:[%s8282_s3 + $0x270] sm:$0xff]  ;;  %v6495_v59 = vld [vmem:[%s8282_s3 + $0x220] sm:$0xff] }
 0x4df   :  { %5638 = vmatpush.bf16.msra.mxu2 %v6481_v40  ;;  %v4656_v12 = vpack.c.bf16 %v4284_v15, %v4278_v44  ;;  %v4272_v49 = vcvt.s32.f32 %v3696_v52  ;;  %v5215_v43 = vperm.slane %v8145_v60, 7  ;;  %v5216_v58 = vperm.slane %v6548_v18, 7  ;;  %v6503_v27 = vld [vmem:[%s8282_s3 + $0x260] sm:$0xff] }
 0x4e0   :  { %5651 = vmatpush.bf16.msra.mxu3 %v6489_v17  ;;  %v4704_v47 = vpack.c.bf16 %v4380_v2, %v4374_v8  ;;  %v4362_v30 = vcvt.s32.f32 %v3786_v46  ;;  %v4368_v24 = vcvt.s32.f32 %v3792_v20  ;;  %v5227_v40 = vperm.slane %v8145_v60, 3  ;;  %v6549_v15 = vld [vmem:[#allocation8 + $0x18] sm:$0xff]  ;;  %v6502_v8 = vld [vmem:[%s8282_s3 + $0x258] sm:$0xff] }
 0x4e1   :  { %5194 = vmatpush.bf16.msrb.mxu0 %v4662_v57  ;;  %v4650_v34 = vpack.c.bf16 %v4272_v49, %v4266_v19  ;;  %v5016_v26 = vpop.f32.mrf.mxu2  ;;  %v5221_v4 = vmul.f32 %v5215_v43, %v8060_v22  ;;  %v5004_v56 = vadd.f32 %v8117_v7, %v8115_v54  ;;  %v5222_v13 = vmul.f32 %v5216_v58, %v8082_v3  ;;  %v6484_v3 = vld [vmem:[%s8282_s3 + $0x1c8] sm:$0xff]  ;;  %v6501_v19 = vld [vmem:[%s8282_s3 + $0x250] sm:$0xff]  ;;  %v6491_v43 = vld [vmem:[%s8282_s3 + $0x200] sm:$0xff] }
 0x4e2   :  { %5207 = vmatpush.bf16.msrb.mxu1 %v4710_v62  ;;  %v4698_v23 = vpack.c.bf16 %v4368_v24, %v4362_v30  ;;  %v5029_v32 = vpop.f32.mrf.mxu3  ;;  %v5228_v22 = vperm.slane %v6548_v18, 3  ;;  %v6496_v54 = vld [vmem:[%s8282_s3 + $0x228] sm:$0xff]  ;;  %v4965_v50 = vadd.f32 %v8100_v1, %v8108_v45  ;;  %v5218_v51 = vperm.slane %v6549_v15, 7  ;;  %v6550_v1 = vld [vmem:[#allocation8 + $0x10] sm:$0xff]  ;;  %v6513_v24 = vld [vmem:[%s8282_s3 + $0x2b0] sm:$0xff] }
 0x4e3   :  { %5639 = vmatpush.bf16.msra.mxu2 %v6480_v35  ;;  %v5017_v55 = vadd.f32 %v5016_v26, %v5004_v56  ;;  %v5233_v63 = vadd.f32 %v5227_v40, %v5221_v4  ;;  %v5217_v45 = vperm.slane %v6550_v1, 7  ;;  %v6492_v49 = vld [vmem:[%s8282_s3 + $0x208] sm:$0xff]  ;;  %v6509_v56 = vld [vmem:[%s8282_s3 + $0x290] sm:$0xff] }
 0x4e4   :  { %5652 = vmatpush.bf16.msra.mxu3 %v6488_v38  ;;  %v5234_v6 = vadd.f32 %v5228_v22, %v5222_v13  ;;  %v4978_v62 = vadd.f32 %v8102_v14, %v4965_v50  ;;  %v6493_v38 = vld [vmem:[%s8282_s3 + $0x210] sm:$0xff]  ;;  %v5229_v14 = vperm.slane %v6550_v1, 3  ;;  %v6508_v13 = vld [vmem:[%s8282_s3 + $0x288] sm:$0xff] }
 0x4e5   :  { %5195 = vmatpush.bf16.msrb.mxu0 %v4656_v12  ;;  %v5030_v17 = vadd.f32 %v5029_v32, %v5017_v55  ;;  %v5239_v5 = vmax.f32 %v5233_v63, 0.0  ;;  %v6511_v32 = vld [vmem:[%s8282_s3 + $0x2a0] sm:$0xff]  ;;  %v6522_v63 = vld [vmem:[%s8282_s3 + $0x2f8] sm:$0xff]  ;;  %v6520_v50 = vld [vmem:[%s8282_s3 + $0x2e8] sm:$0xff] }
 0x4e6   :  { %5208 = vmatpush.bf16.msrb.mxu1 %v4704_v47  ;;  %v5240_v44 = vmax.f32 %v5234_v6, 0.0  ;;  %v5223_v12 = vmul.f32 %v5217_v45, %v4978_v62  ;;  %v6514_v47 = vld [vmem:[%s8282_s3 + $0x2b8] sm:$0xff]  ;;  %v6516_v1 = vld [vmem:[%s8282_s3 + $0x2c8] sm:$0xff]  ;;  %v6515_v45 = vld [vmem:[%s8282_s3 + $0x2c0] sm:$0xff] }
 0x4e7   :  { %5640 = vmatpush.bf16.msra.mxu2 %v6479_v36  ;;  %v5245_v41 = vpack.c.bf16 %v5239_v5, %v5239_v5  ;;  %v5230_v36 = vperm.slane %v6549_v15, 3  ;;  %v6518_v15 = vld [vmem:[%s8282_s3 + $0x2d8] sm:$0xff] }
 0x4e8   :  { %5653 = vmatpush.bf16.msra.mxu3 %v6487_v25  ;;  %v5246_v52 = vpack.c.bf16 %v5240_v44, %v5240_v44  ;;  %v5235_v25 = vadd.f32 %v5229_v14, %v5223_v12 }
 0x4e9   :  { %5196 = vmatpush.bf16.msrb.mxu0 %v4650_v34  ;;  %v5018_v7 = vpop.f32.mrf.mxu2 }
 0x4ea   :  { %5209 = vmatpush.bf16.msrb.mxu1 %v4698_v23  ;;  %v5031_v37 = vpop.f32.mrf.mxu3  ;;  %v6512_v23 = vld [vmem:[%s8282_s3 + $0x2a8] sm:$0xff] }
 0x4eb   :  { %5641 = vmatpush.bf16.msra.mxu2 %v6478_v0  ;;  %v6500_v0 = vld [vmem:[%s8282_s3 + $0x248] sm:$0xff] }
 0x4ec   :  { %5654 = vmatpush.bf16.msra.mxu3 %v6486_v11  ;;  %5197 = vmatmul.bf16.vlgmr.msrb.gmra.mxu0 %v7762_v28  ;;  %v6475_v28 = vld [vmem:[%s8282_s3 + $0x180] sm:$0xff]  ;;  %v5241_v11 = vmax.f32 %v5235_v25, 0.0 }
 0x4ed   :  { %5663 = vmatpush.bf16.msra.mxu0 %v6498_v33  ;;  %5210 = vmatmul.bf16.vlgmr.msrb.gmra.mxu1 %v7764_v10  ;;  %v6504_v10 = vld [vmem:[%s8282_s3 + $0x268] sm:$0xff]  ;;  %v6499_v33 = vld [vmem:[%s8282_s3 + $0x240] sm:$0xff] }
 0x4ee   :  { %5676 = vmatpush.bf16.msra.mxu1 %v6506_v29  ;;  %v5247_v18 = vpack.c.bf16 %v5241_v11, %v5241_v11  ;;  %v6510_v29 = vld [vmem:[%s8282_s3 + $0x298] sm:$0xff] }
 0x4ef   :  { %5642 = vmatpush.bf16.msra.mxu2 %v6477_v16 }
 0x4f0   :  { %5655 = vmatpush.bf16.msra.mxu3 %v6485_v39 }
 0x4f1   :  { %5664 = vmatpush.bf16.msra.mxu0 %v6497_v21 }
 0x4f2   :  { %5677 = vmatpush.bf16.msra.mxu1 %v6505_v53  ;;  %v6507_v53 = vld [vmem:[%s8282_s3 + $0x280] sm:$0xff] }
 0x4f3   :  { %5643 = vmatpush.bf16.msra.mxu2 %v6476_v9  ;;  %v5042_v48 = vpop.f32.mrf.mxu0 }
 0x4f4   :  { %v5055_v42 = vpop.f32.mrf.mxu1  ;;  %5656 = vmatpush.bf16.msra.mxu3 %v6484_v3  ;;  %v5043_v35 = vadd.f32 %v5042_v48, %v5030_v17 }
 0x4f5   :  { %5665 = vmatpush.bf16.msra.mxu0 %v6496_v54  ;;  %v6521_v54 = vld [vmem:[%s8282_s3 + $0x2f0] sm:$0xff] }
 0x4f6   :  { %5678 = vmatpush.bf16.msra.mxu1 %v6504_v10  ;;  %v5056_v57 = vadd.f32 %v5055_v42, %v5043_v35  ;;  %v6551_v10 = vld [vmem:[#allocation8 + $0x20] sm:$0xff] }
 0x4f7   :  { %5644 = vmatpush.bf16.msra.mxu2 %v6475_v28  ;;  %v5219_v48 = vperm.slane %v6551_v10, 7  ;;  %v5231_v42 = vperm.slane %v6551_v10, 3 }
 0x4f8   :  { %5657 = vmatpush.bf16.msra.mxu3 %v6483_v61  ;;  %v5224_v20 = vmul.f32 %v5218_v51, %v5056_v57  ;;  %v6517_v51 = vld [vmem:[%s8282_s3 + $0x2d0] sm:$0xff] }
 0x4f9   :  { %5666 = vmatpush.bf16.msra.mxu0 %v6495_v59 }
 0x4fa   :  { %5645 = vmatmul.bf16.vlgmr.msra.gmra.mxu2 %v5245_v41  ;;  %5679 = vmatpush.bf16.msra.mxu1 %v6503_v27  ;;  %v5236_v30 = vadd.f32 %v5230_v36, %v5224_v20  ;;  %v6519_v41 = vld [vmem:[%s8282_s3 + $0x2e0] sm:$0xff]  ;;  %s6689_s3 = smov [#allocation10]  }
 0x4fb   :  { %v5044_v2 = vpop.f32.mrf.mxu0  ;;  %5658 = vmatmul.bf16.vlgmr.msra.gmra.mxu3 %v5246_v52  ;;  %5689 = vmatpush.bf16.msrb.mxu2 %v6514_v47  ;;  %s5735_s6 = sshll.u32 %s6689_s3, 4  ;;  %s5736_s6 = int_to_ptr.vmem [resolvable:$true] %s5735_s6 }
 0x4fc   :  { %v5057_v46 = vpop.f32.mrf.mxu1  ;;  %v5242_v34 = vmax.f32 %v5236_v30, 0.0  ;;  %5702 = vmatpush.bf16.msrb.mxu3 %v6522_v63 }
 0x4fd   :  { %5667 = vmatpush.bf16.msra.mxu0 %v6494_v31 }
 0x4fe   :  { %5680 = vmatpush.bf16.msra.mxu1 %v6502_v8  ;;  %v5248_v26 = vpack.c.bf16 %v5242_v34, %v5242_v34 }
 0x4ff   :  { %5690 = vmatpush.bf16.msrb.mxu2 %v6513_v24 }
 0x500   :  { %5703 = vmatpush.bf16.msrb.mxu3 %v6521_v54 }
 0x501   :  { %5668 = vmatpush.bf16.msra.mxu0 %v6493_v38 }
 0x502   :  { %5681 = vmatpush.bf16.msra.mxu1 %v6501_v19 }
 0x503   :  { %5691 = vmatpush.bf16.msrb.mxu2 %v6512_v23 }
 0x504   :  { %5704 = vmatpush.bf16.msrb.mxu3 %v6520_v50 }
 0x505   :  { %5669 = vmatpush.bf16.msra.mxu0 %v6492_v49  ;;  %v6552_v49 = vld [vmem:[#allocation8 + $0x28] sm:$0xff] }
 0x506   :  { %5682 = vmatpush.bf16.msra.mxu1 %v6500_v0  ;;  %v5220_v30 = vperm.slane %v6552_v49, 7  ;;  %v5232_v25 = vperm.slane %v6552_v49, 3 }
 0x507   :  { %5692 = vmatpush.bf16.msrb.mxu2 %v6511_v32 }
 0x508   :  { %5705 = vmatpush.bf16.msrb.mxu3 %v6519_v41 }
 0x509   :  { %5670 = vmatpush.bf16.msra.mxu0 %v6491_v43 }
 0x50a   :  { %5683 = vmatpush.bf16.msra.mxu1 %v6499_v33 }
 0x50b   :  { %v5068_v58 = vpop.f32.mrf.mxu2  ;;  %5693 = vmatpush.bf16.msrb.mxu2 %v6510_v29 }
 0x50c   :  { %v5081_v16 = vpop.f32.mrf.mxu3  ;;  %5671 = vmatmul.bf16.vlgmr.msra.gmra.mxu0 %v5247_v18  ;;  %5706 = vmatpush.bf16.msrb.mxu3 %v6518_v15 }
 0x50d   :  { %5684 = vmatmul.bf16.vlgmr.msra.gmra.mxu1 %v5248_v26  ;;  %v5082_v55 = vadd.f32 %v5081_v16, %v5068_v58  ;;  %v5348_v26 = vperm.slane %v8145_v60, 5 }
 0x50f   :  { %5694 = vmatpush.bf16.msrb.mxu2 %v6509_v56 }
 0x510   :  { %5707 = vmatpush.bf16.msrb.mxu3 %v6517_v51 }
 0x513   :  { %v5070_v4 = vpop.f32.mrf.mxu2  ;;  %5695 = vmatpush.bf16.msrb.mxu2 %v6508_v13 }
 0x514   :  { %v5083_v40 = vpop.f32.mrf.mxu3  ;;  %5708 = vmatpush.bf16.msrb.mxu3 %v6516_v1 }
 0x517   :  { %5696 = vmatpush.bf16.msrb.mxu2 %v6507_v53 }
 0x518   :  { %5709 = vmatpush.bf16.msrb.mxu3 %v6515_v45 }
 0x51b   :  { %v5094_v39 = vpop.f32.mrf.mxu0 }
 0x51c   :  { %v5107_v21 = vpop.f32.mrf.mxu1  ;;  %v5095_v3 = vadd.f32 %v5094_v39, %v5082_v55 }
 0x51e   :  { %v5108_v7 = vadd.f32 %v5107_v21, %v5095_v3 }
 0x523   :  { %v5096_v22 = vpop.f32.mrf.mxu0 }
 0x524   :  { %v5109_v9 = vpop.f32.mrf.mxu1 }
 0x535   :  { %v5120_v37 = vpop.f32.mrf.mxu2  ;;  %v5133_v28 = vpop.f32.mrf.mxu3 }
 0x536   :  { %v5121_v6 = vadd.f32 %v5120_v37, %v5108_v7  ;;  %v5720_v7 = vpop.permute.xlu0 %5719  ;;  %v5726_v37 = vpop.permute.xlu1 %5725 }
 0x538   :  { %v5134_v17 = vadd.f32 %v5133_v28, %v5121_v6 }
 0x53a   :  { %v5225_v5 = vmul.f32 %v5219_v48, %v5134_v17 }
 0x53c   :  { %v5237_v61 = vadd.f32 %v5231_v42, %v5225_v5 }
 0x53d   :  { %v5122_v59 = vpop.f32.mrf.mxu2  ;;  %v5135_v44 = vpop.f32.mrf.mxu3 }
 0x53e   :  { %v5243_v35 = vmax.f32 %v5237_v61, 0.0 }
 0x540   :  { %v5249_v27 = vpack.c.bf16 %v5243_v35, %v5243_v35 }
 0x542   :  { %5697 = vmatmul.bf16.vlgmr.msrb.gmra.mxu2 %v5249_v27 }
 0x544   :  { %v5146_v31 = vpop.f32.mrf.mxu0 }
 0x545   :  { %v5159_v57 = vpop.f32.mrf.mxu1 }
 0x546   :  { %v5160_v46 = vadd.f32 %v5159_v57, %v5146_v31 }
 0x54c   :  { %v5148_v52 = vpop.f32.mrf.mxu0 }
 0x54d   :  { %v5161_v62 = vpop.f32.mrf.mxu1 }
 0x55d   :  { %v5172_v8 = vpop.f32.mrf.mxu2 }
 0x55e   :  { %v5185_v2 = vpop.f32.mrf.mxu3  ;;  %v5173_v38 = vadd.f32 %v5172_v8, %v5160_v46 }
 0x560   :  { %v5186_v12 = vadd.f32 %v5185_v2, %v5173_v38 }
 0x565   :  { %v5174_v20 = vpop.f32.mrf.mxu2 }
 0x566   :  { %v5187_v36 = vpop.f32.mrf.mxu3 }
 0x569   :  { %v5198_v14 = vpop.f32.mrf.mxu0 }
 0x56a   :  { %v5211_v19 = vpop.f32.mrf.mxu1  ;;  %v5199_v47 = vadd.f32 %v5198_v14, %v5186_v12 }
 0x56c   :  { %v5212_v24 = vadd.f32 %v5211_v19, %v5199_v47 }
 0x56e   :  { %v5226_v0 = vmul.f32 %v5220_v30, %v5212_v24 }
 0x570   :  { %v5238_v43 = vadd.f32 %v5232_v25, %v5226_v0 }
 0x571   :  { %v5200_v34 = vpop.f32.mrf.mxu0 }
 0x572   :  { %v5213_v23 = vpop.f32.mrf.mxu1  ;;  %v5244_v11 = vmax.f32 %v5238_v43, 0.0 }
 0x574   :  { %v5250_v33 = vpack.c.bf16 %v5244_v11, %v5244_v11 }
 0x576   :  { %5710 = vmatmul.bf16.vlgmr.msrb.gmra.mxu3 %v5250_v33 }
 0x57d   :  { %v5646_v32 = vpop.f32.mrf.mxu2 }
 0x57e   :  { %v5647_v18 = vadd.f32 %v5646_v32, %v5348_v26  ;;  %v5659_v58 = vpop.f32.mrf.mxu3 }
 0x580   :  { %v5660_v16 = vadd.f32 %v5659_v58, %v5647_v18 }
 0x585   :  { %v5648_v29 = vpop.f32.mrf.mxu2 }
 0x586   :  { %v5661_v4 = vpop.f32.mrf.mxu3 }
 0x589   :  { %v5672_v40 = vpop.f32.mrf.mxu0 }
 0x58a   :  { %v5673_v39 = vadd.f32 %v5672_v40, %v5660_v16  ;;  %v5685_v21 = vpop.f32.mrf.mxu1 }
 0x58c   :  { %v5686_v56 = vadd.f32 %v5685_v21, %v5673_v39 }
 0x591   :  { %v5674_v13 = vpop.f32.mrf.mxu0 }
 0x592   :  { %v5687_v22 = vpop.f32.mrf.mxu1 }
 0x5c5   :  { %v5698_v9 = vpop.f32.mrf.mxu2 }
 0x5c6   :  { %v5699_v55 = vadd.f32 %v5698_v9, %v5686_v56 }
 0x5cd   :  { %v5700_v53 = vpop.f32.mrf.mxu2 }
 0x5f9   :  { %v5711_v63 = vpop.f32.mrf.mxu3 }
 0x5fa   :  { %v5712_v3 = vadd.f32 %v5711_v63, %v5699_v55 }
 0x5fc   :  { %6534 = vtanh.f32 %v5712_v3 }
 0x601   :  { %v5713_v60 = vpop.f32.mrf.mxu3 }
 0x602   :  { %v6535_v54 = vpop.eup %6534 }
 0x603   :  { %5717 = vst.msk [vmem:[#allocation10] sm:$0xff] %vm5716_vm1, %v6535_v54 }
 0x604   :  { %5723 = vst.msk [vmem:[#allocation10] sm:$0xff] %vm5722_vm2, %v5720_v7 }
 0x605   :  { %5729 = vst.msk [vmem:[#allocation10] sm:$0xff] %vm5728_vm3, %v5726_v37 }
 0x606   :  { %5740 = dma.vmem_to_hbm [thread:$0]  %s5736_s6, 128, %s5738_s8, [#allocation4]  }
 0x607   :  { %6679 = dma.done.wait [#allocation4], 128  }
 0x608   :  { %6680 = vsyncadd [#allocation4], 4294967168 }
 0x609   :  { %5745 = vsyncpa [#allocation3], 1 }
 0x60a   :  { %5746 = vsyncpa [#allocation6], 1 }
 0x60b   :  { %5747 = vsyncpa [#allocation9], 1 }
 0x60c   :  { %5748 = vsyncpa [#allocation4], 1 }

</bundles_post_ra>
